<compile_context>
chip_gen: v7x
topology: tpu7x:2x2x1
jax: 0.10.0
libtpu: 0.0.40
codegen_flags: <defaults>
</compile_context>

<pallas_src>
import functools

import numpy as np
import jax
import jax.numpy as jnp
from jax.experimental import pallas as pl
from jax.experimental.pallas import tpu as pltpu


# ------------------------------ fused kernel --------------------------------

_PARAM_ORDER = (
    "e1_we", "e1_wo", "e1_b",
    "e2_we", "e2_wo", "e2_b",
    "e3_we", "e3_wo", "e3_b",
    "fc_w", "fc_b",
    "d1_w", "d1_b", "d2_w", "d2_b", "d3_w", "d3_b",
)


def _autoencoder_kernel(x_ref,
                        e1we_ref, e1wo_ref, e1b_ref,
                        e2we_ref, e2wo_ref, e2b_ref,
                        e3we_ref, e3wo_ref, e3b_ref,
                        fcw_ref, fcb_ref,
                        d1w_ref, d1b_ref, d2w_ref, d2b_ref, d3w_ref, d3b_ref,
                        o_ref):
    """Whole forward pass on a (rows, batch_tile) lane-packed activation layout."""
    f32 = jnp.float32

    def mm(w_ref, a):
        # bf16 x bf16 MXU matmul, f32 accumulation.
        return jnp.dot(w_ref[...], a.astype(w_ref.dtype), preferred_element_type=f32)

    def enc_layer(a, we_ref, wo_ref, b_ref):
        # Conv1d + bias + ReLU + MaxPool1d(2):
        # max(relu(ye + b), relu(yo + b)) == relu(max(ye, yo) + b).
        y = jnp.maximum(mm(we_ref, a), mm(wo_ref, a)) + b_ref[...]
        return jnp.maximum(y, 0.0)

    a = x_ref[...]                                      # (W, Bt), C_in = 1
    # ------------------------------ encoder ------------------------------
    a = enc_layer(a, e1we_ref, e1wo_ref, e1b_ref)       # (16*W/2, Bt)
    a = enc_layer(a, e2we_ref, e2wo_ref, e2b_ref)       # (32*W/4, Bt)
    h = enc_layer(a, e3we_ref, e3wo_ref, e3b_ref)       # (16*W/8, Bt) == flatten rows
    # --------------------- fused bottleneck (fc2 o fc1) -------------------
    d = mm(fcw_ref, h) + fcb_ref[...]                   # (16*W/8, Bt)
    # ------------------------------ decoder ------------------------------
    d = jnp.maximum(mm(d1w_ref, d) + d1b_ref[...], 0.0)  # (32*W/4, Bt)
    d = jnp.maximum(mm(d2w_ref, d) + d2b_ref[...], 0.0)  # (16*W/2, Bt)
    y = mm(d3w_ref, d) + d3b_ref[...]                    # (W, Bt)
    # sigmoid via EUP exp + EUP approx reciprocal (no f32 divide).
    o_ref[...] = pl.reciprocal(1.0 + jnp.exp(-y), approx=True).astype(o_ref.dtype)


# -------------------------- weight prep (one time) ---------------------------


def prepare_params(p, window_size=64, latent_dim=8, compute_dtype=jnp.bfloat16):
    """One-time host-side packing: torch layouts -> dense structural matmul matrices.

    Conv1d(stride=1,pad) + ReLU + MaxPool1d(2)  ->  two (C_out*L/2, C_in*L) matrices
    (even / odd pooling phase);  ConvTranspose1d(stride=2,pad,out_pad=1) -> one
    (C_out*2L, C_in*L) matrix;  fc1/fc2 fused into one (F, F) affine map.
    Rows are channel-major (c, pos), matching torch's .view() flatten order.
    """
    W = window_size
    assert W % 8 == 0
    F = 16 * (W // 8)
    assert p["fc1_w"].shape == (latent_dim, F)

    def conv_pool_mats(w, b, pad, L):
        w = np.asarray(w, np.float32)        # (C_out, C_in, K)
        b = np.asarray(b, np.float32)
        c_out, c_in, K = w.shape
        H = L // 2
        rows = np.arange(c_out)[:, None] * H
        cols = np.arange(c_in)[None, :] * L
        mats = []
        for phase in (0, 1):
            M = np.zeros((c_out * H, c_in * L), np.float32)
            for j in range(H):
                for k in range(K):
                    m = 2 * j + phase + k - pad
                    if 0 <= m < L:           # out-of-range taps == zero padding
                        M[rows + j, cols + m] = w[:, :, k]
            mats.append(M)
        return mats[0], mats[1], np.repeat(b, H)[:, None]

    def deconv_mat(wt, b, pad, L):
        wt = np.asarray(wt, np.float32)      # (C_in, C_out, K) torch ConvTranspose1d
        b = np.asarray(b, np.float32)
        c_in, c_out, K = wt.shape
        T = 2 * L                            # stride=2, output_padding=1
        rows = np.arange(c_out)[:, None] * T
        cols = np.arange(c_in)[None, :] * L
        D = np.zeros((c_out * T, c_in * L), np.float32)
        for t in range(T):
            for i in range(L):
                k = t - 2 * i + pad
                if 0 <= k < K:
                    D[rows + t, cols + i] = wt[:, :, k].T
        return D, np.repeat(b, T)[:, None]

    e1we, e1wo, e1b = conv_pool_mats(p["c1_w"], p["c1_b"], 2, W)
    e2we, e2wo, e2b = conv_pool_mats(p["c2_w"], p["c2_b"], 2, W // 2)
    e3we, e3wo, e3b = conv_pool_mats(p["c3_w"], p["c3_b"], 1, W // 4)

    # fc2 o fc1 fused offline (no nonlinearity in between).
    f1w = np.asarray(p["fc1_w"], np.float32)
    f1b = np.asarray(p["fc1_b"], np.float32)
    f2w = np.asarray(p["fc2_w"], np.float32)
    f2b = np.asarray(p["fc2_b"], np.float32)
    fcw = f2w @ f1w
    fcb = (f2w @ f1b + f2b)[:, None]

    d1w, d1b = deconv_mat(p["d1_w"], p["d1_b"], 1, W // 8)
    d2w, d2b = deconv_mat(p["d2_w"], p["d2_b"], 2, W // 4)
    d3w, d3b = deconv_mat(p["d3_w"], p["d3_b"], 2, W // 2)

    mat = lambda a: jnp.asarray(a, compute_dtype)   # MXU operands in bf16
    col = lambda a: jnp.asarray(a, jnp.float32)     # biases stay f32 (VPU adds)

    return {
        "e1_we": mat(e1we), "e1_wo": mat(e1wo), "e1_b": col(e1b),
        "e2_we": mat(e2we), "e2_wo": mat(e2wo), "e2_b": col(e2b),
        "e3_we": mat(e3we), "e3_wo": mat(e3wo), "e3_b": col(e3b),
        "fc_w": mat(fcw), "fc_b": col(fcb),
        "d1_w": mat(d1w), "d1_b": col(d1b),
        "d2_w": mat(d2w), "d2_b": col(d2b),
        "d3_w": mat(d3w), "d3_b": col(d3b),
    }


# ------------------------------ fused forward --------------------------------


def conv_autoencoder_forward(prepped, x, *, window_size=64, batch_tile=128):
    """Whole autoencoder in ONE pallas_call; batch packed into lanes, grid "parallel".

    `x` is (B, 1, W) NCL like PyTorch; the batch is zero-padded up to a multiple of
    `batch_tile` (128 lanes).  For best v7x utilization pick B so the grid length
    (padded_B // batch_tile) is even; 256-lane tiles (batch_tile=256) help v6e/v7x.
    """
    B = x.shape[0]
    assert x.shape == (B, 1, window_size)
    n_tiles = -(-B // batch_tile)
    Bp = n_tiles * batch_tile

    compute_dtype = prepped["e1_we"].dtype
    xt = jnp.transpose(x.reshape(B, window_size)).astype(compute_dtype)   # (W, B)
    if Bp != B:
        xt = jnp.pad(xt, ((0, 0), (0, Bp - B)))

    weights = [prepped[n] for n in _PARAM_ORDER]

    io_block = (window_size, batch_tile)
    x_spec = pl.BlockSpec(io_block, lambda i: (0, i))
    out_spec = pl.BlockSpec(io_block, lambda i: (0, i))

    def const_spec(a):   # whole weight resident in VMEM, constant block index
        return pl.BlockSpec(a.shape, lambda i: (0, 0))

    # Real FLOPs of the structural matmuls (no fake selection-matmul FLOPs).
    mat_names = [n for n in _PARAM_ORDER if n.endswith(("_we", "_wo", "_w"))]
    macs = sum(int(prepped[n].shape[0]) * int(prepped[n].shape[1]) for n in mat_names)
    bytes_accessed = (int(xt.size) * xt.dtype.itemsize
                      + Bp * window_size * 4
                      + sum(int(w.size) * w.dtype.itemsize for w in weights))

    out = pl.pallas_call(
        _autoencoder_kernel,
        out_shape=jax.ShapeDtypeStruct((window_size, Bp), jnp.float32),
        grid_spec=pltpu.PrefetchScalarGridSpec(
            num_scalar_prefetch=0,
            grid=(n_tiles,),
            in_specs=[x_spec] + [const_spec(w) for w in weights],
            out_specs=out_spec,
        ),
        compiler_params=pltpu.CompilerParams(
            dimension_semantics=("parallel",)),
        cost_estimate=pl.CostEstimate(
            flops=int(2 * Bp * macs),
            transcendentals=int(2 * Bp * window_size),
            bytes_accessed=int(bytes_accessed)),
    )(xt, *weights)

    return jnp.transpose(out)[:B].reshape(B, 1, window_size)


# ------------------------ params / reference / main --------------------------


def init_params(key, window_size=64, latent_dim=8):
    """Random parameters in the original PyTorch layouts."""
    flatten = window_size // 8 * 16
    ks = jax.random.split(key, 16)

    def w(k, shape, scale=0.1):
        return scale * jax.random.normal(k, shape, jnp.float32)

    return {
        # encoder Conv1d: (C_out, C_in, K)
        "c1_w": w(ks[0], (16, 1, 5)),   "c1_b": w(ks[1], (16,)),
        "c2_w": w(ks[2], (32, 16, 5)),  "c2_b": w(ks[3], (32,)),
        "c3_w": w(ks[4], (16, 32, 3)),  "c3_b": w(ks[5], (16,)),
        # Linear: (out, in)
        "fc1_w": w(ks[6], (latent_dim, flatten)), "fc1_b": w(ks[7], (latent_dim,)),
        "fc2_w": w(ks[8], (flatten, latent_dim)), "fc2_b": w(ks[9], (flatten,)),
        # decoder ConvTranspose1d: (C_in, C_out, K)
        "d1_w": w(ks[10], (16, 32, 3)), "d1_b": w(ks[11], (32,)),
        "d2_w": w(ks[12], (32, 16, 5)), "d2_b": w(ks[13], (16,)),
        "d3_w": w(ks[14], (16, 1, 5)),  "d3_b": w(ks[15], (1,)),
    }


def _reference_forward(p, x, window_size):
    """Pure-JAX (XLA) reference in the PyTorch formulation; one-time self-check only."""
    _mm = functools.partial(jnp.matmul, precision=jax.lax.Precision.HIGHEST)

    def im2col(xp, K):
        B, C, Lp = xp.shape
        L_out = Lp - K + 1
        cols = jnp.stack([xp[:, :, k:k + L_out] for k in range(K)], axis=-1)
        return jnp.transpose(cols, (0, 2, 1, 3)).reshape(B, L_out, C * K)

    def conv_pool(h, w, b, pad):
        _, C_in, _ = h.shape
        C_out, _, K = w.shape
        patches = im2col(jnp.pad(h, ((0, 0), (0, 0), (pad, pad))), K)
        wmat = jnp.transpose(w, (1, 2, 0)).reshape(C_in * K, C_out)
        y = jnp.maximum(_mm(patches, wmat) + b, 0.0)           # (B, L, C_out)
        y = jnp.maximum(y[:, 0::2, :], y[:, 1::2, :])
        return jnp.transpose(y, (0, 2, 1))

    def deconv(h, w_t, b, pad, act):
        B, C_in, L = h.shape
        _, C_out, K = w_t.shape
        up = jnp.zeros((B, C_in, (L - 1) * 2 + 1), h.dtype).at[:, :, ::2].set(h)
        xp = jnp.pad(up, ((0, 0), (0, 0), (K - 1 - pad, K - pad)))  # out_pad = 1
        w_conv = jnp.flip(jnp.transpose(w_t, (1, 0, 2)), axis=2)
        wmat = jnp.transpose(w_conv, (1, 2, 0)).reshape(C_in * K, C_out)
        y = _mm(im2col(xp, K), wmat) + b
        y = jnp.maximum(y, 0.0) if act == "relu" else jax.nn.sigmoid(y)
        return jnp.transpose(y, (0, 2, 1))

    B = x.shape[0]
    h = conv_pool(x, p["c1_w"], p["c1_b"], 2)
    h = conv_pool(h, p["c2_w"], p["c2_b"], 2)
    h = conv_pool(h, p["c3_w"], p["c3_b"], 1)
    z = _mm(h.reshape(B, -1), p["fc1_w"].T) + p["fc1_b"]
    f = _mm(z, p["fc2_w"].T) + p["fc2_b"]
    d = f.reshape(B, 16, window_size // 8)
    d = deconv(d, p["d1_w"], p["d1_b"], 1, "relu")
    d = deconv(d, p["d2_w"], p["d2_b"], 2, "relu")
    d = deconv(d, p["d3_w"], p["d3_b"], 2, "sigmoid")
    return d


if __name__ == "__main__":
    WINDOW, LATENT, BATCH = 64, 8, 4

    key = jax.random.PRNGKey(0)
    kx, kp = jax.random.split(key)
    x = jax.random.normal(kx, (BATCH, 1, WINDOW), jnp.float32)   # NCL, like PyTorch
    raw = init_params(kp, window_size=WINDOW, latent_dim=LATENT)
    prepped = prepare_params(raw, WINDOW, LATENT)   # one-time, host-side

    fwd = jax.jit(functools.partial(conv_autoencoder_forward,
                                    window_size=WINDOW, batch_tile=128))
    out = fwd(prepped, x)
    jax.block_until_ready(out)

    assert out.shape == (BATCH, 1, WINDOW), out.shape
    assert out.dtype == jnp.float32
    assert bool(jnp.all(jnp.isfinite(out)))
    # sigmoid range (tiny slack for the EUP approx reciprocal)
    assert bool(jnp.all((out >= 0.0) & (out <= 1.0 + 1e-2)))

    # numerical self-check against a plain-JAX reference of the PyTorch model
    # (bf16 MXU operands + approx reciprocal -> loose-ish tolerance).
    ref = _reference_forward(raw, x, WINDOW)
    err = float(jnp.max(jnp.abs(out - ref)))
    assert err < 3e-2, f"max abs error vs reference: {err}"

    print("KERNEL_OK")
</pallas_src>

<mosaic_0001>
module attributes {stable_mosaic.version = 11 : i64} {
  func.func @_autoencoder_kernel(%arg0: i32, %arg1: memref<64x128xbf16, #tpu.memory_space<vmem>>, %arg2: memref<512x64xbf16, #tpu.memory_space<vmem>>, %arg3: memref<512x64xbf16, #tpu.memory_space<vmem>>, %arg4: memref<512x1xf32, #tpu.memory_space<vmem>>, %arg5: memref<512x512xbf16, #tpu.memory_space<vmem>>, %arg6: memref<512x512xbf16, #tpu.memory_space<vmem>>, %arg7: memref<512x1xf32, #tpu.memory_space<vmem>>, %arg8: memref<128x512xbf16, #tpu.memory_space<vmem>>, %arg9: memref<128x512xbf16, #tpu.memory_space<vmem>>, %arg10: memref<128x1xf32, #tpu.memory_space<vmem>>, %arg11: memref<128x128xbf16, #tpu.memory_space<vmem>>, %arg12: memref<128x1xf32, #tpu.memory_space<vmem>>, %arg13: memref<512x128xbf16, #tpu.memory_space<vmem>>, %arg14: memref<512x1xf32, #tpu.memory_space<vmem>>, %arg15: memref<512x512xbf16, #tpu.memory_space<vmem>>, %arg16: memref<512x1xf32, #tpu.memory_space<vmem>>, %arg17: memref<64x512xbf16, #tpu.memory_space<vmem>>, %arg18: memref<64x1xf32, #tpu.memory_space<vmem>>, %arg19: memref<64x128xf32, #tpu.memory_space<vmem>>) attributes {dimension_semantics = [#tpu.dimension_semantics<parallel>], iteration_bounds = array<i64: 1>, scalar_prefetch = 0 : i64, scratch_operands = 0 : i64, tpu.core_type = #tpu.core_type<tc>, window_params = [{transform_indices = @transform_0, window_bounds = array<i64: 64, 128>}, {pipeline_mode = #tpu.pipeline_mode<synchronous>, transform_indices = @transform_1, window_bounds = array<i64: 512, 64>}, {pipeline_mode = #tpu.pipeline_mode<synchronous>, transform_indices = @transform_2, window_bounds = array<i64: 512, 64>}, {pipeline_mode = #tpu.pipeline_mode<synchronous>, transform_indices = @transform_3, window_bounds = array<i64: 512, 1>}, {pipeline_mode = #tpu.pipeline_mode<synchronous>, transform_indices = @transform_4, window_bounds = array<i64: 512, 512>}, {pipeline_mode = #tpu.pipeline_mode<synchronous>, transform_indices = @transform_5, window_bounds = array<i64: 512, 512>}, {pipeline_mode = #tpu.pipeline_mode<synchronous>, transform_indices = @transform_6, window_bounds = array<i64: 512, 1>}, {pipeline_mode = #tpu.pipeline_mode<synchronous>, transform_indices = @transform_7, window_bounds = array<i64: 128, 512>}, {pipeline_mode = #tpu.pipeline_mode<synchronous>, transform_indices = @transform_8, window_bounds = array<i64: 128, 512>}, {pipeline_mode = #tpu.pipeline_mode<synchronous>, transform_indices = @transform_9, window_bounds = array<i64: 128, 1>}, {pipeline_mode = #tpu.pipeline_mode<synchronous>, transform_indices = @transform_10, window_bounds = array<i64: 128, 128>}, {pipeline_mode = #tpu.pipeline_mode<synchronous>, transform_indices = @transform_11, window_bounds = array<i64: 128, 1>}, {pipeline_mode = #tpu.pipeline_mode<synchronous>, transform_indices = @transform_12, window_bounds = array<i64: 512, 128>}, {pipeline_mode = #tpu.pipeline_mode<synchronous>, transform_indices = @transform_13, window_bounds = array<i64: 512, 1>}, {pipeline_mode = #tpu.pipeline_mode<synchronous>, transform_indices = @transform_14, window_bounds = array<i64: 512, 512>}, {pipeline_mode = #tpu.pipeline_mode<synchronous>, transform_indices = @transform_15, window_bounds = array<i64: 512, 1>}, {pipeline_mode = #tpu.pipeline_mode<synchronous>, transform_indices = @transform_16, window_bounds = array<i64: 64, 512>}, {pipeline_mode = #tpu.pipeline_mode<synchronous>, transform_indices = @transform_17, window_bounds = array<i64: 64, 1>}, {transform_indices = @transform_18, window_bounds = array<i64: 64, 128>}]} {
    %c0 = arith.constant 0 : index
    %c0_0 = arith.constant 0 : index
    %0 = vector.load %arg1[%c0, %c0_0] : memref<64x128xbf16, #tpu.memory_space<vmem>>, vector<64x128xbf16>
    %c0_1 = arith.constant 0 : index
    %c0_2 = arith.constant 0 : index
    %1 = vector.load %arg2[%c0_1, %c0_2] : memref<512x64xbf16, #tpu.memory_space<vmem>>, vector<512x64xbf16>
    %cst = arith.constant dense<0.000000e+00> : vector<512x128xf32>
    %2 = tpu.matmul %1, %0, %cst {dimension_numbers = #tpu.dot_dimension_numbers<[1], [0], [0], [1], [0, 0, 1, 1], [], []>} : vector<512x64xbf16>, vector<64x128xbf16>, vector<512x128xf32> -> vector<512x128xf32>
    %c0_3 = arith.constant 0 : index
    %c0_4 = arith.constant 0 : index
    %3 = vector.load %arg3[%c0_3, %c0_4] : memref<512x64xbf16, #tpu.memory_space<vmem>>, vector<512x64xbf16>
    %cst_5 = arith.constant dense<0.000000e+00> : vector<512x128xf32>
    %4 = tpu.matmul %3, %0, %cst_5 {dimension_numbers = #tpu.dot_dimension_numbers<[1], [0], [0], [1], [0, 0, 1, 1], [], []>} : vector<512x64xbf16>, vector<64x128xbf16>, vector<512x128xf32> -> vector<512x128xf32>
    %5 = arith.maximumf %2, %4 : vector<512x128xf32>
    %c0_6 = arith.constant 0 : index
    %c0_7 = arith.constant 0 : index
    %6 = vector.load %arg4[%c0_6, %c0_7] : memref<512x1xf32, #tpu.memory_space<vmem>>, vector<512x1xf32>
    %7 = vector.broadcast %6 : vector<512x1xf32> to vector<512x128xf32>
    %8 = arith.addf %5, %7 : vector<512x128xf32>
    %cst_8 = arith.constant 0.000000e+00 : f32
    %9 = vector.broadcast %cst_8 : f32 to vector<512x128xf32>
    %10 = arith.maximumf %8, %9 : vector<512x128xf32>
    %c0_9 = arith.constant 0 : index
    %c0_10 = arith.constant 0 : index
    %11 = vector.load %arg5[%c0_9, %c0_10] : memref<512x512xbf16, #tpu.memory_space<vmem>>, vector<512x512xbf16>
    %12 = arith.truncf %10 : vector<512x128xf32> to vector<512x128xbf16>
    %cst_11 = arith.constant dense<0.000000e+00> : vector<512x128xf32>
    %13 = tpu.matmul %11, %12, %cst_11 {dimension_numbers = #tpu.dot_dimension_numbers<[1], [0], [0], [1], [0, 0, 1, 1], [], []>} : vector<512x512xbf16>, vector<512x128xbf16>, vector<512x128xf32> -> vector<512x128xf32>
    %c0_12 = arith.constant 0 : index
    %c0_13 = arith.constant 0 : index
    %14 = vector.load %arg6[%c0_12, %c0_13] : memref<512x512xbf16, #tpu.memory_space<vmem>>, vector<512x512xbf16>
    %15 = arith.truncf %10 : vector<512x128xf32> to vector<512x128xbf16>
    %cst_14 = arith.constant dense<0.000000e+00> : vector<512x128xf32>
    %16 = tpu.matmul %14, %15, %cst_14 {dimension_numbers = #tpu.dot_dimension_numbers<[1], [0], [0], [1], [0, 0, 1, 1], [], []>} : vector<512x512xbf16>, vector<512x128xbf16>, vector<512x128xf32> -> vector<512x128xf32>
    %17 = arith.maximumf %13, %16 : vector<512x128xf32>
    %c0_15 = arith.constant 0 : index
    %c0_16 = arith.constant 0 : index
    %18 = vector.load %arg7[%c0_15, %c0_16] : memref<512x1xf32, #tpu.memory_space<vmem>>, vector<512x1xf32>
    %19 = vector.broadcast %18 : vector<512x1xf32> to vector<512x128xf32>
    %20 = arith.addf %17, %19 : vector<512x128xf32>
    %cst_17 = arith.constant 0.000000e+00 : f32
    %21 = vector.broadcast %cst_17 : f32 to vector<512x128xf32>
    %22 = arith.maximumf %20, %21 : vector<512x128xf32>
    %c0_18 = arith.constant 0 : index
    %c0_19 = arith.constant 0 : index
    %23 = vector.load %arg8[%c0_18, %c0_19] : memref<128x512xbf16, #tpu.memory_space<vmem>>, vector<128x512xbf16>
    %24 = arith.truncf %22 : vector<512x128xf32> to vector<512x128xbf16>
    %cst_20 = arith.constant dense<0.000000e+00> : vector<128x128xf32>
    %25 = tpu.matmul %23, %24, %cst_20 {dimension_numbers = #tpu.dot_dimension_numbers<[1], [0], [0], [1], [0, 0, 1, 1], [], []>} : vector<128x512xbf16>, vector<512x128xbf16>, vector<128x128xf32> -> vector<128x128xf32>
    %c0_21 = arith.constant 0 : index
    %c0_22 = arith.constant 0 : index
    %26 = vector.load %arg9[%c0_21, %c0_22] : memref<128x512xbf16, #tpu.memory_space<vmem>>, vector<128x512xbf16>
    %27 = arith.truncf %22 : vector<512x128xf32> to vector<512x128xbf16>
    %cst_23 = arith.constant dense<0.000000e+00> : vector<128x128xf32>
    %28 = tpu.matmul %26, %27, %cst_23 {dimension_numbers = #tpu.dot_dimension_numbers<[1], [0], [0], [1], [0, 0, 1, 1], [], []>} : vector<128x512xbf16>, vector<512x128xbf16>, vector<128x128xf32> -> vector<128x128xf32>
    %29 = arith.maximumf %25, %28 : vector<128x128xf32>
    %c0_24 = arith.constant 0 : index
    %c0_25 = arith.constant 0 : index
    %30 = vector.load %arg10[%c0_24, %c0_25] : memref<128x1xf32, #tpu.memory_space<vmem>>, vector<128x1xf32>
    %31 = vector.broadcast %30 : vector<128x1xf32> to vector<128x128xf32>
    %32 = arith.addf %29, %31 : vector<128x128xf32>
    %cst_26 = arith.constant 0.000000e+00 : f32
    %33 = vector.broadcast %cst_26 : f32 to vector<128x128xf32>
    %34 = arith.maximumf %32, %33 : vector<128x128xf32>
    %c0_27 = arith.constant 0 : index
    %c0_28 = arith.constant 0 : index
    %35 = vector.load %arg11[%c0_27, %c0_28] : memref<128x128xbf16, #tpu.memory_space<vmem>>, vector<128x128xbf16>
    %36 = arith.truncf %34 : vector<128x128xf32> to vector<128x128xbf16>
    %cst_29 = arith.constant dense<0.000000e+00> : vector<128x128xf32>
    %37 = tpu.matmul %35, %36, %cst_29 {dimension_numbers = #tpu.dot_dimension_numbers<[1], [0], [0], [1], [0, 0, 1, 1], [], []>} : vector<128x128xbf16>, vector<128x128xbf16>, vector<128x128xf32> -> vector<128x128xf32>
    %c0_30 = arith.constant 0 : index
    %c0_31 = arith.constant 0 : index
    %38 = vector.load %arg12[%c0_30, %c0_31] : memref<128x1xf32, #tpu.memory_space<vmem>>, vector<128x1xf32>
    %39 = vector.broadcast %38 : vector<128x1xf32> to vector<128x128xf32>
    %40 = arith.addf %37, %39 : vector<128x128xf32>
    %c0_32 = arith.constant 0 : index
    %c0_33 = arith.constant 0 : index
    %41 = vector.load %arg13[%c0_32, %c0_33] : memref<512x128xbf16, #tpu.memory_space<vmem>>, vector<512x128xbf16>
    %42 = arith.truncf %40 : vector<128x128xf32> to vector<128x128xbf16>
    %cst_34 = arith.constant dense<0.000000e+00> : vector<512x128xf32>
    %43 = tpu.matmul %41, %42, %cst_34 {dimension_numbers = #tpu.dot_dimension_numbers<[1], [0], [0], [1], [0, 0, 1, 1], [], []>} : vector<512x128xbf16>, vector<128x128xbf16>, vector<512x128xf32> -> vector<512x128xf32>
    %c0_35 = arith.constant 0 : index
    %c0_36 = arith.constant 0 : index
    %44 = vector.load %arg14[%c0_35, %c0_36] : memref<512x1xf32, #tpu.memory_space<vmem>>, vector<512x1xf32>
    %45 = vector.broadcast %44 : vector<512x1xf32> to vector<512x128xf32>
    %46 = arith.addf %43, %45 : vector<512x128xf32>
    %cst_37 = arith.constant 0.000000e+00 : f32
    %47 = vector.broadcast %cst_37 : f32 to vector<512x128xf32>
    %48 = arith.maximumf %46, %47 : vector<512x128xf32>
    %c0_38 = arith.constant 0 : index
    %c0_39 = arith.constant 0 : index
    %49 = vector.load %arg15[%c0_38, %c0_39] : memref<512x512xbf16, #tpu.memory_space<vmem>>, vector<512x512xbf16>
    %50 = arith.truncf %48 : vector<512x128xf32> to vector<512x128xbf16>
    %cst_40 = arith.constant dense<0.000000e+00> : vector<512x128xf32>
    %51 = tpu.matmul %49, %50, %cst_40 {dimension_numbers = #tpu.dot_dimension_numbers<[1], [0], [0], [1], [0, 0, 1, 1], [], []>} : vector<512x512xbf16>, vector<512x128xbf16>, vector<512x128xf32> -> vector<512x128xf32>
    %c0_41 = arith.constant 0 : index
    %c0_42 = arith.constant 0 : index
    %52 = vector.load %arg16[%c0_41, %c0_42] : memref<512x1xf32, #tpu.memory_space<vmem>>, vector<512x1xf32>
    %53 = vector.broadcast %52 : vector<512x1xf32> to vector<512x128xf32>
    %54 = arith.addf %51, %53 : vector<512x128xf32>
    %cst_43 = arith.constant 0.000000e+00 : f32
    %55 = vector.broadcast %cst_43 : f32 to vector<512x128xf32>
    %56 = arith.maximumf %54, %55 : vector<512x128xf32>
    %c0_44 = arith.constant 0 : index
    %c0_45 = arith.constant 0 : index
    %57 = vector.load %arg17[%c0_44, %c0_45] : memref<64x512xbf16, #tpu.memory_space<vmem>>, vector<64x512xbf16>
    %58 = arith.truncf %56 : vector<512x128xf32> to vector<512x128xbf16>
    %cst_46 = arith.constant dense<0.000000e+00> : vector<64x128xf32>
    %59 = tpu.matmul %57, %58, %cst_46 {dimension_numbers = #tpu.dot_dimension_numbers<[1], [0], [0], [1], [0, 0, 1, 1], [], []>} : vector<64x512xbf16>, vector<512x128xbf16>, vector<64x128xf32> -> vector<64x128xf32>
    %c0_47 = arith.constant 0 : index
    %c0_48 = arith.constant 0 : index
    %60 = vector.load %arg18[%c0_47, %c0_48] : memref<64x1xf32, #tpu.memory_space<vmem>>, vector<64x1xf32>
    %61 = vector.broadcast %60 : vector<64x1xf32> to vector<64x128xf32>
    %62 = arith.addf %59, %61 : vector<64x128xf32>
    %cst_49 = arith.constant 0.000000e+00 : f32
    %63 = vector.broadcast %cst_49 : f32 to vector<64x128xf32>
    %64 = arith.subf %63, %62 : vector<64x128xf32>
    %65 = math.exp %64 : vector<64x128xf32>
    %cst_50 = arith.constant 1.000000e+00 : f32
    %66 = vector.broadcast %cst_50 : f32 to vector<64x128xf32>
    %67 = arith.addf %66, %65 : vector<64x128xf32>
    %68 = tpu.reciprocal %67 {approx = true} : vector<64x128xf32> -> vector<64x128xf32>
    %c0_51 = arith.constant 0 : index
    %c0_52 = arith.constant 0 : index
    %69 = vector.load %arg19[%c0_51, %c0_52] : memref<64x128xf32, #tpu.memory_space<vmem>>, vector<64x128xf32>
    tpu.vector_store %arg19[%c0_51, %c0_52], %68 {strides = array<i32>} : memref<64x128xf32, #tpu.memory_space<vmem>>, vector<64x128xf32>,
    return
  }
  func.func @transform_0(%arg0: i32) -> (i32, i32) {
    %c0_i32 = arith.constant 0 : i32
    %c0_i32_0 = arith.constant 0 : i32
    return %c0_i32, %arg0 : i32, i32
  }
  func.func @transform_1(%arg0: i32) -> (i32, i32) {
    %c0_i32 = arith.constant 0 : i32
    %c0_i32_0 = arith.constant 0 : i32
    %c0_i32_1 = arith.constant 0 : i32
    return %c0_i32, %c0_i32_0 : i32, i32
  }
  func.func @transform_2(%arg0: i32) -> (i32, i32) {
    %c0_i32 = arith.constant 0 : i32
    %c0_i32_0 = arith.constant 0 : i32
    %c0_i32_1 = arith.constant 0 : i32
    return %c0_i32, %c0_i32_0 : i32, i32
  }
  func.func @transform_3(%arg0: i32) -> (i32, i32) {
    %c0_i32 = arith.constant 0 : i32
    %c0_i32_0 = arith.constant 0 : i32
    %c0_i32_1 = arith.constant 0 : i32
    return %c0_i32, %c0_i32_0 : i32, i32
  }
  func.func @transform_4(%arg0: i32) -> (i32, i32) {
    %c0_i32 = arith.constant 0 : i32
    %c0_i32_0 = arith.constant 0 : i32
    %c0_i32_1 = arith.constant 0 : i32
    return %c0_i32, %c0_i32_0 : i32, i32
  }
  func.func @transform_5(%arg0: i32) -> (i32, i32) {
    %c0_i32 = arith.constant 0 : i32
    %c0_i32_0 = arith.constant 0 : i32
    %c0_i32_1 = arith.constant 0 : i32
    return %c0_i32, %c0_i32_0 : i32, i32
  }
  func.func @transform_6(%arg0: i32) -> (i32, i32) {
    %c0_i32 = arith.constant 0 : i32
    %c0_i32_0 = arith.constant 0 : i32
    %c0_i32_1 = arith.constant 0 : i32
    return %c0_i32, %c0_i32_0 : i32, i32
  }
  func.func @transform_7(%arg0: i32) -> (i32, i32) {
    %c0_i32 = arith.constant 0 : i32
    %c0_i32_0 = arith.constant 0 : i32
    %c0_i32_1 = arith.constant 0 : i32
    return %c0_i32, %c0_i32_0 : i32, i32
  }
  func.func @transform_8(%arg0: i32) -> (i32, i32) {
    %c0_i32 = arith.constant 0 : i32
    %c0_i32_0 = arith.constant 0 : i32
    %c0_i32_1 = arith.constant 0 : i32
    return %c0_i32, %c0_i32_0 : i32, i32
  }
  func.func @transform_9(%arg0: i32) -> (i32, i32) {
    %c0_i32 = arith.constant 0 : i32
    %c0_i32_0 = arith.constant 0 : i32
    %c0_i32_1 = arith.constant 0 : i32
    return %c0_i32, %c0_i32_0 : i32, i32
  }
  func.func @transform_10(%arg0: i32) -> (i32, i32) {
    %c0_i32 = arith.constant 0 : i32
    %c0_i32_0 = arith.constant 0 : i32
    %c0_i32_1 = arith.constant 0 : i32
    return %c0_i32, %c0_i32_0 : i32, i32
  }
  func.func @transform_11(%arg0: i32) -> (i32, i32) {
    %c0_i32 = arith.constant 0 : i32
    %c0_i32_0 = arith.constant 0 : i32
    %c0_i32_1 = arith.constant 0 : i32
    return %c0_i32, %c0_i32_0 : i32, i32
  }
  func.func @transform_12(%arg0: i32) -> (i32, i32) {
    %c0_i32 = arith.constant 0 : i32
    %c0_i32_0 = arith.constant 0 : i32
    %c0_i32_1 = arith.constant 0 : i32
    return %c0_i32, %c0_i32_0 : i32, i32
  }
  func.func @transform_13(%arg0: i32) -> (i32, i32) {
    %c0_i32 = arith.constant 0 : i32
    %c0_i32_0 = arith.constant 0 : i32
    %c0_i32_1 = arith.constant 0 : i32
    return %c0_i32, %c0_i32_0 : i32, i32
  }
  func.func @transform_14(%arg0: i32) -> (i32, i32) {
    %c0_i32 = arith.constant 0 : i32
    %c0_i32_0 = arith.constant 0 : i32
    %c0_i32_1 = arith.constant 0 : i32
    return %c0_i32, %c0_i32_0 : i32, i32
  }
  func.func @transform_15(%arg0: i32) -> (i32, i32) {
    %c0_i32 = arith.constant 0 : i32
    %c0_i32_0 = arith.constant 0 : i32
    %c0_i32_1 = arith.constant 0 : i32
    return %c0_i32, %c0_i32_0 : i32, i32
  }
  func.func @transform_16(%arg0: i32) -> (i32, i32) {
    %c0_i32 = arith.constant 0 : i32
    %c0_i32_0 = arith.constant 0 : i32
    %c0_i32_1 = arith.constant 0 : i32
    return %c0_i32, %c0_i32_0 : i32, i32
  }
  func.func @transform_17(%arg0: i32) -> (i32, i32) {
    %c0_i32 = arith.constant 0 : i32
    %c0_i32_0 = arith.constant 0 : i32
    %c0_i32_1 = arith.constant 0 : i32
    return %c0_i32, %c0_i32_0 : i32, i32
  }
  func.func @transform_18(%arg0: i32) -> (i32, i32) {
    %c0_i32 = arith.constant 0 : i32
    %c0_i32_0 = arith.constant 0 : i32
    return %c0_i32, %arg0 : i32, i32
  }
}

</mosaic_0001>

<bundles_post_ra>
// kernel: conv_autoencoder_forward.1
= control target key start
LH: loop header
LB: loop body
LE: loop exit
PB: predicated region body
PF: predicated region fallthrough
CT: control target
= control target key end

     0   :  { %s16507_s0 = inlined_call_operand.vmem [shape: bf16[64,128], index: 0, kind: input, shape index: {}]   ;;  %s16508_s1 = inlined_call_operand.vmem [shape: bf16[512,64], index: 1, kind: input, shape index: {}]   ;;  %s16509_s2 = inlined_call_operand.vmem [shape: bf16[512,64], index: 2, kind: input, shape index: {}]   ;;  %s16510_s3 = inlined_call_operand.vmem [shape: f32[512,1], index: 3, kind: input, shape index: {}]   ;;  %s16511_s4 = inlined_call_operand.vmem [shape: bf16[512,512], index: 4, kind: input, shape index: {}]   ;;  %s16512_s5 = inlined_call_operand.vmem [shape: bf16[512,512], index: 5, kind: input, shape index: {}]   ;;  %s16513_s6 = inlined_call_operand.vmem [shape: f32[512,1], index: 6, kind: input, shape index: {}]   ;;  %s16514_s7 = inlined_call_operand.hbm [shape: bf16[128,512], index: 7, kind: input, shape index: {}]   ;;  %s16515_s8 = inlined_call_operand.hbm [shape: bf16[128,512], index: 8, kind: input, shape index: {}]   ;;  %s16516_s9 = inlined_call_operand.vmem [shape: f32[128,1], index: 9, kind: input, shape index: {}]   ;;  %s16517_s10 = inlined_call_operand.vmem [shape: bf16[128,128], index: 10, kind: input, shape index: {}]   ;;  %s16518_s11 = inlined_call_operand.vmem [shape: f32[128,1], index: 11, kind: input, shape index: {}]   ;;  %s16519_s12 = inlined_call_operand.hbm [shape: bf16[512,128], index: 12, kind: input, shape index: {}]   ;;  %s16520_s13 = inlined_call_operand.vmem [shape: f32[512,1], index: 13, kind: input, shape index: {}]   ;;  %s16521_s14 = inlined_call_operand.vmem [shape: bf16[512,512], index: 14, kind: input, shape index: {}]   ;;  %s16522_s15 = inlined_call_operand.vmem [shape: f32[512,1], index: 15, kind: input, shape index: {}]   ;;  %s16523_s16 = inlined_call_operand.vmem [shape: bf16[64,512], index: 16, kind: input, shape index: {}]   ;;  %s16524_s17 = inlined_call_operand.vmem [shape: f32[64,1], index: 17, kind: input, shape index: {}]   ;;  %s16525_s18 = inlined_call_operand.vmem [shape: f32[64,128], index: 18, kind: output, shape index: {}]  }
   0x1   :  { %16532 = sst [smem:[#allocation157_spill]] %s16507_s0 }
   0x2   :  { %16533 = sst [smem:[#allocation158_spill]] %s16508_s1 }
   0x3   :  { %16534 = sst [smem:[#allocation159_spill]] %s16509_s2 }
   0x4   :  { %23 = vsyncpa [#allocation3], 0 }
   0x5   :  { %24 = vsyncpa [#allocation5], 0  ;;  %s12332_s27 = smov [#allocation4]   ;;  %s12333_s29 = smov [#allocation2]  }
   0x6   :  { %s56_s28 = sshll.u32 %s12332_s27, 4  ;;  %s44_s30 = sshll.u32 %s12333_s29, 4  ;;  %s57_s28 = int_to_ptr.vmem [resolvable:$true] %s56_s28  ;;  %s12435_s30 = int_to_ptr.vmem [resolvable:$true] %s44_s30 }
   0x7   :  { %s12262_s1 = scalar_lea.hbm %s16515_s8, 4096 }
   0x8   :  { %p12263_p0 = scmp.ne.s32.totalorder %s16515_s8, %s12262_s1  ;;  %p12266_p1 = scmp.lt.u32.totalorder %s12262_s1, %s16515_s8 }
   0xa   :  { %p12268_p2 = pnand %p12266_p1, %p12263_p0 }
   0xc   :  { %12271 = shalt.err (!%p12268_p2)
}
   0xd   :  { %s12272_s23 = scalar_lea.vmem %s57_s28, 4096  ;;  %p12277_p4 = scmp.lt.s32.totalorder %s57_s28, %s57_s28 }
   0xe   :  { %p12273_p3 = scmp.ne.s32.totalorder %s57_s28, %s12272_s23  ;;  %p12278_p5 = scmp.lt.s32.totalorder %s12272_s23, %s12272_s23 }
  0x10   :  { %p12279_p6 = por %p12278_p5, %p12277_p4 }
  0x12   :  { %p12280_p7 = pnand %p12279_p6, %p12273_p3 }
  0x14   :  { %12283 = shalt.err (!%p12280_p7)
}
  0x15   :  { %s12334_s24 = smov 256   ;;  %s12335_s25 = smov 16  }
  0x16   :  { %62 = dma.hbm_to_vmem [thread:$0]  %s16515_s8, 4096, %s57_s28, [#allocation5], %s12334_s24, %s12334_s24, %s12335_s25  }
  0x17   :  { %s12284_s19 = scalar_lea.hbm %s16514_s7, 4096 }
  0x18   :  { %p12285_p8 = scmp.ne.s32.totalorder %s16514_s7, %s12284_s19  ;;  %p12288_p9 = scmp.lt.u32.totalorder %s12284_s19, %s16514_s7 }
  0x1a   :  { %p12290_p10 = pnand %p12288_p9, %p12285_p8 }
  0x1c   :  { %12293 = shalt.err (!%p12290_p10)
}
  0x1d   :  { %s12294_s2 = scalar_lea.vmem %s12435_s30, 4096  ;;  %p12299_p12 = scmp.lt.s32.totalorder %s12435_s30, %s12435_s30 }
  0x1e   :  { %p12295_p11 = scmp.ne.s32.totalorder %s12435_s30, %s12294_s2  ;;  %p12300_p13 = scmp.lt.s32.totalorder %s12294_s2, %s12294_s2 }
  0x20   :  { %p12301_p0 = por %p12300_p13, %p12299_p12 }
  0x22   :  { %p12302_p1 = pnand %p12301_p0, %p12295_p11 }
  0x24   :  { %12305 = shalt.err (!%p12302_p1)
}
  0x25   :  { %50 = dma.hbm_to_vmem [thread:$0]  %s16514_s7, 4096, %s12435_s30, [#allocation3], %s12334_s24, %s12334_s24, %s12335_s25  }
  0x26   :  { %s12336_s23 = smov [#allocation6]   ;;  %s12306_s0 = scalar_lea.hbm %s16519_s12, 4096 }
  0x27   :  { %s74_s26 = sshll.u32 %s12336_s23, 4  ;;  %p12307_p2 = scmp.ne.s32.totalorder %s16519_s12, %s12306_s0  ;;  %s75_s26 = int_to_ptr.vmem [resolvable:$true] %s74_s26 }
  0x28   :  { %p12310_p3 = scmp.lt.u32.totalorder %s12306_s0, %s16519_s12 }
  0x2a   :  { %p12312_p4 = pnand %p12310_p3, %p12307_p2 }
  0x2c   :  { %12315 = shalt.err (!%p12312_p4)
}
  0x2d   :  { %s12316_s22 = scalar_lea.vmem %s75_s26, 4096  ;;  %p12321_p6 = scmp.lt.s32.totalorder %s75_s26, %s75_s26 }
  0x2e   :  { %p12317_p5 = scmp.ne.s32.totalorder %s75_s26, %s12316_s22  ;;  %p12322_p7 = scmp.lt.s32.totalorder %s12316_s22, %s12316_s22 }
  0x30   :  { %p12323_p8 = por %p12322_p7, %p12321_p6 }
  0x32   :  { %p12324_p9 = pnand %p12323_p8, %p12317_p5 }
  0x34   :  { %12327 = shalt.err (!%p12324_p9)
}
  0x35   :  { %s12337_s7 = smov 64   ;;  %s12338_s30 = smov 4  }
  0x36   :  { %80 = dma.hbm_to_vmem [thread:$0]  %s16519_s12, 4096, %s75_s26, [#allocation5], %s12337_s7, %s12337_s7, %s12338_s30  }
  0x37   :  { %12328 = dma.done.wait [#allocation3], 4096  }
  0x38   :  { %12329 = vsyncadd [#allocation3], 4294963200 }
  0x39   :  { %12330 = dma.done.wait [#allocation5], 8192  }
  0x3a   :  { %12331 = vsyncadd [#allocation5], 4294959104  ;;  %v16529_v0 = vmov 0   ;;  %v1418_v1 = vld [vmem:[%s16510_s3 + $0x10] sm:$0xff]  ;;  %v1416_v2 = vld [vmem:[%s16510_s3] sm:$0xff]  ;;  %s16535_s27 = sld [smem:[#allocation157_spill]] }
  0x3b   :  { %11425 = vset.pattern.permute.xlu1 %v16529_v0  ;;  %11424 = vset.pattern.permute.xlu0 %v16529_v0  ;;  %v1419_v4 = vld [vmem:[%s16510_s3 + $0x18] sm:$0xff]  ;;  %v1417_v5 = vld [vmem:[%s16510_s3 + $0x8] sm:$0xff]  ;;  %v1420_v8 = vld [vmem:[%s16510_s3 + $0x20] sm:$0xff]  ;;  %s16536_s0 = sld [smem:[#allocation158_spill]]  ;;  %vm357_vm0 = vcmask 523264   ;;  %s16537_s20 = sld [smem:[#allocation159_spill]] }
  0x3c   :  { %1492 = vperm.xlu1 %11425, %v1418_v1   ;;  %1482 = vperm.xlu0 %11424, %v1416_v2   ;;  %v1421_v7 = vld [vmem:[%s16510_s3 + $0x28] sm:$0xff]  ;;  %v1423_v10 = vld [vmem:[%s16510_s3 + $0x38] sm:$0xff]  ;;  %v1422_v11 = vld [vmem:[%s16510_s3 + $0x30] sm:$0xff] }
  0x3d   :  { %v1425_v15 = vld [vmem:[%s16510_s3 + $0x48] sm:$0xff]  ;;  %v1424_v16 = vld [vmem:[%s16510_s3 + $0x40] sm:$0xff]  ;;  %v1427_v21 = vld [vmem:[%s16510_s3 + $0x58] sm:$0xff] }
  0x3e   :  { %v1426_v22 = vld [vmem:[%s16510_s3 + $0x50] sm:$0xff]  ;;  %v1429_v23 = vld [vmem:[%s16510_s3 + $0x68] sm:$0xff]  ;;  %v1428_v24 = vld [vmem:[%s16510_s3 + $0x60] sm:$0xff] }
  0x3f   :  { %v1431_v29 = vld [vmem:[%s16510_s3 + $0x78] sm:$0xff]  ;;  %v1430_v30 = vld [vmem:[%s16510_s3 + $0x70] sm:$0xff]  ;;  %v1433_v31 = vld [vmem:[%s16510_s3 + $0x88] sm:$0xff] }
  0x40   :  { %v11426_v3 = vld [vmem:[%s16535_s27] sm:$0xff]   ;;  %v11427_v6 = vld [vmem:[%s16535_s27 + $0x8] sm:$0xff]   ;;  %1497 = vperm.xlu1 %11425, %v1419_v4   ;;  %1487 = vperm.xlu0 %11424, %v1417_v5   ;;  %v11428_v9 = vld [vmem:[%s16535_s27 + $0x10] sm:$0xff]  }
  0x41   :  { %10728 = vmatprep.subr.bf16.mxu0 %v11426_v3  ;;  %10800 = vmatprep.subr.bf16.mxu1 %v11426_v3  ;;  %v11430_v12 = vld [vmem:[%s16536_s0] sm:$0xff]   ;;  %v11429_v14 = vld [vmem:[%s16535_s27 + $0x18] sm:$0xff]   ;;  %v11432_v17 = vld [vmem:[%s16536_s0 + $0x8] sm:$0xff]  }
  0x42   :  { %10729 = vmatpush3.bf16.msra.mxu0 %v11426_v3  ;;  %10801 = vmatpush3.bf16.msra.mxu1 %v11426_v3  ;;  %v11431_v13 = vld [vmem:[%s16537_s20] sm:$0xff]   ;;  %v11433_v18 = vld [vmem:[%s16537_s20 + $0x8] sm:$0xff]   ;;  %v11434_v19 = vld [vmem:[%s16536_s0 + $0x10] sm:$0xff]  }
  0x43   :  { %10730 = vmatprep.subr.bf16.mxu0 %v11427_v6  ;;  %10802 = vmatprep.subr.bf16.mxu1 %v11427_v6  ;;  %v11435_v20 = vld [vmem:[%s16537_s20 + $0x10] sm:$0xff]   ;;  %v11436_v25 = vld [vmem:[%s16536_s0 + $0x18] sm:$0xff]   ;;  %v11438_v27 = vld [vmem:[%s16536_s0 + $0x20] sm:$0xff]  }
  0x44   :  { %1507 = vperm.xlu1 %11425, %v1421_v7   ;;  %1502 = vperm.xlu0 %11424, %v1420_v8   ;;  %v11437_v26 = vld [vmem:[%s16537_s20 + $0x18] sm:$0xff]   ;;  %v11439_v28 = vld [vmem:[%s16537_s20 + $0x20] sm:$0xff]   ;;  %v11440_v33 = vld [vmem:[%s16536_s0 + $0x28] sm:$0xff]  }
  0x45   :  { %10736 = vmatprep.mubr.msk.bf16.mxu0 %vm357_vm0, %v11430_v12  ;;  %10808 = vmatprep.mubr.msk.bf16.mxu1 %vm357_vm0, %v11431_v13  ;;  %v1432_v32 = vld [vmem:[%s16510_s3 + $0x80] sm:$0xff]  ;;  %v11441_v34 = vld [vmem:[%s16537_s20 + $0x28] sm:$0xff]   ;;  %v11442_v35 = vld [vmem:[%s16536_s0 + $0x30] sm:$0xff]  }
  0x46   :  { %10731 = vmatpush3.bf16.msra.mxu0 %v11427_v6  ;;  %10803 = vmatpush3.bf16.msra.mxu1 %v11427_v6  ;;  %v11443_v36 = vld [vmem:[%s16537_s20 + $0x30] sm:$0xff]   ;;  %v1435_v37 = vld [vmem:[%s16510_s3 + $0x98] sm:$0xff]  ;;  %v1437_v39 = vld [vmem:[%s16510_s3 + $0xa8] sm:$0xff] }
  0x47   :  { %10732 = vmatprep.subr.bf16.mxu0 %v11428_v9  ;;  %10804 = vmatprep.subr.bf16.mxu1 %v11428_v9  ;;  %v1434_v38 = vld [vmem:[%s16510_s3 + $0x90] sm:$0xff]  ;;  %v1436_v40 = vld [vmem:[%s16510_s3 + $0xa0] sm:$0xff]  ;;  %v11444_v41 = vld [vmem:[%s16536_s0 + $0x38] sm:$0xff]  }
  0x48   :  { %1517 = vperm.xlu1 %11425, %v1423_v10   ;;  %1512 = vperm.xlu0 %11424, %v1422_v11   ;;  %v11445_v42 = vld [vmem:[%s16537_s20 + $0x38] sm:$0xff]   ;;  %v11446_v43 = vld [vmem:[%s16536_s0 + $0x40] sm:$0xff]   ;;  %v1438_v46 = vld [vmem:[%s16510_s3 + $0xb0] sm:$0xff] }
  0x49   :  { %v11447_v44 = vld [vmem:[%s16537_s20 + $0x40] sm:$0xff]   ;;  %v1439_v45 = vld [vmem:[%s16510_s3 + $0xb8] sm:$0xff]  ;;  %v1441_v47 = vld [vmem:[%s16510_s3 + $0xc8] sm:$0xff] }
  0x4a   :  { %10733 = vmatpush3.bf16.msra.mxu0 %v11428_v9  ;;  %10805 = vmatpush3.bf16.msra.mxu1 %v11428_v9  ;;  %v1440_v48 = vld [vmem:[%s16510_s3 + $0xc0] sm:$0xff]  ;;  %v11448_v49 = vld [vmem:[%s16536_s0 + $0x48] sm:$0xff]   ;;  %v11450_v51 = vld [vmem:[%s16536_s0 + $0x50] sm:$0xff]  }
  0x4b   :  { %10734 = vmatprep.subr.bf16.mxu0 %v11429_v14  ;;  %10806 = vmatprep.subr.bf16.mxu1 %v11429_v14  ;;  %v11449_v50 = vld [vmem:[%s16537_s20 + $0x48] sm:$0xff]   ;;  %v11451_v52 = vld [vmem:[%s16537_s20 + $0x50] sm:$0xff]   ;;  %v1443_v53 = vld [vmem:[%s16510_s3 + $0xd8] sm:$0xff] }
  0x4c   :  { %1527 = vperm.xlu1 %11425, %v1425_v15   ;;  %1522 = vperm.xlu0 %11424, %v1424_v16   ;;  %v1442_v54 = vld [vmem:[%s16510_s3 + $0xd0] sm:$0xff]  ;;  %v1445_v55 = vld [vmem:[%s16510_s3 + $0xe8] sm:$0xff]  ;;  %v1444_v56 = vld [vmem:[%s16510_s3 + $0xe0] sm:$0xff] }
  0x4d   :  { %v11452_v57 = vld [vmem:[%s16536_s0 + $0x58] sm:$0xff]   ;;  %v11454_v59 = vld [vmem:[%s16536_s0 + $0x60] sm:$0xff]   ;;  %v1446_v62 = vld [vmem:[%s16510_s3 + $0xf0] sm:$0xff] }
  0x4e   :  { %10735 = vmatpush3.bf16.msra.mxu0 %v11429_v14  ;;  %10807 = vmatpush3.bf16.msra.mxu1 %v11429_v14  ;;  %v11453_v58 = vld [vmem:[%s16537_s20 + $0x58] sm:$0xff]   ;;  %v11455_v60 = vld [vmem:[%s16537_s20 + $0x60] sm:$0xff]   ;;  %v1449_v63 = vld [vmem:[%s16510_s3 + $0x108] sm:$0xff] }
  0x4f   :  { %2728 = vmatprep.subr.bf16.mxu0 %v16529_v0  ;;  %10984 = vmatprep.subr.bf16.mxu1 %v16529_v0  ;;  %v1447_v61 = vld [vmem:[%s16510_s3 + $0xf8] sm:$0xff]  ;;  %v1448_v1 = vld [vmem:[%s16510_s3 + $0x100] sm:$0xff]  ;;  %v11456_v2 = vld [vmem:[%s16536_s0 + $0x68] sm:$0xff]  }
  0x50   :  { %1537 = vperm.xlu1 %11425, %v1427_v21   ;;  %1532 = vperm.xlu0 %11424, %v1426_v22   ;;  %v11457_v3 = vld [vmem:[%s16537_s20 + $0x68] sm:$0xff]   ;;  %v11458_v4 = vld [vmem:[%s16536_s0 + $0x70] sm:$0xff]   ;;  %v1451_v6 = vld [vmem:[%s16510_s3 + $0x118] sm:$0xff] }
  0x51   :  { %10737 = vmatmul.mubr.msk.bf16.vlgmr.msra.gmra.mrb[0].mxu0 %vm357_vm0, %v11432_v17  ;;  %10809 = vmatmul.mubr.msk.bf16.vlgmr.msra.gmra.mrb[0].mxu1 %vm357_vm0, %v11433_v18  ;;  %v11459_v5 = vld [vmem:[%s16537_s20 + $0x70] sm:$0xff]   ;;  %v1453_v8 = vld [vmem:[%s16510_s3 + $0x128] sm:$0xff]  ;;  %v1452_v9 = vld [vmem:[%s16510_s3 + $0x120] sm:$0xff] }
  0x52   :  { %10740 = vmatprep.mubr.msk.bf16.mxu0 %vm357_vm0, %v11434_v19  ;;  %10812 = vmatprep.mubr.msk.bf16.mxu1 %vm357_vm0, %v11435_v20  ;;  %v1450_v7 = vld [vmem:[%s16510_s3 + $0x110] sm:$0xff]  ;;  %v11460_v10 = vld [vmem:[%s16536_s0 + $0x78] sm:$0xff]   ;;  %v11462_v12 = vld [vmem:[%s16536_s0 + $0x80] sm:$0xff]  }
  0x53   :  { %v11461_v11 = vld [vmem:[%s16537_s20 + $0x78] sm:$0xff]   ;;  %v11463_v13 = vld [vmem:[%s16537_s20 + $0x80] sm:$0xff]   ;;  %v1454_v15 = vld [vmem:[%s16510_s3 + $0x130] sm:$0xff] }
  0x54   :  { %1547 = vperm.xlu1 %11425, %v1429_v23   ;;  %1542 = vperm.xlu0 %11424, %v1428_v24   ;;  %v1455_v14 = vld [vmem:[%s16510_s3 + $0x138] sm:$0xff]  ;;  %v1457_v16 = vld [vmem:[%s16510_s3 + $0x148] sm:$0xff]  ;;  %v1456_v17 = vld [vmem:[%s16510_s3 + $0x140] sm:$0xff] }
  0x55   :  { %v11464_v18 = vld [vmem:[%s16536_s0 + $0x88] sm:$0xff]   ;;  %v11466_v20 = vld [vmem:[%s16536_s0 + $0x90] sm:$0xff]   ;;  %v1459_v22 = vld [vmem:[%s16510_s3 + $0x158] sm:$0xff] }
  0x56   :  { %v11465_v19 = vld [vmem:[%s16537_s20 + $0x88] sm:$0xff]   ;;  %v11467_v21 = vld [vmem:[%s16537_s20 + $0x90] sm:$0xff]  }
  0x57   :  { %v1458_v23 = vld [vmem:[%s16510_s3 + $0x150] sm:$0xff]  ;;  %v1461_v24 = vld [vmem:[%s16510_s3 + $0x168] sm:$0xff] }
  0x58   :  { %1557 = vperm.xlu1 %11425, %v1431_v29   ;;  %1552 = vperm.xlu0 %11424, %v1430_v30   ;;  %v11471_v29 = vld [vmem:[%s16537_s20 + $0xa0] sm:$0xff]   ;;  %v1463_v30 = vld [vmem:[%s16510_s3 + $0x178] sm:$0xff] }
  0x59   :  { %10741 = vmatmul.mubr.msk.bf16.gmra.mrb[4].mxu0 %vm357_vm0, %v11436_v25  ;;  %10813 = vmatmul.mubr.msk.bf16.gmra.mrb[4].mxu1 %vm357_vm0, %v11437_v26  ;;  %v1460_v25 = vld [vmem:[%s16510_s3 + $0x160] sm:$0xff]  ;;  %v11468_v26 = vld [vmem:[%s16536_s0 + $0x98] sm:$0xff]  }
  0x5a   :  { %10744 = vmatprep.mubr.msk.bf16.mxu0 %vm357_vm0, %v11438_v27  ;;  %10816 = vmatprep.mubr.msk.bf16.mxu1 %vm357_vm0, %v11439_v28  ;;  %v11469_v27 = vld [vmem:[%s16537_s20 + $0x98] sm:$0xff]   ;;  %v11470_v28 = vld [vmem:[%s16536_s0 + $0xa0] sm:$0xff]  }
  0x5c   :  { %1567 = vperm.xlu1 %11425, %v1433_v31   ;;  %1562 = vperm.xlu0 %11424, %v1432_v32   ;;  %v1462_v31 = vld [vmem:[%s16510_s3 + $0x170] sm:$0xff]  ;;  %v1465_v32 = vld [vmem:[%s16510_s3 + $0x188] sm:$0xff] }
  0x60   :  { %1577 = vperm.xlu1 %11425, %v1435_v37   ;;  %1572 = vperm.xlu0 %11424, %v1434_v38   ;;  %v11475_v37 = vld [vmem:[%s16537_s20 + $0xb0] sm:$0xff]   ;;  %v1467_v38 = vld [vmem:[%s16510_s3 + $0x198] sm:$0xff] }
  0x61   :  { %10745 = vmatmul.mubr.msk.bf16.gmra.mrb[8].mxu0 %vm357_vm0, %v11440_v33  ;;  %10817 = vmatmul.mubr.msk.bf16.gmra.mrb[8].mxu1 %vm357_vm0, %v11441_v34  ;;  %v1464_v33 = vld [vmem:[%s16510_s3 + $0x180] sm:$0xff]  ;;  %v11472_v34 = vld [vmem:[%s16536_s0 + $0xa8] sm:$0xff]  }
  0x62   :  { %10748 = vmatprep.mubr.msk.bf16.mxu0 %vm357_vm0, %v11442_v35  ;;  %10820 = vmatprep.mubr.msk.bf16.mxu1 %vm357_vm0, %v11443_v36  ;;  %v11473_v35 = vld [vmem:[%s16537_s20 + $0xa8] sm:$0xff]   ;;  %v11474_v36 = vld [vmem:[%s16536_s0 + $0xb0] sm:$0xff]  }
  0x64   :  { %1587 = vperm.xlu1 %11425, %v1437_v39   ;;  %1582 = vperm.xlu0 %11424, %v1436_v40   ;;  %v1466_v39 = vld [vmem:[%s16510_s3 + $0x190] sm:$0xff]  ;;  %v1469_v40 = vld [vmem:[%s16510_s3 + $0x1a8] sm:$0xff] }
  0x68   :  { %1597 = vperm.xlu1 %11425, %v1439_v45   ;;  %1592 = vperm.xlu0 %11424, %v1438_v46   ;;  %v11479_v45 = vld [vmem:[%s16537_s20 + $0xc0] sm:$0xff]   ;;  %v1471_v46 = vld [vmem:[%s16510_s3 + $0x1b8] sm:$0xff] }
  0x69   :  { %10749 = vmatmul.mubr.msk.bf16.gmra.mrb[12].mxu0 %vm357_vm0, %v11444_v41  ;;  %10821 = vmatmul.mubr.msk.bf16.gmra.mrb[12].mxu1 %vm357_vm0, %v11445_v42  ;;  %v1468_v41 = vld [vmem:[%s16510_s3 + $0x1a0] sm:$0xff]  ;;  %v11476_v42 = vld [vmem:[%s16536_s0 + $0xb8] sm:$0xff]  }
  0x6a   :  { %10752 = vmatprep.mubr.msk.bf16.mxu0 %vm357_vm0, %v11446_v43  ;;  %10824 = vmatprep.mubr.msk.bf16.mxu1 %vm357_vm0, %v11447_v44  ;;  %v11477_v43 = vld [vmem:[%s16537_s20 + $0xb8] sm:$0xff]   ;;  %v11478_v44 = vld [vmem:[%s16536_s0 + $0xc0] sm:$0xff]  }
  0x6c   :  { %1607 = vperm.xlu1 %11425, %v1441_v47   ;;  %1602 = vperm.xlu0 %11424, %v1440_v48   ;;  %v1470_v47 = vld [vmem:[%s16510_s3 + $0x1b0] sm:$0xff]  ;;  %v1473_v48 = vld [vmem:[%s16510_s3 + $0x1c8] sm:$0xff] }
  0x70   :  { %1617 = vperm.xlu1 %11425, %v1443_v53   ;;  %1612 = vperm.xlu0 %11424, %v1442_v54   ;;  %v11483_v53 = vld [vmem:[%s16537_s20 + $0xd0] sm:$0xff]   ;;  %v1475_v54 = vld [vmem:[%s16510_s3 + $0x1d8] sm:$0xff] }
  0x71   :  { %10753 = vmatmul.mubr.msk.bf16.gmra.mrb[16].mxu0 %vm357_vm0, %v11448_v49  ;;  %10825 = vmatmul.mubr.msk.bf16.gmra.mrb[16].mxu1 %vm357_vm0, %v11449_v50  ;;  %v1472_v49 = vld [vmem:[%s16510_s3 + $0x1c0] sm:$0xff]  ;;  %v11480_v50 = vld [vmem:[%s16536_s0 + $0xc8] sm:$0xff]  }
  0x72   :  { %10756 = vmatprep.mubr.msk.bf16.mxu0 %vm357_vm0, %v11450_v51  ;;  %10828 = vmatprep.mubr.msk.bf16.mxu1 %vm357_vm0, %v11451_v52  ;;  %v11481_v51 = vld [vmem:[%s16537_s20 + $0xc8] sm:$0xff]   ;;  %v11482_v52 = vld [vmem:[%s16536_s0 + $0xd0] sm:$0xff]  }
  0x74   :  { %1627 = vperm.xlu1 %11425, %v1445_v55   ;;  %1622 = vperm.xlu0 %11424, %v1444_v56   ;;  %v1474_v55 = vld [vmem:[%s16510_s3 + $0x1d0] sm:$0xff]  ;;  %v1477_v56 = vld [vmem:[%s16510_s3 + $0x1e8] sm:$0xff] }
  0x78   :  { %1637 = vperm.xlu1 %11425, %v1447_v61   ;;  %1632 = vperm.xlu0 %11424, %v1446_v62   ;;  %v11487_v61 = vld [vmem:[%s16537_s20 + $0xe0] sm:$0xff]   ;;  %v1479_v62 = vld [vmem:[%s16510_s3 + $0x1f8] sm:$0xff] }
  0x79   :  { %10757 = vmatmul.mubr.msk.bf16.gmra.mrb[20].mxu0 %vm357_vm0, %v11452_v57  ;;  %10829 = vmatmul.mubr.msk.bf16.gmra.mrb[20].mxu1 %vm357_vm0, %v11453_v58  ;;  %v1476_v57 = vld [vmem:[%s16510_s3 + $0x1e0] sm:$0xff]  ;;  %v11484_v58 = vld [vmem:[%s16536_s0 + $0xd8] sm:$0xff]  }
  0x7a   :  { %10760 = vmatprep.mubr.msk.bf16.mxu0 %vm357_vm0, %v11454_v59  ;;  %10832 = vmatprep.mubr.msk.bf16.mxu1 %vm357_vm0, %v11455_v60  ;;  %v11485_v59 = vld [vmem:[%s16537_s20 + $0xd8] sm:$0xff]   ;;  %v11486_v60 = vld [vmem:[%s16536_s0 + $0xe0] sm:$0xff]  }
  0x7c   :  { %1647 = vperm.xlu1 %11425, %v1449_v63   ;;  %1642 = vperm.xlu0 %11424, %v1448_v1   ;;  %v1478_v63 = vld [vmem:[%s16510_s3 + $0x1f0] sm:$0xff]  ;;  %v4733_v1 = vld [vmem:[%s16513_s6 + $0x88] sm:$0xff] }
  0x80   :  { %1657 = vperm.xlu1 %11425, %v1451_v6   ;;  %1652 = vperm.xlu0 %11424, %v1450_v7   ;;  %v11491_v6 = vld [vmem:[%s16537_s20 + $0xf0] sm:$0xff]  }
  0x81   :  { %10761 = vmatmul.mubr.msk.bf16.gmra.mrb[24].mxu0 %vm357_vm0, %v11456_v2  ;;  %10833 = vmatmul.mubr.msk.bf16.gmra.mrb[24].mxu1 %vm357_vm0, %v11457_v3  ;;  %v4732_v2 = vld [vmem:[%s16513_s6 + $0x80] sm:$0xff]  ;;  %v11488_v3 = vld [vmem:[%s16536_s0 + $0xe8] sm:$0xff]  }
  0x82   :  { %10764 = vmatprep.mubr.msk.bf16.mxu0 %vm357_vm0, %v11458_v4  ;;  %10836 = vmatprep.mubr.msk.bf16.mxu1 %vm357_vm0, %v11459_v5  ;;  %v11489_v4 = vld [vmem:[%s16537_s20 + $0xe8] sm:$0xff]   ;;  %v11490_v5 = vld [vmem:[%s16536_s0 + $0xf0] sm:$0xff]  }
  0x84   :  { %1667 = vperm.xlu1 %11425, %v1453_v8   ;;  %1662 = vperm.xlu0 %11424, %v1452_v9   ;;  %v4765_v9 = vld [vmem:[%s16513_s6 + $0x188] sm:$0xff] }
  0x88   :  { %1677 = vperm.xlu1 %11425, %v1455_v14   ;;  %1672 = vperm.xlu0 %11424, %v1454_v15   ;;  %v4716_v14 = vld [vmem:[%s16513_s6] sm:$0xff]  ;;  %v11492_v15 = vld [vmem:[%s16536_s0 + $0xf8] sm:$0xff]  }
  0x89   :  { %10765 = vmatmul.mubr.msk.bf16.gmra.mrb[28].mxu0 %vm357_vm0, %v11460_v10  ;;  %10837 = vmatmul.mubr.msk.bf16.gmra.mrb[28].mxu1 %vm357_vm0, %v11461_v11  ;;  %v4764_v10 = vld [vmem:[%s16513_s6 + $0x180] sm:$0xff] }
  0x8a   :  { %10768 = vmatprep.mubr.msk.bf16.mxu0 %vm357_vm0, %v11462_v12  ;;  %10840 = vmatprep.mubr.msk.bf16.mxu1 %vm357_vm0, %v11463_v13  ;;  %v4717_v13 = vld [vmem:[%s16513_s6 + $0x8] sm:$0xff] }
  0x8c   :  { %1687 = vperm.xlu1 %11425, %v1457_v16   ;;  %1682 = vperm.xlu0 %11424, %v1456_v17   ;;  %v11493_v16 = vld [vmem:[%s16537_s20 + $0xf8] sm:$0xff]  }
  0x90   :  { %1697 = vperm.xlu1 %11425, %v1459_v22   ;;  %1692 = vperm.xlu0 %11424, %v1458_v23   ;;  %v4735_v23 = vld [vmem:[%s16513_s6 + $0x98] sm:$0xff] }
  0x91   :  { %10769 = vmatmul.mubr.msk.bf16.gmra.mrb[32].mxu0 %vm357_vm0, %v11464_v18  ;;  %10841 = vmatmul.mubr.msk.bf16.gmra.mrb[32].mxu1 %vm357_vm0, %v11465_v19  ;;  %v4749_v19 = vld [vmem:[%s16513_s6 + $0x108] sm:$0xff] }
  0x92   :  { %10772 = vmatprep.mubr.msk.bf16.mxu0 %vm357_vm0, %v11466_v20  ;;  %10844 = vmatprep.mubr.msk.bf16.mxu1 %vm357_vm0, %v11467_v21  ;;  %v4748_v20 = vld [vmem:[%s16513_s6 + $0x100] sm:$0xff] }
  0x94   :  { %1707 = vperm.xlu1 %11425, %v1461_v24   ;;  %1702 = vperm.xlu0 %11424, %v1460_v25   ;;  %v4734_v24 = vld [vmem:[%s16513_s6 + $0x90] sm:$0xff] }
  0x98   :  { %1717 = vperm.xlu1 %11425, %v1463_v30   ;;  %1712 = vperm.xlu0 %11424, %v1462_v31   ;;  %v4719_v31 = vld [vmem:[%s16513_s6 + $0x18] sm:$0xff] }
  0x99   :  { %10773 = vmatmul.mubr.msk.bf16.gmra.mrb[36].mxu0 %vm357_vm0, %v11468_v26  ;;  %10845 = vmatmul.mubr.msk.bf16.gmra.mrb[36].mxu1 %vm357_vm0, %v11469_v27  ;;  %v4767_v27 = vld [vmem:[%s16513_s6 + $0x198] sm:$0xff] }
  0x9a   :  { %10776 = vmatprep.mubr.msk.bf16.mxu0 %vm357_vm0, %v11470_v28  ;;  %10848 = vmatprep.mubr.msk.bf16.mxu1 %vm357_vm0, %v11471_v29  ;;  %v4766_v28 = vld [vmem:[%s16513_s6 + $0x190] sm:$0xff] }
  0x9c   :  { %1727 = vperm.xlu1 %11425, %v1465_v32   ;;  %1722 = vperm.xlu0 %11424, %v1464_v33   ;;  %v4718_v32 = vld [vmem:[%s16513_s6 + $0x10] sm:$0xff] }
  0xa0   :  { %1737 = vperm.xlu1 %11425, %v1467_v38   ;;  %1732 = vperm.xlu0 %11424, %v1466_v39   ;;  %v4737_v39 = vld [vmem:[%s16513_s6 + $0xa8] sm:$0xff] }
  0xa1   :  { %10777 = vmatmul.mubr.msk.bf16.gmra.mrb[40].mxu0 %vm357_vm0, %v11472_v34  ;;  %10849 = vmatmul.mubr.msk.bf16.gmra.mrb[40].mxu1 %vm357_vm0, %v11473_v35  ;;  %v4751_v35 = vld [vmem:[%s16513_s6 + $0x118] sm:$0xff] }
  0xa2   :  { %10780 = vmatprep.mubr.msk.bf16.mxu0 %vm357_vm0, %v11474_v36  ;;  %10852 = vmatprep.mubr.msk.bf16.mxu1 %vm357_vm0, %v11475_v37  ;;  %v4750_v36 = vld [vmem:[%s16513_s6 + $0x110] sm:$0xff] }
  0xa4   :  { %1747 = vperm.xlu1 %11425, %v1469_v40   ;;  %1742 = vperm.xlu0 %11424, %v1468_v41   ;;  %v4736_v40 = vld [vmem:[%s16513_s6 + $0xa0] sm:$0xff] }
  0xa8   :  { %1757 = vperm.xlu1 %11425, %v1471_v46   ;;  %1752 = vperm.xlu0 %11424, %v1470_v47   ;;  %v4721_v47 = vld [vmem:[%s16513_s6 + $0x28] sm:$0xff] }
  0xa9   :  { %10781 = vmatmul.mubr.msk.bf16.gmra.mrb[44].mxu0 %vm357_vm0, %v11476_v42  ;;  %10853 = vmatmul.mubr.msk.bf16.gmra.mrb[44].mxu1 %vm357_vm0, %v11477_v43  ;;  %v4769_v43 = vld [vmem:[%s16513_s6 + $0x1a8] sm:$0xff] }
  0xaa   :  { %10784 = vmatprep.mubr.msk.bf16.mxu0 %vm357_vm0, %v11478_v44  ;;  %10856 = vmatprep.mubr.msk.bf16.mxu1 %vm357_vm0, %v11479_v45  ;;  %v4768_v44 = vld [vmem:[%s16513_s6 + $0x1a0] sm:$0xff] }
  0xac   :  { %1767 = vperm.xlu1 %11425, %v1473_v48   ;;  %1762 = vperm.xlu0 %11424, %v1472_v49   ;;  %v4720_v48 = vld [vmem:[%s16513_s6 + $0x20] sm:$0xff] }
  0xb0   :  { %1777 = vperm.xlu1 %11425, %v1475_v54   ;;  %1772 = vperm.xlu0 %11424, %v1474_v55   ;;  %v4739_v55 = vld [vmem:[%s16513_s6 + $0xb8] sm:$0xff] }
  0xb1   :  { %10785 = vmatmul.mubr.msk.bf16.gmra.mrb[48].mxu0 %vm357_vm0, %v11480_v50  ;;  %10857 = vmatmul.mubr.msk.bf16.gmra.mrb[48].mxu1 %vm357_vm0, %v11481_v51  ;;  %v4753_v51 = vld [vmem:[%s16513_s6 + $0x128] sm:$0xff] }
  0xb2   :  { %10788 = vmatprep.mubr.msk.bf16.mxu0 %vm357_vm0, %v11482_v52  ;;  %10860 = vmatprep.mubr.msk.bf16.mxu1 %vm357_vm0, %v11483_v53  ;;  %v4752_v52 = vld [vmem:[%s16513_s6 + $0x120] sm:$0xff] }
  0xb4   :  { %1787 = vperm.xlu1 %11425, %v1477_v56   ;;  %1782 = vperm.xlu0 %11424, %v1476_v57   ;;  %v4738_v56 = vld [vmem:[%s16513_s6 + $0xb0] sm:$0xff] }
  0xb5   :  { %v11496_v57 = vld [vmem:[%s16511_s4 + $0x4] ss:$16 sps:$4 sm:$0xff]  }
  0xb8   :  { %1797 = vperm.xlu1 %11425, %v1479_v62   ;;  %1792 = vperm.xlu0 %11424, %v1478_v63   ;;  %v4770_v62 = vld [vmem:[%s16513_s6 + $0x1b0] sm:$0xff] }
  0xb9   :  { %10789 = vmatmul.mubr.msk.bf16.gmra.mrb[52].mxu0 %vm357_vm0, %v11484_v58  ;;  %10861 = vmatmul.mubr.msk.bf16.gmra.mrb[52].mxu1 %vm357_vm0, %v11485_v59  ;;  %v11499_v58 = vld [vmem:[%s16511_s4 + $0x104] ss:$16 sps:$4 sm:$0xff]  }
  0xba   :  { %10792 = vmatprep.mubr.msk.bf16.mxu0 %vm357_vm0, %v11486_v60  ;;  %10864 = vmatprep.mubr.msk.bf16.mxu1 %vm357_vm0, %v11487_v61  ;;  %v4771_v61 = vld [vmem:[%s16513_s6 + $0x1b8] sm:$0xff] }
  0xbb   :  { %v12936_v7 = vpop.permute.xlu1 %1492  ;;  %v12938_v8 = vpop.permute.xlu0 %1482 }
  0xbc   :  { %4867 = vperm.xlu1 %11425, %v4733_v1   ;;  %4862 = vperm.xlu0 %11424, %v4732_v2   ;;  %v4723_v2 = vld [vmem:[%s16513_s6 + $0x38] sm:$0xff] }
  0xbf   :  { %v12948_v11 = vpop.permute.xlu1 %1497  ;;  %v12950_v12 = vpop.permute.xlu0 %1487 }
  0xc0   :  { %5027 = vperm.xlu1 %11425, %v4765_v9   ;;  %5022 = vperm.xlu0 %11424, %v4764_v10   ;;  %v4754_v9 = vld [vmem:[%s16513_s6 + $0x130] sm:$0xff] }
  0xc1   :  { %10793 = vmatmul.mubr.msk.bf16.gmra.mrb[56].mxu0 %vm357_vm0, %v11488_v3  ;;  %10865 = vmatmul.mubr.msk.bf16.gmra.mrb[56].mxu1 %vm357_vm0, %v11489_v4  ;;  %v4722_v3 = vld [vmem:[%s16513_s6 + $0x30] sm:$0xff] }
  0xc2   :  { %10796 = vmatprep.mubr.msk.bf16.mxu0 %vm357_vm0, %v11490_v5  ;;  %10868 = vmatprep.mubr.msk.bf16.mxu1 %vm357_vm0, %v11491_v6  ;;  %v4755_v6 = vld [vmem:[%s16513_s6 + $0x138] sm:$0xff] }
  0xc3   :  { %v12966_v17 = vpop.permute.xlu1 %1507  ;;  %v12968_v18 = vpop.permute.xlu0 %1502 }
  0xc4   :  { %4787 = vperm.xlu1 %11425, %v4717_v13   ;;  %4782 = vperm.xlu0 %11424, %v4716_v14   ;;  %v4741_v14 = vld [vmem:[%s16513_s6 + $0xc8] sm:$0xff] }
  0xc7   :  { %v12978_v21 = vpop.permute.xlu1 %1517  ;;  %v12980_v22 = vpop.permute.xlu0 %1512 }
  0xc8   :  { %4947 = vperm.xlu1 %11425, %v4749_v19   ;;  %4942 = vperm.xlu0 %11424, %v4748_v20   ;;  %v4773_v20 = vld [vmem:[%s16513_s6 + $0x1c8] sm:$0xff] }
  0xc9   :  { %10797 = vmatmul.mubr.msk.bf16.gmra.mrb[60].mxu0 %vm357_vm0, %v11492_v15  ;;  %10869 = vmatmul.mubr.msk.bf16.gmra.mrb[60].mxu1 %vm357_vm0, %v11493_v16  ;;  %v4740_v15 = vld [vmem:[%s16513_s6 + $0xc0] sm:$0xff] }
  0xca   :  { %2760 = vmatprep.mubr.bf16.mxu0 %v11496_v57  ;;  %2824 = vmatprep.mubr.bf16.mxu1 %v11499_v58  ;;  %v4727_v58 = vld [vmem:[%s16513_s6 + $0x58] sm:$0xff] }
  0xcb   :  { %v12988_v25 = vpop.permute.xlu1 %1527  ;;  %v12990_v26 = vpop.permute.xlu0 %1522 }
  0xcc   :  { %4877 = vperm.xlu1 %11425, %v4735_v23   ;;  %4872 = vperm.xlu0 %11424, %v4734_v24   ;;  %v4772_v23 = vld [vmem:[%s16513_s6 + $0x1c0] sm:$0xff] }
  0xcf   :  { %v12998_v29 = vpop.permute.xlu1 %1537  ;;  %v13000_v30 = vpop.permute.xlu0 %1532 }
  0xd0   :  { %5037 = vperm.xlu1 %11425, %v4767_v27   ;;  %5032 = vperm.xlu0 %11424, %v4766_v28   ;;  %v4725_v28 = vld [vmem:[%s16513_s6 + $0x48] sm:$0xff] }
  0xd3   :  { %v13008_v33 = vpop.permute.xlu1 %1547  ;;  %v13010_v34 = vpop.permute.xlu0 %1542 }
  0xd4   :  { %4797 = vperm.xlu1 %11425, %v4719_v31   ;;  %4792 = vperm.xlu0 %11424, %v4718_v32   ;;  %v4724_v31 = vld [vmem:[%s16513_s6 + $0x40] sm:$0xff] }
  0xd7   :  { %v13018_v37 = vpop.permute.xlu1 %1557  ;;  %v13020_v38 = vpop.permute.xlu0 %1552 }
  0xd8   :  { %4957 = vperm.xlu1 %11425, %v4751_v35   ;;  %4952 = vperm.xlu0 %11424, %v4750_v36   ;;  %v4757_v36 = vld [vmem:[%s16513_s6 + $0x148] sm:$0xff] }
  0xdb   :  { %v13028_v41 = vpop.permute.xlu1 %1567  ;;  %v13030_v42 = vpop.permute.xlu0 %1562 }
  0xdc   :  { %4887 = vperm.xlu1 %11425, %v4737_v39   ;;  %4882 = vperm.xlu0 %11424, %v4736_v40   ;;  %v4756_v39 = vld [vmem:[%s16513_s6 + $0x140] sm:$0xff] }
  0xdf   :  { %v13038_v45 = vpop.permute.xlu1 %1577  ;;  %v13040_v46 = vpop.permute.xlu0 %1572 }
  0xe0   :  { %5047 = vperm.xlu1 %11425, %v4769_v43   ;;  %5042 = vperm.xlu0 %11424, %v4768_v44   ;;  %v4743_v44 = vld [vmem:[%s16513_s6 + $0xd8] sm:$0xff] }
  0xe3   :  { %v13048_v49 = vpop.permute.xlu1 %1587  ;;  %v13050_v50 = vpop.permute.xlu0 %1582 }
  0xe4   :  { %4807 = vperm.xlu1 %11425, %v4721_v47   ;;  %4802 = vperm.xlu0 %11424, %v4720_v48   ;;  %v4742_v47 = vld [vmem:[%s16513_s6 + $0xd0] sm:$0xff] }
  0xe7   :  { %v13058_v53 = vpop.permute.xlu1 %1597  ;;  %v13060_v54 = vpop.permute.xlu0 %1592 }
  0xe8   :  { %4967 = vperm.xlu1 %11425, %v4753_v51   ;;  %4962 = vperm.xlu0 %11424, %v4752_v52   ;;  %v4775_v52 = vld [vmem:[%s16513_s6 + $0x1d8] sm:$0xff] }
  0xeb   :  { %v13074_v59 = vpop.permute.xlu1 %1607  ;;  %v13076_v60 = vpop.permute.xlu0 %1602 }
  0xec   :  { %4897 = vperm.xlu1 %11425, %v4739_v55   ;;  %4892 = vperm.xlu0 %11424, %v4738_v56   ;;  %v4774_v55 = vld [vmem:[%s16513_s6 + $0x1d0] sm:$0xff] }
  0xef   :  { %v13084_v63 = vpop.permute.xlu1 %1617  ;;  %v13086_v1 = vpop.permute.xlu0 %1612 }
  0xf0   :  { %5057 = vperm.xlu1 %11425, %v4771_v61   ;;  %5052 = vperm.xlu0 %11424, %v4770_v62   ;;  %v4726_v61 = vld [vmem:[%s16513_s6 + $0x50] sm:$0xff] }
  0xf3   :  { %v13094_v4 = vpop.permute.xlu1 %1627  ;;  %v13096_v5 = vpop.permute.xlu0 %1622 }
  0xf4   :  { %4817 = vperm.xlu1 %11425, %v4723_v2   ;;  %4812 = vperm.xlu0 %11424, %v4722_v3   ;;  %v4759_v3 = vld [vmem:[%s16513_s6 + $0x158] sm:$0xff] }
  0xf7   :  { %v13104_v10 = vpop.permute.xlu1 %1637  ;;  %v13106_v13 = vpop.permute.xlu0 %1632 }
  0xf8   :  { %4977 = vperm.xlu1 %11425, %v4755_v6   ;;  %4972 = vperm.xlu0 %11424, %v4754_v9   ;;  %v4758_v6 = vld [vmem:[%s16513_s6 + $0x150] sm:$0xff] }
  0xfb   :  { %v13114_v16 = vpop.permute.xlu1 %1647  ;;  %v13116_v19 = vpop.permute.xlu0 %1642 }
  0xfc   :  { %4907 = vperm.xlu1 %11425, %v4741_v14   ;;  %4902 = vperm.xlu0 %11424, %v4740_v15   ;;  %v4745_v15 = vld [vmem:[%s16513_s6 + $0xe8] sm:$0xff] }
  0xff   :  { %v13124_v24 = vpop.permute.xlu1 %1657  ;;  %v13126_v27 = vpop.permute.xlu0 %1652 }
 0x100   :  { %5067 = vperm.xlu1 %11425, %v4773_v20   ;;  %5062 = vperm.xlu0 %11424, %v4772_v23   ;;  %v4744_v20 = vld [vmem:[%s16513_s6 + $0xe0] sm:$0xff] }
 0x103   :  { %v13134_v32 = vpop.permute.xlu1 %1667  ;;  %v13136_v35 = vpop.permute.xlu0 %1662 }
 0x104   :  { %4827 = vperm.xlu1 %11425, %v4725_v28   ;;  %4822 = vperm.xlu0 %11424, %v4724_v31   ;;  %v4777_v31 = vld [vmem:[%s16513_s6 + $0x1e8] sm:$0xff] }
 0x107   :  { %v13144_v40 = vpop.permute.xlu1 %1677  ;;  %v13146_v43 = vpop.permute.xlu0 %1672 }
 0x108   :  { %4987 = vperm.xlu1 %11425, %v4757_v36   ;;  %4982 = vperm.xlu0 %11424, %v4756_v39   ;;  %v4776_v36 = vld [vmem:[%s16513_s6 + $0x1e0] sm:$0xff] }
 0x10b   :  { %v13154_v48 = vpop.permute.xlu1 %1687  ;;  %v13156_v51 = vpop.permute.xlu0 %1682 }
 0x10c   :  { %4917 = vperm.xlu1 %11425, %v4743_v44   ;;  %4912 = vperm.xlu0 %11424, %v4742_v47  }
 0x10f   :  { %v13164_v56 = vpop.permute.xlu1 %1697  ;;  %v13166_v57 = vpop.permute.xlu0 %1692 }
 0x110   :  { %5077 = vperm.xlu1 %11425, %v4775_v52   ;;  %5072 = vperm.xlu0 %11424, %v4774_v55   ;;  %v4729_v55 = vld [vmem:[%s16513_s6 + $0x68] sm:$0xff] }
 0x113   :  { %v13174_v62 = vpop.permute.xlu1 %1707  ;;  %v13176_v2 = vpop.permute.xlu0 %1702 }
 0x114   :  { %16538 = vst [vmem:[#allocation9_spill] sm:$0xff] %v13174_v62  ;;  %4837 = vperm.xlu1 %11425, %v4727_v58   ;;  %4832 = vperm.xlu0 %11424, %v4726_v61   ;;  %v4728_v58 = vld [vmem:[%s16513_s6 + $0x60] sm:$0xff] }
 0x117   :  { %v13184_v9 = vpop.permute.xlu1 %1717  ;;  %v13186_v14 = vpop.permute.xlu0 %1712 }
 0x118   :  { %4997 = vperm.xlu1 %11425, %v4759_v3   ;;  %4992 = vperm.xlu0 %11424, %v4758_v6  }
 0x11b   :  { %v13194_v23 = vpop.permute.xlu1 %1727  ;;  %v13196_v28 = vpop.permute.xlu0 %1722 }
 0x11c   :  { %16539 = vst [vmem:[#allocation10_spill] sm:$0xff] %v13194_v23  ;;  %16540 = vst [vmem:[#allocation11_spill] sm:$0xff] %v13196_v28  ;;  %4927 = vperm.xlu1 %11425, %v4745_v15   ;;  %4922 = vperm.xlu0 %11424, %v4744_v20  }
 0x11f   :  { %v13204_v39 = vpop.permute.xlu1 %1737  ;;  %v13206_v44 = vpop.permute.xlu0 %1732 }
 0x120   :  { %16541 = vst [vmem:[#allocation12_spill] sm:$0xff] %v13204_v39  ;;  %16542 = vst [vmem:[#allocation13_spill] sm:$0xff] %v13206_v44  ;;  %5087 = vperm.xlu1 %11425, %v4777_v31   ;;  %5082 = vperm.xlu0 %11424, %v4776_v36   ;;  %v4761_v31 = vld [vmem:[%s16513_s6 + $0x168] sm:$0xff] }
 0x123   :  { %v13214_v20 = vpop.permute.xlu1 %1747  ;;  %v13216_v0 = vpop.permute.xlu0 %1742 }
 0x124   :  { %v10738_v47 = vpop.f32.mrb[0].mxu0  ;;  %v10810_v52 = vpop.f32.mrb[0].mxu1  ;;  %16543 = vst [vmem:[#allocation14_spill] sm:$0xff] %v13214_v20  ;;  %16544 = vst [vmem:[#allocation15_spill] sm:$0xff] %v13216_v0  ;;  %4847 = vperm.xlu1 %11425, %v4729_v55   ;;  %4842 = vperm.xlu0 %11424, %v4728_v58  }
 0x125   :  { %v1354_v61 = vmax.f32 %v10738_v47, %v10810_v52  ;;  %v488_v3 = vpop.f32.mrb[1].mxu0  ;;  %v1097_v6 = vpop.f32.mrb[1].mxu1  ;;  %v4760_v47 = vld [vmem:[%s16513_s6 + $0x160] sm:$0xff] }
 0x126   :  { %v1352_v15 = vmax.f32 %v488_v3, %v1097_v6  ;;  %v10739_v23 = vpop.f32.mrb[2].mxu0  ;;  %v10811_v39 = vpop.f32.mrb[2].mxu1 }
 0x127   :  { %v1802_v36 = vadd.f32 %v12936_v7, %v1354_v61  ;;  %v1355_v52 = vmax.f32 %v10739_v23, %v10811_v39  ;;  %v491_v3 = vpop.f32.mrb[3].mxu0  ;;  %v1100_v6 = vpop.f32.mrb[3].mxu1  ;;  %v4747_v7 = vld [vmem:[%s16513_s6 + $0xf8] sm:$0xff] }
 0x128   :  { %v1800_v20 = vadd.f32 %v12938_v8, %v1352_v15  ;;  %v1353_v0 = vmax.f32 %v491_v3, %v1100_v6  ;;  %v13227_v44 = vpop.permute.xlu1 %1757  ;;  %v13229_v62 = vpop.permute.xlu0 %1752  ;;  %5007 = vperm.xlu1 %11425, %v4761_v31   ;;  %5002 = vperm.xlu0 %11424, %v4760_v47   ;;  %v4746_v8 = vld [vmem:[%s16513_s6 + $0xf0] sm:$0xff] }
 0x129   :  { %v1803_v28 = vadd.f32 %v12948_v11, %v1355_v52  ;;  %16545 = vst [vmem:[#allocation16_spill] sm:$0xff] %v13227_v44  ;;  %16546 = vst [vmem:[#allocation17_spill] sm:$0xff] %v13229_v62  ;;  %v1866_v55 = vmax.f32 %v1802_v36, 0.0 }
 0x12a   :  { %v1801_v58 = vadd.f32 %v12950_v12, %v1353_v0  ;;  %v1864_v61 = vmax.f32 %v1800_v20, 0.0  ;;  %v4779_v20 = vld [vmem:[%s16513_s6 + $0x1f8] sm:$0xff] }
 0x12b   :  { %v1867_v23 = vmax.f32 %v1803_v28, 0.0 }
 0x12c   :  { %v10742_v39 = vpop.f32.mrb[4].mxu0  ;;  %v10814_v11 = vpop.f32.mrb[4].mxu1  ;;  %v1865_v15 = vmax.f32 %v1801_v58, 0.0  ;;  %4937 = vperm.xlu1 %11425, %v4747_v7   ;;  %4932 = vperm.xlu0 %11424, %v4746_v8   ;;  %v4778_v58 = vld [vmem:[%s16513_s6 + $0x1f0] sm:$0xff] }
 0x12d   :  { %v1358_v52 = vmax.f32 %v10742_v39, %v10814_v11  ;;  %v504_v3 = vpop.f32.mrb[5].mxu0  ;;  %v1113_v6 = vpop.f32.mrb[5].mxu1  ;;  %v13242_v0 = vpack.c.bf16 %v1867_v23, %v1866_v55 }
 0x12e   :  { %v1356_v44 = vmax.f32 %v504_v3, %v1113_v6  ;;  %v13238_v62 = vpop.permute.xlu1 %1767  ;;  %v13240_v36 = vpop.permute.xlu0 %1762  ;;  %v13245_v28 = vpack.c.bf16 %v1865_v15, %v1864_v61  ;;  %v16548_v15 = vmov 0  }
 0x12f   :  { %16547 = vst [vmem:[#allocation18_spill] sm:$0xff] %v13238_v62  ;;  %v1806_v12 = vadd.f32 %v12980_v22, %v1358_v52  ;;  %v10743_v31 = vpop.f32.mrb[6].mxu0  ;;  %v10815_v47 = vpop.f32.mrb[6].mxu1  ;;  %v4731_v52 = vld [vmem:[%s16513_s6 + $0x78] sm:$0xff] }
 0x130   :  { %v1359_v39 = vmax.f32 %v10743_v31, %v10815_v47  ;;  %v507_v11 = vpop.f32.mrb[7].mxu0  ;;  %v1116_v55 = vpop.f32.mrb[7].mxu1  ;;  %v1804_v23 = vadd.f32 %v12968_v18, %v1356_v44  ;;  %2729 = vmatpush1.bf16.msra.mxu0 %v13245_v28  ;;  %11000 = vmatpush1.bf16.msra.mxu1 %v13245_v28 }
 0x131   :  { %v1357_v22 = vmax.f32 %v507_v11, %v1116_v55  ;;  %2730 = vmatprep.subr.bf16.mxu0 %v16548_v15  ;;  %10985 = vmatprep.subr.bf16.mxu1 %v16548_v15  ;;  %v1870_v18 = vmax.f32 %v1806_v12, 0.0 }
 0x132   :  { %v1807_v7 = vadd.f32 %v12978_v21, %v1359_v39  ;;  %v13257_v8 = vpop.permute.xlu1 %1777  ;;  %v13259_v61 = vpop.permute.xlu0 %1772  ;;  %5097 = vperm.xlu1 %11425, %v4779_v20   ;;  %5092 = vperm.xlu0 %11424, %v4778_v58   ;;  %v4730_v21 = vld [vmem:[%s16513_s6 + $0x70] sm:$0xff]  ;;  %v1868_v47 = vmax.f32 %v1804_v23, 0.0 }
 0x133   :  { %v1805_v44 = vadd.f32 %v12966_v17, %v1357_v22 }
 0x134   :  { %v1871_v3 = vmax.f32 %v1807_v7, 0.0  ;;  %v10746_v6 = vpop.f32.mrb[8].mxu0  ;;  %v10818_v31 = vpop.f32.mrb[8].mxu1  ;;  %2731 = vmatpush1.bf16.msra.mxu0 %v13242_v0  ;;  %11001 = vmatpush1.bf16.msra.mxu1 %v13242_v0 }
 0x135   :  { %v1869_v39 = vmax.f32 %v1805_v44, 0.0  ;;  %v1362_v11 = vmax.f32 %v10746_v6, %v10818_v31  ;;  %v520_v55 = vpop.f32.mrb[9].mxu0  ;;  %v1129_v12 = vpop.f32.mrb[9].mxu1  ;;  %2732 = vmatprep.subr.bf16.mxu0 %v16548_v15  ;;  %10986 = vmatprep.subr.bf16.mxu1 %v16548_v15  ;;  %v4763_v6 = vld [vmem:[%s16513_s6 + $0x178] sm:$0xff]  ;;  %v4762_v31 = vld [vmem:[%s16513_s6 + $0x170] sm:$0xff] }
 0x136   :  { %v1360_v62 = vmax.f32 %v520_v55, %v1129_v12  ;;  %v13272_v17 = vpop.permute.xlu1 %1787  ;;  %v13274_v20 = vpop.permute.xlu0 %1782  ;;  %v13278_v58 = vpack.c.bf16 %v1871_v3, %v1870_v18  ;;  %4857 = vperm.xlu1 %11425, %v4731_v52   ;;  %4852 = vperm.xlu0 %11424, %v4730_v21  }
 0x137   :  { %16549 = vst [vmem:[#allocation19_spill] sm:$0xff] %v13272_v17  ;;  %v1810_v23 = vadd.f32 %v13000_v30, %v1362_v11  ;;  %v10747_v22 = vpop.f32.mrb[10].mxu0  ;;  %v10819_v7 = vpop.f32.mrb[10].mxu1  ;;  %v13281_v44 = vpack.c.bf16 %v1869_v39, %v1868_v47  ;;  %v6049_v39 = vld [vmem:[%s16516_s9 + $0x8] sm:$0xff] }
 0x138   :  { %v1363_v55 = vmax.f32 %v10747_v22, %v10819_v7  ;;  %v523_v12 = vpop.f32.mrb[11].mxu0  ;;  %v1132_v18 = vpop.f32.mrb[11].mxu1  ;;  %v1808_v3 = vadd.f32 %v12990_v26, %v1360_v62 }
 0x139   :  { %v1361_v30 = vmax.f32 %v523_v12, %v1132_v18  ;;  %2733 = vmatpush1.bf16.msra.mxu0 %v13281_v44  ;;  %11002 = vmatpush1.bf16.msra.mxu1 %v13281_v44  ;;  %v1874_v26 = vmax.f32 %v1810_v23, 0.0 }
 0x13a   :  { %v1811_v52 = vadd.f32 %v12998_v29, %v1363_v55  ;;  %v13293_v21 = vpop.permute.xlu1 %1797  ;;  %v13295_v47 = vpop.permute.xlu0 %1792  ;;  %2734 = vmatprep.subr.bf16.mxu0 %v16548_v15  ;;  %10987 = vmatprep.subr.bf16.mxu1 %v16548_v15  ;;  %v6048_v29 = vld [vmem:[%s16516_s9] sm:$0xff]  ;;  %v1872_v55 = vmax.f32 %v1808_v3, 0.0 }
 0x13b   :  { %16550 = vst [vmem:[#allocation20_spill] sm:$0xff] %v13293_v21  ;;  %v1809_v62 = vadd.f32 %v12988_v25, %v1361_v30  ;;  %5017 = vperm.xlu1 %11425, %v4763_v6   ;;  %5012 = vperm.xlu0 %11424, %v4762_v31  }
 0x13c   :  { %v1875_v11 = vmax.f32 %v1811_v52, 0.0  ;;  %v10750_v22 = vpop.f32.mrb[12].mxu0  ;;  %v10822_v7 = vpop.f32.mrb[12].mxu1 }
 0x13d   :  { %v1873_v12 = vmax.f32 %v1809_v62, 0.0  ;;  %v1366_v18 = vmax.f32 %v10750_v22, %v10822_v7  ;;  %2735 = vmatpush1.bf16.msra.mxu0 %v13278_v58  ;;  %11003 = vmatpush1.bf16.msra.mxu1 %v13278_v58  ;;  %v536_v17 = vpop.f32.mrb[13].mxu0  ;;  %v1145_v23 = vpop.f32.mrb[13].mxu1  ;;  %v6050_v22 = vld [vmem:[%s16516_s9 + $0x10] sm:$0xff] }
 0x13e   :  { %v1364_v21 = vmax.f32 %v536_v17, %v1145_v23  ;;  %v13308_v25 = vpop.permute.xlu1 %4867  ;;  %v13310_v6 = vpop.permute.xlu0 %4862  ;;  %2736 = vmatprep.subr.bf16.mxu0 %v16548_v15  ;;  %10988 = vmatprep.subr.bf16.mxu1 %v16548_v15  ;;  %v13314_v31 = vpack.c.bf16 %v1875_v11, %v1874_v26  ;;  %v6051_v17 = vld [vmem:[%s16516_s9 + $0x18] sm:$0xff] }
 0x13f   :  { %16551 = vst [vmem:[#allocation21_spill] sm:$0xff] %v13308_v25  ;;  %16552 = vst [vmem:[#allocation22_spill] sm:$0xff] %v13310_v6  ;;  %v1814_v3 = vadd.f32 %v13020_v38, %v1366_v18  ;;  %v10751_v30 = vpop.f32.mrb[14].mxu0  ;;  %v10823_v52 = vpop.f32.mrb[14].mxu1  ;;  %6071 = vperm.xlu1 %11425, %v6049_v39   ;;  %6066 = vperm.xlu0 %11424, %v6048_v29   ;;  %v13317_v62 = vpack.c.bf16 %v1873_v12, %v1872_v55  ;;  %v6053_v12 = vld [vmem:[%s16516_s9 + $0x28] sm:$0xff] }
 0x140   :  { %v1367_v7 = vmax.f32 %v10751_v30, %v10823_v52  ;;  %v539_v23 = vpop.f32.mrb[15].mxu0  ;;  %v1148_v26 = vpop.f32.mrb[15].mxu1  ;;  %v1812_v11 = vadd.f32 %v13010_v34, %v1364_v21  ;;  %v11739_v6 = vld [vmem:[%s16512_s5 + $0x220] ss:$16 sps:$4 sm:$0xff]  }
 0x141   :  { %v1365_v38 = vmax.f32 %v539_v23, %v1148_v26  ;;  %2737 = vmatpush1.bf16.msra.mxu0 %v13317_v62  ;;  %11004 = vmatpush1.bf16.msra.mxu1 %v13317_v62  ;;  %v1878_v34 = vmax.f32 %v1814_v3, 0.0 }
 0x142   :  { %v1815_v39 = vadd.f32 %v13018_v37, %v1367_v7  ;;  %v13329_v29 = vpop.permute.xlu1 %5027  ;;  %v13331_v55 = vpop.permute.xlu0 %5022  ;;  %2738 = vmatprep.subr.bf16.mxu0 %v16548_v15  ;;  %10989 = vmatprep.subr.bf16.mxu1 %v16548_v15  ;;  %v6052_v37 = vld [vmem:[%s16516_s9 + $0x20] sm:$0xff]  ;;  %v1876_v7 = vmax.f32 %v1812_v11, 0.0 }
 0x143   :  { %16553 = vst [vmem:[#allocation23_spill] sm:$0xff] %v13329_v29  ;;  %16554 = vst [vmem:[#allocation24_spill] sm:$0xff] %v13331_v55  ;;  %v1813_v21 = vadd.f32 %v13008_v33, %v1365_v38  ;;  %6081 = vperm.xlu1 %11425, %v6051_v17   ;;  %6076 = vperm.xlu0 %11424, %v6050_v22  }
 0x144   :  { %v1879_v18 = vmax.f32 %v1815_v39, 0.0  ;;  %v10754_v30 = vpop.f32.mrb[16].mxu0  ;;  %v10826_v52 = vpop.f32.mrb[16].mxu1 }
 0x145   :  { %v1877_v23 = vmax.f32 %v1813_v21, 0.0  ;;  %v1370_v26 = vmax.f32 %v10754_v30, %v10826_v52  ;;  %2739 = vmatpush1.bf16.msra.mxu0 %v13314_v31  ;;  %11005 = vmatpush1.bf16.msra.mxu1 %v13314_v31  ;;  %v552_v29 = vpop.f32.mrb[17].mxu0  ;;  %v1161_v3 = vpop.f32.mrb[17].mxu1  ;;  %v6054_v30 = vld [vmem:[%s16516_s9 + $0x30] sm:$0xff] }
 0x146   :  { %v1368_v55 = vmax.f32 %v552_v29, %v1161_v3  ;;  %v13344_v33 = vpop.permute.xlu1 %4787  ;;  %v13346_v17 = vpop.permute.xlu0 %4782  ;;  %2740 = vmatprep.subr.bf16.mxu0 %v16548_v15  ;;  %10990 = vmatprep.subr.bf16.mxu1 %v16548_v15  ;;  %v13350_v22 = vpack.c.bf16 %v1879_v18, %v1878_v34  ;;  %v6055_v29 = vld [vmem:[%s16516_s9 + $0x38] sm:$0xff] }
 0x147   :  { %v1818_v11 = vadd.f32 %v13040_v46, %v1370_v26  ;;  %v10755_v38 = vpop.f32.mrb[18].mxu0  ;;  %v10827_v39 = vpop.f32.mrb[18].mxu1  ;;  %6091 = vperm.xlu1 %11425, %v6053_v12   ;;  %6086 = vperm.xlu0 %11424, %v6052_v37   ;;  %v13353_v21 = vpack.c.bf16 %v1877_v23, %v1876_v7  ;;  %v6057_v23 = vld [vmem:[%s16516_s9 + $0x48] sm:$0xff] }
 0x148   :  { %v1371_v52 = vmax.f32 %v10755_v38, %v10827_v39  ;;  %v555_v3 = vpop.f32.mrb[19].mxu0  ;;  %v1164_v34 = vpop.f32.mrb[19].mxu1  ;;  %v1816_v18 = vadd.f32 %v13030_v42, %v1368_v55 }
 0x149   :  { %v1369_v46 = vmax.f32 %v555_v3, %v1164_v34  ;;  %2741 = vmatpush1.bf16.msra.mxu0 %v13353_v21  ;;  %11006 = vmatpush1.bf16.msra.mxu1 %v13353_v21  ;;  %v1882_v42 = vmax.f32 %v1818_v11, 0.0 }
 0x14a   :  { %v1819_v12 = vadd.f32 %v13038_v45, %v1371_v52  ;;  %v13365_v37 = vpop.permute.xlu1 %4947  ;;  %v13367_v7 = vpop.permute.xlu0 %4942  ;;  %2742 = vmatprep.subr.bf16.mxu0 %v16548_v15  ;;  %10991 = vmatprep.subr.bf16.mxu1 %v16548_v15  ;;  %v6056_v45 = vld [vmem:[%s16516_s9 + $0x40] sm:$0xff]  ;;  %v1880_v52 = vmax.f32 %v1816_v18, 0.0 }
 0x14b   :  { %16555 = vst [vmem:[#allocation25_spill] sm:$0xff] %v13365_v37  ;;  %16556 = vst [vmem:[#allocation26_spill] sm:$0xff] %v13367_v7  ;;  %v1817_v55 = vadd.f32 %v13028_v41, %v1369_v46  ;;  %6101 = vperm.xlu1 %11425, %v6055_v29   ;;  %6096 = vperm.xlu0 %11424, %v6054_v30  }
 0x14c   :  { %v1883_v26 = vmax.f32 %v1819_v12, 0.0  ;;  %v10758_v38 = vpop.f32.mrb[20].mxu0  ;;  %v10830_v39 = vpop.f32.mrb[20].mxu1 }
 0x14d   :  { %v1881_v3 = vmax.f32 %v1817_v55, 0.0  ;;  %v1374_v34 = vmax.f32 %v10758_v38, %v10830_v39  ;;  %2743 = vmatpush1.bf16.msra.mxu0 %v13350_v22  ;;  %11007 = vmatpush1.bf16.msra.mxu1 %v13350_v22  ;;  %v568_v37 = vpop.f32.mrb[21].mxu0  ;;  %v1177_v11 = vpop.f32.mrb[21].mxu1  ;;  %v6058_v38 = vld [vmem:[%s16516_s9 + $0x50] sm:$0xff] }
 0x14e   :  { %v1372_v7 = vmax.f32 %v568_v37, %v1177_v11  ;;  %v13380_v41 = vpop.permute.xlu1 %4877  ;;  %v13382_v29 = vpop.permute.xlu0 %4872  ;;  %2744 = vmatprep.subr.bf16.mxu0 %v16548_v15  ;;  %10992 = vmatprep.subr.bf16.mxu1 %v16548_v15  ;;  %v13386_v30 = vpack.c.bf16 %v1883_v26, %v1882_v42  ;;  %v6059_v37 = vld [vmem:[%s16516_s9 + $0x58] sm:$0xff] }
 0x14f   :  { %16557 = vst [vmem:[#allocation27_spill] sm:$0xff] %v13380_v41  ;;  %16558 = vst [vmem:[#allocation28_spill] sm:$0xff] %v13382_v29  ;;  %v1822_v18 = vadd.f32 %v13060_v54, %v1374_v34  ;;  %v10759_v46 = vpop.f32.mrb[22].mxu0  ;;  %v10831_v12 = vpop.f32.mrb[22].mxu1  ;;  %6111 = vperm.xlu1 %11425, %v6057_v23   ;;  %6106 = vperm.xlu0 %11424, %v6056_v45   ;;  %v13389_v55 = vpack.c.bf16 %v1881_v3, %v1880_v52  ;;  %v6061_v3 = vld [vmem:[%s16516_s9 + $0x68] sm:$0xff] }
 0x150   :  { %v1375_v39 = vmax.f32 %v10759_v46, %v10831_v12  ;;  %v571_v11 = vpop.f32.mrb[23].mxu0  ;;  %v1180_v42 = vpop.f32.mrb[23].mxu1  ;;  %v1820_v26 = vadd.f32 %v13050_v50, %v1372_v7  ;;  %v11736_v41 = vld [vmem:[%s16512_s5 + $0x200] ss:$16 sps:$4 sm:$0xff]  }
 0x151   :  { %v1373_v54 = vmax.f32 %v571_v11, %v1180_v42  ;;  %2745 = vmatpush1.bf16.msra.mxu0 %v13389_v55  ;;  %11008 = vmatpush1.bf16.msra.mxu1 %v13389_v55  ;;  %v1886_v50 = vmax.f32 %v1822_v18, 0.0 }
 0x152   :  { %v1823_v23 = vadd.f32 %v13058_v53, %v1375_v39  ;;  %v13401_v45 = vpop.permute.xlu1 %5037  ;;  %v13403_v52 = vpop.permute.xlu0 %5032  ;;  %2746 = vmatprep.subr.bf16.mxu0 %v16548_v15  ;;  %10993 = vmatprep.subr.bf16.mxu1 %v16548_v15  ;;  %v6060_v53 = vld [vmem:[%s16516_s9 + $0x60] sm:$0xff]  ;;  %v1884_v39 = vmax.f32 %v1820_v26, 0.0 }
 0x153   :  { %16559 = vst [vmem:[#allocation29_spill] sm:$0xff] %v13401_v45  ;;  %16560 = vst [vmem:[#allocation30_spill] sm:$0xff] %v13403_v52  ;;  %v1821_v7 = vadd.f32 %v13048_v49, %v1373_v54  ;;  %6121 = vperm.xlu1 %11425, %v6059_v37   ;;  %6116 = vperm.xlu0 %11424, %v6058_v38  }
 0x154   :  { %v1887_v34 = vmax.f32 %v1823_v23, 0.0  ;;  %v10762_v46 = vpop.f32.mrb[24].mxu0  ;;  %v10834_v12 = vpop.f32.mrb[24].mxu1 }
 0x155   :  { %v1885_v11 = vmax.f32 %v1821_v7, 0.0  ;;  %v1378_v42 = vmax.f32 %v10762_v46, %v10834_v12  ;;  %2747 = vmatpush1.bf16.msra.mxu0 %v13386_v30  ;;  %11009 = vmatpush1.bf16.msra.mxu1 %v13386_v30  ;;  %v584_v45 = vpop.f32.mrb[25].mxu0  ;;  %v1193_v18 = vpop.f32.mrb[25].mxu1  ;;  %v6062_v46 = vld [vmem:[%s16516_s9 + $0x70] sm:$0xff] }
 0x156   :  { %v1376_v52 = vmax.f32 %v584_v45, %v1193_v18  ;;  %v13416_v49 = vpop.permute.xlu1 %4797  ;;  %v13418_v37 = vpop.permute.xlu0 %4792  ;;  %2748 = vmatprep.subr.bf16.mxu0 %v16548_v15  ;;  %10994 = vmatprep.subr.bf16.mxu1 %v16548_v15  ;;  %v13422_v38 = vpack.c.bf16 %v1887_v34, %v1886_v50  ;;  %v6063_v45 = vld [vmem:[%s16516_s9 + $0x78] sm:$0xff] }
 0x157   :  { %v1826_v26 = vadd.f32 %v13086_v1, %v1378_v42  ;;  %v10763_v54 = vpop.f32.mrb[26].mxu0  ;;  %v10835_v23 = vpop.f32.mrb[26].mxu1  ;;  %6131 = vperm.xlu1 %11425, %v6061_v3   ;;  %6126 = vperm.xlu0 %11424, %v6060_v53   ;;  %v13425_v7 = vpack.c.bf16 %v1885_v11, %v1884_v39  ;;  %v6201_v11 = vld [vmem:[%s16518_s11 + $0x8] sm:$0xff] }
 0x158   :  { %v1379_v12 = vmax.f32 %v10763_v54, %v10835_v23  ;;  %v587_v18 = vpop.f32.mrb[27].mxu0  ;;  %v1196_v50 = vpop.f32.mrb[27].mxu1  ;;  %v1824_v34 = vadd.f32 %v13076_v60, %v1376_v52 }
 0x159   :  { %v1377_v1 = vmax.f32 %v587_v18, %v1196_v50  ;;  %2749 = vmatpush1.bf16.msra.mxu0 %v13425_v7  ;;  %11010 = vmatpush1.bf16.msra.mxu1 %v13425_v7  ;;  %v1890_v60 = vmax.f32 %v1826_v26, 0.0 }
 0x15a   :  { %v1827_v3 = vadd.f32 %v13084_v63, %v1379_v12  ;;  %v13437_v53 = vpop.permute.xlu1 %4957  ;;  %v13439_v39 = vpop.permute.xlu0 %4952  ;;  %2750 = vmatprep.subr.bf16.mxu0 %v16548_v15  ;;  %10995 = vmatprep.subr.bf16.mxu1 %v16548_v15  ;;  %v6200_v63 = vld [vmem:[%s16518_s11] sm:$0xff]  ;;  %v1888_v12 = vmax.f32 %v1824_v34, 0.0 }
 0x15b   :  { %16561 = vst [vmem:[#allocation31_spill] sm:$0xff] %v13437_v53  ;;  %16562 = vst [vmem:[#allocation32_spill] sm:$0xff] %v13439_v39  ;;  %v1825_v52 = vadd.f32 %v13074_v59, %v1377_v1  ;;  %6141 = vperm.xlu1 %11425, %v6063_v45   ;;  %6136 = vperm.xlu0 %11424, %v6062_v46  }
 0x15c   :  { %v1891_v42 = vmax.f32 %v1827_v3, 0.0  ;;  %v10766_v54 = vpop.f32.mrb[28].mxu0  ;;  %v10838_v23 = vpop.f32.mrb[28].mxu1 }
 0x15d   :  { %v1889_v18 = vmax.f32 %v1825_v52, 0.0  ;;  %v1382_v50 = vmax.f32 %v10766_v54, %v10838_v23  ;;  %2751 = vmatpush1.bf16.msra.mxu0 %v13422_v38  ;;  %11011 = vmatpush1.bf16.msra.mxu1 %v13422_v38  ;;  %v600_v53 = vpop.f32.mrb[29].mxu0  ;;  %v1209_v26 = vpop.f32.mrb[29].mxu1  ;;  %v6202_v54 = vld [vmem:[%s16518_s11 + $0x10] sm:$0xff] }
 0x15e   :  { %v1380_v39 = vmax.f32 %v600_v53, %v1209_v26  ;;  %v13452_v59 = vpop.permute.xlu1 %4887  ;;  %v13454_v45 = vpop.permute.xlu0 %4882  ;;  %2752 = vmatprep.subr.bf16.mxu0 %v16548_v15  ;;  %10996 = vmatprep.subr.bf16.mxu1 %v16548_v15  ;;  %v13458_v46 = vpack.c.bf16 %v1891_v42, %v1890_v60  ;;  %v6203_v53 = vld [vmem:[%s16518_s11 + $0x18] sm:$0xff] }
 0x15f   :  { %16563 = vst [vmem:[#allocation33_spill] sm:$0xff] %v13452_v59  ;;  %16564 = vst [vmem:[#allocation34_spill] sm:$0xff] %v13454_v45  ;;  %v1830_v34 = vadd.f32 %v13106_v13, %v1382_v50  ;;  %v10767_v1 = vpop.f32.mrb[30].mxu0  ;;  %v10839_v3 = vpop.f32.mrb[30].mxu1  ;;  %6223 = vperm.xlu1 %11425, %v6201_v11   ;;  %6218 = vperm.xlu0 %11424, %v6200_v63   ;;  %v13461_v52 = vpack.c.bf16 %v1889_v18, %v1888_v12  ;;  %v6205_v18 = vld [vmem:[%s16518_s11 + $0x28] sm:$0xff] }
 0x160   :  { %v1383_v23 = vmax.f32 %v10767_v1, %v10839_v3  ;;  %v603_v26 = vpop.f32.mrb[31].mxu0  ;;  %v1212_v60 = vpop.f32.mrb[31].mxu1  ;;  %v1828_v42 = vadd.f32 %v13096_v5, %v1380_v39 }
 0x161   :  { %v1381_v13 = vmax.f32 %v603_v26, %v1212_v60  ;;  %2753 = vmatpush1.bf16.msra.mxu0 %v13461_v52  ;;  %11012 = vmatpush1.bf16.msra.mxu1 %v13461_v52  ;;  %v1894_v5 = vmax.f32 %v1830_v34, 0.0 }
 0x162   :  { %v1831_v11 = vadd.f32 %v13104_v10, %v1383_v23  ;;  %v13473_v63 = vpop.permute.xlu1 %5047  ;;  %v13475_v12 = vpop.permute.xlu0 %5042  ;;  %2754 = vmatprep.subr.bf16.mxu0 %v16548_v15  ;;  %10997 = vmatprep.subr.bf16.mxu1 %v16548_v15  ;;  %v6204_v10 = vld [vmem:[%s16518_s11 + $0x20] sm:$0xff]  ;;  %v1892_v23 = vmax.f32 %v1828_v42, 0.0 }
 0x163   :  { %16565 = vst [vmem:[#allocation35_spill] sm:$0xff] %v13473_v63  ;;  %16566 = vst [vmem:[#allocation36_spill] sm:$0xff] %v13475_v12  ;;  %v1829_v39 = vadd.f32 %v13094_v4, %v1381_v13  ;;  %6233 = vperm.xlu1 %11425, %v6203_v53   ;;  %6228 = vperm.xlu0 %11424, %v6202_v54  }
 0x164   :  { %v1895_v50 = vmax.f32 %v1831_v11, 0.0  ;;  %v10770_v1 = vpop.f32.mrb[32].mxu0  ;;  %v10842_v3 = vpop.f32.mrb[32].mxu1 }
 0x165   :  { %v1893_v26 = vmax.f32 %v1829_v39, 0.0  ;;  %v1386_v60 = vmax.f32 %v10770_v1, %v10842_v3  ;;  %2755 = vmatpush1.bf16.msra.mxu0 %v13458_v46  ;;  %11013 = vmatpush1.bf16.msra.mxu1 %v13458_v46  ;;  %v616_v63 = vpop.f32.mrb[33].mxu0  ;;  %v1225_v34 = vpop.f32.mrb[33].mxu1  ;;  %v6206_v1 = vld [vmem:[%s16518_s11 + $0x30] sm:$0xff] }
 0x166   :  { %v1384_v12 = vmax.f32 %v616_v63, %v1225_v34  ;;  %v13488_v4 = vpop.permute.xlu1 %4807  ;;  %v13490_v53 = vpop.permute.xlu0 %4802  ;;  %2756 = vmatprep.subr.bf16.mxu0 %v16548_v15  ;;  %10998 = vmatprep.subr.bf16.mxu1 %v16548_v15  ;;  %v13494_v54 = vpack.c.bf16 %v1895_v50, %v1894_v5  ;;  %v6207_v63 = vld [vmem:[%s16518_s11 + $0x38] sm:$0xff] }
 0x167   :  { %v1834_v42 = vadd.f32 %v13126_v27, %v1386_v60  ;;  %v10771_v13 = vpop.f32.mrb[34].mxu0  ;;  %v10843_v11 = vpop.f32.mrb[34].mxu1  ;;  %6243 = vperm.xlu1 %11425, %v6205_v18   ;;  %6238 = vperm.xlu0 %11424, %v6204_v10   ;;  %v13497_v39 = vpack.c.bf16 %v1893_v26, %v1892_v23  ;;  %v11494_v26 = vld [vmem:[%s16511_s4] ss:$16 sps:$4 sm:$0xff]  }
 0x168   :  { %v1387_v3 = vmax.f32 %v10771_v13, %v10843_v11  ;;  %v619_v34 = vpop.f32.mrb[35].mxu0  ;;  %v1228_v5 = vpop.f32.mrb[35].mxu1  ;;  %v1832_v50 = vadd.f32 %v13116_v19, %v1384_v12  ;;  %v11497_v19 = vld [vmem:[%s16511_s4 + $0x100] ss:$16 sps:$4 sm:$0xff]  }
 0x169   :  { %v1385_v27 = vmax.f32 %v619_v34, %v1228_v5  ;;  %2757 = vmatpush1.bf16.msra.mxu0 %v13497_v39  ;;  %11014 = vmatpush1.bf16.msra.mxu1 %v13497_v39  ;;  %v1898_v12 = vmax.f32 %v1834_v42, 0.0  ;;  %v6208_v13 = vld [vmem:[%s16518_s11 + $0x40] sm:$0xff] }
 0x16a   :  { %v1835_v18 = vadd.f32 %v13124_v24, %v1387_v3  ;;  %v13509_v10 = vpop.permute.xlu1 %4967  ;;  %v13511_v23 = vpop.permute.xlu0 %4962  ;;  %2758 = vmatprep.subr.bf16.mxu0 %v16548_v15  ;;  %10999 = vmatprep.subr.bf16.mxu1 %v16548_v15  ;;  %v6209_v24 = vld [vmem:[%s16518_s11 + $0x48] sm:$0xff]  ;;  %v1896_v5 = vmax.f32 %v1832_v50, 0.0 }
 0x16b   :  { %16567 = vst [vmem:[#allocation37_spill] sm:$0xff] %v13509_v10  ;;  %16568 = vst [vmem:[#allocation38_spill] sm:$0xff] %v13511_v23  ;;  %v1833_v60 = vadd.f32 %v13114_v16, %v1385_v27  ;;  %6253 = vperm.xlu1 %11425, %v6207_v63   ;;  %6248 = vperm.xlu0 %11424, %v6206_v1   ;;  %v6211_v1 = vld [vmem:[%s16518_s11 + $0x58] sm:$0xff]  ;;  %v11500_v27 = vld [vmem:[%s16511_s4 + $0x24] ss:$16 sps:$4 sm:$0xff]  }
 0x16c   :  { %v1899_v11 = vmax.f32 %v1835_v18, 0.0  ;;  %v10774_v3 = vpop.f32.mrb[36].mxu0  ;;  %v10846_v34 = vpop.f32.mrb[36].mxu1 }
 0x16d   :  { %v1897_v10 = vmax.f32 %v1833_v60, 0.0  ;;  %v1390_v23 = vmax.f32 %v10774_v3, %v10846_v34  ;;  %2759 = vmatpush1.bf16.msra.mxu0 %v13494_v54  ;;  %11015 = vmatpush1.bf16.msra.mxu1 %v13494_v54  ;;  %v632_v59 = vpop.f32.mrb[37].mxu0  ;;  %v1241_v42 = vpop.f32.mrb[37].mxu1  ;;  %v6210_v34 = vld [vmem:[%s16518_s11 + $0x50] sm:$0xff] }
 0x16e   :  { %v1388_v45 = vmax.f32 %v632_v59, %v1241_v42  ;;  %v13530_v16 = vpop.permute.xlu1 %4897  ;;  %v13532_v63 = vpop.permute.xlu0 %4892  ;;  %3017 = vmatprep.subr.bf16.mxu0 %v16548_v15  ;;  %4074 = vmatprep.subr.bf16.mxu1 %v16548_v15  ;;  %v13539_v50 = vpack.c.bf16 %v1899_v11, %v1898_v12  ;;  %v11502_v12 = vld [vmem:[%s16511_s4 + $0x124] ss:$16 sps:$4 sm:$0xff]  }
 0x16f   :  { %16569 = vst [vmem:[#allocation39_spill] sm:$0xff] %v13530_v16  ;;  %16570 = vst [vmem:[#allocation40_spill] sm:$0xff] %v13532_v63  ;;  %v1838_v59 = vadd.f32 %v13146_v43, %v1390_v23  ;;  %v10775_v18 = vpop.f32.mrb[38].mxu0  ;;  %v10847_v60 = vpop.f32.mrb[38].mxu1  ;;  %6263 = vperm.xlu1 %11425, %v6209_v24   ;;  %6258 = vperm.xlu0 %11424, %v6208_v13   ;;  %v13545_v3 = vpack.c.bf16 %v1897_v10, %v1896_v5 }
 0x170   :  { %v1391_v11 = vmax.f32 %v10775_v18, %v10847_v60  ;;  %v635_v42 = vpop.f32.mrb[39].mxu0  ;;  %v1244_v16 = vpop.f32.mrb[39].mxu1  ;;  %2761 = vmatmul.mubr.bf16.vlgmr.msra.gmra.mrb[64].mxu0 %v11494_v26  ;;  %2825 = vmatmul.mubr.bf16.vlgmr.msra.gmra.mrb[64].mxu1 %v11497_v19  ;;  %v1836_v43 = vadd.f32 %v13136_v35, %v1388_v45  ;;  %v6213_v26 = vld [vmem:[%s16518_s11 + $0x68] sm:$0xff]  ;;  %v11504_v35 = vld [vmem:[%s16511_s4 + $0x20] ss:$16 sps:$4 sm:$0xff]  }
 0x171   :  { %v1389_v23 = vmax.f32 %v635_v42, %v1244_v16  ;;  %3018 = vmatpush1.bf16.msra.mxu0 %v13545_v3  ;;  %4075 = vmatpush1.bf16.msra.mxu1 %v13245_v28  ;;  %v1902_v28 = vmax.f32 %v1838_v59, 0.0  ;;  %v6212_v19 = vld [vmem:[%s16518_s11 + $0x60] sm:$0xff] }
 0x172   :  { %v1839_v10 = vadd.f32 %v13144_v40, %v1391_v11  ;;  %v13557_v24 = vpop.permute.xlu1 %5057  ;;  %v13559_v13 = vpop.permute.xlu0 %5052  ;;  %3019 = vmatprep.subr.bf16.mxu0 %v16548_v15  ;;  %4076 = vmatprep.subr.bf16.mxu1 %v16548_v15  ;;  %v11505_v40 = vld [vmem:[%s16511_s4 + $0x120] ss:$16 sps:$4 sm:$0xff]   ;;  %v1900_v60 = vmax.f32 %v1836_v43, 0.0 }
 0x173   :  { %16571 = vst [vmem:[#allocation41_spill] sm:$0xff] %v13557_v24  ;;  %16572 = vst [vmem:[#allocation42_spill] sm:$0xff] %v13559_v13  ;;  %v1837_v45 = vadd.f32 %v13134_v32, %v1389_v23  ;;  %6273 = vperm.xlu1 %11425, %v6211_v1   ;;  %6268 = vperm.xlu0 %11424, %v6210_v34  }
 0x174   :  { %v1903_v5 = vmax.f32 %v1839_v10, 0.0  ;;  %v10778_v16 = vpop.f32.mrb[40].mxu0  ;;  %v10850_v18 = vpop.f32.mrb[40].mxu1  ;;  %2768 = vmatprep.mubr.bf16.mxu0 %v11500_v27  ;;  %2832 = vmatprep.mubr.bf16.mxu1 %v11502_v12  ;;  %v6215_v27 = vld [vmem:[%s16518_s11 + $0x78] sm:$0xff] }
 0x175   :  { %v1901_v11 = vmax.f32 %v1837_v45, 0.0  ;;  %v1394_v42 = vmax.f32 %v10778_v16, %v10850_v18  ;;  %3020 = vmatpush1.bf16.msra.mxu0 %v13539_v50  ;;  %4077 = vmatpush1.bf16.msra.mxu1 %v13242_v0  ;;  %v648_v59 = vpop.f32.mrb[41].mxu0  ;;  %v1257_v32 = vpop.f32.mrb[41].mxu1  ;;  %v11506_v0 = vld [vmem:[%s16511_s4 + $0x44] ss:$16 sps:$4 sm:$0xff]  }
 0x176   :  { %v1392_v1 = vmax.f32 %v648_v59, %v1257_v32  ;;  %v13578_v34 = vpop.permute.xlu1 %4817  ;;  %v13580_v23 = vpop.permute.xlu0 %4812  ;;  %3021 = vmatprep.subr.bf16.mxu0 %v16548_v15  ;;  %4078 = vmatprep.subr.bf16.mxu1 %v16548_v15  ;;  %v13587_v12 = vpack.c.bf16 %v1903_v5, %v1902_v28  ;;  %v6214_v18 = vld [vmem:[%s16518_s11 + $0x70] sm:$0xff] }
 0x177   :  { %v1842_v43 = vadd.f32 %v13166_v57, %v1394_v42  ;;  %v10779_v10 = vpop.f32.mrb[42].mxu0  ;;  %v10851_v45 = vpop.f32.mrb[42].mxu1  ;;  %6283 = vperm.xlu1 %11425, %v6213_v26   ;;  %6278 = vperm.xlu0 %11424, %v6212_v19   ;;  %v13593_v16 = vpack.c.bf16 %v1901_v11, %v1900_v60  ;;  %v11508_v28 = vld [vmem:[%s16511_s4 + $0x144] ss:$16 sps:$4 sm:$0xff]  }
 0x178   :  { %v1395_v5 = vmax.f32 %v10779_v10, %v10851_v45  ;;  %v651_v59 = vpop.f32.mrb[43].mxu0  ;;  %v1260_v32 = vpop.f32.mrb[43].mxu1  ;;  %2769 = vmatmul.mubr.bf16.gmra.mrb[68].mxu0 %v11504_v35  ;;  %2833 = vmatmul.mubr.bf16.gmra.mrb[68].mxu1 %v11505_v40  ;;  %v1840_v57 = vadd.f32 %v13156_v51, %v1392_v1  ;;  %v6514_v35 = vld [vmem:[%s16520_s13 + $0x8] sm:$0xff]  ;;  %v11510_v51 = vld [vmem:[%s16511_s4 + $0x40] ss:$16 sps:$4 sm:$0xff]  }
 0x179   :  { %v1393_v42 = vmax.f32 %v651_v59, %v1260_v32  ;;  %3022 = vmatpush1.bf16.msra.mxu0 %v13593_v16  ;;  %4079 = vmatpush1.bf16.msra.mxu1 %v13281_v44  ;;  %v1906_v44 = vmax.f32 %v1842_v43, 0.0  ;;  %v6513_v11 = vld [vmem:[%s16520_s13] sm:$0xff] }
 0x17a   :  { %v1843_v26 = vadd.f32 %v13164_v56, %v1395_v5  ;;  %v13605_v19 = vpop.permute.xlu1 %4977  ;;  %v13607_v60 = vpop.permute.xlu0 %4972  ;;  %3023 = vmatprep.subr.bf16.mxu0 %v16548_v15  ;;  %4080 = vmatprep.subr.bf16.mxu1 %v16548_v15  ;;  %v11511_v56 = vld [vmem:[%s16511_s4 + $0x140] ss:$16 sps:$4 sm:$0xff]   ;;  %v1904_v5 = vmax.f32 %v1840_v57, 0.0 }
 0x17b   :  { %16573 = vst [vmem:[#allocation43_spill] sm:$0xff] %v13605_v19  ;;  %16574 = vst [vmem:[#allocation44_spill] sm:$0xff] %v13607_v60  ;;  %v1841_v40 = vadd.f32 %v13154_v48, %v1393_v42  ;;  %6293 = vperm.xlu1 %11425, %v6215_v27   ;;  %6288 = vperm.xlu0 %11424, %v6214_v18  }
 0x17c   :  { %v1907_v1 = vmax.f32 %v1843_v26, 0.0  ;;  %v10782_v10 = vpop.f32.mrb[44].mxu0  ;;  %v10854_v45 = vpop.f32.mrb[44].mxu1  ;;  %2776 = vmatprep.mubr.bf16.mxu0 %v11506_v0  ;;  %2840 = vmatprep.mubr.bf16.mxu1 %v11508_v28  ;;  %v6516_v0 = vld [vmem:[%s16520_s13 + $0x18] sm:$0xff] }
 0x17d   :  { %v1905_v59 = vmax.f32 %v1841_v40, 0.0  ;;  %v1398_v32 = vmax.f32 %v10782_v10, %v10854_v45  ;;  %3024 = vmatpush1.bf16.msra.mxu0 %v13587_v12  ;;  %4081 = vmatpush1.bf16.msra.mxu1 %v13278_v58  ;;  %v664_v43 = vpop.f32.mrb[45].mxu0  ;;  %v1273_v48 = vpop.f32.mrb[45].mxu1  ;;  %v11512_v58 = vld [vmem:[%s16511_s4 + $0x64] ss:$16 sps:$4 sm:$0xff]  }
 0x17e   :  { %v1396_v27 = vmax.f32 %v664_v43, %v1273_v48  ;;  %v13626_v18 = vpop.permute.xlu1 %4907  ;;  %v13628_v42 = vpop.permute.xlu0 %4902  ;;  %3025 = vmatprep.subr.bf16.mxu0 %v16548_v15  ;;  %4082 = vmatprep.subr.bf16.mxu1 %v16548_v15  ;;  %v13635_v28 = vpack.c.bf16 %v1907_v1, %v1906_v44  ;;  %v6515_v45 = vld [vmem:[%s16520_s13 + $0x10] sm:$0xff] }
 0x17f   :  { %16575 = vst [vmem:[#allocation45_spill] sm:$0xff] %v13626_v18  ;;  %16576 = vst [vmem:[#allocation46_spill] sm:$0xff] %v13628_v42  ;;  %v1846_v57 = vadd.f32 %v13186_v14, %v1398_v32  ;;  %v10783_v26 = vpop.f32.mrb[46].mxu0  ;;  %v10855_v40 = vpop.f32.mrb[46].mxu1  ;;  %6584 = vperm.xlu1 %11425, %v6514_v35   ;;  %6579 = vperm.xlu0 %11424, %v6513_v11   ;;  %v13641_v10 = vpack.c.bf16 %v1905_v59, %v1904_v5  ;;  %v11514_v44 = vld [vmem:[%s16511_s4 + $0x164] ss:$16 sps:$4 sm:$0xff]  }
 0x180   :  { %v1399_v1 = vmax.f32 %v10783_v26, %v10855_v40  ;;  %v667_v43 = vpop.f32.mrb[47].mxu0  ;;  %v1276_v48 = vpop.f32.mrb[47].mxu1  ;;  %2777 = vmatmul.mubr.bf16.gmra.mrb[72].mxu0 %v11510_v51  ;;  %2841 = vmatmul.mubr.bf16.gmra.mrb[72].mxu1 %v11511_v56  ;;  %v1844_v14 = vadd.f32 %v13176_v2, %v1396_v27  ;;  %v6518_v51 = vld [vmem:[%s16520_s13 + $0x28] sm:$0xff]  ;;  %v11516_v2 = vld [vmem:[%s16511_s4 + $0x60] ss:$16 sps:$4 sm:$0xff]  }
 0x181   :  { %v1397_v32 = vmax.f32 %v667_v43, %v1276_v48  ;;  %3026 = vmatpush1.bf16.msra.mxu0 %v13641_v10  ;;  %4083 = vmatpush1.bf16.msra.mxu1 %v13317_v62  ;;  %v1910_v62 = vmax.f32 %v1846_v57, 0.0  ;;  %v16579_v56 = vld [vmem:[#allocation9_spill] sm:$0xff]  ;;  %v11732_v18 = vld [vmem:[%s16511_s4 + $0x3e8] ss:$16 sps:$4 sm:$0xff]  }
 0x182   :  { %v1847_v35 = vadd.f32 %v13184_v9, %v1399_v1  ;;  %v13653_v11 = vpop.permute.xlu1 %5067  ;;  %v13655_v5 = vpop.permute.xlu0 %5062  ;;  %3027 = vmatprep.subr.bf16.mxu0 %v16548_v15  ;;  %4084 = vmatprep.subr.bf16.mxu1 %v16548_v15  ;;  %v11517_v9 = vld [vmem:[%s16511_s4 + $0x160] ss:$16 sps:$4 sm:$0xff]   ;;  %v1908_v43 = vmax.f32 %v1844_v14, 0.0 }
 0x183   :  { %16577 = vst [vmem:[#allocation47_spill] sm:$0xff] %v13653_v11  ;;  %16578 = vst [vmem:[#allocation48_spill] sm:$0xff] %v13655_v5  ;;  %v1845_v59 = vadd.f32 %v16579_v56, %v1397_v32  ;;  %6594 = vperm.xlu1 %11425, %v6516_v0   ;;  %6589 = vperm.xlu0 %11424, %v6515_v45   ;;  %v6517_v27 = vld [vmem:[%s16520_s13 + $0x20] sm:$0xff] }
 0x184   :  { %v1911_v26 = vmax.f32 %v1847_v35, 0.0  ;;  %v10786_v40 = vpop.f32.mrb[48].mxu0  ;;  %v10858_v1 = vpop.f32.mrb[48].mxu1  ;;  %2784 = vmatprep.mubr.bf16.mxu0 %v11512_v58  ;;  %2848 = vmatprep.mubr.bf16.mxu1 %v11514_v44  ;;  %v6520_v58 = vld [vmem:[%s16520_s13 + $0x38] sm:$0xff]  ;;  %v16582_v14 = vld [vmem:[#allocation13_spill] sm:$0xff] }
 0x185   :  { %v1909_v48 = vmax.f32 %v1845_v59, 0.0  ;;  %v1402_v11 = vmax.f32 %v10786_v40, %v10858_v1  ;;  %3028 = vmatpush1.bf16.msra.mxu0 %v13635_v28  ;;  %4085 = vmatpush1.bf16.msra.mxu1 %v13314_v31  ;;  %v680_v57 = vpop.f32.mrb[49].mxu0  ;;  %v1289_v32 = vpop.f32.mrb[49].mxu1  ;;  %v11518_v31 = vld [vmem:[%s16511_s4 + $0x84] ss:$16 sps:$4 sm:$0xff]  }
 0x186   :  { %v1400_v0 = vmax.f32 %v680_v57, %v1289_v32  ;;  %v13674_v45 = vpop.permute.xlu1 %4827  ;;  %v13676_v56 = vpop.permute.xlu0 %4822  ;;  %3029 = vmatprep.subr.bf16.mxu0 %v16548_v15  ;;  %4086 = vmatprep.subr.bf16.mxu1 %v16548_v15  ;;  %v13683_v44 = vpack.c.bf16 %v1911_v26, %v1910_v62  ;;  %v6519_v57 = vld [vmem:[%s16520_s13 + $0x30] sm:$0xff] }
 0x187   :  { %16580 = vst [vmem:[#allocation9_spill] sm:$0xff] %v13674_v45  ;;  %16581 = vst [vmem:[#allocation49_spill] sm:$0xff] %v13676_v56  ;;  %v1850_v35 = vadd.f32 %v16582_v14, %v1402_v11  ;;  %v10787_v59 = vpop.f32.mrb[50].mxu0  ;;  %v10859_v40 = vpop.f32.mrb[50].mxu1  ;;  %6604 = vperm.xlu1 %11425, %v6518_v51   ;;  %6599 = vperm.xlu0 %11424, %v6517_v27   ;;  %v13689_v1 = vpack.c.bf16 %v1909_v48, %v1908_v43  ;;  %v11520_v62 = vld [vmem:[%s16511_s4 + $0x184] ss:$16 sps:$4 sm:$0xff]  }
 0x188   :  { %v1403_v26 = vmax.f32 %v10787_v59, %v10859_v40  ;;  %v683_v32 = vpop.f32.mrb[51].mxu0  ;;  %v1292_v5 = vpop.f32.mrb[51].mxu1  ;;  %2785 = vmatmul.mubr.bf16.gmra.mrb[76].mxu0 %v11516_v2  ;;  %2849 = vmatmul.mubr.bf16.gmra.mrb[76].mxu1 %v11517_v9  ;;  %v16583_v11 = vld [vmem:[#allocation11_spill] sm:$0xff]  ;;  %v16584_v51 = vld [vmem:[#allocation12_spill] sm:$0xff]  ;;  %v6522_v2 = vld [vmem:[%s16520_s13 + $0x48] sm:$0xff] }
 0x189   :  { %v1848_v14 = vadd.f32 %v16583_v11, %v1400_v0  ;;  %v1401_v24 = vmax.f32 %v683_v32, %v1292_v5  ;;  %3030 = vmatpush1.bf16.msra.mxu0 %v13689_v1  ;;  %4087 = vmatpush1.bf16.msra.mxu1 %v13353_v21  ;;  %v11522_v5 = vld [vmem:[%s16511_s4 + $0x80] ss:$16 sps:$4 sm:$0xff]   ;;  %v1914_v9 = vmax.f32 %v1850_v35, 0.0  ;;  %v16587_v0 = vld [vmem:[#allocation10_spill] sm:$0xff] }
 0x18a   :  { %v1851_v27 = vadd.f32 %v16584_v51, %v1403_v26  ;;  %v13701_v43 = vpop.permute.xlu1 %4987  ;;  %v13703_v48 = vpop.permute.xlu0 %4982  ;;  %3031 = vmatprep.subr.bf16.mxu0 %v16548_v15  ;;  %4088 = vmatprep.subr.bf16.mxu1 %v16548_v15  ;;  %v11523_v21 = vld [vmem:[%s16511_s4 + $0x180] ss:$16 sps:$4 sm:$0xff]  }
 0x18b   :  { %16585 = vst [vmem:[#allocation13_spill] sm:$0xff] %v13701_v43  ;;  %16586 = vst [vmem:[#allocation11_spill] sm:$0xff] %v13703_v48  ;;  %v1849_v59 = vadd.f32 %v16587_v0, %v1401_v24  ;;  %6614 = vperm.xlu1 %11425, %v6520_v58   ;;  %6609 = vperm.xlu0 %11424, %v6519_v57   ;;  %v6521_v40 = vld [vmem:[%s16520_s13 + $0x40] sm:$0xff]  ;;  %v1912_v51 = vmax.f32 %v1848_v14, 0.0 }
 0x18c   :  { %v1915_v26 = vmax.f32 %v1851_v27, 0.0  ;;  %v10790_v32 = vpop.f32.mrb[52].mxu0  ;;  %v10862_v11 = vpop.f32.mrb[52].mxu1  ;;  %2792 = vmatprep.mubr.bf16.mxu0 %v11518_v31  ;;  %2856 = vmatprep.mubr.bf16.mxu1 %v11520_v62  ;;  %v6524_v31 = vld [vmem:[%s16520_s13 + $0x58] sm:$0xff]  ;;  %v16590_v14 = vld [vmem:[#allocation17_spill] sm:$0xff] }
 0x18d   :  { %v1913_v13 = vmax.f32 %v1849_v59, 0.0  ;;  %v1406_v43 = vmax.f32 %v10790_v32, %v10862_v11  ;;  %3032 = vmatpush1.bf16.msra.mxu0 %v13683_v44  ;;  %4089 = vmatpush1.bf16.msra.mxu1 %v13350_v22  ;;  %v696_v35 = vpop.f32.mrb[53].mxu0  ;;  %v1305_v24 = vpop.f32.mrb[53].mxu1  ;;  %v11524_v22 = vld [vmem:[%s16511_s4 + $0xa4] ss:$16 sps:$4 sm:$0xff]  }
 0x18e   :  { %v1404_v58 = vmax.f32 %v696_v35, %v1305_v24  ;;  %v13722_v57 = vpop.permute.xlu1 %4917  ;;  %v13724_v0 = vpop.permute.xlu0 %4912  ;;  %3033 = vmatprep.subr.bf16.mxu0 %v16548_v15  ;;  %4090 = vmatprep.subr.bf16.mxu1 %v16548_v15  ;;  %v13731_v62 = vpack.c.bf16 %v1915_v26, %v1914_v9  ;;  %v6523_v35 = vld [vmem:[%s16520_s13 + $0x50] sm:$0xff] }
 0x18f   :  { %16588 = vst [vmem:[#allocation12_spill] sm:$0xff] %v13722_v57  ;;  %16589 = vst [vmem:[#allocation10_spill] sm:$0xff] %v13724_v0  ;;  %v1854_v27 = vadd.f32 %v16590_v14, %v1406_v43  ;;  %v10791_v59 = vpop.f32.mrb[54].mxu0  ;;  %v10863_v32 = vpop.f32.mrb[54].mxu1  ;;  %6624 = vperm.xlu1 %11425, %v6522_v2   ;;  %6619 = vperm.xlu0 %11424, %v6521_v40   ;;  %v13737_v11 = vpack.c.bf16 %v1913_v13, %v1912_v51  ;;  %v11526_v9 = vld [vmem:[%s16511_s4 + $0x1a4] ss:$16 sps:$4 sm:$0xff]  }
 0x190   :  { %v1407_v26 = vmax.f32 %v10791_v59, %v10863_v32  ;;  %v699_v24 = vpop.f32.mrb[55].mxu0  ;;  %v1308_v48 = vpop.f32.mrb[55].mxu1  ;;  %2793 = vmatmul.mubr.bf16.gmra.mrb[80].mxu0 %v11522_v5  ;;  %2857 = vmatmul.mubr.bf16.gmra.mrb[80].mxu1 %v11523_v21  ;;  %v16591_v43 = vld [vmem:[#allocation15_spill] sm:$0xff]  ;;  %v16592_v13 = vld [vmem:[#allocation16_spill] sm:$0xff]  ;;  %v6526_v5 = vld [vmem:[%s16520_s13 + $0x68] sm:$0xff] }
 0x191   :  { %v1852_v14 = vadd.f32 %v16591_v43, %v1404_v58  ;;  %v1405_v19 = vmax.f32 %v699_v24, %v1308_v48  ;;  %3034 = vmatpush1.bf16.msra.mxu0 %v13737_v11  ;;  %4091 = vmatpush1.bf16.msra.mxu1 %v13389_v55  ;;  %v11528_v48 = vld [vmem:[%s16511_s4 + $0xa0] ss:$16 sps:$4 sm:$0xff]   ;;  %v1918_v21 = vmax.f32 %v1854_v27, 0.0  ;;  %v16595_v58 = vld [vmem:[#allocation14_spill] sm:$0xff] }
 0x192   :  { %v1855_v2 = vadd.f32 %v16592_v13, %v1407_v26  ;;  %v13749_v40 = vpop.permute.xlu1 %5077  ;;  %v13751_v51 = vpop.permute.xlu0 %5072  ;;  %3035 = vmatprep.subr.bf16.mxu0 %v16548_v15  ;;  %4092 = vmatprep.subr.bf16.mxu1 %v16548_v15  ;;  %v11529_v55 = vld [vmem:[%s16511_s4 + $0x1a0] ss:$16 sps:$4 sm:$0xff]  }
 0x193   :  { %16593 = vst [vmem:[#allocation17_spill] sm:$0xff] %v13749_v40  ;;  %16594 = vst [vmem:[#allocation15_spill] sm:$0xff] %v13751_v51  ;;  %v1853_v59 = vadd.f32 %v16595_v58, %v1405_v19  ;;  %6634 = vperm.xlu1 %11425, %v6524_v31   ;;  %6629 = vperm.xlu0 %11424, %v6523_v35   ;;  %v6525_v32 = vld [vmem:[%s16520_s13 + $0x60] sm:$0xff]  ;;  %v1916_v13 = vmax.f32 %v1852_v14, 0.0 }
 0x194   :  { %v1919_v26 = vmax.f32 %v1855_v2, 0.0  ;;  %v10794_v24 = vpop.f32.mrb[56].mxu0  ;;  %v10866_v43 = vpop.f32.mrb[56].mxu1  ;;  %2800 = vmatprep.mubr.bf16.mxu0 %v11524_v22  ;;  %2864 = vmatprep.mubr.bf16.mxu1 %v11526_v9  ;;  %v6528_v22 = vld [vmem:[%s16520_s13 + $0x78] sm:$0xff]  ;;  %v11733_v42 = vld [vmem:[%s16512_s5 + $0x1e0] ss:$16 sps:$4 sm:$0xff]  }
 0x195   :  { %v1917_v40 = vmax.f32 %v1853_v59, 0.0  ;;  %v1410_v51 = vmax.f32 %v10794_v24, %v10866_v43  ;;  %3036 = vmatpush1.bf16.msra.mxu0 %v13731_v62  ;;  %4093 = vmatpush1.bf16.msra.mxu1 %v13386_v30  ;;  %v712_v27 = vpop.f32.mrb[57].mxu0  ;;  %v1321_v19 = vpop.f32.mrb[57].mxu1  ;;  %v11530_v30 = vld [vmem:[%s16511_s4 + $0xc4] ss:$16 sps:$4 sm:$0xff]  }
 0x196   :  { %v1408_v31 = vmax.f32 %v712_v27, %v1321_v19  ;;  %v13770_v35 = vpop.permute.xlu1 %4837  ;;  %v13772_v58 = vpop.permute.xlu0 %4832  ;;  %3037 = vmatprep.subr.bf16.mxu0 %v16548_v15  ;;  %4094 = vmatprep.subr.bf16.mxu1 %v16548_v15  ;;  %v13779_v9 = vpack.c.bf16 %v1919_v26, %v1918_v21  ;;  %v6527_v43 = vld [vmem:[%s16520_s13 + $0x70] sm:$0xff] }
 0x197   :  { %16596 = vst [vmem:[#allocation16_spill] sm:$0xff] %v13770_v35  ;;  %16597 = vst [vmem:[#allocation14_spill] sm:$0xff] %v13772_v58  ;;  %v1858_v14 = vadd.f32 %v13259_v61, %v1410_v51  ;;  %v10795_v2 = vpop.f32.mrb[58].mxu0  ;;  %v10867_v59 = vpop.f32.mrb[58].mxu1  ;;  %6644 = vperm.xlu1 %11425, %v6526_v5   ;;  %6639 = vperm.xlu0 %11424, %v6525_v32   ;;  %v13785_v24 = vpack.c.bf16 %v1917_v40, %v1916_v13  ;;  %v11532_v21 = vld [vmem:[%s16511_s4 + $0x1c4] ss:$16 sps:$4 sm:$0xff]  }
 0x198   :  { %v1411_v26 = vmax.f32 %v10795_v2, %v10867_v59  ;;  %v715_v27 = vpop.f32.mrb[59].mxu0  ;;  %v1324_v19 = vpop.f32.mrb[59].mxu1  ;;  %2801 = vmatmul.mubr.bf16.gmra.mrb[84].mxu0 %v11528_v48  ;;  %2865 = vmatmul.mubr.bf16.gmra.mrb[84].mxu1 %v11529_v55  ;;  %v1856_v61 = vadd.f32 %v13240_v36, %v1408_v31  ;;  %v6530_v48 = vld [vmem:[%s16520_s13 + $0x88] sm:$0xff]  ;;  %v11534_v36 = vld [vmem:[%s16511_s4 + $0xc0] ss:$16 sps:$4 sm:$0xff]  }
 0x199   :  { %v1409_v51 = vmax.f32 %v715_v27, %v1324_v19  ;;  %3038 = vmatpush1.bf16.msra.mxu0 %v13785_v24  ;;  %4095 = vmatpush1.bf16.msra.mxu1 %v13425_v7  ;;  %v1922_v7 = vmax.f32 %v1858_v14, 0.0  ;;  %v16600_v55 = vld [vmem:[#allocation18_spill] sm:$0xff]  ;;  %v6529_v31 = vld [vmem:[%s16520_s13 + $0x80] sm:$0xff] }
 0x19a   :  { %v1859_v40 = vadd.f32 %v13257_v8, %v1411_v26  ;;  %v13797_v5 = vpop.permute.xlu1 %4997  ;;  %v13799_v32 = vpop.permute.xlu0 %4992  ;;  %3039 = vmatprep.subr.bf16.mxu0 %v16548_v15  ;;  %4096 = vmatprep.subr.bf16.mxu1 %v16548_v15  ;;  %v11535_v8 = vld [vmem:[%s16511_s4 + $0x1c0] ss:$16 sps:$4 sm:$0xff]   ;;  %v1920_v27 = vmax.f32 %v1856_v61, 0.0 }
 0x19b   :  { %16598 = vst [vmem:[#allocation50_spill] sm:$0xff] %v13797_v5  ;;  %16599 = vst [vmem:[#allocation51_spill] sm:$0xff] %v13799_v32  ;;  %v1857_v13 = vadd.f32 %v16600_v55, %v1409_v51  ;;  %6654 = vperm.xlu1 %11425, %v6528_v22   ;;  %6649 = vperm.xlu0 %11424, %v6527_v43   ;;  %v11748_v45 = vld [vmem:[%s16512_s5 + $0x280] ss:$16 sps:$4 sm:$0xff]  }
 0x19c   :  { %v1923_v2 = vmax.f32 %v1859_v40, 0.0  ;;  %v10798_v59 = vpop.f32.mrb[60].mxu0  ;;  %v10870_v26 = vpop.f32.mrb[60].mxu1  ;;  %2808 = vmatprep.mubr.bf16.mxu0 %v11530_v30  ;;  %2872 = vmatprep.mubr.bf16.mxu1 %v11532_v21  ;;  %v6532_v30 = vld [vmem:[%s16520_s13 + $0x98] sm:$0xff] }
 0x19d   :  { %v1921_v19 = vmax.f32 %v1857_v13, 0.0  ;;  %v1414_v5 = vmax.f32 %v10798_v59, %v10870_v26  ;;  %3040 = vmatpush1.bf16.msra.mxu0 %v13779_v9  ;;  %4097 = vmatpush1.bf16.msra.mxu1 %v13422_v38  ;;  %v728_v14 = vpop.f32.mrb[61].mxu0  ;;  %v1337_v51 = vpop.f32.mrb[61].mxu1  ;;  %v11536_v38 = vld [vmem:[%s16511_s4 + $0xe4] ss:$16 sps:$4 sm:$0xff]  }
 0x19e   :  { %v1412_v22 = vmax.f32 %v728_v14, %v1337_v51  ;;  %v13818_v43 = vpop.permute.xlu1 %4927  ;;  %v13820_v55 = vpop.permute.xlu0 %4922  ;;  %3041 = vmatprep.subr.bf16.mxu0 %v16548_v15  ;;  %4098 = vmatprep.subr.bf16.mxu1 %v16548_v15  ;;  %v13827_v21 = vpack.c.bf16 %v1923_v2, %v1922_v7  ;;  %v6531_v59 = vld [vmem:[%s16520_s13 + $0x90] sm:$0xff] }
 0x19f   :  { %16601 = vst [vmem:[#allocation18_spill] sm:$0xff] %v13818_v43  ;;  %16602 = vst [vmem:[#allocation52_spill] sm:$0xff] %v13820_v55  ;;  %v10799_v61 = vpop.f32.mrb[62].mxu0  ;;  %v10871_v40 = vpop.f32.mrb[62].mxu1  ;;  %6664 = vperm.xlu1 %11425, %v6530_v48   ;;  %6659 = vperm.xlu0 %11424, %v6529_v31   ;;  %v13832_v13 = vpack.c.bf16 %v1921_v19, %v1920_v27  ;;  %v11538_v26 = vld [vmem:[%s16511_s4 + $0x1e4] ss:$16 sps:$4 sm:$0xff]   ;;  %v1862_v7 = vadd.f32 %v13295_v47, %v1414_v5 }
 0x1a0   :  { %v1415_v2 = vmax.f32 %v10799_v61, %v10871_v40  ;;  %v731_v14 = vpop.f32.mrb[63].mxu0  ;;  %v1340_v51 = vpop.f32.mrb[63].mxu1  ;;  %2809 = vmatmul.mubr.bf16.gmra.mrb[88].mxu0 %v11534_v36  ;;  %2873 = vmatmul.mubr.bf16.gmra.mrb[88].mxu1 %v11535_v8  ;;  %v1860_v48 = vadd.f32 %v13274_v20, %v1412_v22  ;;  %v16603_v27 = vld [vmem:[#allocation20_spill] sm:$0xff]  ;;  %v6534_v47 = vld [vmem:[%s16520_s13 + $0xa8] sm:$0xff]  ;;  %v11540_v20 = vld [vmem:[%s16511_s4 + $0xe0] ss:$16 sps:$4 sm:$0xff]  }
 0x1a1   :  { %v1413_v31 = vmax.f32 %v731_v14, %v1340_v51  ;;  %3042 = vmatpush1.bf16.msra.mxu0 %v13832_v13  ;;  %4099 = vmatpush1.bf16.msra.mxu1 %v13461_v52  ;;  %v11541_v52 = vld [vmem:[%s16511_s4 + $0x1e0] ss:$16 sps:$4 sm:$0xff]   ;;  %v1926_v22 = vmax.f32 %v1862_v7, 0.0  ;;  %v11546_v7 = vld [vmem:[%s16511_s4 + $0xc] ss:$16 sps:$4 sm:$0xff]  }
 0x1a2   :  { %v1863_v19 = vadd.f32 %v16603_v27, %v1415_v2  ;;  %v13845_v32 = vpop.permute.xlu1 %5087  ;;  %v13847_v60 = vpop.permute.xlu0 %5082  ;;  %3043 = vmatprep.subr.bf16.mxu0 %v16548_v15  ;;  %4100 = vmatprep.subr.bf16.mxu1 %v16548_v15  ;;  %v16606_v5 = vld [vmem:[#allocation19_spill] sm:$0xff]  ;;  %v6533_v8 = vld [vmem:[%s16520_s13 + $0xa0] sm:$0xff]  ;;  %v1924_v40 = vmax.f32 %v1860_v48, 0.0  ;;  %v11544_v27 = vld [vmem:[%s16511_s4 + $0x8] ss:$16 sps:$4 sm:$0xff]  }
 0x1a3   :  { %16604 = vst [vmem:[#allocation20_spill] sm:$0xff] %v13845_v32  ;;  %16605 = vst [vmem:[#allocation53_spill] sm:$0xff] %v13847_v60  ;;  %v1861_v36 = vadd.f32 %v16606_v5, %v1413_v31  ;;  %6674 = vperm.xlu1 %11425, %v6532_v30   ;;  %6669 = vperm.xlu0 %11424, %v6531_v59   ;;  %v6536_v30 = vld [vmem:[%s16520_s13 + $0xb8] sm:$0xff]  ;;  %v9322_v32 = vld [vmem:[%s16524_s17 + $0x30] sm:$0xff] }
 0x1a4   :  { %v1927_v61 = vmax.f32 %v1863_v19, 0.0  ;;  %2816 = vmatprep.mubr.bf16.mxu0 %v11536_v38  ;;  %2880 = vmatprep.mubr.bf16.mxu1 %v11538_v26  ;;  %v6535_v38 = vld [vmem:[%s16520_s13 + $0xb0] sm:$0xff]  ;;  %v6538_v19 = vld [vmem:[%s16520_s13 + $0xc8] sm:$0xff] }
 0x1a5   :  { %v1925_v2 = vmax.f32 %v1861_v36, 0.0  ;;  %3044 = vmatpush1.bf16.msra.mxu0 %v13827_v21  ;;  %4101 = vmatpush1.bf16.msra.mxu1 %v13458_v46  ;;  %v11542_v46 = vld [vmem:[%s16511_s4 + $0x204] ss:$16 sps:$4 sm:$0xff]   ;;  %v11726_v43 = vld [vmem:[%s16511_s4 + $0x3c8] ss:$16 sps:$4 sm:$0xff]  }
 0x1a6   :  { %v13866_v14 = vpop.permute.xlu1 %4847  ;;  %v13868_v51 = vpop.permute.xlu0 %4842  ;;  %3045 = vmatprep.subr.bf16.mxu0 %v16548_v15  ;;  %4102 = vmatprep.subr.bf16.mxu1 %v16548_v15  ;;  %v13878_v59 = vpack.c.bf16 %v1927_v61, %v1926_v22  ;;  %v11727_v55 = vld [vmem:[%s16512_s5 + $0x1c0] ss:$16 sps:$4 sm:$0xff]  }
 0x1a7   :  { %16607 = vst [vmem:[#allocation19_spill] sm:$0xff] %v13866_v14  ;;  %16608 = vst [vmem:[#allocation54_spill] sm:$0xff] %v13868_v51  ;;  %6684 = vperm.xlu1 %11425, %v6534_v47   ;;  %6679 = vperm.xlu0 %11424, %v6533_v8   ;;  %v13883_v26 = vpack.c.bf16 %v1925_v2, %v1924_v40  ;;  %v11547_v47 = vld [vmem:[%s16511_s4 + $0x200] ss:$16 sps:$4 sm:$0xff]   ;;  %v6540_v8 = vld [vmem:[%s16520_s13 + $0xd8] sm:$0xff] }
 0x1a8   :  { %2817 = vmatmul.mubr.bf16.gmra.mrb[92].mxu0 %v11540_v20  ;;  %2881 = vmatmul.mubr.bf16.gmra.mrb[92].mxu1 %v11541_v52  ;;  %v11548_v20 = vld [vmem:[%s16511_s4 + $0x224] ss:$16 sps:$4 sm:$0xff]   ;;  %v11550_v52 = vld [vmem:[%s16511_s4 + $0x2c] ss:$16 sps:$4 sm:$0xff]  }
 0x1a9   :  { %3046 = vmatpush1.bf16.msra.mxu0 %v13883_v26  ;;  %4103 = vmatpush1.bf16.msra.mxu1 %v13497_v39  ;;  %v6537_v39 = vld [vmem:[%s16520_s13 + $0xc0] sm:$0xff]  ;;  %v6542_v40 = vld [vmem:[%s16520_s13 + $0xe8] sm:$0xff] }
 0x1aa   :  { %v13890_v48 = vpop.permute.xlu1 %5007  ;;  %v13892_v31 = vpop.permute.xlu0 %5002  ;;  %3047 = vmatprep.subr.bf16.mxu0 %v16548_v15  ;;  %4104 = vmatprep.subr.bf16.mxu1 %v16548_v15  ;;  %v6541_v2 = vld [vmem:[%s16520_s13 + $0xe0] sm:$0xff] }
 0x1ab   :  { %16609 = vst [vmem:[#allocation55_spill] sm:$0xff] %v13890_v48  ;;  %16610 = vst [vmem:[#allocation56_spill] sm:$0xff] %v13892_v31  ;;  %6694 = vperm.xlu1 %11425, %v6536_v30   ;;  %6689 = vperm.xlu0 %11424, %v6535_v38   ;;  %v11552_v30 = vld [vmem:[%s16511_s4 + $0x220] ss:$16 sps:$4 sm:$0xff]   ;;  %v11553_v38 = vld [vmem:[%s16511_s4 + $0x28] ss:$16 sps:$4 sm:$0xff]  }
 0x1ac   :  { %2888 = vmatprep.mubr.bf16.mxu1 %v11542_v46  ;;  %3049 = vmatprep.mubr.bf16.mxu0 %v11546_v7  ;;  %v11554_v46 = vld [vmem:[%s16511_s4 + $0x244] ss:$16 sps:$4 sm:$0xff]   ;;  %v11556_v7 = vld [vmem:[%s16511_s4 + $0x4c] ss:$16 sps:$4 sm:$0xff]   ;;  %v11720_v48 = vld [vmem:[%s16511_s4 + $0x3a8] ss:$16 sps:$4 sm:$0xff]  }
 0x1ad   :  { %3048 = vmatpush1.bf16.msra.mxu0 %v13878_v59  ;;  %4105 = vmatpush1.bf16.msra.mxu1 %v13494_v54  ;;  %v6539_v54 = vld [vmem:[%s16520_s13 + $0xd0] sm:$0xff] }
 0x1ae   :  { %v13916_v5 = vpop.permute.xlu1 %4937  ;;  %v13918_v36 = vpop.permute.xlu0 %4932  ;;  %4363 = vmatprep.subr.bf16.mxu1 %v16548_v15  ;;  %v11721_v31 = vld [vmem:[%s16512_s5 + $0x1a0] ss:$16 sps:$4 sm:$0xff]  }
 0x1af   :  { %16611 = vst [vmem:[#allocation57_spill] sm:$0xff] %v13916_v5  ;;  %16612 = vst [vmem:[#allocation58_spill] sm:$0xff] %v13918_v36  ;;  %6704 = vperm.xlu1 %11425, %v6538_v19   ;;  %6699 = vperm.xlu0 %11424, %v6537_v39   ;;  %v6544_v39 = vld [vmem:[%s16520_s13 + $0xf8] sm:$0xff] }
 0x1b0   :  { %2889 = vmatmul.mubr.bf16.gmra.mrb[96].mxu1 %v11547_v47  ;;  %3050 = vmatmul.mubr.bf16.vlgmr.msra.gmra.mrb[64].mxu0 %v11544_v27  ;;  %v6543_v47 = vld [vmem:[%s16520_s13 + $0xf0] sm:$0xff] }
 0x1b1   :  { %2896 = vmatprep.mubr.bf16.mxu1 %v11548_v20  ;;  %3057 = vmatprep.mubr.bf16.mxu0 %v11550_v52 }
 0x1b2   :  { %v13927_v22 = vpop.permute.xlu1 %5097  ;;  %v13929_v61 = vpop.permute.xlu0 %5092 }
 0x1b3   :  { %16613 = vst [vmem:[#allocation59_spill] sm:$0xff] %v13927_v22  ;;  %16614 = vst [vmem:[#allocation60_spill] sm:$0xff] %v13929_v61  ;;  %6714 = vperm.xlu1 %11425, %v6540_v8   ;;  %6709 = vperm.xlu0 %11424, %v6539_v54   ;;  %v6546_v8 = vld [vmem:[%s16520_s13 + $0x108] sm:$0xff]  ;;  %v6545_v54 = vld [vmem:[%s16520_s13 + $0x100] sm:$0xff] }
 0x1b6   :  { %v13949_v27 = vpop.permute.xlu1 %4857  ;;  %v13951_v19 = vpop.permute.xlu0 %4852 }
 0x1b7   :  { %16615 = vst [vmem:[#allocation61_spill] sm:$0xff] %v13949_v27  ;;  %16616 = vst [vmem:[#allocation62_spill] sm:$0xff] %v13951_v19  ;;  %6724 = vperm.xlu1 %11425, %v6542_v40   ;;  %6719 = vperm.xlu0 %11424, %v6541_v2   ;;  %v11558_v40 = vld [vmem:[%s16511_s4 + $0x240] ss:$16 sps:$4 sm:$0xff]   ;;  %v11559_v2 = vld [vmem:[%s16511_s4 + $0x48] ss:$16 sps:$4 sm:$0xff]  }
 0x1b8   :  { %2897 = vmatmul.mubr.bf16.gmra.mrb[100].mxu1 %v11552_v30  ;;  %3058 = vmatmul.mubr.bf16.gmra.mrb[68].mxu0 %v11553_v38  ;;  %v11560_v30 = vld [vmem:[%s16511_s4 + $0x264] ss:$16 sps:$4 sm:$0xff]   ;;  %v11562_v38 = vld [vmem:[%s16511_s4 + $0x6c] ss:$16 sps:$4 sm:$0xff]  }
 0x1b9   :  { %2904 = vmatprep.mubr.bf16.mxu1 %v11554_v46  ;;  %3065 = vmatprep.mubr.bf16.mxu0 %v11556_v7 }
 0x1ba   :  { %v13959_v20 = vpop.permute.xlu1 %5017  ;;  %v13961_v52 = vpop.permute.xlu0 %5012 }
 0x1bb   :  { %16617 = vst [vmem:[#allocation63_spill] sm:$0xff] %v13959_v20  ;;  %16618 = vst [vmem:[#allocation64_spill] sm:$0xff] %v13961_v52  ;;  %6734 = vperm.xlu1 %11425, %v6544_v39   ;;  %6729 = vperm.xlu0 %11424, %v6543_v47   ;;  %v6548_v39 = vld [vmem:[%s16520_s13 + $0x118] sm:$0xff]  ;;  %v6547_v47 = vld [vmem:[%s16520_s13 + $0x110] sm:$0xff] }
 0x1be   :  { %v13981_v46 = vpop.permute.xlu1 %6071  ;;  %v13983_v7 = vpop.permute.xlu0 %6066 }
 0x1bf   :  { %16619 = vst [vmem:[#allocation65_spill] sm:$0xff] %v13981_v46  ;;  %16620 = vst [vmem:[#allocation66_spill] sm:$0xff] %v13983_v7  ;;  %6744 = vperm.xlu1 %11425, %v6546_v8   ;;  %6739 = vperm.xlu0 %11424, %v6545_v54   ;;  %v6550_v8 = vld [vmem:[%s16520_s13 + $0x128] sm:$0xff]  ;;  %v6549_v54 = vld [vmem:[%s16520_s13 + $0x120] sm:$0xff] }
 0x1c0   :  { %2905 = vmatmul.mubr.bf16.gmra.mrb[104].mxu1 %v11558_v40  ;;  %3066 = vmatmul.mubr.bf16.gmra.mrb[72].mxu0 %v11559_v2  ;;  %v11564_v40 = vld [vmem:[%s16511_s4 + $0x260] ss:$16 sps:$4 sm:$0xff]   ;;  %v11565_v2 = vld [vmem:[%s16511_s4 + $0x68] ss:$16 sps:$4 sm:$0xff]  }
 0x1c1   :  { %2912 = vmatprep.mubr.bf16.mxu1 %v11560_v30  ;;  %3073 = vmatprep.mubr.bf16.mxu0 %v11562_v38  ;;  %v11566_v30 = vld [vmem:[%s16511_s4 + $0x284] ss:$16 sps:$4 sm:$0xff]   ;;  %v11568_v38 = vld [vmem:[%s16511_s4 + $0x8c] ss:$16 sps:$4 sm:$0xff]  }
 0x1c2   :  { %v13991_v22 = vpop.permute.xlu1 %6081  ;;  %v13993_v61 = vpop.permute.xlu0 %6076  ;;  %v9323_v7 = vld [vmem:[%s16524_s17 + $0x38] sm:$0xff] }
 0x1c3   :  { %16621 = vst [vmem:[#allocation67_spill] sm:$0xff] %v13991_v22  ;;  %16622 = vst [vmem:[#allocation68_spill] sm:$0xff] %v13993_v61  ;;  %6754 = vperm.xlu1 %11425, %v6548_v39   ;;  %6749 = vperm.xlu0 %11424, %v6547_v47   ;;  %v6552_v47 = vld [vmem:[%s16520_s13 + $0x138] sm:$0xff]  ;;  %v6551_v22 = vld [vmem:[%s16520_s13 + $0x130] sm:$0xff] }
 0x1c6   :  { %v14013_v39 = vpop.permute.xlu1 %6091  ;;  %v14021_v61 = vpop.permute.xlu0 %6086 }
 0x1c7   :  { %6764 = vperm.xlu1 %11425, %v6550_v8   ;;  %6759 = vperm.xlu0 %11424, %v6549_v54   ;;  %16623 = vst [vmem:[#allocation69_spill] sm:$0xff] %v14013_v39  ;;  %16624 = vst [vmem:[#allocation70_spill] sm:$0xff] %v14021_v61  ;;  %v6554_v8 = vld [vmem:[%s16520_s13 + $0x148] sm:$0xff]  ;;  %v6553_v54 = vld [vmem:[%s16520_s13 + $0x140] sm:$0xff] }
 0x1c8   :  { %2913 = vmatmul.mubr.bf16.gmra.mrb[108].mxu1 %v11564_v40  ;;  %3074 = vmatmul.mubr.bf16.gmra.mrb[76].mxu0 %v11565_v2  ;;  %v11570_v40 = vld [vmem:[%s16511_s4 + $0x280] ss:$16 sps:$4 sm:$0xff]   ;;  %v11571_v2 = vld [vmem:[%s16511_s4 + $0x88] ss:$16 sps:$4 sm:$0xff]  }
 0x1c9   :  { %2920 = vmatprep.mubr.bf16.mxu1 %v11566_v30  ;;  %3081 = vmatprep.mubr.bf16.mxu0 %v11568_v38  ;;  %v11574_v30 = vld [vmem:[%s16511_s4 + $0xac] ss:$16 sps:$4 sm:$0xff]   ;;  %v6555_v61 = vld [vmem:[%s16520_s13 + $0x150] sm:$0xff] }
 0x1ca   :  { %v14041_v38 = vpop.permute.xlu1 %6101  ;;  %v6556_v39 = vld [vmem:[%s16520_s13 + $0x158] sm:$0xff] }
 0x1cb   :  { %6774 = vperm.xlu1 %11425, %v6552_v47   ;;  %6769 = vperm.xlu0 %11424, %v6551_v22   ;;  %v11572_v22 = vld [vmem:[%s16511_s4 + $0x2a4] ss:$16 sps:$4 sm:$0xff]   ;;  %16625 = vst [vmem:[#allocation71_spill] sm:$0xff] %v14041_v38  ;;  %v14043_v47 = vpop.permute.xlu0 %6096  ;;  %v6558_v38 = vld [vmem:[%s16520_s13 + $0x168] sm:$0xff] }
 0x1cc   :  { %16626 = vst [vmem:[#allocation72_spill] sm:$0xff] %v14043_v47 }
 0x1cf   :  { %6784 = vperm.xlu1 %11425, %v6554_v8   ;;  %6779 = vperm.xlu0 %11424, %v6553_v54   ;;  %v14054_v8 = vpop.permute.xlu1 %6111  ;;  %v6557_v54 = vld [vmem:[%s16520_s13 + $0x160] sm:$0xff] }
 0x1d0   :  { %2921 = vmatmul.mubr.bf16.gmra.mrb[112].mxu1 %v11570_v40  ;;  %3082 = vmatmul.mubr.bf16.gmra.mrb[80].mxu0 %v11571_v2  ;;  %16627 = vst [vmem:[#allocation73_spill] sm:$0xff] %v14054_v8  ;;  %v11576_v40 = vld [vmem:[%s16511_s4 + $0x2a0] ss:$16 sps:$4 sm:$0xff]   ;;  %v11577_v2 = vld [vmem:[%s16511_s4 + $0xa8] ss:$16 sps:$4 sm:$0xff]  }
 0x1d1   :  { %2928 = vmatprep.mubr.bf16.mxu1 %v11572_v22  ;;  %3089 = vmatprep.mubr.bf16.mxu0 %v11574_v30  ;;  %v11580_v22 = vld [vmem:[%s16511_s4 + $0xcc] ss:$16 sps:$4 sm:$0xff]   ;;  %v6559_v8 = vld [vmem:[%s16520_s13 + $0x170] sm:$0xff] }
 0x1d2   :  { %v6560_v30 = vld [vmem:[%s16520_s13 + $0x178] sm:$0xff] }
 0x1d3   :  { %6794 = vperm.xlu1 %11425, %v6556_v39   ;;  %6789 = vperm.xlu0 %11424, %v6555_v61   ;;  %v14065_v39 = vpop.permute.xlu0 %6106  ;;  %v11578_v61 = vld [vmem:[%s16511_s4 + $0x2c4] ss:$16 sps:$4 sm:$0xff]  }
 0x1d4   :  { %16628 = vst [vmem:[#allocation74_spill] sm:$0xff] %v14065_v39  ;;  %v14079_v39 = vpop.permute.xlu1 %6121 }
 0x1d5   :  { %16629 = vst [vmem:[#allocation75_spill] sm:$0xff] %v14079_v39  ;;  %v6563_v39 = vld [vmem:[%s16520_s13 + $0x190] sm:$0xff] }
 0x1d7   :  { %6804 = vperm.xlu1 %11425, %v6558_v38   ;;  %6799 = vperm.xlu0 %11424, %v6557_v54   ;;  %v14081_v47 = vpop.permute.xlu0 %6116  ;;  %v6562_v38 = vld [vmem:[%s16520_s13 + $0x188] sm:$0xff]  ;;  %v6561_v54 = vld [vmem:[%s16520_s13 + $0x180] sm:$0xff] }
 0x1d8   :  { %2929 = vmatmul.mubr.bf16.gmra.mrb[116].mxu1 %v11576_v40  ;;  %3090 = vmatmul.mubr.bf16.gmra.mrb[84].mxu0 %v11577_v2  ;;  %16630 = vst [vmem:[#allocation76_spill] sm:$0xff] %v14081_v47  ;;  %v11582_v40 = vld [vmem:[%s16511_s4 + $0x2c0] ss:$16 sps:$4 sm:$0xff]   ;;  %v11583_v2 = vld [vmem:[%s16511_s4 + $0xc8] ss:$16 sps:$4 sm:$0xff]  }
 0x1d9   :  { %2936 = vmatprep.mubr.bf16.mxu1 %v11578_v61  ;;  %3097 = vmatprep.mubr.bf16.mxu0 %v11580_v22  ;;  %v11586_v61 = vld [vmem:[%s16511_s4 + $0xec] ss:$16 sps:$4 sm:$0xff]   ;;  %v14101_v22 = vpop.permute.xlu1 %6131 }
 0x1da   :  { %16631 = vst [vmem:[#allocation77_spill] sm:$0xff] %v14101_v22  ;;  %v6568_v22 = vld [vmem:[%s16520_s13 + $0x1b8] sm:$0xff] }
 0x1db   :  { %6814 = vperm.xlu1 %11425, %v6560_v30   ;;  %6809 = vperm.xlu0 %11424, %v6559_v8   ;;  %v11584_v8 = vld [vmem:[%s16511_s4 + $0x2e4] ss:$16 sps:$4 sm:$0xff]   ;;  %v6564_v30 = vld [vmem:[%s16520_s13 + $0x198] sm:$0xff]  ;;  %v14109_v47 = vpop.permute.xlu0 %6126 }
 0x1dc   :  { %16632 = vst [vmem:[#allocation78_spill] sm:$0xff] %v14109_v47  ;;  %v6567_v47 = vld [vmem:[%s16520_s13 + $0x1b0] sm:$0xff] }
 0x1df   :  { %6824 = vperm.xlu1 %11425, %v6562_v38   ;;  %6819 = vperm.xlu0 %11424, %v6561_v54   ;;  %v6566_v38 = vld [vmem:[%s16520_s13 + $0x1a8] sm:$0xff]  ;;  %v6565_v54 = vld [vmem:[%s16520_s13 + $0x1a0] sm:$0xff] }
 0x1e0   :  { %2937 = vmatmul.mubr.bf16.gmra.mrb[120].mxu1 %v11582_v40  ;;  %3098 = vmatmul.mubr.bf16.gmra.mrb[88].mxu0 %v11583_v2  ;;  %v11588_v40 = vld [vmem:[%s16511_s4 + $0x2e0] ss:$16 sps:$4 sm:$0xff]   ;;  %v11589_v2 = vld [vmem:[%s16511_s4 + $0xe8] ss:$16 sps:$4 sm:$0xff]  }
 0x1e1   :  { %2944 = vmatprep.mubr.bf16.mxu1 %v11584_v8  ;;  %3105 = vmatprep.mubr.bf16.mxu0 %v11586_v61  ;;  %v11592_v8 = vld [vmem:[%s16511_s4 + $0x10c] ss:$16 sps:$4 sm:$0xff]   ;;  %v14129_v61 = vpop.permute.xlu1 %6141 }
 0x1e2   :  { %16633 = vst [vmem:[#allocation79_spill] sm:$0xff] %v14129_v61  ;;  %v6570_v61 = vld [vmem:[%s16520_s13 + $0x1c8] sm:$0xff] }
 0x1e3   :  { %6834 = vperm.xlu1 %11425, %v6564_v30   ;;  %6829 = vperm.xlu0 %11424, %v6563_v39   ;;  %v11590_v39 = vld [vmem:[%s16511_s4 + $0x304] ss:$16 sps:$4 sm:$0xff]   ;;  %v14131_v30 = vpop.permute.xlu0 %6136 }
 0x1e4   :  { %16634 = vst [vmem:[#allocation80_spill] sm:$0xff] %v14131_v30 }
 0x1e7   :  { %6844 = vperm.xlu1 %11425, %v6566_v38   ;;  %6839 = vperm.xlu0 %11424, %v6565_v54   ;;  %v14142_v38 = vpop.permute.xlu1 %6223  ;;  %v6569_v54 = vld [vmem:[%s16520_s13 + $0x1c0] sm:$0xff] }
 0x1e8   :  { %2945 = vmatmul.mubr.bf16.gmra.mrb[124].mxu1 %v11588_v40  ;;  %3106 = vmatmul.mubr.bf16.gmra.mrb[92].mxu0 %v11589_v2  ;;  %16635 = vst [vmem:[#allocation81_spill] sm:$0xff] %v14142_v38  ;;  %v11594_v40 = vld [vmem:[%s16511_s4 + $0x300] ss:$16 sps:$4 sm:$0xff]   ;;  %v11595_v2 = vld [vmem:[%s16511_s4 + $0x108] ss:$16 sps:$4 sm:$0xff]  }
 0x1e9   :  { %2952 = vmatprep.mubr.bf16.mxu1 %v11590_v39  ;;  %3113 = vmatprep.mubr.bf16.mxu0 %v11592_v8  ;;  %v11598_v39 = vld [vmem:[%s16511_s4 + $0x12c] ss:$16 sps:$4 sm:$0xff]   ;;  %v6571_v38 = vld [vmem:[%s16520_s13 + $0x1d0] sm:$0xff] }
 0x1ea   :  { %v6572_v8 = vld [vmem:[%s16520_s13 + $0x1d8] sm:$0xff] }
 0x1eb   :  { %6854 = vperm.xlu1 %11425, %v6568_v22   ;;  %6849 = vperm.xlu0 %11424, %v6567_v47   ;;  %v14153_v22 = vpop.permute.xlu0 %6218  ;;  %v11596_v47 = vld [vmem:[%s16511_s4 + $0x324] ss:$16 sps:$4 sm:$0xff]  }
 0x1ec   :  { %16636 = vst [vmem:[#allocation82_spill] sm:$0xff] %v14153_v22  ;;  %v14167_v22 = vpop.permute.xlu1 %6233 }
 0x1ed   :  { %16637 = vst [vmem:[#allocation83_spill] sm:$0xff] %v14167_v22  ;;  %v6575_v22 = vld [vmem:[%s16520_s13 + $0x1f0] sm:$0xff] }
 0x1ef   :  { %6864 = vperm.xlu1 %11425, %v6570_v61   ;;  %6859 = vperm.xlu0 %11424, %v6569_v54   ;;  %v14169_v30 = vpop.permute.xlu0 %6228  ;;  %v6574_v61 = vld [vmem:[%s16520_s13 + $0x1e8] sm:$0xff]  ;;  %v6573_v54 = vld [vmem:[%s16520_s13 + $0x1e0] sm:$0xff] }
 0x1f0   :  { %2953 = vmatmul.mubr.bf16.gmra.mrb[128].mxu1 %v11594_v40  ;;  %3114 = vmatmul.mubr.bf16.gmra.mrb[96].mxu0 %v11595_v2  ;;  %16638 = vst [vmem:[#allocation84_spill] sm:$0xff] %v14169_v30  ;;  %v11600_v40 = vld [vmem:[%s16511_s4 + $0x320] ss:$16 sps:$4 sm:$0xff]   ;;  %v11601_v2 = vld [vmem:[%s16511_s4 + $0x128] ss:$16 sps:$4 sm:$0xff]  }
 0x1f1   :  { %2960 = vmatprep.mubr.bf16.mxu1 %v11596_v47  ;;  %3121 = vmatprep.mubr.bf16.mxu0 %v11598_v39  ;;  %v11604_v47 = vld [vmem:[%s16511_s4 + $0x14c] ss:$16 sps:$4 sm:$0xff]   ;;  %v14189_v39 = vpop.permute.xlu1 %6243 }
 0x1f2   :  { %16639 = vst [vmem:[#allocation85_spill] sm:$0xff] %v14189_v39  ;;  %v7603_v39 = vld [vmem:[%s16522_s15 + $0x8] sm:$0xff] }
 0x1f3   :  { %6874 = vperm.xlu1 %11425, %v6572_v8   ;;  %6869 = vperm.xlu0 %11424, %v6571_v38   ;;  %v11602_v38 = vld [vmem:[%s16511_s4 + $0x344] ss:$16 sps:$4 sm:$0xff]   ;;  %v6576_v8 = vld [vmem:[%s16520_s13 + $0x1f8] sm:$0xff]  ;;  %v14197_v30 = vpop.permute.xlu0 %6238 }
 0x1f4   :  { %16640 = vst [vmem:[#allocation86_spill] sm:$0xff] %v14197_v30  ;;  %v7602_v30 = vld [vmem:[%s16522_s15] sm:$0xff] }
 0x1f7   :  { %6884 = vperm.xlu1 %11425, %v6574_v61   ;;  %6879 = vperm.xlu0 %11424, %v6573_v54   ;;  %v7619_v61 = vld [vmem:[%s16522_s15 + $0x88] sm:$0xff]  ;;  %v7618_v54 = vld [vmem:[%s16522_s15 + $0x80] sm:$0xff] }
 0x1f8   :  { %2961 = vmatmul.mubr.bf16.gmra.mrb[132].mxu1 %v11600_v40  ;;  %3122 = vmatmul.mubr.bf16.gmra.mrb[100].mxu0 %v11601_v2  ;;  %v11606_v40 = vld [vmem:[%s16511_s4 + $0x340] ss:$16 sps:$4 sm:$0xff]   ;;  %v11607_v2 = vld [vmem:[%s16511_s4 + $0x148] ss:$16 sps:$4 sm:$0xff]  }
 0x1f9   :  { %2968 = vmatprep.mubr.bf16.mxu1 %v11602_v38  ;;  %3129 = vmatprep.mubr.bf16.mxu0 %v11604_v47  ;;  %v11610_v38 = vld [vmem:[%s16511_s4 + $0x16c] ss:$16 sps:$4 sm:$0xff]   ;;  %v14217_v47 = vpop.permute.xlu1 %6253 }
 0x1fa   :  { %16641 = vst [vmem:[#allocation87_spill] sm:$0xff] %v14217_v47  ;;  %v7621_v47 = vld [vmem:[%s16522_s15 + $0x98] sm:$0xff] }
 0x1fb   :  { %6894 = vperm.xlu1 %11425, %v6576_v8   ;;  %6889 = vperm.xlu0 %11424, %v6575_v22   ;;  %v11608_v22 = vld [vmem:[%s16511_s4 + $0x364] ss:$16 sps:$4 sm:$0xff]   ;;  %v14219_v8 = vpop.permute.xlu0 %6248 }
 0x1fc   :  { %16642 = vst [vmem:[#allocation88_spill] sm:$0xff] %v14219_v8 }
 0x1ff   :  { %7753 = vperm.xlu1 %11425, %v7619_v61   ;;  %7748 = vperm.xlu0 %11424, %v7618_v54   ;;  %v14230_v61 = vpop.permute.xlu1 %6263  ;;  %v7620_v54 = vld [vmem:[%s16522_s15 + $0x90] sm:$0xff] }
 0x200   :  { %2969 = vmatmul.mubr.bf16.gmra.mrb[136].mxu1 %v11606_v40  ;;  %3130 = vmatmul.mubr.bf16.gmra.mrb[104].mxu0 %v11607_v2  ;;  %16643 = vst [vmem:[#allocation89_spill] sm:$0xff] %v14230_v61  ;;  %v11612_v40 = vld [vmem:[%s16511_s4 + $0x360] ss:$16 sps:$4 sm:$0xff]   ;;  %v11613_v2 = vld [vmem:[%s16511_s4 + $0x168] ss:$16 sps:$4 sm:$0xff]  }
 0x201   :  { %2976 = vmatprep.mubr.bf16.mxu1 %v11608_v22  ;;  %3137 = vmatprep.mubr.bf16.mxu0 %v11610_v38  ;;  %v11616_v22 = vld [vmem:[%s16511_s4 + $0x18c] ss:$16 sps:$4 sm:$0xff]   ;;  %v7604_v61 = vld [vmem:[%s16522_s15 + $0x10] sm:$0xff] }
 0x202   :  { %v7605_v38 = vld [vmem:[%s16522_s15 + $0x18] sm:$0xff] }
 0x203   :  { %7673 = vperm.xlu1 %11425, %v7603_v39   ;;  %7668 = vperm.xlu0 %11424, %v7602_v30   ;;  %v14241_v39 = vpop.permute.xlu0 %6258  ;;  %v11614_v30 = vld [vmem:[%s16511_s4 + $0x384] ss:$16 sps:$4 sm:$0xff]  }
 0x204   :  { %16644 = vst [vmem:[#allocation90_spill] sm:$0xff] %v14241_v39  ;;  %v14255_v39 = vpop.permute.xlu1 %6273 }
 0x205   :  { %16645 = vst [vmem:[#allocation91_spill] sm:$0xff] %v14255_v39  ;;  %v7606_v39 = vld [vmem:[%s16522_s15 + $0x20] sm:$0xff] }
 0x207   :  { %7763 = vperm.xlu1 %11425, %v7621_v47   ;;  %7758 = vperm.xlu0 %11424, %v7620_v54   ;;  %v14257_v8 = vpop.permute.xlu0 %6268  ;;  %v7623_v47 = vld [vmem:[%s16522_s15 + $0xa8] sm:$0xff]  ;;  %v7622_v54 = vld [vmem:[%s16522_s15 + $0xa0] sm:$0xff] }
 0x208   :  { %2977 = vmatmul.mubr.bf16.gmra.mrb[140].mxu1 %v11612_v40  ;;  %3138 = vmatmul.mubr.bf16.gmra.mrb[108].mxu0 %v11613_v2  ;;  %16646 = vst [vmem:[#allocation92_spill] sm:$0xff] %v14257_v8  ;;  %v11618_v40 = vld [vmem:[%s16511_s4 + $0x380] ss:$16 sps:$4 sm:$0xff]   ;;  %v11619_v2 = vld [vmem:[%s16511_s4 + $0x188] ss:$16 sps:$4 sm:$0xff]  }
 0x209   :  { %2984 = vmatprep.mubr.bf16.mxu1 %v11614_v30  ;;  %3145 = vmatprep.mubr.bf16.mxu0 %v11616_v22  ;;  %v11622_v30 = vld [vmem:[%s16511_s4 + $0x1ac] ss:$16 sps:$4 sm:$0xff]   ;;  %v14277_v22 = vpop.permute.xlu1 %6283 }
 0x20a   :  { %16647 = vst [vmem:[#allocation93_spill] sm:$0xff] %v14277_v22  ;;  %v7609_v22 = vld [vmem:[%s16522_s15 + $0x38] sm:$0xff] }
 0x20b   :  { %7683 = vperm.xlu1 %11425, %v7605_v38   ;;  %7678 = vperm.xlu0 %11424, %v7604_v61   ;;  %v11620_v61 = vld [vmem:[%s16511_s4 + $0x3a4] ss:$16 sps:$4 sm:$0xff]   ;;  %v7607_v38 = vld [vmem:[%s16522_s15 + $0x28] sm:$0xff]  ;;  %v14285_v8 = vpop.permute.xlu0 %6278 }
 0x20c   :  { %16648 = vst [vmem:[#allocation94_spill] sm:$0xff] %v14285_v8  ;;  %v7608_v8 = vld [vmem:[%s16522_s15 + $0x30] sm:$0xff] }
 0x20f   :  { %7773 = vperm.xlu1 %11425, %v7623_v47   ;;  %7768 = vperm.xlu0 %11424, %v7622_v54   ;;  %v7625_v47 = vld [vmem:[%s16522_s15 + $0xb8] sm:$0xff]  ;;  %v7624_v54 = vld [vmem:[%s16522_s15 + $0xb0] sm:$0xff] }
 0x210   :  { %2985 = vmatmul.mubr.bf16.gmra.mrb[144].mxu1 %v11618_v40  ;;  %3146 = vmatmul.mubr.bf16.gmra.mrb[112].mxu0 %v11619_v2  ;;  %v11624_v40 = vld [vmem:[%s16511_s4 + $0x3a0] ss:$16 sps:$4 sm:$0xff]   ;;  %v11625_v2 = vld [vmem:[%s16511_s4 + $0x1a8] ss:$16 sps:$4 sm:$0xff]  }
 0x211   :  { %2992 = vmatprep.mubr.bf16.mxu1 %v11620_v61  ;;  %3153 = vmatprep.mubr.bf16.mxu0 %v11622_v30  ;;  %v11628_v61 = vld [vmem:[%s16511_s4 + $0x1cc] ss:$16 sps:$4 sm:$0xff]   ;;  %v14305_v30 = vpop.permute.xlu1 %6293 }
 0x212   :  { %16649 = vst [vmem:[#allocation95_spill] sm:$0xff] %v14305_v30  ;;  %v7627_v30 = vld [vmem:[%s16522_s15 + $0xc8] sm:$0xff] }
 0x213   :  { %7693 = vperm.xlu1 %11425, %v7607_v38   ;;  %7688 = vperm.xlu0 %11424, %v7606_v39   ;;  %v11626_v39 = vld [vmem:[%s16511_s4 + $0x3c4] ss:$16 sps:$4 sm:$0xff]   ;;  %v14307_v38 = vpop.permute.xlu0 %6288 }
 0x214   :  { %16650 = vst [vmem:[#allocation96_spill] sm:$0xff] %v14307_v38 }
 0x217   :  { %7783 = vperm.xlu1 %11425, %v7625_v47   ;;  %7778 = vperm.xlu0 %11424, %v7624_v54   ;;  %v14318_v47 = vpop.permute.xlu1 %6584  ;;  %v7626_v54 = vld [vmem:[%s16522_s15 + $0xc0] sm:$0xff] }
 0x218   :  { %2993 = vmatmul.mubr.bf16.gmra.mrb[148].mxu1 %v11624_v40  ;;  %3154 = vmatmul.mubr.bf16.gmra.mrb[116].mxu0 %v11625_v2  ;;  %16651 = vst [vmem:[#allocation97_spill] sm:$0xff] %v14318_v47  ;;  %v11630_v40 = vld [vmem:[%s16511_s4 + $0x3c0] ss:$16 sps:$4 sm:$0xff]   ;;  %v11631_v2 = vld [vmem:[%s16511_s4 + $0x1c8] ss:$16 sps:$4 sm:$0xff]  }
 0x219   :  { %3000 = vmatprep.mubr.bf16.mxu1 %v11626_v39  ;;  %3161 = vmatprep.mubr.bf16.mxu0 %v11628_v61  ;;  %v11634_v39 = vld [vmem:[%s16511_s4 + $0x1ec] ss:$16 sps:$4 sm:$0xff]   ;;  %v7610_v47 = vld [vmem:[%s16522_s15 + $0x40] sm:$0xff] }
 0x21a   :  { %v7611_v61 = vld [vmem:[%s16522_s15 + $0x48] sm:$0xff] }
 0x21b   :  { %7703 = vperm.xlu1 %11425, %v7609_v22   ;;  %7698 = vperm.xlu0 %11424, %v7608_v8   ;;  %v14329_v22 = vpop.permute.xlu0 %6579  ;;  %v11632_v8 = vld [vmem:[%s16511_s4 + $0x3e4] ss:$16 sps:$4 sm:$0xff]  }
 0x21c   :  { %16652 = vst [vmem:[#allocation98_spill] sm:$0xff] %v14329_v22  ;;  %v14343_v22 = vpop.permute.xlu1 %6594 }
 0x21d   :  { %16653 = vst [vmem:[#allocation99_spill] sm:$0xff] %v14343_v22  ;;  %v7612_v22 = vld [vmem:[%s16522_s15 + $0x50] sm:$0xff] }
 0x21f   :  { %7793 = vperm.xlu1 %11425, %v7627_v30   ;;  %7788 = vperm.xlu0 %11424, %v7626_v54   ;;  %v14345_v38 = vpop.permute.xlu0 %6589  ;;  %v7629_v30 = vld [vmem:[%s16522_s15 + $0xd8] sm:$0xff]  ;;  %v7628_v54 = vld [vmem:[%s16522_s15 + $0xd0] sm:$0xff] }
 0x220   :  { %3001 = vmatmul.mubr.bf16.gmra.mrb[152].mxu1 %v11630_v40  ;;  %3162 = vmatmul.mubr.bf16.gmra.mrb[120].mxu0 %v11631_v2  ;;  %16654 = vst [vmem:[#allocation100_spill] sm:$0xff] %v14345_v38  ;;  %v11636_v40 = vld [vmem:[%s16511_s4 + $0x3e0] ss:$16 sps:$4 sm:$0xff]   ;;  %v11637_v2 = vld [vmem:[%s16511_s4 + $0x1e8] ss:$16 sps:$4 sm:$0xff]  }
 0x221   :  { %3008 = vmatprep.mubr.bf16.mxu1 %v11632_v8  ;;  %3169 = vmatprep.mubr.bf16.mxu0 %v11634_v39  ;;  %v11642_v8 = vld [vmem:[%s16512_s5 + $0x4] ss:$16 sps:$4 sm:$0xff]   ;;  %v14365_v39 = vpop.permute.xlu1 %6604 }
 0x222   :  { %16655 = vst [vmem:[#allocation101_spill] sm:$0xff] %v14365_v39  ;;  %v7615_v39 = vld [vmem:[%s16522_s15 + $0x68] sm:$0xff] }
 0x223   :  { %7713 = vperm.xlu1 %11425, %v7611_v61   ;;  %7708 = vperm.xlu0 %11424, %v7610_v47   ;;  %v11638_v47 = vld [vmem:[%s16511_s4 + $0x20c] ss:$16 sps:$4 sm:$0xff]   ;;  %v14373_v38 = vpop.permute.xlu0 %6599 }
 0x224   :  { %v7613_v61 = vld [vmem:[%s16522_s15 + $0x58] sm:$0xff]  ;;  %16656 = vst [vmem:[#allocation102_spill] sm:$0xff] %v14373_v38  ;;  %v7614_v38 = vld [vmem:[%s16522_s15 + $0x60] sm:$0xff] }
 0x227   :  { %7803 = vperm.xlu1 %11425, %v7629_v30   ;;  %7798 = vperm.xlu0 %11424, %v7628_v54   ;;  %v11640_v30 = vld [vmem:[%s16512_s5] ss:$16 sps:$4 sm:$0xff]   ;;  %v7631_v54 = vld [vmem:[%s16522_s15 + $0xe8] sm:$0xff] }
 0x228   :  { %3009 = vmatmul.mubr.bf16.gmra.mrb[156].mxu1 %v11636_v40  ;;  %3170 = vmatmul.mubr.bf16.gmra.mrb[124].mxu0 %v11637_v2  ;;  %v7630_v40 = vld [vmem:[%s16522_s15 + $0xe0] sm:$0xff]  ;;  %v11643_v2 = vld [vmem:[%s16511_s4 + $0x208] ss:$16 sps:$4 sm:$0xff]  }
 0x229   :  { %3177 = vmatprep.mubr.bf16.mxu0 %v11638_v47  ;;  %4106 = vmatprep.mubr.bf16.mxu1 %v11642_v8  ;;  %v14390_v47 = vpop.permute.xlu1 %6614  ;;  %v11646_v8 = vld [vmem:[%s16512_s5 + $0x24] ss:$16 sps:$4 sm:$0xff]  }
 0x22a   :  { %16657 = vst [vmem:[#allocation103_spill] sm:$0xff] %v14390_v47  ;;  %v7648_v47 = vld [vmem:[%s16522_s15 + $0x170] sm:$0xff] }
 0x22b   :  { %7723 = vperm.xlu1 %11425, %v7613_v61   ;;  %7718 = vperm.xlu0 %11424, %v7612_v22   ;;  %v11644_v22 = vld [vmem:[%s16511_s4 + $0x22c] ss:$16 sps:$4 sm:$0xff]   ;;  %v14395_v61 = vpop.permute.xlu0 %6609 }
 0x22c   :  { %16658 = vst [vmem:[#allocation104_spill] sm:$0xff] %v14395_v61 }
 0x22f   :  { %7813 = vperm.xlu1 %11425, %v7631_v54   ;;  %7808 = vperm.xlu0 %11424, %v7630_v40   ;;  %v14408_v54 = vpop.permute.xlu1 %6624  ;;  %v7632_v40 = vld [vmem:[%s16522_s15 + $0xf0] sm:$0xff] }
 0x230   :  { %3178 = vmatmul.mubr.bf16.gmra.mrb[128].mxu0 %v11643_v2  ;;  %4107 = vmatmul.mubr.bf16.vlgmr.msra.gmra.mrb[160].mxu1 %v11640_v30  ;;  %v7633_v30 = vld [vmem:[%s16522_s15 + $0xf8] sm:$0xff]  ;;  %16659 = vst [vmem:[#allocation105_spill] sm:$0xff] %v14408_v54  ;;  %v11649_v2 = vld [vmem:[%s16512_s5 + $0x20] ss:$16 sps:$4 sm:$0xff]  }
 0x231   :  { %4364 = vmatpush1.bf16.msra.mxu1 %v13545_v3  ;;  %3185 = vmatprep.mubr.bf16.mxu0 %v11644_v22  ;;  %v11648_v3 = vld [vmem:[%s16511_s4 + $0x228] ss:$16 sps:$4 sm:$0xff]   ;;  %v11652_v22 = vld [vmem:[%s16512_s5 + $0x44] ss:$16 sps:$4 sm:$0xff]  }
 0x232   :  { %4365 = vmatprep.subr.bf16.mxu1 %v16548_v15  ;;  %4114 = vmatprep.mubr.bf16.mxu1 %v11646_v8  ;;  %v7617_v8 = vld [vmem:[%s16522_s15 + $0x78] sm:$0xff] }
 0x233   :  { %7733 = vperm.xlu1 %11425, %v7615_v39   ;;  %7728 = vperm.xlu0 %11424, %v7614_v38   ;;  %v14419_v39 = vpop.permute.xlu0 %6619  ;;  %v11650_v38 = vld [vmem:[%s16511_s4 + $0x24c] ss:$16 sps:$4 sm:$0xff]   ;;  %v14436_v54 = vpop.permute.xlu1 %6634 }
 0x234   :  { %16660 = vst [vmem:[#allocation106_spill] sm:$0xff] %v14419_v39  ;;  %16661 = vst [vmem:[#allocation107_spill] sm:$0xff] %v14436_v54 }
 0x235   :  { %4366 = vmatpush1.bf16.msra.mxu1 %v13539_v50  ;;  %v7616_v50 = vld [vmem:[%s16522_s15 + $0x70] sm:$0xff] }
 0x236   :  { %4367 = vmatprep.subr.bf16.mxu1 %v16548_v15 }
 0x237   :  { %7823 = vperm.xlu1 %11425, %v7633_v30   ;;  %7818 = vperm.xlu0 %11424, %v7632_v40   ;;  %v14439_v30 = vpop.permute.xlu0 %6629  ;;  %v7651_v40 = vld [vmem:[%s16522_s15 + $0x188] sm:$0xff] }
 0x238   :  { %3186 = vmatmul.mubr.bf16.gmra.mrb[132].mxu0 %v11648_v3  ;;  %4115 = vmatmul.mubr.bf16.gmra.mrb[164].mxu1 %v11649_v2  ;;  %16662 = vst [vmem:[#allocation108_spill] sm:$0xff] %v14439_v30  ;;  %v7650_v3 = vld [vmem:[%s16522_s15 + $0x180] sm:$0xff] }
 0x239   :  { %4368 = vmatpush1.bf16.msra.mxu1 %v13593_v16  ;;  %3193 = vmatprep.mubr.bf16.mxu0 %v11650_v38  ;;  %v11654_v16 = vld [vmem:[%s16511_s4 + $0x248] ss:$16 sps:$4 sm:$0xff]   ;;  %v11655_v2 = vld [vmem:[%s16512_s5 + $0x40] ss:$16 sps:$4 sm:$0xff]   ;;  %v11656_v38 = vld [vmem:[%s16511_s4 + $0x26c] ss:$16 sps:$4 sm:$0xff]  }
 0x23a   :  { %4369 = vmatprep.subr.bf16.mxu1 %v16548_v15  ;;  %4122 = vmatprep.mubr.bf16.mxu1 %v11652_v22  ;;  %v11658_v22 = vld [vmem:[%s16512_s5 + $0x64] ss:$16 sps:$4 sm:$0xff]  }
 0x23b   :  { %7743 = vperm.xlu1 %11425, %v7617_v8   ;;  %7738 = vperm.xlu0 %11424, %v7616_v50   ;;  %v14461_v8 = vpop.permute.xlu1 %6644  ;;  %v7634_v50 = vld [vmem:[%s16522_s15 + $0x100] sm:$0xff]  ;;  %v14469_v54 = vpop.permute.xlu0 %6639 }
 0x23c   :  { %16663 = vst [vmem:[#allocation109_spill] sm:$0xff] %v14461_v8  ;;  %16664 = vst [vmem:[#allocation110_spill] sm:$0xff] %v14469_v54  ;;  %v11664_v8 = vld [vmem:[%s16512_s5 + $0x84] ss:$16 sps:$4 sm:$0xff]  }
 0x23d   :  { %4370 = vmatpush1.bf16.msra.mxu1 %v13587_v12  ;;  %v7635_v12 = vld [vmem:[%s16522_s15 + $0x108] sm:$0xff] }
 0x23e   :  { %4371 = vmatprep.subr.bf16.mxu1 %v16548_v15 }
 0x23f   :  { %7913 = vperm.xlu1 %11425, %v7651_v40   ;;  %7908 = vperm.xlu0 %11424, %v7650_v3   ;;  %v7653_v3 = vld [vmem:[%s16522_s15 + $0x198] sm:$0xff]  ;;  %v14499_v54 = vpop.permute.xlu0 %6649 }
 0x240   :  { %3194 = vmatmul.mubr.bf16.gmra.mrb[136].mxu0 %v11654_v16  ;;  %4123 = vmatmul.mubr.bf16.gmra.mrb[168].mxu1 %v11655_v2  ;;  %v7652_v2 = vld [vmem:[%s16522_s15 + $0x190] sm:$0xff]  ;;  %16666 = vst [vmem:[#allocation112_spill] sm:$0xff] %v14499_v54 }
 0x241   :  { %4372 = vmatpush1.bf16.msra.mxu1 %v13641_v10  ;;  %3201 = vmatprep.mubr.bf16.mxu0 %v11656_v38  ;;  %v11660_v10 = vld [vmem:[%s16511_s4 + $0x268] ss:$16 sps:$4 sm:$0xff]   ;;  %v11661_v38 = vld [vmem:[%s16512_s5 + $0x60] ss:$16 sps:$4 sm:$0xff]  }
 0x242   :  { %4373 = vmatprep.subr.bf16.mxu1 %v16548_v15  ;;  %4130 = vmatprep.mubr.bf16.mxu1 %v11658_v22 }
 0x243   :  { %v14473_v40 = vpop.f32.mrb[64].mxu1  ;;  %7833 = vperm.xlu1 %11425, %v7635_v12   ;;  %7828 = vperm.xlu0 %11424, %v7634_v50   ;;  %v11662_v12 = vld [vmem:[%s16511_s4 + $0x28c] ss:$16 sps:$4 sm:$0xff]   ;;  %v14493_v50 = vpop.permute.xlu1 %6654 }
 0x244   :  { %v2828_v16 = vpop.f32.mrb[65].mxu1  ;;  %16665 = vst [vmem:[#allocation111_spill] sm:$0xff] %v14493_v50 }
 0x245   :  { %4374 = vmatpush1.bf16.msra.mxu1 %v13635_v28  ;;  %v14488_v22 = vpop.f32.mrb[66].mxu1  ;;  %v7637_v28 = vld [vmem:[%s16522_s15 + $0x118] sm:$0xff] }
 0x246   :  { %v2831_v16 = vpop.f32.mrb[67].mxu1  ;;  %4375 = vmatprep.subr.bf16.mxu1 %v16548_v15 }
 0x247   :  { %7923 = vperm.xlu1 %11425, %v7653_v3   ;;  %7918 = vperm.xlu0 %11424, %v7652_v2   ;;  %v7636_v16 = vld [vmem:[%s16522_s15 + $0x110] sm:$0xff]  ;;  %v7655_v3 = vld [vmem:[%s16522_s15 + $0x1a8] sm:$0xff]  ;;  %v14514_v2 = vpop.permute.xlu1 %6664 }
 0x248   :  { %3202 = vmatmul.mubr.bf16.gmra.mrb[140].mxu0 %v11660_v10  ;;  %4131 = vmatmul.mubr.bf16.gmra.mrb[172].mxu1 %v11661_v38  ;;  %16667 = vst [vmem:[#allocation113_spill] sm:$0xff] %v14514_v2  ;;  %v7654_v38 = vld [vmem:[%s16522_s15 + $0x1a0] sm:$0xff] }
 0x249   :  { %4376 = vmatpush1.bf16.msra.mxu1 %v13689_v1  ;;  %3209 = vmatprep.mubr.bf16.mxu0 %v11662_v12  ;;  %v11666_v1 = vld [vmem:[%s16511_s4 + $0x288] ss:$16 sps:$4 sm:$0xff]   ;;  %v14525_v12 = vpop.permute.xlu0 %6659  ;;  %v11670_v2 = vld [vmem:[%s16512_s5 + $0xa4] ss:$16 sps:$4 sm:$0xff]  }
 0x24a   :  { %4377 = vmatprep.subr.bf16.mxu1 %v16548_v15  ;;  %4138 = vmatprep.mubr.bf16.mxu1 %v11664_v8  ;;  %v11667_v8 = vld [vmem:[%s16512_s5 + $0x80] ss:$16 sps:$4 sm:$0xff]   ;;  %16668 = vst [vmem:[#allocation114_spill] sm:$0xff] %v14525_v12 }
 0x24b   :  { %v14509_v50 = vpop.f32.mrb[68].mxu1  ;;  %7843 = vperm.xlu1 %11425, %v7637_v28   ;;  %7838 = vperm.xlu0 %11424, %v7636_v16   ;;  %v11668_v16 = vld [vmem:[%s16511_s4 + $0x2ac] ss:$16 sps:$4 sm:$0xff]   ;;  %v7638_v12 = vld [vmem:[%s16522_s15 + $0x120] sm:$0xff] }
 0x24c   :  { %v2836_v10 = vpop.f32.mrb[69].mxu1 }
 0x24d   :  { %4378 = vmatpush1.bf16.msra.mxu1 %v13683_v44  ;;  %v14528_v28 = vpop.f32.mrb[70].mxu1  ;;  %v7639_v44 = vld [vmem:[%s16522_s15 + $0x128] sm:$0xff] }
 0x24e   :  { %v2839_v10 = vpop.f32.mrb[71].mxu1  ;;  %4379 = vmatprep.subr.bf16.mxu1 %v16548_v15 }
 0x24f   :  { %7933 = vperm.xlu1 %11425, %v7655_v3   ;;  %7928 = vperm.xlu0 %11424, %v7654_v38   ;;  %v14544_v10 = vpop.permute.xlu1 %6674  ;;  %v14547_v3 = vpop.permute.xlu0 %6669 }
 0x250   :  { %3210 = vmatmul.mubr.bf16.gmra.mrb[144].mxu0 %v11666_v1  ;;  %4139 = vmatmul.mubr.bf16.gmra.mrb[176].mxu1 %v11667_v8  ;;  %16669 = vst [vmem:[#allocation115_spill] sm:$0xff] %v14544_v10  ;;  %16670 = vst [vmem:[#allocation116_spill] sm:$0xff] %v14547_v3  ;;  %v7657_v1 = vld [vmem:[%s16522_s15 + $0x1b8] sm:$0xff]  ;;  %v11676_v10 = vld [vmem:[%s16512_s5 + $0xc4] ss:$16 sps:$4 sm:$0xff]  }
 0x251   :  { %4380 = vmatpush1.bf16.msra.mxu1 %v13737_v11  ;;  %3217 = vmatprep.mubr.bf16.mxu0 %v11668_v16  ;;  %v7656_v11 = vld [vmem:[%s16522_s15 + $0x1b0] sm:$0xff]  ;;  %v11672_v16 = vld [vmem:[%s16511_s4 + $0x2a8] ss:$16 sps:$4 sm:$0xff]  }
 0x252   :  { %4381 = vmatprep.subr.bf16.mxu1 %v16548_v15  ;;  %4146 = vmatprep.mubr.bf16.mxu1 %v11670_v2  ;;  %v11673_v2 = vld [vmem:[%s16512_s5 + $0xa0] ss:$16 sps:$4 sm:$0xff]  }
 0x253   :  { %v14549_v38 = vpop.f32.mrb[72].mxu1  ;;  %7853 = vperm.xlu1 %11425, %v7639_v44   ;;  %7848 = vperm.xlu0 %11424, %v7638_v12   ;;  %v11674_v44 = vld [vmem:[%s16511_s4 + $0x2cc] ss:$16 sps:$4 sm:$0xff]   ;;  %v14573_v3 = vpop.permute.xlu1 %6684 }
 0x254   :  { %v2844_v8 = vpop.f32.mrb[73].mxu1  ;;  %16671 = vst [vmem:[#allocation117_spill] sm:$0xff] %v14573_v3  ;;  %v14581_v54 = vpop.permute.xlu0 %6679  ;;  %v11682_v3 = vld [vmem:[%s16512_s5 + $0xe4] ss:$16 sps:$4 sm:$0xff]  }
 0x255   :  { %4382 = vmatpush1.bf16.msra.mxu1 %v13731_v62  ;;  %v14564_v12 = vpop.f32.mrb[74].mxu1  ;;  %v7641_v62 = vld [vmem:[%s16522_s15 + $0x138] sm:$0xff]  ;;  %16672 = vst [vmem:[#allocation118_spill] sm:$0xff] %v14581_v54 }
 0x256   :  { %v2847_v8 = vpop.f32.mrb[75].mxu1  ;;  %4383 = vmatprep.subr.bf16.mxu1 %v16548_v15 }
 0x257   :  { %7943 = vperm.xlu1 %11425, %v7657_v1   ;;  %7938 = vperm.xlu0 %11424, %v7656_v11   ;;  %v7640_v8 = vld [vmem:[%s16522_s15 + $0x130] sm:$0xff]  ;;  %v7659_v11 = vld [vmem:[%s16522_s15 + $0x1c8] sm:$0xff] }
 0x258   :  { %3218 = vmatmul.mubr.bf16.gmra.mrb[148].mxu0 %v11672_v16  ;;  %4147 = vmatmul.mubr.bf16.gmra.mrb[180].mxu1 %v11673_v2  ;;  %v7658_v2 = vld [vmem:[%s16522_s15 + $0x1c0] sm:$0xff]  ;;  %v14611_v54 = vpop.permute.xlu0 %6689 }
 0x259   :  { %4384 = vmatpush1.bf16.msra.mxu1 %v13785_v24  ;;  %3225 = vmatprep.mubr.bf16.mxu0 %v11674_v44  ;;  %v11678_v24 = vld [vmem:[%s16511_s4 + $0x2c8] ss:$16 sps:$4 sm:$0xff]   ;;  %16674 = vst [vmem:[#allocation120_spill] sm:$0xff] %v14611_v54  ;;  %v7646_v54 = vld [vmem:[%s16522_s15 + $0x160] sm:$0xff] }
 0x25a   :  { %4385 = vmatprep.subr.bf16.mxu1 %v16548_v15  ;;  %4154 = vmatprep.mubr.bf16.mxu1 %v11676_v10  ;;  %v11679_v10 = vld [vmem:[%s16512_s5 + $0xc0] ss:$16 sps:$4 sm:$0xff]  }
 0x25b   :  { %v14585_v1 = vpop.f32.mrb[76].mxu1  ;;  %7863 = vperm.xlu1 %11425, %v7641_v62   ;;  %7858 = vperm.xlu0 %11424, %v7640_v8   ;;  %v11680_v62 = vld [vmem:[%s16511_s4 + $0x2ec] ss:$16 sps:$4 sm:$0xff]   ;;  %v14605_v8 = vpop.permute.xlu1 %6694 }
 0x25c   :  { %v2852_v16 = vpop.f32.mrb[77].mxu1  ;;  %16673 = vst [vmem:[#allocation119_spill] sm:$0xff] %v14605_v8 }
 0x25d   :  { %4386 = vmatpush1.bf16.msra.mxu1 %v13779_v9  ;;  %v14600_v44 = vpop.f32.mrb[78].mxu1  ;;  %v7643_v9 = vld [vmem:[%s16522_s15 + $0x148] sm:$0xff] }
 0x25e   :  { %v2855_v16 = vpop.f32.mrb[79].mxu1  ;;  %4387 = vmatprep.subr.bf16.mxu1 %v16548_v15 }
 0x25f   :  { %7953 = vperm.xlu1 %11425, %v7659_v11   ;;  %7948 = vperm.xlu0 %11424, %v7658_v2   ;;  %v7642_v16 = vld [vmem:[%s16522_s15 + $0x140] sm:$0xff]  ;;  %v7661_v11 = vld [vmem:[%s16522_s15 + $0x1d8] sm:$0xff]  ;;  %v14626_v2 = vpop.permute.xlu1 %6704 }
 0x260   :  { %3226 = vmatmul.mubr.bf16.gmra.mrb[152].mxu0 %v11678_v24  ;;  %4155 = vmatmul.mubr.bf16.gmra.mrb[184].mxu1 %v11679_v10  ;;  %16675 = vst [vmem:[#allocation121_spill] sm:$0xff] %v14626_v2  ;;  %v7660_v10 = vld [vmem:[%s16522_s15 + $0x1d0] sm:$0xff] }
 0x261   :  { %4388 = vmatpush1.bf16.msra.mxu1 %v13832_v13  ;;  %3233 = vmatprep.mubr.bf16.mxu0 %v11680_v62  ;;  %v11684_v13 = vld [vmem:[%s16511_s4 + $0x2e8] ss:$16 sps:$4 sm:$0xff]   ;;  %v14637_v62 = vpop.permute.xlu0 %6699  ;;  %v11688_v2 = vld [vmem:[%s16512_s5 + $0x104] ss:$16 sps:$4 sm:$0xff]  }
 0x262   :  { %4389 = vmatprep.subr.bf16.mxu1 %v16548_v15  ;;  %4162 = vmatprep.mubr.bf16.mxu1 %v11682_v3  ;;  %v11685_v3 = vld [vmem:[%s16512_s5 + $0xe0] ss:$16 sps:$4 sm:$0xff]   ;;  %16676 = vst [vmem:[#allocation122_spill] sm:$0xff] %v14637_v62 }
 0x263   :  { %v14621_v8 = vpop.f32.mrb[80].mxu1  ;;  %7873 = vperm.xlu1 %11425, %v7643_v9   ;;  %7868 = vperm.xlu0 %11424, %v7642_v16   ;;  %v11686_v16 = vld [vmem:[%s16511_s4 + $0x30c] ss:$16 sps:$4 sm:$0xff]   ;;  %v7644_v62 = vld [vmem:[%s16522_s15 + $0x150] sm:$0xff] }
 0x264   :  { %v2860_v24 = vpop.f32.mrb[81].mxu1 }
 0x265   :  { %4390 = vmatpush1.bf16.msra.mxu1 %v13827_v21  ;;  %v14640_v9 = vpop.f32.mrb[82].mxu1  ;;  %v7645_v21 = vld [vmem:[%s16522_s15 + $0x158] sm:$0xff] }
 0x266   :  { %v2863_v24 = vpop.f32.mrb[83].mxu1  ;;  %4391 = vmatprep.subr.bf16.mxu1 %v16548_v15 }
 0x267   :  { %7963 = vperm.xlu1 %11425, %v7661_v11   ;;  %7958 = vperm.xlu0 %11424, %v7660_v10   ;;  %v14656_v24 = vpop.permute.xlu1 %6714  ;;  %v14659_v11 = vpop.permute.xlu0 %6709 }
 0x268   :  { %3234 = vmatmul.mubr.bf16.gmra.mrb[156].mxu0 %v11684_v13  ;;  %4163 = vmatmul.mubr.bf16.gmra.mrb[188].mxu1 %v11685_v3  ;;  %16677 = vst [vmem:[#allocation123_spill] sm:$0xff] %v14656_v24  ;;  %16678 = vst [vmem:[#allocation124_spill] sm:$0xff] %v14659_v11  ;;  %v7663_v13 = vld [vmem:[%s16522_s15 + $0x1e8] sm:$0xff] }
 0x269   :  { %4392 = vmatpush1.bf16.msra.mxu1 %v13883_v26  ;;  %3241 = vmatprep.mubr.bf16.mxu0 %v11686_v16  ;;  %v7662_v26 = vld [vmem:[%s16522_s15 + $0x1e0] sm:$0xff]  ;;  %v11690_v16 = vld [vmem:[%s16511_s4 + $0x308] ss:$16 sps:$4 sm:$0xff]  }
 0x26a   :  { %4393 = vmatprep.subr.bf16.mxu1 %v16548_v15  ;;  %4170 = vmatprep.mubr.bf16.mxu1 %v11688_v2  ;;  %v11691_v2 = vld [vmem:[%s16512_s5 + $0x100] ss:$16 sps:$4 sm:$0xff]  }
 0x26b   :  { %v14661_v10 = vpop.f32.mrb[84].mxu1  ;;  %7883 = vperm.xlu1 %11425, %v7645_v21   ;;  %7878 = vperm.xlu0 %11424, %v7644_v62   ;;  %v11692_v21 = vld [vmem:[%s16511_s4 + $0x32c] ss:$16 sps:$4 sm:$0xff]   ;;  %v14684_v11 = vpop.permute.xlu1 %6724 }
 0x26c   :  { %v2868_v3 = vpop.f32.mrb[85].mxu1  ;;  %16679 = vst [vmem:[#allocation125_spill] sm:$0xff] %v14684_v11  ;;  %v14692_v39 = vpop.permute.xlu0 %6719 }
 0x26d   :  { %4394 = vmatpush1.bf16.msra.mxu1 %v13878_v59  ;;  %v14676_v62 = vpop.f32.mrb[86].mxu1  ;;  %v11694_v3 = vld [vmem:[%s16512_s5 + $0x124] ss:$16 sps:$4 sm:$0xff]   ;;  %v7647_v59 = vld [vmem:[%s16522_s15 + $0x168] sm:$0xff]  ;;  %16680 = vst [vmem:[#allocation126_spill] sm:$0xff] %v14692_v39  ;;  %v7649_v39 = vld [vmem:[%s16522_s15 + $0x178] sm:$0xff] }
 0x26e   :  { %v2871_v24 = vpop.f32.mrb[87].mxu1 }
 0x26f   :  { %7973 = vperm.xlu1 %11425, %v7663_v13   ;;  %7968 = vperm.xlu0 %11424, %v7662_v26   ;;  %v7665_v24 = vld [vmem:[%s16522_s15 + $0x1f8] sm:$0xff]  ;;  %v7664_v26 = vld [vmem:[%s16522_s15 + $0x1f0] sm:$0xff] }
 0x270   :  { %3242 = vmatmul.mubr.bf16.gmra.mrb[160].mxu0 %v11690_v16  ;;  %4171 = vmatmul.mubr.bf16.gmra.mrb[192].mxu1 %v11691_v2  ;;  %v11696_v16 = vld [vmem:[%s16511_s4 + $0x328] ss:$16 sps:$4 sm:$0xff]   ;;  %v11697_v2 = vld [vmem:[%s16512_s5 + $0x120] ss:$16 sps:$4 sm:$0xff]   ;;  %v14718_v11 = vpop.permute.xlu0 %6729 }
 0x271   :  { %3249 = vmatprep.mubr.bf16.mxu0 %v11692_v21  ;;  %4178 = vmatprep.mubr.bf16.mxu1 %v11694_v3  ;;  %v11700_v3 = vld [vmem:[%s16512_s5 + $0x144] ss:$16 sps:$4 sm:$0xff]   ;;  %16682 = vst [vmem:[#allocation128_spill] sm:$0xff] %v14718_v11 }
 0x273   :  { %v14694_v30 = vpop.f32.mrb[88].mxu1  ;;  %7893 = vperm.xlu1 %11425, %v7647_v59   ;;  %7888 = vperm.xlu0 %11424, %v7646_v54   ;;  %v11698_v54 = vld [vmem:[%s16511_s4 + $0x34c] ss:$16 sps:$4 sm:$0xff]   ;;  %v14716_v59 = vpop.permute.xlu1 %6734 }
 0x274   :  { %v2876_v13 = vpop.f32.mrb[89].mxu1  ;;  %16681 = vst [vmem:[#allocation127_spill] sm:$0xff] %v14716_v59  ;;  %v9319_v59 = vld [vmem:[%s16524_s17 + $0x18] sm:$0xff] }
 0x275   :  { %v14708_v21 = vpop.f32.mrb[90].mxu1 }
 0x276   :  { %v2879_v13 = vpop.f32.mrb[91].mxu1 }
 0x277   :  { %7983 = vperm.xlu1 %11425, %v7665_v24   ;;  %7978 = vperm.xlu0 %11424, %v7664_v26   ;;  %v9317_v24 = vld [vmem:[%s16524_s17 + $0x8] sm:$0xff]  ;;  %v14731_v26 = vpop.permute.xlu1 %6744 }
 0x278   :  { %3250 = vmatmul.mubr.bf16.gmra.mrb[164].mxu0 %v11696_v16  ;;  %4179 = vmatmul.mubr.bf16.gmra.mrb[196].mxu1 %v11697_v2  ;;  %16683 = vst [vmem:[#allocation129_spill] sm:$0xff] %v14731_v26  ;;  %v9316_v2 = vld [vmem:[%s16524_s17] sm:$0xff]  ;;  %v11704_v13 = vld [vmem:[%s16511_s4 + $0x36c] ss:$16 sps:$4 sm:$0xff]  }
 0x279   :  { %3257 = vmatprep.mubr.bf16.mxu0 %v11698_v54  ;;  %4186 = vmatprep.mubr.bf16.mxu1 %v11700_v3  ;;  %v11702_v54 = vld [vmem:[%s16511_s4 + $0x348] ss:$16 sps:$4 sm:$0xff]  }
 0x27b   :  { %v14726_v61 = vpop.f32.mrb[92].mxu1  ;;  %7903 = vperm.xlu1 %11425, %v7649_v39   ;;  %7898 = vperm.xlu0 %11424, %v7648_v47   ;;  %v11703_v39 = vld [vmem:[%s16512_s5 + $0x140] ss:$16 sps:$4 sm:$0xff]   ;;  %v14742_v47 = vpop.permute.xlu0 %6739 }
 0x27c   :  { %v2884_v16 = vpop.f32.mrb[93].mxu1  ;;  %16684 = vst [vmem:[#allocation130_spill] sm:$0xff] %v14742_v47  ;;  %v9318_v47 = vld [vmem:[%s16524_s17 + $0x10] sm:$0xff]  ;;  %v14758_v11 = vpop.permute.xlu1 %6754 }
 0x27d   :  { %v14744_v3 = vpop.f32.mrb[94].mxu1  ;;  %v11706_v16 = vld [vmem:[%s16512_s5 + $0x164] ss:$16 sps:$4 sm:$0xff]   ;;  %16685 = vst [vmem:[#allocation131_spill] sm:$0xff] %v14758_v11 }
 0x27e   :  { %v2887_v26 = vpop.f32.mrb[95].mxu1 }
 0x27f   :  { %9331 = vperm.xlu1 %11425, %v9317_v24   ;;  %9326 = vperm.xlu0 %11424, %v9316_v2   ;;  %v14760_v15 = vpop.permute.xlu0 %6749  ;;  %v9321_v24 = vld [vmem:[%s16524_s17 + $0x28] sm:$0xff]  ;;  %v9320_v26 = vld [vmem:[%s16524_s17 + $0x20] sm:$0xff] }
 0x280   :  { %3258 = vmatmul.mubr.bf16.gmra.mrb[168].mxu0 %v11702_v54  ;;  %4187 = vmatmul.mubr.bf16.gmra.mrb[200].mxu1 %v11703_v39  ;;  %16686 = vst [vmem:[#allocation132_spill] sm:$0xff] %v14760_v15  ;;  %v11708_v54 = vld [vmem:[%s16511_s4 + $0x368] ss:$16 sps:$4 sm:$0xff]   ;;  %v11709_v39 = vld [vmem:[%s16512_s5 + $0x160] ss:$16 sps:$4 sm:$0xff]   ;;  %v14794_v20 = vpop.permute.xlu1 %6764 }
 0x281   :  { %3265 = vmatprep.mubr.bf16.mxu0 %v11704_v13  ;;  %4194 = vmatprep.mubr.bf16.mxu1 %v11706_v16  ;;  %v11712_v16 = vld [vmem:[%s16512_s5 + $0x184] ss:$16 sps:$4 sm:$0xff]   ;;  %16687 = vst [vmem:[#allocation133_spill] sm:$0xff] %v14794_v20 }
 0x283   :  { %v14762_v46 = vpop.f32.mrb[96].mxu1  ;;  %9341 = vperm.xlu1 %11425, %v9319_v59   ;;  %9336 = vperm.xlu0 %11424, %v9318_v47   ;;  %v14776_v13 = vpop.f32.mrb[64].mxu0  ;;  %v11710_v47 = vld [vmem:[%s16511_s4 + $0x38c] ss:$16 sps:$4 sm:$0xff]  }
 0x284   :  { %v2892_v2 = vpop.f32.mrb[97].mxu1 }
 0x285   :  { %v14778_v59 = vpop.f32.mrb[98].mxu1  ;;  %v3053_v2 = vpop.f32.mrb[65].mxu0 }
 0x286   :  { %v2895_v11 = vpop.f32.mrb[99].mxu1  ;;  %v14786_v15 = vpop.f32.mrb[66].mxu0 }
 0x287   :  { %9351 = vperm.xlu1 %11425, %v9321_v24   ;;  %9346 = vperm.xlu0 %11424, %v9320_v26   ;;  %v3056_v60 = vpop.f32.mrb[67].mxu0  ;;  %v14796_v11 = vpop.permute.xlu0 %6759 }
 0x288   :  { %3266 = vmatmul.mubr.bf16.gmra.mrb[172].mxu0 %v11708_v54  ;;  %4195 = vmatmul.mubr.bf16.gmra.mrb[204].mxu1 %v11709_v39  ;;  %16688 = vst [vmem:[#allocation134_spill] sm:$0xff] %v14796_v11  ;;  %v11714_v54 = vld [vmem:[%s16511_s4 + $0x388] ss:$16 sps:$4 sm:$0xff]   ;;  %v11715_v39 = vld [vmem:[%s16512_s5 + $0x180] ss:$16 sps:$4 sm:$0xff]  }
 0x289   :  { %3273 = vmatprep.mubr.bf16.mxu0 %v11710_v47  ;;  %4202 = vmatprep.mubr.bf16.mxu1 %v11712_v16  ;;  %v11716_v16 = vld [vmem:[%s16511_s4 + $0x3ac] ss:$16 sps:$4 sm:$0xff]  }
 0x28b   :  { %v14798_v24 = vpop.f32.mrb[100].mxu1  ;;  %9361 = vperm.xlu1 %11425, %v9323_v7   ;;  %9356 = vperm.xlu0 %11424, %v9322_v32   ;;  %v14806_v60 = vpop.f32.mrb[68].mxu0  ;;  %v11718_v32 = vld [vmem:[%s16512_s5 + $0x1a4] ss:$16 sps:$4 sm:$0xff]  }
 0x28c   :  { %v2900_v26 = vpop.f32.mrb[101].mxu1  ;;  %v3061_v7 = vpop.f32.mrb[69].mxu0 }
 0x28d   :  { %v14808_v47 = vpop.f32.mrb[102].mxu1  ;;  %v14816_v26 = vpop.f32.mrb[70].mxu0 }
 0x28e   :  { %v2903_v2 = vpop.f32.mrb[103].mxu1  ;;  %v3064_v20 = vpop.f32.mrb[71].mxu0 }
 0x28f   :  { %v11722_v20 = vld [vmem:[%s16511_s4 + $0x3cc] ss:$16 sps:$4 sm:$0xff]  }
 0x290   :  { %3274 = vmatmul.mubr.bf16.gmra.mrb[176].mxu0 %v11714_v54  ;;  %4203 = vmatmul.mubr.bf16.gmra.mrb[208].mxu1 %v11715_v39 }
 0x291   :  { %3281 = vmatprep.mubr.bf16.mxu0 %v11716_v16  ;;  %4210 = vmatprep.mubr.bf16.mxu1 %v11718_v32 }
 0x293   :  { %v14818_v11 = vpop.f32.mrb[104].mxu1  ;;  %v14826_v7 = vpop.f32.mrb[72].mxu0 }
 0x294   :  { %v2908_v52 = vpop.f32.mrb[105].mxu1  ;;  %v3069_v54 = vpop.f32.mrb[73].mxu0 }
 0x295   :  { %v14828_v2 = vpop.f32.mrb[106].mxu1  ;;  %v11724_v52 = vld [vmem:[%s16512_s5 + $0x1c4] ss:$16 sps:$4 sm:$0xff]   ;;  %v14836_v16 = vpop.f32.mrb[74].mxu0 }
 0x296   :  { %v2911_v39 = vpop.f32.mrb[107].mxu1  ;;  %v3072_v32 = vpop.f32.mrb[75].mxu0 }
 0x298   :  { %3282 = vmatmul.mubr.bf16.gmra.mrb[180].mxu0 %v11720_v48  ;;  %4211 = vmatmul.mubr.bf16.gmra.mrb[212].mxu1 %v11721_v31  ;;  %v11728_v48 = vld [vmem:[%s16511_s4 + $0x3ec] ss:$16 sps:$4 sm:$0xff]   ;;  %v11730_v31 = vld [vmem:[%s16512_s5 + $0x1e4] ss:$16 sps:$4 sm:$0xff]  }
 0x299   :  { %3289 = vmatprep.mubr.bf16.mxu0 %v11722_v20  ;;  %4218 = vmatprep.mubr.bf16.mxu1 %v11724_v52 }
 0x29b   :  { %v14838_v5 = vpop.f32.mrb[108].mxu1  ;;  %v14846_v54 = vpop.f32.mrb[76].mxu0 }
 0x29c   :  { %v2916_v36 = vpop.f32.mrb[109].mxu1 }
 0x29d   :  { %v14848_v39 = vpop.f32.mrb[110].mxu1  ;;  %v3077_v36 = vpop.f32.mrb[77].mxu0 }
 0x29e   :  { %v2919_v20 = vpop.f32.mrb[111].mxu1  ;;  %v14856_v52 = vpop.f32.mrb[78].mxu0 }
 0x29f   :  { %v3080_v32 = vpop.f32.mrb[79].mxu0 }
 0x2a0   :  { %3290 = vmatmul.mubr.bf16.gmra.mrb[184].mxu0 %v11726_v43  ;;  %4219 = vmatmul.mubr.bf16.gmra.mrb[216].mxu1 %v11727_v55  ;;  %v11734_v43 = vld [vmem:[%s16512_s5 + $0x204] ss:$16 sps:$4 sm:$0xff]  }
 0x2a1   :  { %3297 = vmatprep.mubr.bf16.mxu0 %v11728_v48  ;;  %4226 = vmatprep.mubr.bf16.mxu1 %v11730_v31 }
 0x2a3   :  { %v14858_v57 = vpop.f32.mrb[112].mxu1  ;;  %v14866_v36 = vpop.f32.mrb[80].mxu0 }
 0x2a4   :  { %v2924_v0 = vpop.f32.mrb[113].mxu1  ;;  %v3085_v55 = vpop.f32.mrb[81].mxu0 }
 0x2a5   :  { %v14868_v20 = vpop.f32.mrb[114].mxu1  ;;  %v14873_v31 = vpop.f32.mrb[82].mxu0  ;;  %v11737_v55 = vld [vmem:[%s16512_s5 + $0x224] ss:$16 sps:$4 sm:$0xff]  }
 0x2a6   :  { %v2927_v48 = vpop.f32.mrb[115].mxu1  ;;  %16689 = vst [vmem:[#allocation135_spill] sm:$0xff] %v14873_v31  ;;  %v3088_v0 = vpop.f32.mrb[83].mxu0 }
 0x2a8   :  { %3298 = vmatmul.mubr.bf16.gmra.mrb[188].mxu0 %v11732_v18  ;;  %4227 = vmatmul.mubr.bf16.gmra.mrb[220].mxu1 %v11733_v42 }
 0x2a9   :  { %4234 = vmatprep.mubr.bf16.mxu1 %v11734_v43 }
 0x2ab   :  { %v14875_v32 = vpop.f32.mrb[116].mxu1  ;;  %v14880_v29 = vpop.f32.mrb[84].mxu0 }
 0x2ac   :  { %v2932_v63 = vpop.f32.mrb[117].mxu1  ;;  %16690 = vst [vmem:[#allocation136_spill] sm:$0xff] %v14880_v29  ;;  %v3093_v48 = vpop.f32.mrb[85].mxu0 }
 0x2ad   :  { %v14882_v25 = vpop.f32.mrb[118].mxu1  ;;  %v14887_v42 = vpop.f32.mrb[86].mxu0  ;;  %v11740_v48 = vld [vmem:[%s16512_s5 + $0x244] ss:$16 sps:$4 sm:$0xff]  }
 0x2ae   :  { %v2935_v18 = vpop.f32.mrb[119].mxu1  ;;  %16691 = vst [vmem:[#allocation137_spill] sm:$0xff] %v14887_v42  ;;  %v3096_v43 = vpop.f32.mrb[87].mxu0  ;;  %v11745_v42 = vld [vmem:[%s16512_s5 + $0x260] ss:$16 sps:$4 sm:$0xff]  }
 0x2b0   :  { %4235 = vmatmul.mubr.bf16.gmra.mrb[224].mxu1 %v11736_v41 }
 0x2b1   :  { %4242 = vmatprep.mubr.bf16.mxu1 %v11737_v55 }
 0x2b3   :  { %v14889_v63 = vpop.f32.mrb[120].mxu1  ;;  %v14894_v27 = vpop.f32.mrb[88].mxu0 }
 0x2b4   :  { %v2940_v0 = vpop.f32.mrb[121].mxu1  ;;  %16692 = vst [vmem:[#allocation138_spill] sm:$0xff] %v14894_v27  ;;  %v3101_v14 = vpop.f32.mrb[89].mxu0  ;;  %v11742_v27 = vld [vmem:[%s16512_s5 + $0x240] ss:$16 sps:$4 sm:$0xff]  }
 0x2b5   :  { %v14896_v19 = vpop.f32.mrb[122].mxu1  ;;  %v14901_v41 = vpop.f32.mrb[90].mxu0 }
 0x2b6   :  { %v2943_v18 = vpop.f32.mrb[123].mxu1  ;;  %16693 = vst [vmem:[#allocation139_spill] sm:$0xff] %v14901_v41  ;;  %v3104_v55 = vpop.f32.mrb[91].mxu0 }
 0x2b7   :  { %v11743_v18 = vld [vmem:[%s16512_s5 + $0x264] ss:$16 sps:$4 sm:$0xff]  }
 0x2b8   :  { %4243 = vmatmul.mubr.bf16.gmra.mrb[228].mxu1 %v11739_v6 }
 0x2b9   :  { %4250 = vmatprep.mubr.bf16.mxu1 %v11740_v48 }
 0x2bb   :  { %v14903_v43 = vpop.f32.mrb[124].mxu1  ;;  %v14905_v51 = vpop.f32.mrb[92].mxu0 }
 0x2bc   :  { %v2948_v0 = vpop.f32.mrb[125].mxu1  ;;  %16694 = vst [vmem:[#allocation140_spill] sm:$0xff] %v14905_v51  ;;  %v3109_v35 = vpop.f32.mrb[93].mxu0 }
 0x2bd   :  { %v14910_v14 = vpop.f32.mrb[126].mxu1  ;;  %v14915_v6 = vpop.f32.mrb[94].mxu0 }
 0x2be   :  { %v2951_v41 = vpop.f32.mrb[127].mxu1  ;;  %16695 = vst [vmem:[#allocation141_spill] sm:$0xff] %v14915_v6  ;;  %v3112_v48 = vpop.f32.mrb[95].mxu0 }
 0x2bf   :  { %v11746_v41 = vld [vmem:[%s16512_s5 + $0x284] ss:$16 sps:$4 sm:$0xff]  }
 0x2c0   :  { %4251 = vmatmul.mubr.bf16.gmra.mrb[232].mxu1 %v11742_v27 }
 0x2c1   :  { %4258 = vmatprep.mubr.bf16.mxu1 %v11743_v18 }
 0x2c3   :  { %v14917_v55 = vpop.f32.mrb[128].mxu1  ;;  %v3115_v0 = vpop.f32.mrb[96].mxu0 }
 0x2c4   :  { %v2956_v51 = vpop.f32.mrb[129].mxu1  ;;  %v3117_v58 = vpop.f32.mrb[97].mxu0  ;;  %v14928_v6 = vadd.f32 %v3115_v0, %v14473_v40  ;;  %v11749_v40 = vld [vmem:[%s16512_s5 + $0x2a4] ss:$16 sps:$4 sm:$0xff]  }
 0x2c5   :  { %v14922_v35 = vpop.f32.mrb[130].mxu1  ;;  %v3118_v27 = vpop.f32.mrb[98].mxu0 }
 0x2c6   :  { %v2959_v18 = vpop.f32.mrb[131].mxu1  ;;  %v14931_v48 = vadd.f32 %v3118_v27, %v14488_v22  ;;  %v3120_v51 = vpop.f32.mrb[99].mxu0 }
 0x2c8   :  { %16696 = vst [vmem:[#allocation142_spill] sm:$0xff] %v14931_v48  ;;  %4259 = vmatmul.mubr.bf16.gmra.mrb[236].mxu1 %v11745_v42 }
 0x2c9   :  { %4266 = vmatprep.mubr.bf16.mxu1 %v11746_v41 }
 0x2cb   :  { %v14933_v29 = vpop.f32.mrb[132].mxu1  ;;  %v3123_v58 = vpop.f32.mrb[100].mxu0 }
 0x2cc   :  { %v2964_v31 = vpop.f32.mrb[133].mxu1  ;;  %v3125_v56 = vpop.f32.mrb[101].mxu0  ;;  %v14942_v0 = vadd.f32 %v3123_v58, %v14509_v50  ;;  %v11752_v58 = vld [vmem:[%s16512_s5 + $0x2c4] ss:$16 sps:$4 sm:$0xff]  }
 0x2cd   :  { %v14944_v22 = vpop.f32.mrb[134].mxu1  ;;  %v3126_v42 = vpop.f32.mrb[102].mxu0  ;;  %v11751_v31 = vld [vmem:[%s16512_s5 + $0x2a0] ss:$16 sps:$4 sm:$0xff]  }
 0x2ce   :  { %16697 = vst [vmem:[#allocation143_spill] sm:$0xff] %v14942_v0  ;;  %v2967_v41 = vpop.f32.mrb[135].mxu1  ;;  %v14947_v27 = vadd.f32 %v3126_v42, %v14528_v28  ;;  %v3128_v18 = vpop.f32.mrb[103].mxu0 }
 0x2d0   :  { %16698 = vst [vmem:[#allocation144_spill] sm:$0xff] %v14947_v27  ;;  %4267 = vmatmul.mubr.bf16.gmra.mrb[240].mxu1 %v11748_v45 }
 0x2d1   :  { %4274 = vmatprep.mubr.bf16.mxu1 %v11749_v40 }
 0x2d3   :  { %v14949_v51 = vpop.f32.mrb[136].mxu1  ;;  %v3131_v56 = vpop.f32.mrb[104].mxu0 }
 0x2d4   :  { %v2972_v48 = vpop.f32.mrb[137].mxu1  ;;  %v3133_v50 = vpop.f32.mrb[105].mxu0  ;;  %v14958_v41 = vadd.f32 %v3131_v56, %v14549_v38  ;;  %v11755_v56 = vld [vmem:[%s16512_s5 + $0x2e4] ss:$16 sps:$4 sm:$0xff]  }
 0x2d5   :  { %v14960_v28 = vpop.f32.mrb[138].mxu1  ;;  %v3134_v45 = vpop.f32.mrb[106].mxu0  ;;  %v11754_v50 = vld [vmem:[%s16512_s5 + $0x2c0] ss:$16 sps:$4 sm:$0xff]  }
 0x2d6   :  { %16699 = vst [vmem:[#allocation145_spill] sm:$0xff] %v14958_v41  ;;  %v2975_v40 = vpop.f32.mrb[139].mxu1  ;;  %v14963_v42 = vadd.f32 %v3134_v45, %v14564_v12  ;;  %v3136_v18 = vpop.f32.mrb[107].mxu0 }
 0x2d8   :  { %16700 = vst [vmem:[#allocation146_spill] sm:$0xff] %v14963_v42  ;;  %4275 = vmatmul.mubr.bf16.gmra.mrb[244].mxu1 %v11751_v31 }
 0x2d9   :  { %4282 = vmatprep.mubr.bf16.mxu1 %v11752_v58 }
 0x2db   :  { %v14965_v27 = vpop.f32.mrb[140].mxu1  ;;  %v3139_v48 = vpop.f32.mrb[108].mxu0 }
 0x2dc   :  { %v2980_v0 = vpop.f32.mrb[141].mxu1  ;;  %v3141_v38 = vpop.f32.mrb[109].mxu0  ;;  %v14974_v40 = vadd.f32 %v3139_v48, %v14585_v1  ;;  %v11760_v48 = vld [vmem:[%s16512_s5 + $0x304] ss:$16 sps:$4 sm:$0xff]  }
 0x2dd   :  { %v14976_v12 = vpop.f32.mrb[142].mxu1  ;;  %v3142_v31 = vpop.f32.mrb[110].mxu0  ;;  %v11757_v38 = vld [vmem:[%s16512_s5 + $0x2e0] ss:$16 sps:$4 sm:$0xff]  }
 0x2de   :  { %16701 = vst [vmem:[#allocation147_spill] sm:$0xff] %v14974_v40  ;;  %v2983_v58 = vpop.f32.mrb[143].mxu1  ;;  %v14979_v45 = vadd.f32 %v3142_v31, %v14600_v44  ;;  %v3144_v18 = vpop.f32.mrb[111].mxu0 }
 0x2e0   :  { %16702 = vst [vmem:[#allocation148_spill] sm:$0xff] %v14979_v45  ;;  %4283 = vmatmul.mubr.bf16.gmra.mrb[248].mxu1 %v11754_v50 }
 0x2e1   :  { %4290 = vmatprep.mubr.bf16.mxu1 %v11755_v56 }
 0x2e3   :  { %v14981_v42 = vpop.f32.mrb[144].mxu1  ;;  %v3147_v0 = vpop.f32.mrb[112].mxu0 }
 0x2e4   :  { %v2988_v41 = vpop.f32.mrb[145].mxu1  ;;  %v3149_v1 = vpop.f32.mrb[113].mxu0  ;;  %v14990_v58 = vadd.f32 %v3147_v0, %v14621_v8  ;;  %v11763_v0 = vld [vmem:[%s16512_s5 + $0x324] ss:$16 sps:$4 sm:$0xff]  }
 0x2e5   :  { %v14992_v44 = vpop.f32.mrb[146].mxu1  ;;  %v3150_v50 = vpop.f32.mrb[114].mxu0  ;;  %v11758_v1 = vld [vmem:[%s16512_s5 + $0x300] ss:$16 sps:$4 sm:$0xff]  }
 0x2e6   :  { %16703 = vst [vmem:[#allocation149_spill] sm:$0xff] %v14990_v58  ;;  %v2991_v56 = vpop.f32.mrb[147].mxu1  ;;  %v14995_v31 = vadd.f32 %v3150_v50, %v14640_v9  ;;  %v3152_v18 = vpop.f32.mrb[115].mxu0 }
 0x2e8   :  { %16704 = vst [vmem:[#allocation150_spill] sm:$0xff] %v14995_v31  ;;  %4291 = vmatmul.mubr.bf16.gmra.mrb[252].mxu1 %v11757_v38 }
 0x2e9   :  { %4298 = vmatprep.mubr.bf16.mxu1 %v11760_v48 }
 0x2eb   :  { %v14997_v45 = vpop.f32.mrb[148].mxu1  ;;  %v3155_v41 = vpop.f32.mrb[116].mxu0 }
 0x2ec   :  { %v2996_v40 = vpop.f32.mrb[149].mxu1  ;;  %v3157_v8 = vpop.f32.mrb[117].mxu0  ;;  %v15006_v56 = vadd.f32 %v3155_v41, %v14661_v10  ;;  %v11766_v41 = vld [vmem:[%s16512_s5 + $0x344] ss:$16 sps:$4 sm:$0xff]  }
 0x2ed   :  { %v15008_v9 = vpop.f32.mrb[150].mxu1  ;;  %v3158_v38 = vpop.f32.mrb[118].mxu0  ;;  %v11761_v8 = vld [vmem:[%s16512_s5 + $0x320] ss:$16 sps:$4 sm:$0xff]  }
 0x2ee   :  { %16705 = vst [vmem:[#allocation151_spill] sm:$0xff] %v15006_v56  ;;  %v2999_v48 = vpop.f32.mrb[151].mxu1  ;;  %v15011_v50 = vadd.f32 %v3158_v38, %v14676_v62  ;;  %v3160_v18 = vpop.f32.mrb[119].mxu0 }
 0x2f0   :  { %16706 = vst [vmem:[#allocation152_spill] sm:$0xff] %v15011_v50  ;;  %4299 = vmatmul.mubr.bf16.gmra.mrb[0].mxu1 %v11758_v1 }
 0x2f1   :  { %4306 = vmatprep.mubr.bf16.mxu1 %v11763_v0 }
 0x2f3   :  { %v15013_v31 = vpop.f32.mrb[152].mxu1  ;;  %v3163_v40 = vpop.f32.mrb[120].mxu0 }
 0x2f4   :  { %v3004_v58 = vpop.f32.mrb[153].mxu1  ;;  %v3165_v10 = vpop.f32.mrb[121].mxu0  ;;  %v15022_v48 = vadd.f32 %v3163_v40, %v14694_v30  ;;  %v11769_v40 = vld [vmem:[%s16512_s5 + $0x364] ss:$16 sps:$4 sm:$0xff]  }
 0x2f5   :  { %v15024_v62 = vpop.f32.mrb[154].mxu1  ;;  %v3166_v1 = vpop.f32.mrb[122].mxu0  ;;  %v11764_v10 = vld [vmem:[%s16512_s5 + $0x340] ss:$16 sps:$4 sm:$0xff]  }
 0x2f6   :  { %16707 = vst [vmem:[#allocation153_spill] sm:$0xff] %v15022_v48  ;;  %v3007_v0 = vpop.f32.mrb[155].mxu1  ;;  %v15027_v38 = vadd.f32 %v3166_v1, %v14708_v21  ;;  %v3168_v18 = vpop.f32.mrb[123].mxu0 }
 0x2f8   :  { %16708 = vst [vmem:[#allocation154_spill] sm:$0xff] %v15027_v38  ;;  %4307 = vmatmul.mubr.bf16.gmra.mrb[4].mxu1 %v11761_v8 }
 0x2f9   :  { %4314 = vmatprep.mubr.bf16.mxu1 %v11766_v41 }
 0x2fb   :  { %v15029_v50 = vpop.f32.mrb[156].mxu1  ;;  %v3171_v58 = vpop.f32.mrb[124].mxu0 }
 0x2fc   :  { %v3012_v56 = vpop.f32.mrb[157].mxu1  ;;  %v3173_v30 = vpop.f32.mrb[125].mxu0  ;;  %v15038_v0 = vadd.f32 %v3171_v58, %v14726_v61  ;;  %v11772_v58 = vld [vmem:[%s16512_s5 + $0x384] ss:$16 sps:$4 sm:$0xff]  }
 0x2fd   :  { %v15040_v21 = vpop.f32.mrb[158].mxu1  ;;  %v3174_v8 = vpop.f32.mrb[126].mxu0  ;;  %v11767_v30 = vld [vmem:[%s16512_s5 + $0x360] ss:$16 sps:$4 sm:$0xff]  }
 0x2fe   :  { %v3015_v41 = vpop.f32.mrb[159].mxu1  ;;  %v15043_v1 = vadd.f32 %v3174_v8, %v14744_v3  ;;  %v3176_v18 = vpop.f32.mrb[127].mxu0  ;;  %v11770_v8 = vld [vmem:[%s16512_s5 + $0x380] ss:$16 sps:$4 sm:$0xff]  }
 0x2ff   :  { %v11775_v18 = vld [vmem:[%s16512_s5 + $0x3a4] ss:$16 sps:$4 sm:$0xff]  }
 0x300   :  { %4315 = vmatmul.mubr.bf16.gmra.mrb[8].mxu1 %v11764_v10 }
 0x301   :  { %4322 = vmatprep.mubr.bf16.mxu1 %v11769_v40 }
 0x303   :  { %v3179_v38 = vpop.f32.mrb[128].mxu0 }
 0x304   :  { %v3181_v56 = vpop.f32.mrb[129].mxu0  ;;  %v15049_v48 = vadd.f32 %v3179_v38, %v14762_v46 }
 0x305   :  { %v3182_v61 = vpop.f32.mrb[130].mxu0 }
 0x306   :  { %v3184_v41 = vpop.f32.mrb[131].mxu0  ;;  %v15055_v3 = vadd.f32 %v3182_v61, %v14778_v59 }
 0x308   :  { %4323 = vmatmul.mubr.bf16.gmra.mrb[12].mxu1 %v11767_v30 }
 0x309   :  { %4330 = vmatprep.mubr.bf16.mxu1 %v11772_v58  ;;  %v11773_v58 = vld [vmem:[%s16512_s5 + $0x3a0] ss:$16 sps:$4 sm:$0xff]  }
 0x30b   :  { %v3187_v10 = vpop.f32.mrb[132].mxu0 }
 0x30c   :  { %v3189_v40 = vpop.f32.mrb[133].mxu0  ;;  %v15061_v46 = vadd.f32 %v3187_v10, %v14798_v24  ;;  %v11778_v10 = vld [vmem:[%s16512_s5 + $0x3c4] ss:$16 sps:$4 sm:$0xff]  }
 0x30d   :  { %v3190_v38 = vpop.f32.mrb[134].mxu0 }
 0x30e   :  { %v3192_v56 = vpop.f32.mrb[135].mxu0  ;;  %v15067_v59 = vadd.f32 %v3190_v38, %v14808_v47 }
 0x310   :  { %4331 = vmatmul.mubr.bf16.gmra.mrb[16].mxu1 %v11770_v8 }
 0x311   :  { %4338 = vmatprep.mubr.bf16.mxu1 %v11775_v18  ;;  %v11776_v18 = vld [vmem:[%s16512_s5 + $0x3c0] ss:$16 sps:$4 sm:$0xff]  }
 0x313   :  { %v3195_v30 = vpop.f32.mrb[136].mxu0 }
 0x314   :  { %v3197_v61 = vpop.f32.mrb[137].mxu0  ;;  %v15073_v24 = vadd.f32 %v3195_v30, %v14818_v11  ;;  %v11781_v30 = vld [vmem:[%s16512_s5 + $0x3e4] ss:$16 sps:$4 sm:$0xff]  }
 0x315   :  { %v3198_v41 = vpop.f32.mrb[138].mxu0 }
 0x316   :  { %v3200_v40 = vpop.f32.mrb[139].mxu0  ;;  %v15079_v47 = vadd.f32 %v3198_v41, %v14828_v2 }
 0x318   :  { %4339 = vmatmul.mubr.bf16.gmra.mrb[20].mxu1 %v11773_v58 }
 0x319   :  { %4346 = vmatprep.mubr.bf16.mxu1 %v11778_v10 }
 0x31b   :  { %v3203_v8 = vpop.f32.mrb[140].mxu0 }
 0x31c   :  { %v3205_v38 = vpop.f32.mrb[141].mxu0  ;;  %v15085_v11 = vadd.f32 %v3203_v8, %v14838_v5  ;;  %v11779_v5 = vld [vmem:[%s16512_s5 + $0x3e0] ss:$16 sps:$4 sm:$0xff]   ;;  %v11784_v8 = vld [vmem:[%s16512_s5 + $0xc] ss:$16 sps:$4 sm:$0xff]  }
 0x31d   :  { %v3206_v56 = vpop.f32.mrb[142].mxu0 }
 0x31e   :  { %v3208_v61 = vpop.f32.mrb[143].mxu0  ;;  %v15091_v2 = vadd.f32 %v3206_v56, %v14848_v39 }
 0x320   :  { %4347 = vmatmul.mubr.bf16.gmra.mrb[24].mxu1 %v11776_v18 }
 0x321   :  { %4354 = vmatprep.mubr.bf16.mxu1 %v11781_v30  ;;  %v11782_v30 = vld [vmem:[%s16512_s5 + $0x8] ss:$16 sps:$4 sm:$0xff]  }
 0x323   :  { %v3211_v58 = vpop.f32.mrb[144].mxu0 }
 0x324   :  { %v15094_v41 = vadd.f32 %v3211_v58, %v14858_v57  ;;  %v3213_v10 = vpop.f32.mrb[145].mxu0  ;;  %v11785_v58 = vld [vmem:[%s16512_s5 + $0x2c] ss:$16 sps:$4 sm:$0xff]  }
 0x325   :  { %v3214_v40 = vpop.f32.mrb[146].mxu0 }
 0x326   :  { %v15103_v38 = vadd.f32 %v3214_v40, %v14868_v20  ;;  %v3216_v39 = vpop.f32.mrb[147].mxu0 }
 0x328   :  { %4355 = vmatmul.mubr.bf16.gmra.mrb[28].mxu1 %v11779_v5 }
 0x329   :  { %4395 = vmatprep.mubr.bf16.mxu1 %v11784_v8  ;;  %v11787_v8 = vld [vmem:[%s16512_s5 + $0x28] ss:$16 sps:$4 sm:$0xff]  }
 0x32b   :  { %v3219_v18 = vpop.f32.mrb[148].mxu0 }
 0x32c   :  { %v15106_v57 = vadd.f32 %v3219_v18, %v14875_v32  ;;  %v3221_v56 = vpop.f32.mrb[149].mxu0  ;;  %v11788_v18 = vld [vmem:[%s16512_s5 + $0x4c] ss:$16 sps:$4 sm:$0xff]  }
 0x32d   :  { %v3222_v61 = vpop.f32.mrb[150].mxu0 }
 0x32e   :  { %v15115_v20 = vadd.f32 %v3222_v61, %v14882_v25  ;;  %v3224_v10 = vpop.f32.mrb[151].mxu0 }
 0x330   :  { %4396 = vmatmul.mubr.bf16.vlgmr.msra.gmra.mrb[160].mxu1 %v11782_v30 }
 0x331   :  { %4403 = vmatprep.mubr.bf16.mxu1 %v11785_v58  ;;  %v11790_v58 = vld [vmem:[%s16512_s5 + $0x48] ss:$16 sps:$4 sm:$0xff]  }
 0x333   :  { %v3227_v5 = vpop.f32.mrb[152].mxu0 }
 0x334   :  { %v15118_v32 = vadd.f32 %v3227_v5, %v14889_v63  ;;  %v3229_v40 = vpop.f32.mrb[153].mxu0  ;;  %v11791_v5 = vld [vmem:[%s16512_s5 + $0x6c] ss:$16 sps:$4 sm:$0xff]  }
 0x335   :  { %v3230_v39 = vpop.f32.mrb[154].mxu0 }
 0x336   :  { %v15127_v25 = vadd.f32 %v3230_v39, %v14896_v19  ;;  %v3232_v56 = vpop.f32.mrb[155].mxu0 }
 0x338   :  { %4404 = vmatmul.mubr.bf16.gmra.mrb[164].mxu1 %v11787_v8 }
 0x339   :  { %4411 = vmatprep.mubr.bf16.mxu1 %v11788_v18  ;;  %v11793_v18 = vld [vmem:[%s16512_s5 + $0x68] ss:$16 sps:$4 sm:$0xff]  }
 0x33b   :  { %v3235_v30 = vpop.f32.mrb[156].mxu0 }
 0x33c   :  { %v15130_v63 = vadd.f32 %v3235_v30, %v14903_v43  ;;  %v3237_v61 = vpop.f32.mrb[157].mxu0  ;;  %v11794_v30 = vld [vmem:[%s16512_s5 + $0x8c] ss:$16 sps:$4 sm:$0xff]  }
 0x33d   :  { %v3238_v10 = vpop.f32.mrb[158].mxu0 }
 0x33e   :  { %v15139_v19 = vadd.f32 %v3238_v10, %v14910_v14  ;;  %v3240_v40 = vpop.f32.mrb[159].mxu0 }
 0x340   :  { %4412 = vmatmul.mubr.bf16.gmra.mrb[168].mxu1 %v11790_v58 }
 0x341   :  { %4419 = vmatprep.mubr.bf16.mxu1 %v11791_v5  ;;  %v11796_v5 = vld [vmem:[%s16512_s5 + $0x88] ss:$16 sps:$4 sm:$0xff]  }
 0x343   :  { %v3243_v8 = vpop.f32.mrb[160].mxu0 }
 0x344   :  { %v15142_v43 = vadd.f32 %v3243_v8, %v14917_v55  ;;  %v3245_v39 = vpop.f32.mrb[161].mxu0  ;;  %v11797_v8 = vld [vmem:[%s16512_s5 + $0xac] ss:$16 sps:$4 sm:$0xff]  }
 0x345   :  { %v3246_v56 = vpop.f32.mrb[162].mxu0 }
 0x346   :  { %v15151_v14 = vadd.f32 %v3246_v56, %v14922_v35  ;;  %v3248_v61 = vpop.f32.mrb[163].mxu0 }
 0x348   :  { %4420 = vmatmul.mubr.bf16.gmra.mrb[172].mxu1 %v11793_v18 }
 0x349   :  { %4427 = vmatprep.mubr.bf16.mxu1 %v11794_v30  ;;  %v11799_v30 = vld [vmem:[%s16512_s5 + $0xa8] ss:$16 sps:$4 sm:$0xff]  }
 0x34b   :  { %v3251_v58 = vpop.f32.mrb[164].mxu0 }
 0x34c   :  { %v15154_v55 = vadd.f32 %v3251_v58, %v14933_v29  ;;  %v3253_v10 = vpop.f32.mrb[165].mxu0  ;;  %v11800_v58 = vld [vmem:[%s16512_s5 + $0xcc] ss:$16 sps:$4 sm:$0xff]  }
 0x34d   :  { %v3254_v40 = vpop.f32.mrb[166].mxu0 }
 0x34e   :  { %v15163_v35 = vadd.f32 %v3254_v40, %v14944_v22  ;;  %v3256_v39 = vpop.f32.mrb[167].mxu0 }
 0x350   :  { %4428 = vmatmul.mubr.bf16.gmra.mrb[176].mxu1 %v11796_v5 }
 0x351   :  { %4435 = vmatprep.mubr.bf16.mxu1 %v11797_v8  ;;  %v11802_v8 = vld [vmem:[%s16512_s5 + $0xc8] ss:$16 sps:$4 sm:$0xff]  }
 0x353   :  { %v3259_v18 = vpop.f32.mrb[168].mxu0 }
 0x354   :  { %v15166_v29 = vadd.f32 %v3259_v18, %v14949_v51  ;;  %v3261_v56 = vpop.f32.mrb[169].mxu0  ;;  %v11803_v18 = vld [vmem:[%s16512_s5 + $0xec] ss:$16 sps:$4 sm:$0xff]  }
 0x355   :  { %v3262_v61 = vpop.f32.mrb[170].mxu0 }
 0x356   :  { %v15175_v22 = vadd.f32 %v3262_v61, %v14960_v28  ;;  %v3264_v10 = vpop.f32.mrb[171].mxu0 }
 0x358   :  { %4436 = vmatmul.mubr.bf16.gmra.mrb[180].mxu1 %v11799_v30 }
 0x359   :  { %4443 = vmatprep.mubr.bf16.mxu1 %v11800_v58  ;;  %v11805_v58 = vld [vmem:[%s16512_s5 + $0xe8] ss:$16 sps:$4 sm:$0xff]  }
 0x35b   :  { %v3267_v5 = vpop.f32.mrb[172].mxu0 }
 0x35c   :  { %v15178_v51 = vadd.f32 %v3267_v5, %v14965_v27  ;;  %v3269_v40 = vpop.f32.mrb[173].mxu0  ;;  %v11806_v5 = vld [vmem:[%s16512_s5 + $0x10c] ss:$16 sps:$4 sm:$0xff]  }
 0x35d   :  { %v3270_v39 = vpop.f32.mrb[174].mxu0 }
 0x35e   :  { %v15187_v28 = vadd.f32 %v3270_v39, %v14976_v12  ;;  %v3272_v56 = vpop.f32.mrb[175].mxu0 }
 0x360   :  { %4444 = vmatmul.mubr.bf16.gmra.mrb[184].mxu1 %v11802_v8 }
 0x361   :  { %4451 = vmatprep.mubr.bf16.mxu1 %v11803_v18  ;;  %v11808_v18 = vld [vmem:[%s16512_s5 + $0x108] ss:$16 sps:$4 sm:$0xff]  }
 0x363   :  { %v3275_v30 = vpop.f32.mrb[176].mxu0 }
 0x364   :  { %v15190_v27 = vadd.f32 %v3275_v30, %v14981_v42  ;;  %v3277_v61 = vpop.f32.mrb[177].mxu0  ;;  %v11809_v30 = vld [vmem:[%s16512_s5 + $0x12c] ss:$16 sps:$4 sm:$0xff]  }
 0x365   :  { %v3278_v10 = vpop.f32.mrb[178].mxu0 }
 0x366   :  { %v15199_v12 = vadd.f32 %v3278_v10, %v14992_v44  ;;  %v3280_v40 = vpop.f32.mrb[179].mxu0 }
 0x368   :  { %4452 = vmatmul.mubr.bf16.gmra.mrb[188].mxu1 %v11805_v58 }
 0x369   :  { %4459 = vmatprep.mubr.bf16.mxu1 %v11806_v5  ;;  %v11811_v5 = vld [vmem:[%s16512_s5 + $0x128] ss:$16 sps:$4 sm:$0xff]  }
 0x36b   :  { %v3283_v8 = vpop.f32.mrb[180].mxu0 }
 0x36c   :  { %v15202_v42 = vadd.f32 %v3283_v8, %v14997_v45  ;;  %v3285_v39 = vpop.f32.mrb[181].mxu0  ;;  %v11812_v8 = vld [vmem:[%s16512_s5 + $0x14c] ss:$16 sps:$4 sm:$0xff]  }
 0x36d   :  { %v3286_v56 = vpop.f32.mrb[182].mxu0 }
 0x36e   :  { %v15211_v44 = vadd.f32 %v3286_v56, %v15008_v9  ;;  %v3288_v61 = vpop.f32.mrb[183].mxu0 }
 0x370   :  { %4460 = vmatmul.mubr.bf16.gmra.mrb[192].mxu1 %v11808_v18 }
 0x371   :  { %4467 = vmatprep.mubr.bf16.mxu1 %v11809_v30  ;;  %v11814_v30 = vld [vmem:[%s16512_s5 + $0x148] ss:$16 sps:$4 sm:$0xff]  }
 0x373   :  { %v3291_v58 = vpop.f32.mrb[184].mxu0 }
 0x374   :  { %v15214_v45 = vadd.f32 %v3291_v58, %v15013_v31  ;;  %v3293_v10 = vpop.f32.mrb[185].mxu0  ;;  %v11815_v58 = vld [vmem:[%s16512_s5 + $0x16c] ss:$16 sps:$4 sm:$0xff]  }
 0x375   :  { %v3294_v40 = vpop.f32.mrb[186].mxu0 }
 0x376   :  { %v15223_v9 = vadd.f32 %v3294_v40, %v15024_v62  ;;  %v3296_v39 = vpop.f32.mrb[187].mxu0  ;;  %v11820_v40 = vld [vmem:[%s16512_s5 + $0x188] ss:$16 sps:$4 sm:$0xff]  }
 0x377   :  { %v11824_v39 = vld [vmem:[%s16512_s5 + $0x1cc] ss:$16 sps:$4 sm:$0xff]  }
 0x378   :  { %4468 = vmatmul.mubr.bf16.gmra.mrb[196].mxu1 %v11811_v5  ;;  %v11818_v5 = vld [vmem:[%s16512_s5 + $0x18c] ss:$16 sps:$4 sm:$0xff]  }
 0x379   :  { %4475 = vmatprep.mubr.bf16.mxu1 %v11812_v8  ;;  %v11823_v8 = vld [vmem:[%s16512_s5 + $0x1a8] ss:$16 sps:$4 sm:$0xff]  }
 0x37b   :  { %v3299_v18 = vpop.f32.mrb[188].mxu0 }
 0x37c   :  { %v15226_v31 = vadd.f32 %v3299_v18, %v15029_v50  ;;  %v3301_v56 = vpop.f32.mrb[189].mxu0  ;;  %v11817_v50 = vld [vmem:[%s16512_s5 + $0x168] ss:$16 sps:$4 sm:$0xff]  }
 0x37d   :  { %v3302_v61 = vpop.f32.mrb[190].mxu0  ;;  %v11826_v18 = vld [vmem:[%s16512_s5 + $0x1c8] ss:$16 sps:$4 sm:$0xff]   ;;  %v11827_v56 = vld [vmem:[%s16512_s5 + $0x1ec] ss:$16 sps:$4 sm:$0xff]  }
 0x37e   :  { %16709 = vst [vmem:[#allocation155_spill] sm:$0xff] %v15226_v31  ;;  %v15235_v62 = vadd.f32 %v3302_v61, %v15040_v21  ;;  %v3304_v10 = vpop.f32.mrb[191].mxu0  ;;  %v11821_v21 = vld [vmem:[%s16512_s5 + $0x1ac] ss:$16 sps:$4 sm:$0xff]   ;;  %v11866_v31 = vld [vmem:[%s16512_s5 + $0x388] ss:$16 sps:$4 sm:$0xff]  }
 0x37f   :  { %v11830_v61 = vld [vmem:[%s16512_s5 + $0x20c] ss:$16 sps:$4 sm:$0xff]  }
 0x380   :  { %16710 = vst [vmem:[#allocation156_spill] sm:$0xff] %v15235_v62  ;;  %4476 = vmatmul.mubr.bf16.gmra.mrb[200].mxu1 %v11814_v30  ;;  %v11829_v30 = vld [vmem:[%s16512_s5 + $0x1e8] ss:$16 sps:$4 sm:$0xff]   ;;  %v11833_v10 = vld [vmem:[%s16512_s5 + $0x22c] ss:$16 sps:$4 sm:$0xff]  }
 0x381   :  { %4483 = vmatprep.mubr.bf16.mxu1 %v11815_v58  ;;  %v11832_v58 = vld [vmem:[%s16512_s5 + $0x208] ss:$16 sps:$4 sm:$0xff]  }
 0x388   :  { %4484 = vmatmul.mubr.bf16.gmra.mrb[204].mxu1 %v11817_v50  ;;  %v11835_v50 = vld [vmem:[%s16512_s5 + $0x228] ss:$16 sps:$4 sm:$0xff]  }
 0x389   :  { %4491 = vmatprep.mubr.bf16.mxu1 %v11818_v5  ;;  %v11836_v5 = vld [vmem:[%s16512_s5 + $0x24c] ss:$16 sps:$4 sm:$0xff]  }
 0x390   :  { %4492 = vmatmul.mubr.bf16.gmra.mrb[208].mxu1 %v11820_v40  ;;  %v11838_v40 = vld [vmem:[%s16512_s5 + $0x248] ss:$16 sps:$4 sm:$0xff]  }
 0x391   :  { %4499 = vmatprep.mubr.bf16.mxu1 %v11821_v21  ;;  %v11839_v21 = vld [vmem:[%s16512_s5 + $0x26c] ss:$16 sps:$4 sm:$0xff]  }
 0x398   :  { %4500 = vmatmul.mubr.bf16.gmra.mrb[212].mxu1 %v11823_v8  ;;  %v11841_v8 = vld [vmem:[%s16512_s5 + $0x268] ss:$16 sps:$4 sm:$0xff]  }
 0x399   :  { %4507 = vmatprep.mubr.bf16.mxu1 %v11824_v39  ;;  %v11842_v39 = vld [vmem:[%s16512_s5 + $0x28c] ss:$16 sps:$4 sm:$0xff]  }
 0x3a0   :  { %4508 = vmatmul.mubr.bf16.gmra.mrb[216].mxu1 %v11826_v18  ;;  %v11844_v18 = vld [vmem:[%s16512_s5 + $0x288] ss:$16 sps:$4 sm:$0xff]  }
 0x3a1   :  { %4515 = vmatprep.mubr.bf16.mxu1 %v11827_v56  ;;  %v11845_v56 = vld [vmem:[%s16512_s5 + $0x2ac] ss:$16 sps:$4 sm:$0xff]  }
 0x3a8   :  { %4516 = vmatmul.mubr.bf16.gmra.mrb[220].mxu1 %v11829_v30  ;;  %v11847_v30 = vld [vmem:[%s16512_s5 + $0x2a8] ss:$16 sps:$4 sm:$0xff]  }
 0x3a9   :  { %4523 = vmatprep.mubr.bf16.mxu1 %v11830_v61  ;;  %v11848_v61 = vld [vmem:[%s16512_s5 + $0x2cc] ss:$16 sps:$4 sm:$0xff]  }
 0x3b0   :  { %4524 = vmatmul.mubr.bf16.gmra.mrb[224].mxu1 %v11832_v58  ;;  %v11850_v58 = vld [vmem:[%s16512_s5 + $0x2c8] ss:$16 sps:$4 sm:$0xff]  }
 0x3b1   :  { %4531 = vmatprep.mubr.bf16.mxu1 %v11833_v10  ;;  %v11851_v10 = vld [vmem:[%s16512_s5 + $0x2ec] ss:$16 sps:$4 sm:$0xff]  }
 0x3b8   :  { %4532 = vmatmul.mubr.bf16.gmra.mrb[228].mxu1 %v11835_v50  ;;  %v11853_v50 = vld [vmem:[%s16512_s5 + $0x2e8] ss:$16 sps:$4 sm:$0xff]  }
 0x3b9   :  { %4539 = vmatprep.mubr.bf16.mxu1 %v11836_v5  ;;  %v11856_v5 = vld [vmem:[%s16512_s5 + $0x30c] ss:$16 sps:$4 sm:$0xff]  }
 0x3c0   :  { %4540 = vmatmul.mubr.bf16.gmra.mrb[232].mxu1 %v11838_v40  ;;  %v11854_v40 = vld [vmem:[%s16512_s5 + $0x308] ss:$16 sps:$4 sm:$0xff]  }
 0x3c1   :  { %4547 = vmatprep.mubr.bf16.mxu1 %v11839_v21  ;;  %v11859_v21 = vld [vmem:[%s16512_s5 + $0x32c] ss:$16 sps:$4 sm:$0xff]  }
 0x3c8   :  { %4548 = vmatmul.mubr.bf16.gmra.mrb[236].mxu1 %v11841_v8  ;;  %v11857_v8 = vld [vmem:[%s16512_s5 + $0x328] ss:$16 sps:$4 sm:$0xff]  }
 0x3c9   :  { %4555 = vmatprep.mubr.bf16.mxu1 %v11842_v39  ;;  %v11862_v39 = vld [vmem:[%s16512_s5 + $0x34c] ss:$16 sps:$4 sm:$0xff]  }
 0x3d0   :  { %4556 = vmatmul.mubr.bf16.gmra.mrb[240].mxu1 %v11844_v18  ;;  %v11860_v18 = vld [vmem:[%s16512_s5 + $0x348] ss:$16 sps:$4 sm:$0xff]  }
 0x3d1   :  { %4563 = vmatprep.mubr.bf16.mxu1 %v11845_v56  ;;  %v11865_v56 = vld [vmem:[%s16512_s5 + $0x36c] ss:$16 sps:$4 sm:$0xff]  }
 0x3d8   :  { %4564 = vmatmul.mubr.bf16.gmra.mrb[244].mxu1 %v11847_v30 }
 0x3d9   :  { %4571 = vmatprep.mubr.bf16.mxu1 %v11848_v61 }
 0x3e0   :  { %4572 = vmatmul.mubr.bf16.gmra.mrb[248].mxu1 %v11850_v58 }
 0x3e1   :  { %4579 = vmatprep.mubr.bf16.mxu1 %v11851_v10  ;;  %v11863_v10 = vld [vmem:[%s16512_s5 + $0x368] ss:$16 sps:$4 sm:$0xff]  }
 0x3e8   :  { %4580 = vmatmul.mubr.bf16.gmra.mrb[252].mxu1 %v11853_v50 }
 0x3e9   :  { %4587 = vmatprep.mubr.bf16.mxu1 %v11856_v5  ;;  %v11868_v5 = vld [vmem:[%s16512_s5 + $0x38c] ss:$16 sps:$4 sm:$0xff]  }
 0x3f0   :  { %4588 = vmatmul.mubr.bf16.gmra.mrb[0].mxu1 %v11854_v40 }
 0x3f1   :  { %4595 = vmatprep.mubr.bf16.mxu1 %v11859_v21 }
 0x3f8   :  { %4596 = vmatmul.mubr.bf16.gmra.mrb[4].mxu1 %v11857_v8 }
 0x3f9   :  { %4603 = vmatprep.mubr.bf16.mxu1 %v11862_v39 }
 0x400   :  { %4604 = vmatmul.mubr.bf16.gmra.mrb[8].mxu1 %v11860_v18 }
 0x401   :  { %4611 = vmatprep.mubr.bf16.mxu1 %v11865_v56 }
 0x403   :  { %v4397_v30 = vpop.f32.mrb[160].mxu1 }
 0x404   :  { %v4652_v61 = vmax.f32 %v14776_v13, %v4397_v30  ;;  %v4399_v58 = vpop.f32.mrb[161].mxu1  ;;  %v11880_v13 = vld [vmem:[#allocation2 + $0x4] ss:$16 sps:$4 sm:$0xff]  }
 0x405   :  { %v4400_v50 = vpop.f32.mrb[162].mxu1  ;;  %5484 = vmatprep.mubr.bf16.mxu0 %v11880_v13 }
 0x406   :  { %v5100_v40 = vadd.f32 %v13346_v17, %v4652_v61  ;;  %v4653_v21 = vmax.f32 %v14786_v15, %v4400_v50  ;;  %v4402_v8 = vpop.f32.mrb[163].mxu1 }
 0x408   :  { %v5101_v39 = vadd.f32 %v13344_v33, %v4653_v21  ;;  %4612 = vmatmul.mubr.bf16.gmra.mrb[12].mxu1 %v11863_v10  ;;  %v5164_v18 = vmax.f32 %v5100_v40, 0.0  ;;  %v11871_v33 = vld [vmem:[%s16512_s5 + $0x3ac] ss:$16 sps:$4 sm:$0xff]  }
 0x409   :  { %4619 = vmatprep.mubr.bf16.mxu1 %v11868_v5 }
 0x40a   :  { %v5165_v56 = vmax.f32 %v5101_v39, 0.0  ;;  %v11869_v39 = vld [vmem:[%s16512_s5 + $0x3a8] ss:$16 sps:$4 sm:$0xff]  }
 0x40b   :  { %v4405_v30 = vpop.f32.mrb[164].mxu1 }
 0x40c   :  { %v4654_v58 = vmax.f32 %v14806_v60, %v4405_v30  ;;  %v4407_v62 = vpop.f32.mrb[165].mxu1  ;;  %v15347_v17 = vpack.c.bf16 %v5165_v56, %v5164_v18 }
 0x40d   :  { %v4408_v15 = vpop.f32.mrb[166].mxu1 }
 0x40e   :  { %v5102_v61 = vadd.f32 %v13418_v37, %v4654_v58  ;;  %v4655_v10 = vmax.f32 %v14816_v26, %v4408_v15  ;;  %v4410_v50 = vpop.f32.mrb[167].mxu1  ;;  %v11874_v26 = vld [vmem:[%s16512_s5 + $0x3cc] ss:$16 sps:$4 sm:$0xff]  }
 0x410   :  { %v5103_v5 = vadd.f32 %v13416_v49, %v4655_v10  ;;  %4620 = vmatmul.mubr.bf16.gmra.mrb[16].mxu1 %v11866_v31  ;;  %v5166_v60 = vmax.f32 %v5102_v61, 0.0  ;;  %v11872_v61 = vld [vmem:[%s16512_s5 + $0x3c8] ss:$16 sps:$4 sm:$0xff]  }
 0x411   :  { %4627 = vmatprep.mubr.bf16.mxu1 %v11871_v33 }
 0x412   :  { %v5167_v62 = vmax.f32 %v5103_v5, 0.0 }
 0x413   :  { %v4413_v40 = vpop.f32.mrb[168].mxu1 }
 0x414   :  { %v4656_v21 = vmax.f32 %v14826_v7, %v4413_v40  ;;  %v4415_v8 = vpop.f32.mrb[169].mxu1  ;;  %v15359_v13 = vpack.c.bf16 %v5167_v62, %v5166_v60 }
 0x415   :  { %v4416_v37 = vpop.f32.mrb[170].mxu1 }
 0x416   :  { %v5104_v49 = vadd.f32 %v13490_v53, %v4656_v21  ;;  %v4657_v31 = vmax.f32 %v14836_v16, %v4416_v37  ;;  %v4418_v18 = vpop.f32.mrb[171].mxu1  ;;  %v11877_v16 = vld [vmem:[%s16512_s5 + $0x3ec] ss:$16 sps:$4 sm:$0xff]  }
 0x417   :  { %v16713_v18 = vld [vmem:[#allocation9_spill] sm:$0xff] }
 0x418   :  { %v5105_v56 = vadd.f32 %v13488_v4, %v4657_v31  ;;  %4628 = vmatmul.mubr.bf16.gmra.mrb[20].mxu1 %v11869_v39  ;;  %v5168_v7 = vmax.f32 %v5104_v49, 0.0  ;;  %v11875_v39 = vld [vmem:[%s16512_s5 + $0x3e8] ss:$16 sps:$4 sm:$0xff]   ;;  %v16712_v49 = vld [vmem:[#allocation135_spill] sm:$0xff] }
 0x419   :  { %4635 = vmatprep.mubr.bf16.mxu1 %v11874_v26  ;;  %v16711_v26 = vld [vmem:[#allocation49_spill] sm:$0xff] }
 0x41a   :  { %v5169_v30 = vmax.f32 %v5105_v56, 0.0 }
 0x41b   :  { %v4421_v58 = vpop.f32.mrb[172].mxu1 }
 0x41c   :  { %v4658_v15 = vmax.f32 %v14846_v54, %v4421_v58  ;;  %v4423_v33 = vpop.f32.mrb[173].mxu1  ;;  %v15371_v10 = vpack.c.bf16 %v5169_v30, %v5168_v7 }
 0x41d   :  { %v4424_v53 = vpop.f32.mrb[174].mxu1 }
 0x41e   :  { %v5106_v4 = vadd.f32 %v13580_v23, %v4658_v15  ;;  %v4659_v50 = vmax.f32 %v14856_v52, %v4424_v53  ;;  %v4426_v5 = vpop.f32.mrb[175].mxu1 }
 0x420   :  { %v5107_v60 = vadd.f32 %v13578_v34, %v4659_v50  ;;  %4636 = vmatmul.mubr.bf16.gmra.mrb[24].mxu1 %v11872_v61  ;;  %v5170_v54 = vmax.f32 %v5106_v4, 0.0  ;;  %v16716_v50 = vld [vmem:[#allocation137_spill] sm:$0xff] }
 0x421   :  { %4643 = vmatprep.mubr.bf16.mxu1 %v11877_v16  ;;  %v16715_v16 = vld [vmem:[#allocation14_spill] sm:$0xff] }
 0x422   :  { %v5171_v62 = vmax.f32 %v5107_v60, 0.0 }
 0x423   :  { %v4429_v40 = vpop.f32.mrb[176].mxu1 }
 0x424   :  { %v4660_v21 = vmax.f32 %v14866_v36, %v4429_v40  ;;  %v4431_v8 = vpop.f32.mrb[177].mxu1  ;;  %v15383_v37 = vpack.c.bf16 %v5171_v62, %v5170_v54  ;;  %v16714_v36 = vld [vmem:[#allocation136_spill] sm:$0xff] }
 0x425   :  { %v4432_v23 = vpop.f32.mrb[178].mxu1  ;;  %v16717_v54 = vld [vmem:[#allocation16_spill] sm:$0xff] }
 0x426   :  { %v5108_v52 = vadd.f32 %v16711_v26, %v4660_v21  ;;  %v4661_v31 = vmax.f32 %v16712_v49, %v4432_v23  ;;  %v4434_v34 = vpop.f32.mrb[179].mxu1 }
 0x428   :  { %v5109_v56 = vadd.f32 %v16713_v18, %v4661_v31  ;;  %4644 = vmatmul.mubr.bf16.gmra.mrb[28].mxu1 %v11875_v39  ;;  %v5172_v7 = vmax.f32 %v5108_v52, 0.0  ;;  %v16718_v39 = vld [vmem:[#allocation138_spill] sm:$0xff]  ;;  %v16720_v18 = vld [vmem:[#allocation139_spill] sm:$0xff] }
 0x429   :  { %v16719_v31 = vld [vmem:[#allocation54_spill] sm:$0xff] }
 0x42a   :  { %v5173_v30 = vmax.f32 %v5109_v56, 0.0 }
 0x42b   :  { %v4437_v58 = vpop.f32.mrb[180].mxu1 }
 0x42c   :  { %v4662_v15 = vmax.f32 %v16714_v36, %v4437_v58  ;;  %v4439_v33 = vpop.f32.mrb[181].mxu1  ;;  %v15389_v61 = vpack.c.bf16 %v5173_v30, %v5172_v7  ;;  %v16721_v30 = vld [vmem:[#allocation19_spill] sm:$0xff] }
 0x42d   :  { %v4440_v53 = vpop.f32.mrb[182].mxu1 }
 0x42e   :  { %v5110_v4 = vadd.f32 %v16715_v16, %v4662_v15  ;;  %v4663_v5 = vmax.f32 %v16716_v50, %v4440_v53  ;;  %v4442_v60 = vpop.f32.mrb[183].mxu1  ;;  %v16722_v53 = vld [vmem:[#allocation140_spill] sm:$0xff] }
 0x42f   :  { %v16723_v60 = vld [vmem:[#allocation62_spill] sm:$0xff] }
 0x430   :  { %v5111_v62 = vadd.f32 %v16717_v54, %v4663_v5  ;;  %v5174_v40 = vmax.f32 %v5110_v4, 0.0 }
 0x432   :  { %v5175_v21 = vmax.f32 %v5111_v62, 0.0  ;;  %v16724_v62 = vld [vmem:[#allocation141_spill] sm:$0xff] }
 0x433   :  { %v4445_v8 = vpop.f32.mrb[184].mxu1 }
 0x434   :  { %v4664_v23 = vmax.f32 %v16718_v39, %v4445_v8  ;;  %v4447_v26 = vpop.f32.mrb[185].mxu1  ;;  %v15395_v52 = vpack.c.bf16 %v5175_v21, %v5174_v40  ;;  %v16725_v8 = vld [vmem:[#allocation61_spill] sm:$0xff] }
 0x435   :  { %v4448_v49 = vpop.f32.mrb[186].mxu1 }
 0x436   :  { %v5112_v34 = vadd.f32 %v16719_v31, %v4664_v23  ;;  %v4665_v56 = vmax.f32 %v16720_v18, %v4448_v49  ;;  %v4450_v7 = vpop.f32.mrb[187].mxu1 }
 0x437   :  { %v16726_v7 = vld [vmem:[#allocation22_spill] sm:$0xff] }
 0x438   :  { %v5113_v58 = vadd.f32 %v16721_v30, %v4665_v56  ;;  %v5176_v36 = vmax.f32 %v5112_v34, 0.0 }
 0x43a   :  { %v5177_v15 = vmax.f32 %v5113_v58, 0.0  ;;  %v16727_v58 = vld [vmem:[#allocation142_spill] sm:$0xff] }
 0x43b   :  { %v4453_v33 = vpop.f32.mrb[188].mxu1 }
 0x43c   :  { %v4666_v16 = vmax.f32 %v16722_v53, %v4453_v33  ;;  %v4455_v4 = vpop.f32.mrb[189].mxu1  ;;  %v15401_v50 = vpack.c.bf16 %v5177_v15, %v5176_v36  ;;  %v16728_v33 = vld [vmem:[#allocation21_spill] sm:$0xff] }
 0x43d   :  { %v4456_v5 = vpop.f32.mrb[190].mxu1 }
 0x43e   :  { %v5114_v54 = vadd.f32 %v16723_v60, %v4666_v16  ;;  %v4667_v40 = vmax.f32 %v16724_v62, %v4456_v5  ;;  %v4458_v21 = vpop.f32.mrb[191].mxu1  ;;  %v16729_v60 = vld [vmem:[#allocation143_spill] sm:$0xff] }
 0x43f   :  { %v16730_v21 = vld [vmem:[#allocation28_spill] sm:$0xff] }
 0x440   :  { %v5115_v39 = vadd.f32 %v16725_v8, %v4667_v40  ;;  %v5178_v23 = vmax.f32 %v5114_v54, 0.0 }
 0x442   :  { %v5179_v26 = vmax.f32 %v5115_v39, 0.0  ;;  %v16731_v39 = vld [vmem:[#allocation144_spill] sm:$0xff] }
 0x443   :  { %v4461_v49 = vpop.f32.mrb[192].mxu1 }
 0x444   :  { %v4668_v31 = vmax.f32 %v14928_v6, %v4461_v49  ;;  %v4463_v34 = vpop.f32.mrb[193].mxu1  ;;  %v15407_v18 = vpack.c.bf16 %v5179_v26, %v5178_v23  ;;  %v16732_v49 = vld [vmem:[#allocation27_spill] sm:$0xff] }
 0x445   :  { %v4464_v56 = vpop.f32.mrb[194].mxu1 }
 0x446   :  { %v5116_v30 = vadd.f32 %v16726_v7, %v4668_v31  ;;  %v4669_v36 = vmax.f32 %v16727_v58, %v4464_v56  ;;  %v4466_v15 = vpop.f32.mrb[195].mxu1 }
 0x448   :  { %v5117_v53 = vadd.f32 %v16728_v33, %v4669_v36  ;;  %v5180_v16 = vmax.f32 %v5116_v30, 0.0  ;;  %v16733_v30 = vld [vmem:[#allocation145_spill] sm:$0xff] }
 0x44a   :  { %v5181_v4 = vmax.f32 %v5117_v53, 0.0  ;;  %v16734_v53 = vld [vmem:[#allocation34_spill] sm:$0xff] }
 0x44b   :  { %v4469_v5 = vpop.f32.mrb[196].mxu1 }
 0x44c   :  { %v4670_v54 = vmax.f32 %v16729_v60, %v4469_v5  ;;  %v4471_v62 = vpop.f32.mrb[197].mxu1  ;;  %v15413_v40 = vpack.c.bf16 %v5181_v4, %v5180_v16  ;;  %v16735_v4 = vld [vmem:[#allocation146_spill] sm:$0xff] }
 0x44d   :  { %v4472_v6 = vpop.f32.mrb[198].mxu1 }
 0x44e   :  { %v5118_v8 = vadd.f32 %v16730_v21, %v4670_v54  ;;  %v4671_v23 = vmax.f32 %v16731_v39, %v4472_v6  ;;  %v4474_v26 = vpop.f32.mrb[199].mxu1  ;;  %10336 = vmatprep.subr.bf16.mxu0 %v15413_v40  ;;  %v16736_v54 = vld [vmem:[#allocation33_spill] sm:$0xff]  ;;  %v16737_v39 = vld [vmem:[#allocation147_spill] sm:$0xff] }
 0x44f   :  { %10337 = vmatpush3.bf16.msra.mxu0 %v15347_v17 }
 0x450   :  { %v5119_v31 = vadd.f32 %v16732_v49, %v4671_v23  ;;  %v5182_v34 = vmax.f32 %v5118_v8, 0.0 }
 0x452   :  { %v5183_v56 = vmax.f32 %v5119_v31, 0.0 }
 0x453   :  { %v4477_v7 = vpop.f32.mrb[200].mxu1 }
 0x454   :  { %v4672_v58 = vmax.f32 %v16733_v30, %v4477_v7  ;;  %v4479_v36 = vpop.f32.mrb[201].mxu1  ;;  %v15421_v15 = vpack.c.bf16 %v5183_v56, %v5182_v34  ;;  %v16738_v34 = vld [vmem:[#allocation40_spill] sm:$0xff] }
 0x455   :  { %v4480_v33 = vpop.f32.mrb[202].mxu1  ;;  %v16739_v7 = vld [vmem:[#allocation148_spill] sm:$0xff]  ;;  %v16740_v36 = vld [vmem:[#allocation39_spill] sm:$0xff] }
 0x456   :  { %v5120_v16 = vadd.f32 %v16734_v53, %v4672_v58  ;;  %v4673_v5 = vmax.f32 %v16735_v4, %v4480_v33  ;;  %v4482_v60 = vpop.f32.mrb[203].mxu1  ;;  %10338 = vmatprep.subr.bf16.mxu0 %v15421_v15 }
 0x457   :  { %10339 = vmatpush3.bf16.msra.mxu0 %v15359_v13 }
 0x458   :  { %v5121_v62 = vadd.f32 %v16736_v54, %v4673_v5  ;;  %v5184_v6 = vmax.f32 %v5120_v16, 0.0  ;;  %v16741_v5 = vld [vmem:[#allocation149_spill] sm:$0xff] }
 0x45a   :  { %v5185_v21 = vmax.f32 %v5121_v62, 0.0 }
 0x45b   :  { %v4485_v8 = vpop.f32.mrb[204].mxu1 }
 0x45c   :  { %v4674_v23 = vmax.f32 %v16737_v39, %v4485_v8  ;;  %v4487_v26 = vpop.f32.mrb[205].mxu1  ;;  %v15429_v49 = vpack.c.bf16 %v5185_v21, %v5184_v6  ;;  %v16742_v21 = vld [vmem:[#allocation46_spill] sm:$0xff] }
 0x45d   :  { %v4488_v31 = vpop.f32.mrb[206].mxu1  ;;  %v16743_v39 = vld [vmem:[#allocation150_spill] sm:$0xff] }
 0x45e   :  { %v5122_v56 = vadd.f32 %v16738_v34, %v4674_v23  ;;  %v4675_v30 = vmax.f32 %v16739_v7, %v4488_v31  ;;  %v4490_v58 = vpop.f32.mrb[207].mxu1  ;;  %10340 = vmatprep.subr.bf16.mxu0 %v15429_v49  ;;  %v16744_v31 = vld [vmem:[#allocation45_spill] sm:$0xff] }
 0x45f   :  { %10341 = vmatpush3.bf16.msra.mxu0 %v15371_v10  ;;  %v16745_v58 = vld [vmem:[#allocation151_spill] sm:$0xff] }
 0x460   :  { %v5123_v33 = vadd.f32 %v16740_v36, %v4675_v30  ;;  %v5186_v53 = vmax.f32 %v5122_v56, 0.0 }
 0x462   :  { %v5187_v16 = vmax.f32 %v5123_v33, 0.0 }
 0x463   :  { %v4493_v4 = vpop.f32.mrb[208].mxu1 }
 0x464   :  { %v4676_v60 = vmax.f32 %v16741_v5, %v4493_v4  ;;  %v4495_v54 = vpop.f32.mrb[209].mxu1  ;;  %v15437_v62 = vpack.c.bf16 %v5187_v16, %v5186_v53  ;;  %v16746_v4 = vld [vmem:[#allocation10_spill] sm:$0xff] }
 0x465   :  { %v4496_v6 = vpop.f32.mrb[210].mxu1 }
 0x466   :  { %v5124_v8 = vadd.f32 %v16742_v21, %v4676_v60  ;;  %v4677_v23 = vmax.f32 %v16743_v39, %v4496_v6  ;;  %v4498_v26 = vpop.f32.mrb[211].mxu1  ;;  %10342 = vmatprep.subr.bf16.mxu0 %v15437_v62  ;;  %v16747_v60 = vld [vmem:[#allocation152_spill] sm:$0xff] }
 0x467   :  { %10343 = vmatpush3.bf16.msra.mxu0 %v15383_v37  ;;  %v16748_v21 = vld [vmem:[#allocation12_spill] sm:$0xff] }
 0x468   :  { %v5125_v34 = vadd.f32 %v16744_v31, %v4677_v23  ;;  %v5188_v56 = vmax.f32 %v5124_v8, 0.0  ;;  %v16749_v31 = vld [vmem:[#allocation153_spill] sm:$0xff] }
 0x46a   :  { %v5189_v7 = vmax.f32 %v5125_v34, 0.0 }
 0x46b   :  { %v4501_v30 = vpop.f32.mrb[212].mxu1 }
 0x46c   :  { %v4678_v36 = vmax.f32 %v16745_v58, %v4501_v30  ;;  %v4503_v33 = vpop.f32.mrb[213].mxu1  ;;  %v15445_v53 = vpack.c.bf16 %v5189_v7, %v5188_v56  ;;  %v16750_v58 = vld [vmem:[#allocation52_spill] sm:$0xff] }
 0x46d   :  { %v4504_v16 = vpop.f32.mrb[214].mxu1  ;;  %v16751_v33 = vld [vmem:[#allocation154_spill] sm:$0xff] }
 0x46e   :  { %v5126_v5 = vadd.f32 %v16746_v4, %v4678_v36  ;;  %v4679_v54 = vmax.f32 %v16747_v60, %v4504_v16  ;;  %v4506_v6 = vpop.f32.mrb[215].mxu1  ;;  %10344 = vmatprep.subr.bf16.mxu0 %v15445_v53  ;;  %v16752_v60 = vld [vmem:[#allocation18_spill] sm:$0xff] }
 0x46f   :  { %10345 = vmatpush3.bf16.msra.mxu0 %v15389_v61 }
 0x470   :  { %v5127_v39 = vadd.f32 %v16748_v21, %v4679_v54  ;;  %v5190_v8 = vmax.f32 %v5126_v5, 0.0 }
 0x472   :  { %v5191_v23 = vmax.f32 %v5127_v39, 0.0 }
 0x473   :  { %v4509_v26 = vpop.f32.mrb[216].mxu1 }
 0x474   :  { %v4680_v34 = vmax.f32 %v16749_v31, %v4509_v26  ;;  %v4511_v30 = vpop.f32.mrb[217].mxu1  ;;  %v15453_v56 = vpack.c.bf16 %v5191_v23, %v5190_v8  ;;  %v16753_v31 = vld [vmem:[#allocation58_spill] sm:$0xff] }
 0x475   :  { %v4512_v7 = vpop.f32.mrb[218].mxu1 }
 0x476   :  { %v5128_v36 = vadd.f32 %v16750_v58, %v4680_v34  ;;  %v4681_v16 = vmax.f32 %v16751_v33, %v4512_v7  ;;  %v4514_v4 = vpop.f32.mrb[219].mxu1  ;;  %10346 = vmatprep.subr.bf16.mxu0 %v15453_v56  ;;  %v16754_v58 = vld [vmem:[#allocation57_spill] sm:$0xff] }
 0x477   :  { %10347 = vmatpush3.bf16.msra.mxu0 %v15395_v52 }
 0x478   :  { %v5129_v54 = vadd.f32 %v16752_v60, %v4681_v16  ;;  %v5192_v5 = vmax.f32 %v5128_v36, 0.0 }
 0x47a   :  { %v5193_v6 = vmax.f32 %v5129_v54, 0.0 }
 0x47b   :  { %v4517_v21 = vpop.f32.mrb[220].mxu1 }
 0x47c   :  { %v4682_v39 = vmax.f32 %v15038_v0, %v4517_v21  ;;  %v4519_v26 = vpop.f32.mrb[221].mxu1  ;;  %v15461_v8 = vpack.c.bf16 %v5193_v6, %v5192_v5  ;;  %v16755_v6 = vld [vmem:[#allocation26_spill] sm:$0xff] }
 0x47d   :  { %v4520_v23 = vpop.f32.mrb[222].mxu1  ;;  %v11878_v26 = vld [vmem:[#allocation2] ss:$16 sps:$4 sm:$0xff]  }
 0x47e   :  { %v5130_v34 = vadd.f32 %v16753_v31, %v4682_v39  ;;  %v4683_v30 = vmax.f32 %v15043_v1, %v4520_v23  ;;  %v4522_v7 = vpop.f32.mrb[223].mxu1  ;;  %10348 = vmatprep.subr.bf16.mxu0 %v15461_v8  ;;  %v16756_v23 = vld [vmem:[#allocation25_spill] sm:$0xff] }
 0x47f   :  { %10349 = vmatpush3.bf16.msra.mxu0 %v15401_v50 }
 0x480   :  { %v5131_v33 = vadd.f32 %v16754_v58, %v4683_v30  ;;  %v5194_v36 = vmax.f32 %v5130_v34, 0.0  ;;  %v11883_v34 = vld [vmem:[#allocation2 + $0xc] ss:$16 sps:$4 sm:$0xff]  }
 0x481   :  { %5581 = vmatprep.mubr.bf16.mxu1 %v11883_v34 }
 0x482   :  { %v5195_v16 = vmax.f32 %v5131_v33, 0.0 }
 0x483   :  { %v4525_v4 = vpop.f32.mrb[224].mxu1 }
 0x484   :  { %v4684_v0 = vmax.f32 %v15049_v48, %v4525_v4  ;;  %v4527_v60 = vpop.f32.mrb[225].mxu1  ;;  %v15469_v54 = vpack.c.bf16 %v5195_v16, %v5194_v36  ;;  %v11884_v16 = vld [vmem:[#allocation2 + $0x24] ss:$16 sps:$4 sm:$0xff]   ;;  %v16757_v4 = vld [vmem:[#allocation32_spill] sm:$0xff] }
 0x485   :  { %v4528_v5 = vpop.f32.mrb[226].mxu1 }
 0x486   :  { %v5132_v21 = vadd.f32 %v16755_v6, %v4684_v0  ;;  %v4685_v1 = vmax.f32 %v15055_v3, %v4528_v5  ;;  %v4530_v39 = vpop.f32.mrb[227].mxu1  ;;  %10350 = vmatprep.subr.bf16.mxu0 %v15469_v54  ;;  %v11889_v5 = vld [vmem:[#allocation2 + $0x20] ss:$16 sps:$4 sm:$0xff]  }
 0x487   :  { %10351 = vmatpush3.bf16.msra.mxu0 %v15407_v18  ;;  %v16758_v6 = vld [vmem:[#allocation31_spill] sm:$0xff] }
 0x488   :  { %v5133_v31 = vadd.f32 %v16756_v23, %v4685_v1  ;;  %10464 = vmatprep.subr.bf16.mxu0 %v15413_v40  ;;  %v5196_v48 = vmax.f32 %v5132_v21, 0.0  ;;  %v16759_v23 = vld [vmem:[#allocation38_spill] sm:$0xff] }
 0x48a   :  { %v5197_v30 = vmax.f32 %v5133_v31, 0.0  ;;  %5485 = vmatmul.mubr.bf16.vlgmr.msra.gmra.mrb[192].mxu0 %v11878_v26 }
 0x48b   :  { %v4533_v7 = vpop.f32.mrb[228].mxu1  ;;  %10465 = vmatpush3.bf16.msra.mxu0 %v15347_v17  ;;  %5492 = vmatprep.mubr.bf16.mxu0 %v11884_v16  ;;  %v16761_v16 = vld [vmem:[#allocation44_spill] sm:$0xff] }
 0x48c   :  { %v15478_v58 = vpack.c.bf16 %v5197_v30, %v5196_v48  ;;  %v4686_v3 = vmax.f32 %v15061_v46, %v4533_v7  ;;  %v4535_v33 = vpop.f32.mrb[229].mxu1  ;;  %10466 = vmatprep.subr.bf16.mxu0 %v15421_v15  ;;  %v11895_v48 = vld [vmem:[#allocation2 + $0x40] ss:$16 sps:$4 sm:$0xff]  }
 0x48d   :  { %v4536_v36 = vpop.f32.mrb[230].mxu1  ;;  %v16760_v30 = vld [vmem:[#allocation37_spill] sm:$0xff] }
 0x48e   :  { %v5134_v0 = vadd.f32 %v16757_v4, %v4686_v3  ;;  %v4687_v40 = vmax.f32 %v15067_v59, %v4536_v36  ;;  %v4538_v60 = vpop.f32.mrb[231].mxu1 }
 0x48f   :  { %10467 = vmatpush3.bf16.msra.mxu0 %v15359_v13  ;;  %v11890_v13 = vld [vmem:[#allocation2 + $0x44] ss:$16 sps:$4 sm:$0xff]  }
 0x490   :  { %v5135_v17 = vadd.f32 %v16758_v6, %v4687_v40  ;;  %10468 = vmatprep.subr.bf16.mxu0 %v15429_v49  ;;  %v5198_v21 = vmax.f32 %v5134_v0, 0.0  ;;  %v11901_v40 = vld [vmem:[#allocation2 + $0x60] ss:$16 sps:$4 sm:$0xff]  }
 0x491   :  { %v16762_v60 = vld [vmem:[#allocation43_spill] sm:$0xff] }
 0x492   :  { %v5199_v46 = vmax.f32 %v5135_v17, 0.0  ;;  %5493 = vmatmul.mubr.bf16.gmra.mrb[196].mxu0 %v11889_v5 }
 0x493   :  { %v4541_v1 = vpop.f32.mrb[232].mxu1  ;;  %10469 = vmatpush3.bf16.msra.mxu0 %v15371_v10  ;;  %5500 = vmatprep.mubr.bf16.mxu0 %v11890_v13 }
 0x494   :  { %v15488_v15 = vpack.c.bf16 %v5199_v46, %v5198_v21  ;;  %v4688_v39 = vmax.f32 %v15073_v24, %v4541_v1  ;;  %v4543_v59 = vpop.f32.mrb[233].mxu1  ;;  %10470 = vmatprep.subr.bf16.mxu0 %v15437_v62  ;;  %v16763_v46 = vld [vmem:[#allocation11_spill] sm:$0xff] }
 0x495   :  { %v4544_v26 = vpop.f32.mrb[234].mxu1  ;;  %v11907_v59 = vld [vmem:[#allocation2 + $0x80] ss:$16 sps:$4 sm:$0xff]  }
 0x496   :  { %v5136_v31 = vadd.f32 %v16759_v23, %v4688_v39  ;;  %v4689_v34 = vmax.f32 %v15079_v47, %v4544_v26  ;;  %v4546_v49 = vpop.f32.mrb[235].mxu1  ;;  %v16764_v26 = vld [vmem:[#allocation13_spill] sm:$0xff] }
 0x497   :  { %10471 = vmatpush3.bf16.msra.mxu0 %v15383_v37  ;;  %v11896_v37 = vld [vmem:[#allocation2 + $0x64] ss:$16 sps:$4 sm:$0xff]  }
 0x498   :  { %v5137_v10 = vadd.f32 %v16760_v30, %v4689_v34  ;;  %10472 = vmatprep.subr.bf16.mxu0 %v15445_v53  ;;  %v5200_v7 = vmax.f32 %v5136_v31, 0.0 }
 0x49a   :  { %v5201_v24 = vmax.f32 %v5137_v10, 0.0  ;;  %5501 = vmatmul.mubr.bf16.gmra.mrb[200].mxu0 %v11895_v48 }
 0x49b   :  { %v4549_v3 = vpop.f32.mrb[236].mxu1  ;;  %10473 = vmatpush3.bf16.msra.mxu0 %v15389_v61  ;;  %5508 = vmatprep.mubr.bf16.mxu0 %v11896_v37 }
 0x49c   :  { %v15498_v62 = vpack.c.bf16 %v5201_v24, %v5200_v7  ;;  %v4690_v33 = vmax.f32 %v15085_v11, %v4549_v3  ;;  %v4551_v47 = vpop.f32.mrb[237].mxu1  ;;  %10474 = vmatprep.subr.bf16.mxu0 %v15453_v56  ;;  %v11913_v7 = vld [vmem:[#allocation2 + $0xa0] ss:$16 sps:$4 sm:$0xff]   ;;  %v16766_v24 = vld [vmem:[#allocation50_spill] sm:$0xff] }
 0x49d   :  { %v4552_v36 = vpop.f32.mrb[238].mxu1 }
 0x49e   :  { %v5138_v4 = vadd.f32 %v16761_v16, %v4690_v33  ;;  %v4691_v0 = vmax.f32 %v15091_v2, %v4552_v36  ;;  %v4554_v53 = vpop.f32.mrb[239].mxu1  ;;  %v11914_v36 = vld [vmem:[#allocation2 + $0xc4] ss:$16 sps:$4 sm:$0xff]  }
 0x49f   :  { %10475 = vmatpush3.bf16.msra.mxu0 %v15395_v52  ;;  %v11902_v52 = vld [vmem:[#allocation2 + $0x84] ss:$16 sps:$4 sm:$0xff]   ;;  %v16767_v53 = vld [vmem:[#allocation56_spill] sm:$0xff] }
 0x4a0   :  { %v5139_v61 = vadd.f32 %v16762_v60, %v4691_v0  ;;  %10476 = vmatprep.subr.bf16.mxu0 %v15461_v8  ;;  %v5202_v5 = vmax.f32 %v5138_v4, 0.0 }
 0x4a2   :  { %v5203_v11 = vmax.f32 %v5139_v61, 0.0  ;;  %5509 = vmatmul.mubr.bf16.gmra.mrb[204].mxu0 %v11901_v40  ;;  %v11919_v61 = vld [vmem:[#allocation2 + $0xc0] ss:$16 sps:$4 sm:$0xff]  }
 0x4a3   :  { %v4557_v6 = vpop.f32.mrb[240].mxu1  ;;  %10477 = vmatpush3.bf16.msra.mxu0 %v15401_v50  ;;  %5516 = vmatprep.mubr.bf16.mxu0 %v11902_v52 }
 0x4a4   :  { %v15508_v56 = vpack.c.bf16 %v5203_v11, %v5202_v5  ;;  %v4692_v17 = vmax.f32 %v15094_v41, %v4557_v6  ;;  %v4559_v2 = vpop.f32.mrb[241].mxu1  ;;  %10478 = vmatprep.subr.bf16.mxu0 %v15469_v54  ;;  %v11908_v41 = vld [vmem:[#allocation2 + $0xa4] ss:$16 sps:$4 sm:$0xff]  }
 0x4a5   :  { %v4560_v21 = vpop.f32.mrb[242].mxu1  ;;  %v16768_v5 = vld [vmem:[#allocation55_spill] sm:$0xff] }
 0x4a6   :  { %v5140_v1 = vadd.f32 %v16763_v46, %v4692_v17  ;;  %v4693_v39 = vmax.f32 %v15103_v38, %v4560_v21  ;;  %v4562_v8 = vpop.f32.mrb[243].mxu1  ;;  %v16765_v38 = vld [vmem:[#allocation51_spill] sm:$0xff] }
 0x4a7   :  { %10479 = vmatpush3.bf16.msra.mxu0 %v15407_v18  ;;  %v11920_v2 = vld [vmem:[#allocation2 + $0xe4] ss:$16 sps:$4 sm:$0xff]  }
 0x4a8   :  { %v5141_v50 = vadd.f32 %v16764_v26, %v4693_v39  ;;  %v5204_v13 = vmax.f32 %v5140_v1, 0.0  ;;  %v16769_v39 = vld [vmem:[#allocation64_spill] sm:$0xff]  ;;  %v11925_v26 = vld [vmem:[#allocation2 + $0xe0] ss:$16 sps:$4 sm:$0xff]  }
 0x4aa   :  { %v5205_v23 = vmax.f32 %v5141_v50, 0.0  ;;  %5517 = vmatmul.mubr.bf16.gmra.mrb[208].mxu0 %v11907_v59  ;;  %v16770_v50 = vld [vmem:[#allocation63_spill] sm:$0xff] }
 0x4ab   :  { %v4565_v31 = vpop.f32.mrb[244].mxu1  ;;  %5524 = vmatprep.mubr.bf16.mxu0 %v11908_v41 }
 0x4ac   :  { %v15516_v34 = vpack.c.bf16 %v5205_v23, %v5204_v13  ;;  %v4694_v54 = vmax.f32 %v15106_v57, %v4565_v31  ;;  %v4567_v49 = vpop.f32.mrb[245].mxu1  ;;  %v11928_v31 = vld [vmem:[#allocation4 + $0x4] ss:$16 sps:$4 sm:$0xff]  }
 0x4ad   :  { %v4568_v48 = vpop.f32.mrb[246].mxu1 }
 0x4ae   :  { %v5142_v30 = vadd.f32 %v16765_v38, %v4694_v54  ;;  %v4695_v10 = vmax.f32 %v15115_v20, %v4568_v48  ;;  %v4570_v18 = vpop.f32.mrb[247].mxu1 }
 0x4b0   :  { %v5143_v3 = vadd.f32 %v16766_v24, %v4695_v10  ;;  %v5206_v33 = vmax.f32 %v5142_v30, 0.0  ;;  %v16771_v30 = vld [vmem:[#allocation24_spill] sm:$0xff]  ;;  %v16772_v24 = vld [vmem:[#allocation23_spill] sm:$0xff] }
 0x4b2   :  { %v5207_v47 = vmax.f32 %v5143_v3, 0.0  ;;  %5525 = vmatmul.mubr.bf16.gmra.mrb[212].mxu0 %v11913_v7  ;;  %v11926_v7 = vld [vmem:[#allocation4] ss:$16 sps:$4 sm:$0xff]  }
 0x4b3   :  { %v4573_v37 = vpop.f32.mrb[248].mxu1  ;;  %5532 = vmatprep.mubr.bf16.mxu0 %v11914_v36  ;;  %v11932_v36 = vld [vmem:[#allocation4 + $0x24] ss:$16 sps:$4 sm:$0xff]  }
 0x4b4   :  { %v15522_v16 = vpack.c.bf16 %v5207_v47, %v5206_v33  ;;  %v4696_v57 = vmax.f32 %v15118_v32, %v4573_v37  ;;  %v4575_v4 = vpop.f32.mrb[249].mxu1 }
 0x4b5   :  { %v4576_v0 = vpop.f32.mrb[250].mxu1 }
 0x4b6   :  { %v5144_v40 = vadd.f32 %v16767_v53, %v4696_v57  ;;  %v4697_v20 = vmax.f32 %v15127_v25, %v4576_v0  ;;  %v4578_v60 = vpop.f32.mrb[251].mxu1  ;;  %v16773_v53 = vld [vmem:[#allocation30_spill] sm:$0xff] }
 0x4b7   :  { %v11937_v60 = vld [vmem:[#allocation4 + $0x20] ss:$16 sps:$4 sm:$0xff]  }
 0x4b8   :  { %v5145_v11 = vadd.f32 %v16768_v5, %v4697_v20  ;;  %v5208_v6 = vmax.f32 %v5144_v40, 0.0 }
 0x4ba   :  { %v5209_v17 = vmax.f32 %v5145_v11, 0.0  ;;  %5533 = vmatmul.mubr.bf16.gmra.mrb[216].mxu0 %v11919_v61  ;;  %v16774_v61 = vld [vmem:[#allocation29_spill] sm:$0xff] }
 0x4bb   :  { %v4581_v21 = vpop.f32.mrb[252].mxu1  ;;  %5540 = vmatprep.mubr.bf16.mxu0 %v11920_v2 }
 0x4bc   :  { %v15528_v52 = vpack.c.bf16 %v5209_v17, %v5208_v6  ;;  %v4698_v32 = vmax.f32 %v15130_v63, %v4581_v21  ;;  %v4583_v46 = vpop.f32.mrb[253].mxu1 }
 0x4bd   :  { %v4584_v1 = vpop.f32.mrb[254].mxu1  ;;  %v16775_v46 = vld [vmem:[#allocation36_spill] sm:$0xff] }
 0x4be   :  { %v5146_v8 = vadd.f32 %v16769_v39, %v4698_v32  ;;  %v4699_v25 = vmax.f32 %v15139_v19, %v4584_v1  ;;  %v4586_v59 = vpop.f32.mrb[255].mxu1 }
 0x4bf   :  { %v16776_v59 = vld [vmem:[#allocation35_spill] sm:$0xff] }
 0x4c0   :  { %v5147_v13 = vadd.f32 %v16770_v50, %v4699_v25  ;;  %v5210_v23 = vmax.f32 %v5146_v8, 0.0  ;;  %v11943_v25 = vld [vmem:[#allocation4 + $0x40] ss:$16 sps:$4 sm:$0xff]  }
 0x4c2   :  { %v5211_v41 = vmax.f32 %v5147_v13, 0.0  ;;  %5541 = vmatmul.mubr.bf16.gmra.mrb[220].mxu0 %v11925_v26 }
 0x4c3   :  { %v4589_v54 = vpop.f32.mrb[0].mxu1  ;;  %5870 = vmatprep.mubr.bf16.mxu0 %v11928_v31 }
 0x4c4   :  { %v15534_v49 = vpack.c.bf16 %v5211_v41, %v5210_v23  ;;  %v4700_v63 = vmax.f32 %v15142_v43, %v4589_v54  ;;  %v4591_v48 = vpop.f32.mrb[1].mxu1 }
 0x4c5   :  { %v4592_v38 = vpop.f32.mrb[2].mxu1 }
 0x4c6   :  { %v5148_v10 = vadd.f32 %v16771_v30, %v4700_v63  ;;  %v4701_v19 = vmax.f32 %v15151_v14, %v4592_v38  ;;  %v4594_v18 = vpop.f32.mrb[3].mxu1  ;;  %v16777_v63 = vld [vmem:[#allocation42_spill] sm:$0xff] }
 0x4c8   :  { %v5149_v3 = vadd.f32 %v16772_v24, %v4701_v19  ;;  %v5212_v33 = vmax.f32 %v5148_v10, 0.0  ;;  %v11949_v10 = vld [vmem:[#allocation4 + $0x60] ss:$16 sps:$4 sm:$0xff]  }
 0x4c9   :  { %v16778_v19 = vld [vmem:[#allocation41_spill] sm:$0xff] }
 0x4ca   :  { %v5213_v47 = vmax.f32 %v5149_v3, 0.0  ;;  %5871 = vmatmul.mubr.bf16.vlgmr.msra.gmra.mrb[224].mxu0 %v11926_v7 }
 0x4cb   :  { %v4597_v37 = vpop.f32.mrb[4].mxu1  ;;  %5878 = vmatprep.mubr.bf16.mxu0 %v11932_v36 }
 0x4cc   :  { %v4702_v57 = vmax.f32 %v15154_v55, %v4597_v37  ;;  %v4599_v4 = vpop.f32.mrb[5].mxu1  ;;  %v15541_v43 = vpack.c.bf16 %v5213_v47, %v5212_v33  ;;  %v11938_v55 = vld [vmem:[#allocation4 + $0x44] ss:$16 sps:$4 sm:$0xff]   ;;  %v16779_v37 = vld [vmem:[#allocation48_spill] sm:$0xff] }
 0x4cd   :  { %v4600_v0 = vpop.f32.mrb[6].mxu1 }
 0x4ce   :  { %v5150_v40 = vadd.f32 %v16773_v53, %v4702_v57  ;;  %v4703_v14 = vmax.f32 %v15163_v35, %v4600_v0  ;;  %v4602_v20 = vpop.f32.mrb[7].mxu1  ;;  %10400 = vmatprep.subr.bf16.mxu1 %v15541_v43  ;;  %v11955_v53 = vld [vmem:[#allocation4 + $0x80] ss:$16 sps:$4 sm:$0xff]  }
 0x4cf   :  { %10401 = vmatpush3.bf16.msra.mxu1 %v15478_v58 }
 0x4d0   :  { %v5151_v5 = vadd.f32 %v16774_v61, %v4703_v14  ;;  %v5214_v11 = vmax.f32 %v5150_v40, 0.0  ;;  %v16780_v40 = vld [vmem:[#allocation47_spill] sm:$0xff] }
 0x4d2   :  { %v5215_v6 = vmax.f32 %v5151_v5, 0.0  ;;  %5879 = vmatmul.mubr.bf16.gmra.mrb[228].mxu0 %v11937_v60 }
 0x4d3   :  { %v4605_v17 = vpop.f32.mrb[8].mxu1  ;;  %5886 = vmatprep.mubr.bf16.mxu0 %v11938_v55  ;;  %v16781_v55 = vld [vmem:[#allocation15_spill] sm:$0xff] }
 0x4d4   :  { %v4704_v2 = vmax.f32 %v15166_v29, %v4605_v17  ;;  %v4607_v21 = vpop.f32.mrb[9].mxu1  ;;  %v15549_v32 = vpack.c.bf16 %v5215_v6, %v5214_v11  ;;  %v11944_v29 = vld [vmem:[#allocation4 + $0x64] ss:$16 sps:$4 sm:$0xff]  }
 0x4d5   :  { %v4608_v35 = vpop.f32.mrb[10].mxu1 }
 0x4d6   :  { %v5152_v1 = vadd.f32 %v16775_v46, %v4704_v2  ;;  %v4705_v39 = vmax.f32 %v15175_v22, %v4608_v35  ;;  %v4610_v8 = vpop.f32.mrb[11].mxu1  ;;  %10402 = vmatprep.subr.bf16.mxu1 %v15549_v32  ;;  %v11961_v35 = vld [vmem:[#allocation4 + $0xa0] ss:$16 sps:$4 sm:$0xff]  }
 0x4d7   :  { %10403 = vmatpush3.bf16.msra.mxu1 %v15488_v15  ;;  %v16782_v46 = vld [vmem:[#allocation17_spill] sm:$0xff] }
 0x4d8   :  { %v5153_v26 = vadd.f32 %v16776_v59, %v4705_v39  ;;  %v5216_v50 = vmax.f32 %v5152_v1, 0.0 }
 0x4da   :  { %v5217_v13 = vmax.f32 %v5153_v26, 0.0  ;;  %5887 = vmatmul.mubr.bf16.gmra.mrb[232].mxu0 %v11943_v25 }
 0x4db   :  { %v4613_v23 = vpop.f32.mrb[12].mxu1  ;;  %5894 = vmatprep.mubr.bf16.mxu0 %v11944_v29 }
 0x4dc   :  { %v4706_v41 = vmax.f32 %v15178_v51, %v4613_v23  ;;  %v4615_v31 = vpop.f32.mrb[13].mxu1  ;;  %v15557_v54 = vpack.c.bf16 %v5217_v13, %v5216_v50  ;;  %v11950_v51 = vld [vmem:[#allocation4 + $0x84] ss:$16 sps:$4 sm:$0xff]  }
 0x4dd   :  { %v4616_v22 = vpop.f32.mrb[14].mxu1  ;;  %v11967_v31 = vld [vmem:[#allocation4 + $0xc0] ss:$16 sps:$4 sm:$0xff]  }
 0x4de   :  { %v5154_v48 = vadd.f32 %v16777_v63, %v4706_v41  ;;  %v4707_v38 = vmax.f32 %v15187_v28, %v4616_v22  ;;  %v4618_v30 = vpop.f32.mrb[15].mxu1  ;;  %10404 = vmatprep.subr.bf16.mxu1 %v15557_v54  ;;  %v16784_v22 = vld [vmem:[#allocation20_spill] sm:$0xff] }
 0x4df   :  { %10405 = vmatpush3.bf16.msra.mxu1 %v15498_v62  ;;  %v11968_v30 = vld [vmem:[#allocation4 + $0xe4] ss:$16 sps:$4 sm:$0xff]  }
 0x4e0   :  { %v5155_v18 = vadd.f32 %v16778_v19, %v4707_v38  ;;  %v5218_v7 = vmax.f32 %v5154_v48, 0.0 }
 0x4e2   :  { %v5219_v24 = vmax.f32 %v5155_v18, 0.0  ;;  %5895 = vmatmul.mubr.bf16.gmra.mrb[236].mxu0 %v11949_v10  ;;  %v16785_v10 = vld [vmem:[#allocation155_spill] sm:$0xff] }
 0x4e3   :  { %v4621_v3 = vpop.f32.mrb[16].mxu1  ;;  %5902 = vmatprep.mubr.bf16.mxu0 %v11950_v51  ;;  %v16786_v51 = vld [vmem:[#allocation60_spill] sm:$0xff] }
 0x4e4   :  { %v4708_v33 = vmax.f32 %v15190_v27, %v4621_v3  ;;  %v4623_v47 = vpop.f32.mrb[17].mxu1  ;;  %v15565_v36 = vpack.c.bf16 %v5219_v24, %v5218_v7  ;;  %v11956_v27 = vld [vmem:[#allocation4 + $0xa4] ss:$16 sps:$4 sm:$0xff]   ;;  %v16787_v3 = vld [vmem:[#allocation156_spill] sm:$0xff] }
 0x4e5   :  { %v4624_v28 = vpop.f32.mrb[18].mxu1 }
 0x4e6   :  { %v5156_v57 = vadd.f32 %v16779_v37, %v4708_v33  ;;  %v4709_v4 = vmax.f32 %v15199_v12, %v4624_v28  ;;  %v4626_v0 = vpop.f32.mrb[19].mxu1  ;;  %10406 = vmatprep.subr.bf16.mxu1 %v15565_v36  ;;  %v11973_v28 = vld [vmem:[#allocation4 + $0xe0] ss:$16 sps:$4 sm:$0xff]  }
 0x4e7   :  { %10407 = vmatpush3.bf16.msra.mxu1 %v15508_v56  ;;  %v16788_v37 = vld [vmem:[#allocation59_spill] sm:$0xff] }
 0x4e8   :  { %v5157_v14 = vadd.f32 %v16780_v40, %v4709_v4  ;;  %v5220_v20 = vmax.f32 %v5156_v57, 0.0  ;;  %v11881_v40 = vld [vmem:[#allocation2 + $0x8] ss:$16 sps:$4 sm:$0xff]  }
 0x4ea   :  { %v5221_v60 = vmax.f32 %v5157_v14, 0.0  ;;  %5903 = vmatmul.mubr.bf16.gmra.mrb[240].mxu0 %v11955_v53  ;;  %v11888_v14 = vld [vmem:[#allocation2 + $0x2c] ss:$16 sps:$4 sm:$0xff]  }
 0x4eb   :  { %v4629_v61 = vpop.f32.mrb[20].mxu1  ;;  %5910 = vmatprep.mubr.bf16.mxu0 %v11956_v27  ;;  %v11892_v27 = vld [vmem:[#allocation2 + $0x48] ss:$16 sps:$4 sm:$0xff]  }
 0x4ec   :  { %v4710_v5 = vmax.f32 %v15202_v42, %v4629_v61  ;;  %v4631_v11 = vpop.f32.mrb[21].mxu1  ;;  %v15573_v6 = vpack.c.bf16 %v5221_v60, %v5220_v20  ;;  %v11962_v42 = vld [vmem:[#allocation4 + $0xc4] ss:$16 sps:$4 sm:$0xff]   ;;  %v11886_v20 = vld [vmem:[#allocation2 + $0x28] ss:$16 sps:$4 sm:$0xff]  }
 0x4ed   :  { %v4632_v12 = vpop.f32.mrb[22].mxu1  ;;  %v11894_v60 = vld [vmem:[#allocation2 + $0x4c] ss:$16 sps:$4 sm:$0xff]  }
 0x4ee   :  { %v5158_v17 = vadd.f32 %v16781_v55, %v4710_v5  ;;  %v4711_v2 = vmax.f32 %v15211_v44, %v4632_v12  ;;  %v4634_v21 = vpop.f32.mrb[23].mxu1  ;;  %10408 = vmatprep.subr.bf16.mxu1 %v15573_v6  ;;  %v16783_v44 = vld [vmem:[#allocation53_spill] sm:$0xff]  ;;  %v11931_v61 = vld [vmem:[#allocation4 + $0xc] ss:$16 sps:$4 sm:$0xff]  }
 0x4ef   :  { %10409 = vmatpush3.bf16.msra.mxu1 %v15516_v34  ;;  %v11936_v5 = vld [vmem:[#allocation4 + $0x2c] ss:$16 sps:$4 sm:$0xff]  }
 0x4f0   :  { %v5159_v1 = vadd.f32 %v16782_v46, %v4711_v2  ;;  %v5222_v39 = vmax.f32 %v5158_v17, 0.0  ;;  %v11942_v11 = vld [vmem:[#allocation4 + $0x4c] ss:$16 sps:$4 sm:$0xff]   ;;  %v11946_v17 = vld [vmem:[#allocation4 + $0x68] ss:$16 sps:$4 sm:$0xff]  }
 0x4f1   :  { %v11948_v12 = vld [vmem:[#allocation4 + $0x6c] ss:$16 sps:$4 sm:$0xff]  }
 0x4f2   :  { %v5223_v8 = vmax.f32 %v5159_v1, 0.0  ;;  %5911 = vmatmul.mubr.bf16.gmra.mrb[244].mxu0 %v11961_v35  ;;  %v11954_v21 = vld [vmem:[#allocation4 + $0x8c] ss:$16 sps:$4 sm:$0xff]  }
 0x4f3   :  { %v4637_v25 = vpop.f32.mrb[24].mxu1  ;;  %5918 = vmatprep.mubr.bf16.mxu0 %v11962_v42  ;;  %v11952_v42 = vld [vmem:[#allocation4 + $0x88] ss:$16 sps:$4 sm:$0xff]  }
 0x4f4   :  { %v4712_v59 = vmax.f32 %v15214_v45, %v4637_v25  ;;  %v4639_v26 = vpop.f32.mrb[25].mxu1  ;;  %v5289_v50 = vpack.c.bf16 %v5223_v8, %v5222_v39 }
 0x4f5   :  { %v4640_v13 = vpop.f32.mrb[26].mxu1 }
 0x4f6   :  { %v5160_v29 = vadd.f32 %v16783_v44, %v4712_v59  ;;  %v4713_v23 = vmax.f32 %v15223_v9, %v4640_v13  ;;  %v4642_v41 = vpop.f32.mrb[27].mxu1  ;;  %10410 = vmatprep.subr.bf16.mxu1 %v5289_v50  ;;  %v11960_v59 = vld [vmem:[#allocation4 + $0xac] ss:$16 sps:$4 sm:$0xff]  }
 0x4f7   :  { %10411 = vmatpush3.bf16.msra.mxu1 %v15522_v16 }
 0x4f8   :  { %v5161_v63 = vadd.f32 %v16784_v22, %v4713_v23  ;;  %v5224_v48 = vmax.f32 %v5160_v29, 0.0  ;;  %v11958_v23 = vld [vmem:[#allocation4 + $0xa8] ss:$16 sps:$4 sm:$0xff]  }
 0x4fa   :  { %v5225_v38 = vmax.f32 %v5161_v63, 0.0  ;;  %5919 = vmatmul.mubr.bf16.gmra.mrb[248].mxu0 %v11967_v31  ;;  %v11966_v31 = vld [vmem:[#allocation4 + $0xcc] ss:$16 sps:$4 sm:$0xff]  }
 0x4fb   :  { %v4645_v45 = vpop.f32.mrb[28].mxu1  ;;  %5926 = vmatprep.mubr.bf16.mxu0 %v11968_v30 }
 0x4fc   :  { %v4714_v19 = vmax.f32 %v16785_v10, %v4645_v45  ;;  %v4647_v18 = vpop.f32.mrb[29].mxu1  ;;  %v5290_v7 = vpack.c.bf16 %v5225_v38, %v5224_v48  ;;  %v11964_v45 = vld [vmem:[#allocation4 + $0xc8] ss:$16 sps:$4 sm:$0xff]  }
 0x4fd   :  { %v4648_v24 = vpop.f32.mrb[30].mxu1 }
 0x4fe   :  { %v5162_v9 = vadd.f32 %v16786_v51, %v4714_v19  ;;  %v4715_v33 = vmax.f32 %v16787_v3, %v4648_v24  ;;  %v4650_v47 = vpop.f32.mrb[31].mxu1  ;;  %10412 = vmatprep.subr.bf16.mxu1 %v5290_v7  ;;  %v11972_v19 = vld [vmem:[#allocation4 + $0xec] ss:$16 sps:$4 sm:$0xff]   ;;  %v11970_v3 = vld [vmem:[#allocation4 + $0xe8] ss:$16 sps:$4 sm:$0xff]  }
 0x4ff   :  { %10413 = vmatpush3.bf16.msra.mxu1 %v15528_v52 }
 0x500   :  { %v5163_v57 = vadd.f32 %v16788_v37, %v4715_v33  ;;  %v5226_v4 = vmax.f32 %v5162_v9, 0.0 }
 0x502   :  { %v5227_v0 = vmax.f32 %v5163_v57, 0.0  ;;  %5927 = vmatmul.mubr.bf16.gmra.mrb[252].mxu0 %v11973_v28 }
 0x504   :  { %v5291_v53 = vpack.c.bf16 %v5227_v0, %v5226_v4 }
 0x506   :  { %10414 = vmatprep.subr.bf16.mxu1 %v5291_v53 }
 0x507   :  { %10415 = vmatpush3.bf16.msra.mxu1 %v15534_v49 }
 0x508   :  { %10528 = vmatprep.subr.bf16.mxu1 %v15541_v43  ;;  %v11900_v43 = vld [vmem:[#allocation2 + $0x6c] ss:$16 sps:$4 sm:$0xff]  }
 0x50a   :  { %5582 = vmatmul.mubr.bf16.vlgmr.msra.gmra.mrb[32].mxu1 %v11881_v40 }
 0x50b   :  { %10529 = vmatpush3.bf16.msra.mxu1 %v15478_v58  ;;  %5589 = vmatprep.mubr.bf16.mxu1 %v11888_v14  ;;  %v11898_v58 = vld [vmem:[#allocation2 + $0x68] ss:$16 sps:$4 sm:$0xff]  }
 0x50c   :  { %10530 = vmatprep.subr.bf16.mxu1 %v15549_v32  ;;  %v11910_v32 = vld [vmem:[#allocation2 + $0xa8] ss:$16 sps:$4 sm:$0xff]  }
 0x50f   :  { %10531 = vmatpush3.bf16.msra.mxu1 %v15488_v15  ;;  %v11906_v15 = vld [vmem:[#allocation2 + $0x8c] ss:$16 sps:$4 sm:$0xff]  }
 0x510   :  { %10532 = vmatprep.subr.bf16.mxu1 %v15557_v54  ;;  %v11916_v54 = vld [vmem:[#allocation2 + $0xc8] ss:$16 sps:$4 sm:$0xff]  }
 0x512   :  { %5590 = vmatmul.mubr.bf16.gmra.mrb[36].mxu1 %v11886_v20 }
 0x513   :  { %10533 = vmatpush3.bf16.msra.mxu1 %v15498_v62  ;;  %5597 = vmatprep.mubr.bf16.mxu1 %v11894_v60  ;;  %v11904_v62 = vld [vmem:[#allocation2 + $0x88] ss:$16 sps:$4 sm:$0xff]  }
 0x514   :  { %10534 = vmatprep.subr.bf16.mxu1 %v15565_v36  ;;  %v11924_v36 = vld [vmem:[#allocation2 + $0xec] ss:$16 sps:$4 sm:$0xff]  }
 0x517   :  { %10535 = vmatpush3.bf16.msra.mxu1 %v15508_v56  ;;  %v11912_v56 = vld [vmem:[#allocation2 + $0xac] ss:$16 sps:$4 sm:$0xff]  }
 0x518   :  { %10536 = vmatprep.subr.bf16.mxu1 %v15573_v6  ;;  %v11940_v6 = vld [vmem:[#allocation4 + $0x48] ss:$16 sps:$4 sm:$0xff]  }
 0x51a   :  { %5598 = vmatmul.mubr.bf16.gmra.mrb[40].mxu1 %v11892_v27 }
 0x51b   :  { %10537 = vmatpush3.bf16.msra.mxu1 %v15516_v34  ;;  %5605 = vmatprep.mubr.bf16.mxu1 %v11900_v43  ;;  %v11918_v34 = vld [vmem:[#allocation2 + $0xcc] ss:$16 sps:$4 sm:$0xff]  }
 0x51c   :  { %10538 = vmatprep.subr.bf16.mxu1 %v5289_v50 }
 0x51f   :  { %10539 = vmatpush3.bf16.msra.mxu1 %v15522_v16  ;;  %v11922_v16 = vld [vmem:[#allocation2 + $0xe8] ss:$16 sps:$4 sm:$0xff]  }
 0x520   :  { %10540 = vmatprep.subr.bf16.mxu1 %v5290_v7 }
 0x522   :  { %5606 = vmatmul.mubr.bf16.gmra.mrb[44].mxu1 %v11898_v58 }
 0x523   :  { %10541 = vmatpush3.bf16.msra.mxu1 %v15528_v52  ;;  %5613 = vmatprep.mubr.bf16.mxu1 %v11906_v15  ;;  %v11929_v52 = vld [vmem:[#allocation4 + $0x8] ss:$16 sps:$4 sm:$0xff]  }
 0x524   :  { %10542 = vmatprep.subr.bf16.mxu1 %v5291_v53 }
 0x527   :  { %10543 = vmatpush3.bf16.msra.mxu1 %v15534_v49  ;;  %v11934_v49 = vld [vmem:[#allocation4 + $0x28] ss:$16 sps:$4 sm:$0xff]  }
 0x52a   :  { %5614 = vmatmul.mubr.bf16.gmra.mrb[48].mxu1 %v11904_v62 }
 0x52b   :  { %5621 = vmatprep.mubr.bf16.mxu1 %v11912_v56 }
 0x532   :  { %5622 = vmatmul.mubr.bf16.gmra.mrb[52].mxu1 %v11910_v32 }
 0x533   :  { %5629 = vmatprep.mubr.bf16.mxu1 %v11918_v34 }
 0x53a   :  { %5630 = vmatmul.mubr.bf16.gmra.mrb[56].mxu1 %v11916_v54 }
 0x53b   :  { %5637 = vmatprep.mubr.bf16.mxu1 %v11924_v36 }
 0x542   :  { %5638 = vmatmul.mubr.bf16.gmra.mrb[60].mxu1 %v11922_v16 }
 0x543   :  { %5967 = vmatprep.mubr.bf16.mxu1 %v11931_v61 }
 0x54a   :  { %5968 = vmatmul.mubr.bf16.vlgmr.msra.gmra.mrb[64].mxu1 %v11929_v52 }
 0x54b   :  { %5975 = vmatprep.mubr.bf16.mxu1 %v11936_v5 }
 0x552   :  { %5976 = vmatmul.mubr.bf16.gmra.mrb[68].mxu1 %v11934_v49 }
 0x553   :  { %5983 = vmatprep.mubr.bf16.mxu1 %v11942_v11 }
 0x55a   :  { %5984 = vmatmul.mubr.bf16.gmra.mrb[72].mxu1 %v11940_v6 }
 0x55b   :  { %5991 = vmatprep.mubr.bf16.mxu1 %v11948_v12 }
 0x55d   :  { %v10352_v55 = vpop.f32.mrb[192].mxu0 }
 0x55e   :  { %v10353_v2 = vpop.f32.mrb[193].mxu0 }
 0x55f   :  { %v15604_v35 = vadd.f32 %v10353_v2, %v10352_v55  ;;  %v10355_v46 = vpop.f32.mrb[194].mxu0 }
 0x560   :  { %v10356_v1 = vpop.f32.mrb[195].mxu0 }
 0x561   :  { %v15606_v39 = vadd.f32 %v10356_v1, %v10355_v46 }
 0x562   :  { %5992 = vmatmul.mubr.bf16.gmra.mrb[76].mxu1 %v11946_v17 }
 0x563   :  { %5999 = vmatprep.mubr.bf16.mxu1 %v11954_v21 }
 0x565   :  { %v10358_v8 = vpop.f32.mrb[196].mxu0 }
 0x566   :  { %v10359_v25 = vpop.f32.mrb[197].mxu0 }
 0x567   :  { %v15608_v26 = vadd.f32 %v10359_v25, %v10358_v8  ;;  %v10361_v50 = vpop.f32.mrb[198].mxu0 }
 0x568   :  { %v10362_v13 = vpop.f32.mrb[199].mxu0 }
 0x569   :  { %v15610_v44 = vadd.f32 %v10362_v13, %v10361_v50 }
 0x56a   :  { %6000 = vmatmul.mubr.bf16.gmra.mrb[80].mxu1 %v11952_v42 }
 0x56b   :  { %6007 = vmatprep.mubr.bf16.mxu1 %v11960_v59 }
 0x56d   :  { %v10364_v29 = vpop.f32.mrb[200].mxu0 }
 0x56e   :  { %v10365_v41 = vpop.f32.mrb[201].mxu0 }
 0x56f   :  { %v15612_v22 = vadd.f32 %v10365_v41, %v10364_v29  ;;  %v10367_v63 = vpop.f32.mrb[202].mxu0 }
 0x570   :  { %v10368_v48 = vpop.f32.mrb[203].mxu0 }
 0x571   :  { %v15614_v38 = vadd.f32 %v10368_v48, %v10367_v63 }
 0x572   :  { %6008 = vmatmul.mubr.bf16.gmra.mrb[84].mxu1 %v11958_v23 }
 0x573   :  { %6015 = vmatprep.mubr.bf16.mxu1 %v11966_v31 }
 0x575   :  { %v10370_v30 = vpop.f32.mrb[204].mxu0 }
 0x576   :  { %v10371_v10 = vpop.f32.mrb[205].mxu0 }
 0x577   :  { %v15616_v18 = vadd.f32 %v10371_v10, %v10370_v30  ;;  %v10373_v7 = vpop.f32.mrb[206].mxu0 }
 0x578   :  { %v10374_v24 = vpop.f32.mrb[207].mxu0 }
 0x579   :  { %v15618_v51 = vadd.f32 %v10374_v24, %v10373_v7 }
 0x57a   :  { %6016 = vmatmul.mubr.bf16.gmra.mrb[88].mxu1 %v11964_v45 }
 0x57b   :  { %6023 = vmatprep.mubr.bf16.mxu1 %v11972_v19 }
 0x57d   :  { %v10376_v9 = vpop.f32.mrb[208].mxu0 }
 0x57e   :  { %v10377_v33 = vpop.f32.mrb[209].mxu0 }
 0x57f   :  { %v15620_v47 = vadd.f32 %v10377_v33, %v10376_v9  ;;  %v10379_v28 = vpop.f32.mrb[210].mxu0 }
 0x580   :  { %v10380_v37 = vpop.f32.mrb[211].mxu0 }
 0x581   :  { %v15622_v57 = vadd.f32 %v10380_v37, %v10379_v28 }
 0x582   :  { %6024 = vmatmul.mubr.bf16.gmra.mrb[92].mxu1 %v11970_v3 }
 0x585   :  { %v10382_v4 = vpop.f32.mrb[212].mxu0 }
 0x586   :  { %v10383_v0 = vpop.f32.mrb[213].mxu0 }
 0x587   :  { %v15624_v53 = vadd.f32 %v10383_v0, %v10382_v4  ;;  %v10385_v40 = vpop.f32.mrb[214].mxu0 }
 0x588   :  { %v10386_v14 = vpop.f32.mrb[215].mxu0 }
 0x589   :  { %v15626_v20 = vadd.f32 %v10386_v14, %v10385_v40 }
 0x58d   :  { %v10388_v60 = vpop.f32.mrb[216].mxu0 }
 0x58e   :  { %v10389_v27 = vpop.f32.mrb[217].mxu0 }
 0x58f   :  { %v15628_v43 = vadd.f32 %v10389_v27, %v10388_v60  ;;  %v10391_v58 = vpop.f32.mrb[218].mxu0 }
 0x590   :  { %v10392_v15 = vpop.f32.mrb[219].mxu0 }
 0x591   :  { %v15630_v62 = vadd.f32 %v10392_v15, %v10391_v58 }
 0x595   :  { %v10394_v56 = vpop.f32.mrb[220].mxu0 }
 0x596   :  { %v10395_v32 = vpop.f32.mrb[221].mxu0 }
 0x597   :  { %v15632_v34 = vadd.f32 %v10395_v32, %v10394_v56  ;;  %v10397_v54 = vpop.f32.mrb[222].mxu0 }
 0x598   :  { %v10398_v36 = vpop.f32.mrb[223].mxu0 }
 0x599   :  { %v15634_v16 = vadd.f32 %v10398_v36, %v10397_v54 }
 0x59d   :  { %v10480_v61 = vpop.f32.mrb[224].mxu0 }
 0x59e   :  { %v10481_v52 = vpop.f32.mrb[225].mxu0 }
 0x59f   :  { %v15636_v5 = vadd.f32 %v10481_v52, %v10480_v61  ;;  %v10483_v49 = vpop.f32.mrb[226].mxu0 }
 0x5a0   :  { %v10484_v11 = vpop.f32.mrb[227].mxu0 }
 0x5a1   :  { %v15638_v6 = vadd.f32 %v10484_v11, %v10483_v49 }
 0x5a5   :  { %v10486_v12 = vpop.f32.mrb[228].mxu0 }
 0x5a6   :  { %v10487_v55 = vpop.f32.mrb[229].mxu0 }
 0x5a7   :  { %v15640_v17 = vadd.f32 %v10487_v55, %v10486_v12  ;;  %v10489_v2 = vpop.f32.mrb[230].mxu0 }
 0x5a8   :  { %v10490_v21 = vpop.f32.mrb[231].mxu0 }
 0x5a9   :  { %v15642_v46 = vadd.f32 %v10490_v21, %v10489_v2 }
 0x5ad   :  { %v10492_v1 = vpop.f32.mrb[232].mxu0 }
 0x5ae   :  { %v10493_v8 = vpop.f32.mrb[233].mxu0 }
 0x5af   :  { %v15644_v42 = vadd.f32 %v10493_v8, %v10492_v1  ;;  %v10495_v25 = vpop.f32.mrb[234].mxu0 }
 0x5b0   :  { %v10496_v59 = vpop.f32.mrb[235].mxu0 }
 0x5b1   :  { %v15646_v50 = vadd.f32 %v10496_v59, %v10495_v25  ;;  %v11974_v25 = vld [vmem:[%s16517_s10] sm:$0xff]  }
 0x5b2   :  { %10888 = vmatprep.mubr.bf16.mxu0 %v11974_v25 }
 0x5b5   :  { %v10498_v13 = vpop.f32.mrb[236].mxu0 }
 0x5b6   :  { %v10499_v29 = vpop.f32.mrb[237].mxu0 }
 0x5b7   :  { %v15648_v23 = vadd.f32 %v10499_v29, %v10498_v13  ;;  %v10501_v41 = vpop.f32.mrb[238].mxu0 }
 0x5b8   :  { %v10502_v31 = vpop.f32.mrb[239].mxu0 }
 0x5b9   :  { %v15650_v63 = vadd.f32 %v10502_v31, %v10501_v41 }
 0x5bd   :  { %v10504_v48 = vpop.f32.mrb[240].mxu0 }
 0x5be   :  { %v10505_v30 = vpop.f32.mrb[241].mxu0 }
 0x5bf   :  { %v15652_v45 = vadd.f32 %v10505_v30, %v10504_v48  ;;  %v10507_v10 = vpop.f32.mrb[242].mxu0 }
 0x5c0   :  { %v10508_v19 = vpop.f32.mrb[243].mxu0 }
 0x5c1   :  { %v15654_v7 = vadd.f32 %v10508_v19, %v10507_v10 }
 0x5c5   :  { %v10510_v24 = vpop.f32.mrb[244].mxu0 }
 0x5c6   :  { %v10511_v9 = vpop.f32.mrb[245].mxu0 }
 0x5c7   :  { %v15656_v3 = vadd.f32 %v10511_v9, %v10510_v24  ;;  %v10513_v33 = vpop.f32.mrb[246].mxu0 }
 0x5c8   :  { %v10514_v28 = vpop.f32.mrb[247].mxu0 }
 0x5c9   :  { %v15658_v37 = vadd.f32 %v10514_v28, %v10513_v33 }
 0x5cd   :  { %v10516_v4 = vpop.f32.mrb[248].mxu0 }
 0x5ce   :  { %v10517_v0 = vpop.f32.mrb[249].mxu0 }
 0x5cf   :  { %v15660_v40 = vadd.f32 %v10517_v0, %v10516_v4  ;;  %v10519_v14 = vpop.f32.mrb[250].mxu0 }
 0x5d0   :  { %v10520_v60 = vpop.f32.mrb[251].mxu0 }
 0x5d1   :  { %v15662_v27 = vadd.f32 %v10520_v60, %v10519_v14 }
 0x5d5   :  { %v10522_v58 = vpop.f32.mrb[252].mxu0 }
 0x5d6   :  { %v10523_v15 = vpop.f32.mrb[253].mxu0 }
 0x5d7   :  { %v15664_v56 = vadd.f32 %v10523_v15, %v10522_v58  ;;  %v10525_v32 = vpop.f32.mrb[254].mxu0 }
 0x5d8   :  { %v10526_v54 = vpop.f32.mrb[255].mxu0 }
 0x5d9   :  { %v15666_v36 = vadd.f32 %v10526_v54, %v10525_v32 }
 0x5dd   :  { %v10416_v61 = vpop.f32.mrb[32].mxu1 }
 0x5de   :  { %v10417_v52 = vpop.f32.mrb[33].mxu1 }
 0x5df   :  { %v10418_v49 = vadd.f32 %v10417_v52, %v10416_v61  ;;  %v10419_v11 = vpop.f32.mrb[34].mxu1 }
 0x5e0   :  { %v10420_v12 = vpop.f32.mrb[35].mxu1 }
 0x5e1   :  { %v15669_v55 = vadd.f32 %v10418_v49, %v15604_v35  ;;  %v10421_v2 = vadd.f32 %v10420_v12, %v10419_v11 }
 0x5e3   :  { %v15672_v21 = vadd.f32 %v10421_v2, %v15606_v39 }
 0x5e5   :  { %v10422_v1 = vpop.f32.mrb[36].mxu1 }
 0x5e6   :  { %v10423_v8 = vpop.f32.mrb[37].mxu1 }
 0x5e7   :  { %v10424_v59 = vadd.f32 %v10423_v8, %v10422_v1  ;;  %v10425_v13 = vpop.f32.mrb[38].mxu1 }
 0x5e8   :  { %v10426_v29 = vpop.f32.mrb[39].mxu1 }
 0x5e9   :  { %v15678_v41 = vadd.f32 %v10424_v59, %v15608_v26  ;;  %v10427_v31 = vadd.f32 %v10426_v29, %v10425_v13 }
 0x5eb   :  { %v15681_v35 = vadd.f32 %v10427_v31, %v15610_v44 }
 0x5ed   :  { %v10428_v48 = vpop.f32.mrb[40].mxu1 }
 0x5ee   :  { %v10429_v39 = vpop.f32.mrb[41].mxu1 }
 0x5ef   :  { %v10430_v30 = vadd.f32 %v10429_v39, %v10428_v48  ;;  %v10431_v10 = vpop.f32.mrb[42].mxu1 }
 0x5f0   :  { %v10432_v19 = vpop.f32.mrb[43].mxu1 }
 0x5f1   :  { %v15684_v24 = vadd.f32 %v10430_v30, %v15612_v22  ;;  %v10433_v9 = vadd.f32 %v10432_v19, %v10431_v10 }
 0x5f3   :  { %v15687_v33 = vadd.f32 %v10433_v9, %v15614_v38 }
 0x5f5   :  { %v10434_v28 = vpop.f32.mrb[44].mxu1 }
 0x5f6   :  { %v10435_v4 = vpop.f32.mrb[45].mxu1 }
 0x5f7   :  { %v10436_v26 = vadd.f32 %v10435_v4, %v10434_v28  ;;  %v10437_v0 = vpop.f32.mrb[46].mxu1 }
 0x5f8   :  { %v10438_v14 = vpop.f32.mrb[47].mxu1 }
 0x5f9   :  { %v15690_v44 = vadd.f32 %v10436_v26, %v15616_v18  ;;  %v10439_v60 = vadd.f32 %v10438_v14, %v10437_v0 }
 0x5fb   :  { %v15693_v58 = vadd.f32 %v10439_v60, %v15618_v51 }
 0x5fd   :  { %v10440_v15 = vpop.f32.mrb[48].mxu1 }
 0x5fe   :  { %v10441_v32 = vpop.f32.mrb[49].mxu1 }
 0x5ff   :  { %v10442_v22 = vadd.f32 %v10441_v32, %v10440_v15  ;;  %v10443_v54 = vpop.f32.mrb[50].mxu1 }
 0x600   :  { %v10444_v61 = vpop.f32.mrb[51].mxu1 }
 0x601   :  { %v15696_v38 = vadd.f32 %v10442_v22, %v15620_v47  ;;  %v10445_v52 = vadd.f32 %v10444_v61, %v10443_v54  ;;  %v16789_v61 = vld [vmem:[#allocation66_spill] sm:$0xff] }
 0x603   :  { %v15699_v49 = vadd.f32 %v10445_v52, %v15622_v57 }
 0x605   :  { %v10446_v11 = vpop.f32.mrb[52].mxu1 }
 0x606   :  { %v10447_v12 = vpop.f32.mrb[53].mxu1 }
 0x607   :  { %v10448_v18 = vadd.f32 %v10447_v12, %v10446_v11  ;;  %v10449_v2 = vpop.f32.mrb[54].mxu1 }
 0x608   :  { %v10450_v1 = vpop.f32.mrb[55].mxu1 }
 0x609   :  { %v15702_v51 = vadd.f32 %v10448_v18, %v15624_v53  ;;  %v10451_v8 = vadd.f32 %v10450_v1, %v10449_v2  ;;  %v16790_v18 = vld [vmem:[#allocation65_spill] sm:$0xff] }
 0x60b   :  { %v15705_v25 = vadd.f32 %v10451_v8, %v15626_v20 }
 0x60d   :  { %v10452_v59 = vpop.f32.mrb[56].mxu1 }
 0x60e   :  { %v10453_v13 = vpop.f32.mrb[57].mxu1 }
 0x60f   :  { %v10454_v47 = vadd.f32 %v10453_v13, %v10452_v59  ;;  %v10455_v29 = vpop.f32.mrb[58].mxu1 }
 0x610   :  { %v10456_v31 = vpop.f32.mrb[59].mxu1 }
 0x611   :  { %v15708_v57 = vadd.f32 %v10454_v47, %v15628_v43  ;;  %v10457_v48 = vadd.f32 %v10456_v31, %v10455_v29  ;;  %v16791_v31 = vld [vmem:[#allocation68_spill] sm:$0xff] }
 0x613   :  { %v15711_v39 = vadd.f32 %v10457_v48, %v15630_v62 }
 0x615   :  { %v10458_v30 = vpop.f32.mrb[60].mxu1 }
 0x616   :  { %v10459_v10 = vpop.f32.mrb[61].mxu1 }
 0x617   :  { %v10460_v53 = vadd.f32 %v10459_v10, %v10458_v30  ;;  %v10461_v19 = vpop.f32.mrb[62].mxu1 }
 0x618   :  { %v10462_v9 = vpop.f32.mrb[63].mxu1 }
 0x619   :  { %v15714_v20 = vadd.f32 %v10460_v53, %v15632_v34  ;;  %v10463_v28 = vadd.f32 %v10462_v9, %v10461_v19  ;;  %v16792_v19 = vld [vmem:[#allocation67_spill] sm:$0xff] }
 0x61b   :  { %v15717_v4 = vadd.f32 %v10463_v28, %v15634_v16 }
 0x61d   :  { %v10544_v26 = vpop.f32.mrb[64].mxu1 }
 0x61e   :  { %v10545_v0 = vpop.f32.mrb[65].mxu1 }
 0x61f   :  { %v10546_v43 = vadd.f32 %v10545_v0, %v10544_v26  ;;  %v10547_v14 = vpop.f32.mrb[66].mxu1 }
 0x620   :  { %v10548_v60 = vpop.f32.mrb[67].mxu1 }
 0x621   :  { %v5970_v62 = vadd.f32 %v10546_v43, %v15636_v5  ;;  %v10549_v15 = vadd.f32 %v10548_v60, %v10547_v14 }
 0x623   :  { %v6032_v32 = vmax.f32 %v15669_v55, %v5970_v62  ;;  %v5973_v22 = vadd.f32 %v10549_v15, %v15638_v6  ;;  %v16793_v62 = vld [vmem:[#allocation70_spill] sm:$0xff] }
 0x625   :  { %v6033_v54 = vmax.f32 %v15672_v21, %v5973_v22  ;;  %v10550_v34 = vpop.f32.mrb[68].mxu1  ;;  %v6144_v52 = vadd.f32 %v16789_v61, %v6032_v32 }
 0x626   :  { %v10551_v11 = vpop.f32.mrb[69].mxu1 }
 0x627   :  { %v10552_v16 = vadd.f32 %v10551_v11, %v10550_v34  ;;  %v10553_v12 = vpop.f32.mrb[70].mxu1  ;;  %v6145_v2 = vadd.f32 %v16790_v18, %v6033_v54  ;;  %v6160_v5 = vmax.f32 %v6144_v52, 0.0  ;;  %v16794_v34 = vld [vmem:[#allocation69_spill] sm:$0xff] }
 0x628   :  { %v10554_v1 = vpop.f32.mrb[71].mxu1 }
 0x629   :  { %v5978_v8 = vadd.f32 %v10552_v16, %v15640_v17  ;;  %v10555_v59 = vadd.f32 %v10554_v1, %v10553_v12  ;;  %v6161_v13 = vmax.f32 %v6145_v2, 0.0  ;;  %v16795_v1 = vld [vmem:[#allocation72_spill] sm:$0xff] }
 0x62b   :  { %v6034_v55 = vmax.f32 %v15678_v41, %v5978_v8  ;;  %v5981_v6 = vadd.f32 %v10555_v59, %v15642_v46  ;;  %v6192_v47 = vpack.c.bf16 %v6161_v13, %v6160_v5 }
 0x62d   :  { %v6035_v21 = vmax.f32 %v15681_v35, %v5981_v6  ;;  %v10556_v29 = vpop.f32.mrb[72].mxu1  ;;  %10872 = vmatprep.subr.bf16.mxu0 %v6192_v47  ;;  %v6146_v48 = vadd.f32 %v16791_v31, %v6034_v55  ;;  %v16796_v55 = vld [vmem:[#allocation71_spill] sm:$0xff] }
 0x62e   :  { %v10557_v30 = vpop.f32.mrb[73].mxu1  ;;  %10873 = vmatpush3.bf16.msra.mxu0 %v6192_v47 }
 0x62f   :  { %v10558_v10 = vadd.f32 %v10557_v30, %v10556_v29  ;;  %v10559_v53 = vpop.f32.mrb[74].mxu1  ;;  %v6147_v17 = vadd.f32 %v16792_v19, %v6035_v21  ;;  %v6162_v41 = vmax.f32 %v6146_v48, 0.0 }
 0x630   :  { %v10560_v9 = vpop.f32.mrb[75].mxu1 }
 0x631   :  { %v5986_v28 = vadd.f32 %v10558_v10, %v15644_v42  ;;  %v10561_v26 = vadd.f32 %v10560_v9, %v10559_v53  ;;  %v6163_v0 = vmax.f32 %v6147_v17, 0.0  ;;  %v16797_v10 = vld [vmem:[#allocation74_spill] sm:$0xff] }
 0x633   :  { %v6036_v46 = vmax.f32 %v15684_v24, %v5986_v28  ;;  %v5989_v35 = vadd.f32 %v10561_v26, %v15646_v50  ;;  %v6193_v43 = vpack.c.bf16 %v6163_v0, %v6162_v41  ;;  %v16798_v28 = vld [vmem:[#allocation73_spill] sm:$0xff] }
 0x635   :  { %v6037_v14 = vmax.f32 %v15687_v33, %v5989_v35  ;;  %v10562_v60 = vpop.f32.mrb[76].mxu1  ;;  %10874 = vmatprep.subr.bf16.mxu0 %v6193_v43  ;;  %v6148_v15 = vadd.f32 %v16793_v62, %v6036_v46 }
 0x636   :  { %v10563_v32 = vpop.f32.mrb[77].mxu1  ;;  %10875 = vmatpush3.bf16.msra.mxu0 %v6193_v43 }
 0x637   :  { %v10564_v22 = vadd.f32 %v10563_v32, %v10562_v60  ;;  %v10565_v54 = vpop.f32.mrb[78].mxu1  ;;  %v6149_v42 = vadd.f32 %v16794_v34, %v6037_v14  ;;  %v6164_v24 = vmax.f32 %v6148_v15, 0.0  ;;  %v16799_v60 = vld [vmem:[#allocation76_spill] sm:$0xff] }
 0x638   :  { %v10566_v61 = vpop.f32.mrb[79].mxu1 }
 0x639   :  { %v5994_v52 = vadd.f32 %v10564_v22, %v15648_v23  ;;  %v10567_v11 = vadd.f32 %v10566_v61, %v10565_v54  ;;  %v6165_v16 = vmax.f32 %v6149_v42, 0.0  ;;  %v16800_v54 = vld [vmem:[#allocation75_spill] sm:$0xff] }
 0x63b   :  { %v6038_v50 = vmax.f32 %v15690_v44, %v5994_v52  ;;  %v5997_v33 = vadd.f32 %v10567_v11, %v15650_v63  ;;  %v6194_v12 = vpack.c.bf16 %v6165_v16, %v6164_v24 }
 0x63d   :  { %v6039_v18 = vmax.f32 %v15693_v58, %v5997_v33  ;;  %v10568_v2 = vpop.f32.mrb[80].mxu1  ;;  %10876 = vmatprep.subr.bf16.mxu0 %v6194_v12  ;;  %v6150_v8 = vadd.f32 %v16795_v1, %v6038_v50  ;;  %v16801_v50 = vld [vmem:[#allocation78_spill] sm:$0xff]  ;;  %v16802_v1 = vld [vmem:[#allocation77_spill] sm:$0xff] }
 0x63e   :  { %v10569_v59 = vpop.f32.mrb[81].mxu1  ;;  %10877 = vmatpush3.bf16.msra.mxu0 %v6194_v12 }
 0x63f   :  { %v10570_v5 = vadd.f32 %v10569_v59, %v10568_v2  ;;  %v10571_v13 = vpop.f32.mrb[82].mxu1  ;;  %v6151_v23 = vadd.f32 %v16796_v55, %v6039_v18  ;;  %v6166_v44 = vmax.f32 %v6150_v8, 0.0 }
 0x640   :  { %v10572_v6 = vpop.f32.mrb[83].mxu1 }
 0x641   :  { %v6002_v47 = vadd.f32 %v10570_v5, %v15652_v45  ;;  %v10573_v21 = vadd.f32 %v10572_v6, %v10571_v13  ;;  %v6167_v29 = vmax.f32 %v6151_v23, 0.0  ;;  %v16803_v6 = vld [vmem:[#allocation80_spill] sm:$0xff] }
 0x643   :  { %v6040_v63 = vmax.f32 %v15696_v38, %v6002_v47  ;;  %v6005_v58 = vadd.f32 %v10573_v21, %v15654_v7  ;;  %v6195_v31 = vpack.c.bf16 %v6167_v29, %v6166_v44  ;;  %v16804_v21 = vld [vmem:[#allocation79_spill] sm:$0xff] }
 0x645   :  { %v6041_v48 = vmax.f32 %v15699_v49, %v6005_v58  ;;  %v10574_v30 = vpop.f32.mrb[84].mxu1  ;;  %10878 = vmatprep.subr.bf16.mxu0 %v6195_v31  ;;  %v6152_v53 = vadd.f32 %v16797_v10, %v6040_v63  ;;  %v11981_v10 = vld [vmem:[%s16517_s10 + $0x38] sm:$0xff]  }
 0x646   :  { %v10575_v19 = vpop.f32.mrb[85].mxu1  ;;  %10879 = vmatpush3.bf16.msra.mxu0 %v6195_v31  ;;  %v11978_v31 = vld [vmem:[%s16517_s10 + $0x20] sm:$0xff]  }
 0x647   :  { %v10576_v17 = vadd.f32 %v10575_v19, %v10574_v30  ;;  %v10577_v9 = vpop.f32.mrb[86].mxu1  ;;  %v6153_v45 = vadd.f32 %v16798_v28, %v6041_v48  ;;  %v6168_v38 = vmax.f32 %v6152_v53, 0.0  ;;  %v11979_v48 = vld [vmem:[%s16517_s10 + $0x28] sm:$0xff]   ;;  %v11980_v30 = vld [vmem:[%s16517_s10 + $0x30] sm:$0xff]   ;;  %v11982_v53 = vld [vmem:[#allocation6] sm:$0xff]  }
 0x648   :  { %v10578_v26 = vpop.f32.mrb[87].mxu1  ;;  %10920 = vmatprep.mubr.bf16.mxu1 %v11982_v53  ;;  %v16806_v28 = vld [vmem:[#allocation84_spill] sm:$0xff] }
 0x649   :  { %v6010_v41 = vadd.f32 %v10576_v17, %v15656_v3  ;;  %v10579_v0 = vadd.f32 %v10578_v26, %v10577_v9  ;;  %v6169_v46 = vmax.f32 %v6153_v45, 0.0  ;;  %v16807_v26 = vld [vmem:[#allocation83_spill] sm:$0xff]  ;;  %v11989_v53 = vld [vmem:[#allocation6 + $0x38] sm:$0xff]  }
 0x64b   :  { %v6042_v7 = vmax.f32 %v15702_v51, %v6010_v41  ;;  %v6013_v49 = vadd.f32 %v10579_v0, %v15658_v37  ;;  %v6196_v35 = vpack.c.bf16 %v6169_v46, %v6168_v38  ;;  %v16808_v38 = vld [vmem:[#allocation82_spill] sm:$0xff] }
 0x64d   :  { %v6043_v43 = vmax.f32 %v15705_v25, %v6013_v49  ;;  %v10580_v14 = vpop.f32.mrb[88].mxu1  ;;  %10880 = vmatprep.subr.bf16.mxu0 %v6196_v35  ;;  %v6154_v62 = vadd.f32 %v16799_v60, %v6042_v7  ;;  %v16809_v7 = vld [vmem:[#allocation81_spill] sm:$0xff] }
 0x64e   :  { %v10581_v15 = vpop.f32.mrb[89].mxu1  ;;  %10881 = vmatpush3.bf16.msra.mxu0 %v6196_v35 }
 0x64f   :  { %v10582_v32 = vadd.f32 %v10581_v15, %v10580_v14  ;;  %v10583_v22 = vpop.f32.mrb[90].mxu1  ;;  %v6155_v3 = vadd.f32 %v16800_v54, %v6043_v43  ;;  %v6170_v51 = vmax.f32 %v6154_v62, 0.0  ;;  %v16810_v15 = vld [vmem:[#allocation88_spill] sm:$0xff] }
 0x650   :  { %v10584_v34 = vpop.f32.mrb[91].mxu1 }
 0x651   :  { %v6018_v42 = vadd.f32 %v10582_v32, %v15660_v40  ;;  %v10585_v61 = vadd.f32 %v10584_v34, %v10583_v22  ;;  %v6171_v52 = vmax.f32 %v6155_v3, 0.0  ;;  %v16811_v22 = vld [vmem:[#allocation87_spill] sm:$0xff]  ;;  %v16812_v34 = vld [vmem:[#allocation86_spill] sm:$0xff] }
 0x653   :  { %v6044_v37 = vmax.f32 %v15708_v57, %v6018_v42  ;;  %v6021_v25 = vadd.f32 %v10585_v61, %v15662_v27  ;;  %v6197_v11 = vpack.c.bf16 %v6171_v52, %v6170_v51  ;;  %v16813_v61 = vld [vmem:[#allocation85_spill] sm:$0xff] }
 0x655   :  { %v6045_v24 = vmax.f32 %v15711_v39, %v6021_v25  ;;  %v10586_v16 = vpop.f32.mrb[92].mxu1  ;;  %10882 = vmatprep.subr.bf16.mxu0 %v6197_v11  ;;  %v6156_v33 = vadd.f32 %v16801_v50, %v6044_v37 }
 0x656   :  { %v10587_v12 = vpop.f32.mrb[93].mxu1  ;;  %10883 = vmatpush3.bf16.msra.mxu0 %v6197_v11 }
 0x657   :  { %v10588_v18 = vadd.f32 %v10587_v12, %v10586_v16  ;;  %v10589_v2 = vpop.f32.mrb[94].mxu1  ;;  %v6157_v40 = vadd.f32 %v16802_v1, %v6045_v24  ;;  %v6172_v57 = vmax.f32 %v6156_v33, 0.0  ;;  %v16814_v16 = vld [vmem:[#allocation92_spill] sm:$0xff]  ;;  %v16815_v33 = vld [vmem:[#allocation91_spill] sm:$0xff] }
 0x658   :  { %v10590_v8 = vpop.f32.mrb[95].mxu1 }
 0x659   :  { %v6026_v59 = vadd.f32 %v10588_v18, %v15664_v56  ;;  %v10591_v5 = vadd.f32 %v10590_v8, %v10589_v2  ;;  %v6173_v13 = vmax.f32 %v6157_v40, 0.0  ;;  %v11975_v56 = vld [vmem:[%s16517_s10 + $0x8] sm:$0xff]   ;;  %v16817_v40 = vld [vmem:[#allocation89_spill] sm:$0xff] }
 0x65a   :  { %v16816_v2 = vld [vmem:[#allocation90_spill] sm:$0xff] }
 0x65b   :  { %v6046_v27 = vmax.f32 %v15714_v20, %v6026_v59  ;;  %v6029_v39 = vadd.f32 %v10591_v5, %v15666_v36  ;;  %v6198_v55 = vpack.c.bf16 %v6173_v13, %v6172_v57  ;;  %v11976_v36 = vld [vmem:[%s16517_s10 + $0x10] sm:$0xff]   ;;  %v16805_v20 = vmov 0  }
 0x65d   :  { %v6047_v23 = vmax.f32 %v15717_v4, %v6029_v39  ;;  %10884 = vmatprep.subr.bf16.mxu0 %v6198_v55  ;;  %v6158_v47 = vadd.f32 %v16803_v6, %v6046_v27  ;;  %v11977_v4 = vld [vmem:[%s16517_s10 + $0x18] sm:$0xff]  }
 0x65e   :  { %10885 = vmatpush3.bf16.msra.mxu0 %v6198_v55  ;;  %v16818_v39 = vld [vmem:[#allocation96_spill] sm:$0xff] }
 0x65f   :  { %v6159_v44 = vadd.f32 %v16804_v21, %v6047_v23  ;;  %v6174_v29 = vmax.f32 %v6158_v47, 0.0  ;;  %v16819_v23 = vld [vmem:[#allocation95_spill] sm:$0xff]  ;;  %v16820_v21 = vld [vmem:[#allocation94_spill] sm:$0xff] }
 0x661   :  { %v6175_v63 = vmax.f32 %v6159_v44, 0.0 }
 0x663   :  { %v6199_v58 = vpack.c.bf16 %v6175_v63, %v6174_v29  ;;  %v16821_v29 = vld [vmem:[#allocation93_spill] sm:$0xff] }
 0x665   :  { %10886 = vmatprep.subr.bf16.mxu0 %v6199_v58 }
 0x666   :  { %10887 = vmatpush3.bf16.msra.mxu0 %v6199_v58 }
 0x667   :  { %8626 = vmatprep.subr.bf16.mxu0 %v16805_v20 }
 0x669   :  { %10889 = vmatmul.mubr.bf16.vlgmr.msra.gmra.mrb[0].mxu0 %v11975_v56 }
 0x66a   :  { %10892 = vmatprep.mubr.bf16.mxu0 %v11976_v36  ;;  %v11983_v36 = vld [vmem:[#allocation6 + $0x8] sm:$0xff]  }
 0x671   :  { %10893 = vmatmul.mubr.bf16.gmra.mrb[4].mxu0 %v11977_v4  ;;  %v11984_v4 = vld [vmem:[#allocation6 + $0x10] sm:$0xff]  }
 0x672   :  { %10896 = vmatprep.mubr.bf16.mxu0 %v11978_v31  ;;  %v11985_v31 = vld [vmem:[#allocation6 + $0x18] sm:$0xff]  }
 0x679   :  { %10897 = vmatmul.mubr.bf16.gmra.mrb[8].mxu0 %v11979_v48  ;;  %v11986_v48 = vld [vmem:[#allocation6 + $0x20] sm:$0xff]  }
 0x67a   :  { %10900 = vmatprep.mubr.bf16.mxu0 %v11980_v30  ;;  %v11987_v30 = vld [vmem:[#allocation6 + $0x28] sm:$0xff]  }
 0x681   :  { %10901 = vmatmul.mubr.bf16.gmra.mrb[12].mxu0 %v11981_v10  ;;  %v11988_v10 = vld [vmem:[#allocation6 + $0x30] sm:$0xff]  }
 0x73c   :  { %v10890_v19 = vpop.f32.mrb[0].mxu0 }
 0x73d   :  { %v6378_v17 = vpop.f32.mrb[1].mxu0  ;;  %v6387_v45 = vadd.f32 %v10890_v19, %v16806_v28  ;;  %v11990_v19 = vld [vmem:[#allocation6 + $0x40] sm:$0xff]   ;;  %v11993_v28 = vld [vmem:[#allocation6 + $0x58] sm:$0xff]  }
 0x73e   :  { %v10891_v9 = vpop.f32.mrb[2].mxu0  ;;  %v6379_v46 = vadd.f32 %v6378_v17, %v16808_v38  ;;  %v11991_v17 = vld [vmem:[#allocation6 + $0x48] sm:$0xff]   ;;  %v11998_v38 = vld [vmem:[#allocation6 + $0x80] sm:$0xff]  }
 0x73f   :  { %v6390_v41 = vadd.f32 %v10891_v9, %v16807_v26  ;;  %v6381_v0 = vpop.f32.mrb[3].mxu0  ;;  %v11992_v9 = vld [vmem:[#allocation6 + $0x50] sm:$0xff]   ;;  %v11995_v26 = vld [vmem:[#allocation6 + $0x68] sm:$0xff]  }
 0x740   :  { %v6382_v49 = vadd.f32 %v6381_v0, %v16809_v7  ;;  %v11997_v0 = vld [vmem:[#allocation6 + $0x78] sm:$0xff]   ;;  %v12000_v7 = vld [vmem:[#allocation6 + $0x90] sm:$0xff]  }
 0x741   :  { %v6506_v35 = vpack.c.bf16 %v6390_v41, %v6387_v45  ;;  %v11994_v45 = vld [vmem:[#allocation6 + $0x60] sm:$0xff]   ;;  %v11996_v41 = vld [vmem:[#allocation6 + $0x70] sm:$0xff]  }
 0x742   :  { %v6505_v43 = vpack.c.bf16 %v6382_v49, %v6379_v46  ;;  %v11999_v46 = vld [vmem:[#allocation6 + $0x88] sm:$0xff]   ;;  %v12001_v49 = vld [vmem:[#allocation6 + $0x98] sm:$0xff]  }
 0x744   :  { %v10894_v14 = vpop.f32.mrb[4].mxu0  ;;  %10904 = vmatprep.subr.bf16.mxu1 %v6505_v43 }
 0x745   :  { %v6394_v60 = vpop.f32.mrb[5].mxu0  ;;  %10905 = vmatpush3.bf16.msra.mxu1 %v6505_v43  ;;  %v6403_v32 = vadd.f32 %v10894_v14, %v16810_v15  ;;  %v12003_v43 = vld [vmem:[#allocation6 + $0xa8] sm:$0xff]   ;;  %v12004_v14 = vld [vmem:[#allocation6 + $0xb0] sm:$0xff]  }
 0x746   :  { %v10895_v62 = vpop.f32.mrb[6].mxu0  ;;  %10906 = vmatprep.subr.bf16.mxu1 %v6506_v35  ;;  %v6395_v42 = vadd.f32 %v6394_v60, %v16812_v34  ;;  %v12005_v60 = vld [vmem:[#allocation6 + $0xb8] sm:$0xff]   ;;  %v12007_v15 = vld [vmem:[#allocation6 + $0xc8] sm:$0xff]   ;;  %v12012_v34 = vld [vmem:[#allocation6 + $0xf0] sm:$0xff]  }
 0x747   :  { %v6406_v54 = vadd.f32 %v10895_v62, %v16811_v22  ;;  %v6397_v3 = vpop.f32.mrb[7].mxu0  ;;  %v12006_v62 = vld [vmem:[#allocation6 + $0xc0] sm:$0xff]   ;;  %v12009_v22 = vld [vmem:[#allocation6 + $0xd8] sm:$0xff]  }
 0x748   :  { %v6398_v51 = vadd.f32 %v6397_v3, %v16813_v61  ;;  %v12011_v3 = vld [vmem:[#allocation6 + $0xe8] sm:$0xff]   ;;  %v12016_v61 = vld [vmem:[%s16521_s14 + $0x4] ss:$16 sps:$4 sm:$0xff]  }
 0x749   :  { %v6508_v52 = vpack.c.bf16 %v6406_v54, %v6403_v32  ;;  %10907 = vmatpush3.bf16.msra.mxu1 %v6506_v35  ;;  %v12002_v35 = vld [vmem:[#allocation6 + $0xa0] sm:$0xff]   ;;  %v12008_v32 = vld [vmem:[#allocation6 + $0xd0] sm:$0xff]   ;;  %8658 = vmatprep.mubr.bf16.mxu0 %v12016_v61 }
 0x74a   :  { %v6507_v37 = vpack.c.bf16 %v6398_v51, %v6395_v42  ;;  %v12010_v54 = vld [vmem:[#allocation6 + $0xe0] sm:$0xff]   ;;  %v12013_v42 = vld [vmem:[#allocation6 + $0xf8] sm:$0xff]  }
 0x74c   :  { %v10898_v25 = vpop.f32.mrb[8].mxu0  ;;  %10908 = vmatprep.subr.bf16.mxu1 %v6507_v37 }
 0x74d   :  { %v6410_v11 = vpop.f32.mrb[9].mxu0  ;;  %10909 = vmatpush3.bf16.msra.mxu1 %v6507_v37  ;;  %v6419_v50 = vadd.f32 %v10898_v25, %v16814_v16 }
 0x74e   :  { %v10899_v24 = vpop.f32.mrb[10].mxu0  ;;  %10910 = vmatprep.subr.bf16.mxu1 %v6508_v52  ;;  %v6411_v1 = vadd.f32 %v6410_v11, %v16816_v2  ;;  %v16823_v11 = vld [vmem:[#allocation98_spill] sm:$0xff] }
 0x74f   :  { %v6422_v12 = vadd.f32 %v10899_v24, %v16815_v33  ;;  %v6413_v18 = vpop.f32.mrb[11].mxu0 }
 0x750   :  { %v6414_v8 = vadd.f32 %v6413_v18, %v16817_v40  ;;  %v16825_v18 = vld [vmem:[#allocation97_spill] sm:$0xff] }
 0x751   :  { %v6510_v59 = vpack.c.bf16 %v6422_v12, %v6419_v50  ;;  %10911 = vmatpush3.bf16.msra.mxu1 %v6508_v52  ;;  %v16822_v52 = vld [vmem:[#allocation100_spill] sm:$0xff]  ;;  %v16824_v50 = vld [vmem:[#allocation99_spill] sm:$0xff] }
 0x752   :  { %v6509_v5 = vpack.c.bf16 %v6414_v8, %v6411_v1 }
 0x754   :  { %v10902_v57 = vpop.f32.mrb[12].mxu0  ;;  %10912 = vmatprep.subr.bf16.mxu1 %v6509_v5 }
 0x755   :  { %v6426_v13 = vpop.f32.mrb[13].mxu0  ;;  %10913 = vmatpush3.bf16.msra.mxu1 %v6509_v5  ;;  %v6435_v55 = vadd.f32 %v10902_v57, %v16818_v39 }
 0x756   :  { %v10903_v27 = vpop.f32.mrb[14].mxu0  ;;  %10914 = vmatprep.subr.bf16.mxu1 %v6510_v59  ;;  %v6427_v44 = vadd.f32 %v6426_v13, %v16820_v21  ;;  %v16828_v21 = vld [vmem:[#allocation103_spill] sm:$0xff] }
 0x757   :  { %v6438_v6 = vadd.f32 %v10903_v27, %v16819_v23  ;;  %v6429_v47 = vpop.f32.mrb[15].mxu0  ;;  %v16826_v27 = vld [vmem:[#allocation104_spill] sm:$0xff]  ;;  %v16827_v23 = vld [vmem:[#allocation102_spill] sm:$0xff] }
 0x758   :  { %v6430_v63 = vadd.f32 %v6429_v47, %v16821_v29 }
 0x759   :  { %v6512_v58 = vpack.c.bf16 %v6438_v6, %v6435_v55  ;;  %10915 = vmatpush3.bf16.msra.mxu1 %v6510_v59 }
 0x75a   :  { %v6511_v56 = vpack.c.bf16 %v6430_v63, %v6427_v44  ;;  %v16829_v63 = vld [vmem:[#allocation101_spill] sm:$0xff] }
 0x75c   :  { %10916 = vmatprep.subr.bf16.mxu1 %v6511_v56 }
 0x75d   :  { %10917 = vmatpush3.bf16.msra.mxu1 %v6511_v56 }
 0x75e   :  { %10918 = vmatprep.subr.bf16.mxu1 %v6512_v58 }
 0x761   :  { %10919 = vmatpush3.bf16.msra.mxu1 %v6512_v58 }
 0x764   :  { %10921 = vmatmul.mubr.bf16.vlgmr.msra.gmra.mrb[96].mxu1 %v11983_v36 }
 0x765   :  { %10924 = vmatprep.mubr.bf16.mxu1 %v11984_v4 }
 0x76c   :  { %10925 = vmatmul.mubr.bf16.gmra.mrb[100].mxu1 %v11985_v31 }
 0x76d   :  { %10928 = vmatprep.mubr.bf16.mxu1 %v11986_v48 }
 0x774   :  { %10929 = vmatmul.mubr.bf16.gmra.mrb[104].mxu1 %v11987_v30 }
 0x775   :  { %10932 = vmatprep.mubr.bf16.mxu1 %v11988_v10 }
 0x77c   :  { %10933 = vmatmul.mubr.bf16.gmra.mrb[108].mxu1 %v11989_v53  ;;  %v16830_v53 = vld [vmem:[#allocation108_spill] sm:$0xff] }
 0x77d   :  { %10936 = vmatprep.mubr.bf16.mxu1 %v11990_v19 }
 0x784   :  { %10937 = vmatmul.mubr.bf16.gmra.mrb[112].mxu1 %v11991_v17 }
 0x785   :  { %10940 = vmatprep.mubr.bf16.mxu1 %v11992_v9  ;;  %v16831_v9 = vld [vmem:[#allocation106_spill] sm:$0xff] }
 0x78c   :  { %10941 = vmatmul.mubr.bf16.gmra.mrb[116].mxu1 %v11993_v28 }
 0x78d   :  { %10944 = vmatprep.mubr.bf16.mxu1 %v11994_v45 }
 0x794   :  { %10945 = vmatmul.mubr.bf16.gmra.mrb[120].mxu1 %v11995_v26  ;;  %v16832_v26 = vld [vmem:[#allocation107_spill] sm:$0xff] }
 0x795   :  { %10948 = vmatprep.mubr.bf16.mxu1 %v11996_v41 }
 0x79c   :  { %10949 = vmatmul.mubr.bf16.gmra.mrb[124].mxu1 %v11997_v0 }
 0x79d   :  { %10952 = vmatprep.mubr.bf16.mxu1 %v11998_v38  ;;  %v16833_v38 = vld [vmem:[#allocation105_spill] sm:$0xff] }
 0x7a4   :  { %10953 = vmatmul.mubr.bf16.gmra.mrb[128].mxu1 %v11999_v46 }
 0x7a5   :  { %10956 = vmatprep.mubr.bf16.mxu1 %v12000_v7 }
 0x7ac   :  { %10957 = vmatmul.mubr.bf16.gmra.mrb[132].mxu1 %v12001_v49 }
 0x7ad   :  { %10960 = vmatprep.mubr.bf16.mxu1 %v12002_v35 }
 0x7b4   :  { %10961 = vmatmul.mubr.bf16.gmra.mrb[136].mxu1 %v12003_v43 }
 0x7b5   :  { %10964 = vmatprep.mubr.bf16.mxu1 %v12004_v14 }
 0x7bc   :  { %10965 = vmatmul.mubr.bf16.gmra.mrb[140].mxu1 %v12005_v60 }
 0x7bd   :  { %10968 = vmatprep.mubr.bf16.mxu1 %v12006_v62 }
 0x7c4   :  { %10969 = vmatmul.mubr.bf16.gmra.mrb[144].mxu1 %v12007_v15  ;;  %v16834_v15 = vld [vmem:[#allocation112_spill] sm:$0xff] }
 0x7c5   :  { %10972 = vmatprep.mubr.bf16.mxu1 %v12008_v32 }
 0x7cc   :  { %10973 = vmatmul.mubr.bf16.gmra.mrb[148].mxu1 %v12009_v22 }
 0x7cd   :  { %10976 = vmatprep.mubr.bf16.mxu1 %v12010_v54  ;;  %v16835_v54 = vld [vmem:[#allocation110_spill] sm:$0xff] }
 0x7d4   :  { %10977 = vmatmul.mubr.bf16.gmra.mrb[152].mxu1 %v12011_v3 }
 0x7d5   :  { %10980 = vmatprep.mubr.bf16.mxu1 %v12012_v34 }
 0x7dc   :  { %10981 = vmatmul.mubr.bf16.gmra.mrb[156].mxu1 %v12013_v42  ;;  %v16836_v42 = vld [vmem:[#allocation111_spill] sm:$0xff] }
 0x837   :  { %v10922_v51 = vpop.f32.mrb[96].mxu1 }
 0x838   :  { %v7132_v37 = vadd.f32 %v10922_v51, %v16822_v52  ;;  %v7123_v25 = vpop.f32.mrb[97].mxu1  ;;  %v16837_v52 = vld [vmem:[#allocation109_spill] sm:$0xff] }
 0x839   :  { %v7124_v24 = vadd.f32 %v7123_v25, %v16823_v11  ;;  %v10923_v16 = vpop.f32.mrb[98].mxu1 }
 0x83a   :  { %v7135_v33 = vadd.f32 %v10923_v16, %v16824_v50  ;;  %v7126_v12 = vpop.f32.mrb[99].mxu1  ;;  %v7380_v1 = vmax.f32 %v7132_v37, 0.0 }
 0x83b   :  { %v7127_v2 = vadd.f32 %v7126_v12, %v16825_v18  ;;  %v7378_v8 = vmax.f32 %v7124_v24, 0.0  ;;  %v16838_v18 = vld [vmem:[#allocation116_spill] sm:$0xff] }
 0x83c   :  { %v7381_v40 = vmax.f32 %v7135_v33, 0.0 }
 0x83d   :  { %v7379_v59 = vmax.f32 %v7127_v2, 0.0 }
 0x83e   :  { %v7571_v5 = vpack.c.bf16 %v7381_v40, %v7380_v1  ;;  %v16839_v40 = vld [vmem:[#allocation114_spill] sm:$0xff] }
 0x83f   :  { %v7570_v57 = vpack.c.bf16 %v7379_v59, %v7378_v8  ;;  %v10926_v13 = vpop.f32.mrb[100].mxu1 }
 0x840   :  { %v7148_v39 = vadd.f32 %v10926_v13, %v16826_v27  ;;  %v7139_v55 = vpop.f32.mrb[101].mxu1  ;;  %v16841_v27 = vld [vmem:[#allocation113_spill] sm:$0xff] }
 0x841   :  { %v7140_v6 = vadd.f32 %v7139_v55, %v16827_v23  ;;  %v10927_v47 = vpop.f32.mrb[102].mxu1  ;;  %8627 = vmatpush1.bf16.msra.mxu0 %v7570_v57 }
 0x842   :  { %v7151_v44 = vadd.f32 %v10927_v47, %v16828_v21  ;;  %v7142_v29 = vpop.f32.mrb[103].mxu1  ;;  %8628 = vmatprep.subr.bf16.mxu0 %v16805_v20  ;;  %v7384_v56 = vmax.f32 %v7148_v39, 0.0 }
 0x843   :  { %v7143_v58 = vadd.f32 %v7142_v29, %v16829_v63  ;;  %v7382_v4 = vmax.f32 %v7140_v6, 0.0  ;;  %v16842_v63 = vld [vmem:[#allocation120_spill] sm:$0xff] }
 0x844   :  { %v7385_v36 = vmax.f32 %v7151_v44, 0.0 }
 0x845   :  { %v7383_v31 = vmax.f32 %v7143_v58, 0.0  ;;  %8629 = vmatpush1.bf16.msra.mxu0 %v7571_v5  ;;  %v16840_v5 = vld [vmem:[#allocation115_spill] sm:$0xff] }
 0x846   :  { %v7573_v48 = vpack.c.bf16 %v7385_v36, %v7384_v56  ;;  %8630 = vmatprep.subr.bf16.mxu0 %v16805_v20  ;;  %v16843_v36 = vld [vmem:[#allocation118_spill] sm:$0xff] }
 0x847   :  { %v7572_v30 = vpack.c.bf16 %v7383_v31, %v7382_v4  ;;  %v10930_v10 = vpop.f32.mrb[104].mxu1 }
 0x848   :  { %v7164_v19 = vadd.f32 %v10930_v10, %v16830_v53  ;;  %v7155_v17 = vpop.f32.mrb[105].mxu1  ;;  %v16845_v53 = vld [vmem:[#allocation117_spill] sm:$0xff] }
 0x849   :  { %v7156_v28 = vadd.f32 %v7155_v17, %v16831_v9  ;;  %v10931_v45 = vpop.f32.mrb[106].mxu1  ;;  %8631 = vmatpush1.bf16.msra.mxu0 %v7572_v30 }
 0x84a   :  { %v7167_v41 = vadd.f32 %v10931_v45, %v16832_v26  ;;  %v7158_v0 = vpop.f32.mrb[107].mxu1  ;;  %8632 = vmatprep.subr.bf16.mxu0 %v16805_v20  ;;  %v7388_v7 = vmax.f32 %v7164_v19, 0.0 }
 0x84b   :  { %v7159_v46 = vadd.f32 %v7158_v0, %v16833_v38  ;;  %v7386_v35 = vmax.f32 %v7156_v28, 0.0 }
 0x84c   :  { %v7389_v49 = vmax.f32 %v7167_v41, 0.0  ;;  %v15842_v41 = vpop.permute.xlu0 %6769 }
 0x84d   :  { %v7387_v43 = vmax.f32 %v7159_v46, 0.0  ;;  %8633 = vmatpush1.bf16.msra.mxu0 %v7573_v48  ;;  %v16844_v48 = vld [vmem:[#allocation119_spill] sm:$0xff]  ;;  %v16846_v46 = vld [vmem:[#allocation124_spill] sm:$0xff] }
 0x84e   :  { %v7575_v14 = vpack.c.bf16 %v7389_v49, %v7388_v7  ;;  %8634 = vmatprep.subr.bf16.mxu0 %v16805_v20 }
 0x84f   :  { %v7574_v60 = vpack.c.bf16 %v7387_v43, %v7386_v35  ;;  %v10934_v62 = vpop.f32.mrb[108].mxu1  ;;  %v15845_v35 = vpop.permute.xlu1 %6774  ;;  %v16847_v43 = vld [vmem:[#allocation122_spill] sm:$0xff] }
 0x850   :  { %v7180_v32 = vadd.f32 %v10934_v62, %v16834_v15  ;;  %v7171_v22 = vpop.f32.mrb[109].mxu1  ;;  %v16848_v62 = vld [vmem:[#allocation123_spill] sm:$0xff] }
 0x851   :  { %v7172_v3 = vadd.f32 %v7171_v22, %v16835_v54  ;;  %v10935_v34 = vpop.f32.mrb[110].mxu1  ;;  %8635 = vmatpush1.bf16.msra.mxu0 %v7574_v60  ;;  %v16849_v22 = vld [vmem:[#allocation121_spill] sm:$0xff] }
 0x852   :  { %v7183_v61 = vadd.f32 %v10935_v34, %v16836_v42  ;;  %v7174_v51 = vpop.f32.mrb[111].mxu1  ;;  %8636 = vmatprep.subr.bf16.mxu0 %v16805_v20  ;;  %v7392_v25 = vmax.f32 %v7180_v32, 0.0  ;;  %v15851_v42 = vpop.permute.xlu0 %6779 }
 0x853   :  { %v7175_v37 = vadd.f32 %v7174_v51, %v16837_v52  ;;  %v7390_v24 = vmax.f32 %v7172_v3, 0.0 }
 0x854   :  { %v7393_v11 = vmax.f32 %v7183_v61, 0.0 }
 0x855   :  { %v7391_v16 = vmax.f32 %v7175_v37, 0.0  ;;  %8637 = vmatpush1.bf16.msra.mxu0 %v7575_v14  ;;  %v15854_v37 = vpop.permute.xlu1 %6784 }
 0x856   :  { %v7577_v50 = vpack.c.bf16 %v7393_v11, %v7392_v25  ;;  %8638 = vmatprep.subr.bf16.mxu0 %v16805_v20 }
 0x857   :  { %v7576_v33 = vpack.c.bf16 %v7391_v16, %v7390_v24  ;;  %v10938_v12 = vpop.f32.mrb[112].mxu1  ;;  %v16850_v24 = vld [vmem:[#allocation128_spill] sm:$0xff] }
 0x858   :  { %v7196_v2 = vadd.f32 %v10938_v12, %v16838_v18  ;;  %v7187_v1 = vpop.f32.mrb[113].mxu1 }
 0x859   :  { %v7188_v8 = vadd.f32 %v7187_v1, %v16839_v40  ;;  %v10939_v59 = vpop.f32.mrb[114].mxu1  ;;  %8639 = vmatpush1.bf16.msra.mxu0 %v7576_v33  ;;  %v16851_v33 = vld [vmem:[#allocation126_spill] sm:$0xff] }
 0x85a   :  { %v7199_v57 = vadd.f32 %v10939_v59, %v16840_v5  ;;  %v7190_v13 = vpop.f32.mrb[115].mxu1  ;;  %8640 = vmatprep.subr.bf16.mxu0 %v16805_v20  ;;  %v7396_v55 = vmax.f32 %v7196_v2, 0.0  ;;  %v16852_v2 = vld [vmem:[#allocation127_spill] sm:$0xff]  ;;  %v16853_v59 = vld [vmem:[#allocation125_spill] sm:$0xff] }
 0x85b   :  { %v7191_v39 = vadd.f32 %v7190_v13, %v16841_v27  ;;  %v7394_v6 = vmax.f32 %v7188_v8, 0.0  ;;  %v6790_v8 = vpop.permute.xlu0 %6789  ;;  %v15861_v27 = vpop.permute.xlu1 %6794 }
 0x85c   :  { %v7397_v23 = vmax.f32 %v7199_v57, 0.0 }
 0x85d   :  { %v7395_v47 = vmax.f32 %v7191_v39, 0.0  ;;  %8641 = vmatpush1.bf16.msra.mxu0 %v7577_v50 }
 0x85e   :  { %v7579_v21 = vpack.c.bf16 %v7397_v23, %v7396_v55  ;;  %8642 = vmatprep.subr.bf16.mxu0 %v16805_v20 }
 0x85f   :  { %v7578_v44 = vpack.c.bf16 %v7395_v47, %v7394_v6  ;;  %v10942_v29 = vpop.f32.mrb[116].mxu1 }
 0x860   :  { %v7212_v58 = vadd.f32 %v10942_v29, %v16842_v63  ;;  %v7203_v56 = vpop.f32.mrb[117].mxu1  ;;  %v15865_v63 = vpop.permute.xlu0 %6799 }
 0x861   :  { %v7204_v4 = vadd.f32 %v7203_v56, %v16843_v36  ;;  %v10943_v31 = vpop.f32.mrb[118].mxu1  ;;  %8643 = vmatpush1.bf16.msra.mxu0 %v7578_v44 }
 0x862   :  { %v7215_v30 = vadd.f32 %v10943_v31, %v16844_v48  ;;  %v7206_v10 = vpop.f32.mrb[119].mxu1  ;;  %8644 = vmatprep.subr.bf16.mxu0 %v16805_v20  ;;  %v7400_v17 = vmax.f32 %v7212_v58, 0.0  ;;  %v16855_v58 = vld [vmem:[#allocation130_spill] sm:$0xff] }
 0x863   :  { %v7207_v19 = vadd.f32 %v7206_v10, %v16845_v53  ;;  %v7398_v28 = vmax.f32 %v7204_v4, 0.0  ;;  %v16856_v4 = vld [vmem:[#allocation131_spill] sm:$0xff]  ;;  %v16857_v10 = vld [vmem:[#allocation129_spill] sm:$0xff] }
 0x864   :  { %v7401_v9 = vmax.f32 %v7215_v30, 0.0  ;;  %v15870_v30 = vpop.permute.xlu1 %6804 }
 0x865   :  { %v7399_v45 = vmax.f32 %v7207_v19, 0.0  ;;  %8645 = vmatpush1.bf16.msra.mxu0 %v7579_v21  ;;  %v16854_v21 = vld [vmem:[#allocation132_spill] sm:$0xff] }
 0x866   :  { %v7581_v26 = vpack.c.bf16 %v7401_v9, %v7400_v17  ;;  %8646 = vmatprep.subr.bf16.mxu0 %v16805_v20  ;;  %v12014_v9 = vld [vmem:[%s16521_s14] ss:$16 sps:$4 sm:$0xff]  }
 0x867   :  { %v7580_v0 = vpack.c.bf16 %v7399_v45, %v7398_v28  ;;  %v10946_v38 = vpop.f32.mrb[120].mxu1 }
 0x868   :  { %v7228_v7 = vadd.f32 %v10946_v38, %v16846_v46  ;;  %v7219_v49 = vpop.f32.mrb[121].mxu1  ;;  %v6810_v38 = vpop.permute.xlu0 %6809 }
 0x869   :  { %v7220_v14 = vadd.f32 %v7219_v49, %v16847_v43  ;;  %v10947_v60 = vpop.f32.mrb[122].mxu1  ;;  %8647 = vmatpush1.bf16.msra.mxu0 %v7580_v0 }
 0x86a   :  { %v7231_v15 = vadd.f32 %v10947_v60, %v16848_v62  ;;  %v7222_v32 = vpop.f32.mrb[123].mxu1  ;;  %8648 = vmatprep.subr.bf16.mxu0 %v16805_v20  ;;  %v7404_v3 = vmax.f32 %v7228_v7, 0.0  ;;  %v16858_v60 = vld [vmem:[#allocation134_spill] sm:$0xff] }
 0x86b   :  { %v7223_v54 = vadd.f32 %v7222_v32, %v16849_v22  ;;  %v7402_v61 = vmax.f32 %v7220_v14, 0.0  ;;  %v6815_v14 = vpop.permute.xlu1 %6814 }
 0x86c   :  { %v7405_v34 = vmax.f32 %v7231_v15, 0.0 }
 0x86d   :  { %v7403_v51 = vmax.f32 %v7223_v54, 0.0  ;;  %8649 = vmatpush1.bf16.msra.mxu0 %v7581_v26  ;;  %v12019_v26 = vld [vmem:[%s16521_s14 + $0x24] ss:$16 sps:$4 sm:$0xff]  }
 0x86e   :  { %v7583_v52 = vpack.c.bf16 %v7405_v34, %v7404_v3  ;;  %8650 = vmatprep.subr.bf16.mxu0 %v16805_v20  ;;  %v16859_v54 = vld [vmem:[#allocation133_spill] sm:$0xff] }
 0x86f   :  { %v7582_v25 = vpack.c.bf16 %v7403_v51, %v7402_v61  ;;  %v10950_v11 = vpop.f32.mrb[124].mxu1  ;;  %v15888_v51 = vpop.permute.xlu0 %6819 }
 0x870   :  { %v7244_v16 = vadd.f32 %v10950_v11, %v16850_v24  ;;  %v7235_v50 = vpop.f32.mrb[125].mxu1  ;;  %v15894_v24 = vpop.permute.xlu1 %6824 }
 0x871   :  { %v7236_v12 = vadd.f32 %v7235_v50, %v16851_v33  ;;  %v10951_v18 = vpop.f32.mrb[126].mxu1  ;;  %8651 = vmatpush1.bf16.msra.mxu0 %v7582_v25 }
 0x872   :  { %v7247_v1 = vadd.f32 %v10951_v18, %v16852_v2  ;;  %v7238_v40 = vpop.f32.mrb[127].mxu1  ;;  %8652 = vmatprep.subr.bf16.mxu0 %v16805_v20  ;;  %v7408_v57 = vmax.f32 %v7244_v16, 0.0 }
 0x873   :  { %v7239_v5 = vadd.f32 %v7238_v40, %v16853_v59  ;;  %v7406_v39 = vmax.f32 %v7236_v12, 0.0  ;;  %v6830_v59 = vpop.permute.xlu0 %6829 }
 0x874   :  { %v7409_v13 = vmax.f32 %v7247_v1, 0.0 }
 0x875   :  { %v7407_v55 = vmax.f32 %v7239_v5, 0.0  ;;  %8653 = vmatpush1.bf16.msra.mxu0 %v7583_v52 }
 0x876   :  { %v7585_v23 = vpack.c.bf16 %v7409_v13, %v7408_v57  ;;  %8654 = vmatprep.subr.bf16.mxu0 %v16805_v20 }
 0x877   :  { %v7584_v6 = vpack.c.bf16 %v7407_v55, %v7406_v39  ;;  %v10954_v47 = vpop.f32.mrb[128].mxu1  ;;  %v6835_v39 = vpop.permute.xlu1 %6834 }
 0x878   :  { %v7260_v44 = vadd.f32 %v10954_v47, %v16854_v21  ;;  %v7251_v29 = vpop.f32.mrb[129].mxu1 }
 0x879   :  { %v7252_v56 = vadd.f32 %v7251_v29, %v16855_v58  ;;  %v10955_v36 = vpop.f32.mrb[130].mxu1  ;;  %8655 = vmatpush1.bf16.msra.mxu0 %v7584_v6 }
 0x87a   :  { %v7263_v31 = vadd.f32 %v10955_v36, %v16856_v4  ;;  %v7254_v48 = vpop.f32.mrb[131].mxu1  ;;  %8656 = vmatprep.subr.bf16.mxu0 %v16805_v20  ;;  %v7412_v19 = vmax.f32 %v7260_v44, 0.0  ;;  %v6840_v44 = vpop.permute.xlu0 %6839 }
 0x87b   :  { %v7255_v53 = vadd.f32 %v7254_v48, %v16857_v10  ;;  %v7410_v28 = vmax.f32 %v7252_v56, 0.0  ;;  %v6845_v4 = vpop.permute.xlu1 %6844 }
 0x87c   :  { %v7413_v17 = vmax.f32 %v7263_v31, 0.0 }
 0x87d   :  { %v7411_v45 = vmax.f32 %v7255_v53, 0.0  ;;  %8657 = vmatpush1.bf16.msra.mxu0 %v7585_v23  ;;  %v12023_v53 = vld [vmem:[%s16521_s14 + $0x60] ss:$16 sps:$4 sm:$0xff]  }
 0x87e   :  { %v7587_v0 = vpack.c.bf16 %v7413_v17, %v7412_v19  ;;  %8915 = vmatprep.subr.bf16.mxu0 %v16805_v20 }
 0x87f   :  { %v7586_v46 = vpack.c.bf16 %v7411_v45, %v7410_v28  ;;  %v10958_v7 = vpop.f32.mrb[132].mxu1  ;;  %v6850_v28 = vpop.permute.xlu0 %6849 }
 0x880   :  { %v7276_v49 = vadd.f32 %v10958_v7, %v15842_v41  ;;  %v7267_v43 = vpop.f32.mrb[133].mxu1  ;;  %8659 = vmatmul.mubr.bf16.vlgmr.msra.gmra.mrb[16].mxu0 %v12014_v9  ;;  %v12017_v41 = vld [vmem:[%s16521_s14 + $0x20] ss:$16 sps:$4 sm:$0xff]  }
 0x881   :  { %v7268_v62 = vadd.f32 %v7267_v43, %v16858_v60  ;;  %v10959_v15 = vpop.f32.mrb[134].mxu1  ;;  %8916 = vmatpush1.bf16.msra.mxu0 %v7586_v46  ;;  %8666 = vmatprep.mubr.bf16.mxu0 %v12019_v26 }
 0x882   :  { %v7279_v32 = vadd.f32 %v10959_v15, %v15845_v35  ;;  %v7270_v22 = vpop.f32.mrb[135].mxu1  ;;  %8917 = vmatprep.subr.bf16.mxu0 %v16805_v20  ;;  %v7416_v34 = vmax.f32 %v7276_v49, 0.0  ;;  %v12022_v35 = vld [vmem:[%s16521_s14 + $0x44] ss:$16 sps:$4 sm:$0xff]   ;;  %v12026_v15 = vld [vmem:[%s16521_s14 + $0x80] ss:$16 sps:$4 sm:$0xff]  }
 0x883   :  { %v7271_v3 = vadd.f32 %v7270_v22, %v16859_v54  ;;  %v7414_v52 = vmax.f32 %v7268_v62, 0.0 }
 0x884   :  { %v7417_v61 = vmax.f32 %v7279_v32, 0.0  ;;  %v6860_v32 = vpop.permute.xlu0 %6859 }
 0x885   :  { %v7415_v25 = vmax.f32 %v7271_v3, 0.0  ;;  %8918 = vmatpush1.bf16.msra.mxu0 %v7587_v0  ;;  %v12031_v3 = vld [vmem:[%s16521_s14 + $0xa4] ss:$16 sps:$4 sm:$0xff]  }
 0x886   :  { %v7589_v11 = vpack.c.bf16 %v7417_v61, %v7416_v34  ;;  %8919 = vmatprep.subr.bf16.mxu0 %v16805_v20 }
 0x887   :  { %v7588_v16 = vpack.c.bf16 %v7415_v25, %v7414_v52  ;;  %v10962_v50 = vpop.f32.mrb[136].mxu1 }
 0x888   :  { %v7292_v33 = vadd.f32 %v10962_v50, %v6790_v8  ;;  %v7283_v12 = vpop.f32.mrb[137].mxu1  ;;  %8667 = vmatmul.mubr.bf16.gmra.mrb[20].mxu0 %v12017_v41  ;;  %v12020_v8 = vld [vmem:[%s16521_s14 + $0x40] ss:$16 sps:$4 sm:$0xff]   ;;  %v6870_v50 = vpop.permute.xlu0 %6869 }
 0x889   :  { %v7284_v18 = vadd.f32 %v7283_v12, %v15851_v42  ;;  %v10963_v2 = vpop.f32.mrb[138].mxu1  ;;  %8920 = vmatpush1.bf16.msra.mxu0 %v7588_v16  ;;  %8674 = vmatprep.mubr.bf16.mxu0 %v12022_v35 }
 0x88a   :  { %v7295_v1 = vadd.f32 %v10963_v2, %v15861_v27  ;;  %v7286_v40 = vpop.f32.mrb[139].mxu1  ;;  %8921 = vmatprep.subr.bf16.mxu0 %v16805_v20  ;;  %v7420_v57 = vmax.f32 %v7292_v33, 0.0  ;;  %v12025_v27 = vld [vmem:[%s16521_s14 + $0x64] ss:$16 sps:$4 sm:$0xff]   ;;  %v12029_v2 = vld [vmem:[%s16521_s14 + $0xa0] ss:$16 sps:$4 sm:$0xff]  }
 0x88b   :  { %v7287_v5 = vadd.f32 %v7286_v40, %v15854_v37  ;;  %v7418_v55 = vmax.f32 %v7284_v18, 0.0 }
 0x88c   :  { %v7421_v13 = vmax.f32 %v7295_v1, 0.0 }
 0x88d   :  { %v7419_v42 = vmax.f32 %v7287_v5, 0.0  ;;  %8922 = vmatpush1.bf16.msra.mxu0 %v7589_v11  ;;  %v12034_v5 = vld [vmem:[%s16521_s14 + $0xc4] ss:$16 sps:$4 sm:$0xff]  }
 0x88e   :  { %v7591_v23 = vpack.c.bf16 %v7421_v13, %v7420_v57  ;;  %8923 = vmatprep.subr.bf16.mxu0 %v16805_v20 }
 0x88f   :  { %v7590_v6 = vpack.c.bf16 %v7419_v42, %v7418_v55  ;;  %v10966_v47 = vpop.f32.mrb[140].mxu1  ;;  %v6880_v42 = vpop.permute.xlu0 %6879 }
 0x890   :  { %v7308_v37 = vadd.f32 %v10966_v47, %v6810_v38  ;;  %v7299_v21 = vpop.f32.mrb[141].mxu1  ;;  %8675 = vmatmul.mubr.bf16.gmra.mrb[24].mxu0 %v12020_v8  ;;  %v6855_v38 = vpop.permute.xlu1 %6854 }
 0x891   :  { %v7300_v29 = vadd.f32 %v7299_v21, %v15865_v63  ;;  %v10967_v58 = vpop.f32.mrb[142].mxu1  ;;  %8924 = vmatpush1.bf16.msra.mxu0 %v7590_v6  ;;  %8682 = vmatprep.mubr.bf16.mxu0 %v12025_v27  ;;  %v12028_v63 = vld [vmem:[%s16521_s14 + $0x84] ss:$16 sps:$4 sm:$0xff]  }
 0x892   :  { %v7311_v56 = vadd.f32 %v10967_v58, %v6815_v14  ;;  %v7302_v36 = vpop.f32.mrb[143].mxu1  ;;  %8925 = vmatprep.subr.bf16.mxu0 %v16805_v20  ;;  %v7424_v48 = vmax.f32 %v7308_v37, 0.0  ;;  %v12032_v58 = vld [vmem:[%s16521_s14 + $0xc0] ss:$16 sps:$4 sm:$0xff]  }
 0x893   :  { %v7303_v31 = vadd.f32 %v7302_v36, %v15870_v30  ;;  %v7422_v19 = vmax.f32 %v7300_v29, 0.0 }
 0x894   :  { %v7425_v10 = vmax.f32 %v7311_v56, 0.0  ;;  %v6865_v61 = vpop.permute.xlu1 %6864 }
 0x895   :  { %v7423_v17 = vmax.f32 %v7303_v31, 0.0  ;;  %8926 = vmatpush1.bf16.msra.mxu0 %v7591_v23 }
 0x896   :  { %v7593_v9 = vpack.c.bf16 %v7425_v10, %v7424_v48  ;;  %8927 = vmatprep.subr.bf16.mxu0 %v16805_v20  ;;  %v6890_v48 = vpop.permute.xlu0 %6889 }
 0x897   :  { %v7592_v45 = vpack.c.bf16 %v7423_v17, %v7422_v19  ;;  %v10970_v26 = vpop.f32.mrb[144].mxu1 }
 0x898   :  { %v7324_v30 = vadd.f32 %v10970_v26, %v6830_v59  ;;  %v7315_v0 = vpop.f32.mrb[145].mxu1  ;;  %8683 = vmatmul.mubr.bf16.gmra.mrb[28].mxu0 %v12023_v53  ;;  %v6875_v1 = vpop.permute.xlu1 %6874 }
 0x899   :  { %v7316_v46 = vadd.f32 %v7315_v0, %v15888_v51  ;;  %v10971_v7 = vpop.f32.mrb[146].mxu1  ;;  %8928 = vmatpush1.bf16.msra.mxu0 %v7592_v45  ;;  %8690 = vmatprep.mubr.bf16.mxu0 %v12028_v63 }
 0x89a   :  { %v7327_v49 = vadd.f32 %v10971_v7, %v6835_v39  ;;  %v7318_v43 = vpop.f32.mrb[147].mxu1  ;;  %8929 = vmatprep.subr.bf16.mxu0 %v16805_v20  ;;  %v7428_v60 = vmax.f32 %v7324_v30, 0.0 }
 0x89b   :  { %v7319_v14 = vadd.f32 %v7318_v43, %v15894_v24  ;;  %v7426_v22 = vmax.f32 %v7316_v46, 0.0  ;;  %v12035_v46 = vld [vmem:[%s16521_s14 + $0xe0] ss:$16 sps:$4 sm:$0xff]   ;;  %v12040_v43 = vld [vmem:[%s16521_s14 + $0x104] ss:$16 sps:$4 sm:$0xff]  }
 0x89c   :  { %v7429_v62 = vmax.f32 %v7327_v49, 0.0  ;;  %v6885_v37 = vpop.permute.xlu1 %6884 }
 0x89d   :  { %v7427_v54 = vmax.f32 %v7319_v14, 0.0  ;;  %8930 = vmatpush1.bf16.msra.mxu0 %v7593_v9 }
 0x89e   :  { %v7595_v34 = vpack.c.bf16 %v7429_v62, %v7428_v60  ;;  %8931 = vmatprep.subr.bf16.mxu0 %v16805_v20  ;;  %v12038_v62 = vld [vmem:[%s16521_s14 + $0x100] ss:$16 sps:$4 sm:$0xff]  }
 0x89f   :  { %v7594_v41 = vpack.c.bf16 %v7427_v54, %v7426_v22  ;;  %v10974_v51 = vpop.f32.mrb[148].mxu1  ;;  %v12046_v22 = vld [vmem:[%s16521_s14 + $0x144] ss:$16 sps:$4 sm:$0xff]  }
 0x8a0   :  { %v7340_v52 = vadd.f32 %v10974_v51, %v6850_v28  ;;  %v7331_v25 = vpop.f32.mrb[149].mxu1  ;;  %8691 = vmatmul.mubr.bf16.gmra.mrb[32].mxu0 %v12026_v15  ;;  %v6895_v63 = vpop.permute.xlu1 %6894  ;;  %v12043_v15 = vld [vmem:[%s16521_s14 + $0x124] ss:$16 sps:$4 sm:$0xff]   ;;  %v12053_v51 = vld [vmem:[%s16521_s14 + $0x1a0] ss:$16 sps:$4 sm:$0xff]  }
 0x8a1   :  { %v7332_v35 = vadd.f32 %v7331_v25, %v6840_v44  ;;  %v10975_v11 = vpop.f32.mrb[150].mxu1  ;;  %8932 = vmatpush1.bf16.msra.mxu0 %v7594_v41  ;;  %8698 = vmatprep.mubr.bf16.mxu0 %v12031_v3  ;;  %v12049_v54 = vld [vmem:[%s16521_s14 + $0x164] ss:$16 sps:$4 sm:$0xff]   ;;  %v12047_v3 = vld [vmem:[%s16521_s14 + $0x160] ss:$16 sps:$4 sm:$0xff]  }
 0x8a2   :  { %v7343_v24 = vadd.f32 %v10975_v11, %v6855_v38  ;;  %v7334_v16 = vpop.f32.mrb[151].mxu1  ;;  %8933 = vmatprep.subr.bf16.mxu0 %v16805_v20  ;;  %v7432_v12 = vmax.f32 %v7340_v52, 0.0  ;;  %v12055_v41 = vld [vmem:[%s16521_s14 + $0x1a4] ss:$16 sps:$4 sm:$0xff]   ;;  %v12056_v25 = vld [vmem:[%s16521_s14 + $0x1c0] ss:$16 sps:$4 sm:$0xff]  }
 0x8a3   :  { %v7335_v33 = vadd.f32 %v7334_v16, %v6845_v4  ;;  %v7430_v40 = vmax.f32 %v7332_v35, 0.0  ;;  %v12037_v4 = vld [vmem:[%s16521_s14 + $0xe4] ss:$16 sps:$4 sm:$0xff]   ;;  %v12059_v11 = vld [vmem:[%s16521_s14 + $0x1e0] ss:$16 sps:$4 sm:$0xff]  }
 0x8a4   :  { %v7433_v18 = vmax.f32 %v7343_v24, 0.0  ;;  %v12058_v52 = vld [vmem:[%s16521_s14 + $0x1c4] ss:$16 sps:$4 sm:$0xff]   ;;  %v12062_v16 = vld [vmem:[%s16521_s14 + $0x200] ss:$16 sps:$4 sm:$0xff]  }
 0x8a5   :  { %v7431_v59 = vmax.f32 %v7335_v33, 0.0  ;;  %8934 = vmatpush1.bf16.msra.mxu0 %v7595_v34  ;;  %v12052_v34 = vld [vmem:[%s16521_s14 + $0x184] ss:$16 sps:$4 sm:$0xff]   ;;  %v12065_v33 = vld [vmem:[%s16521_s14 + $0x220] ss:$16 sps:$4 sm:$0xff]  }
 0x8a6   :  { %v7597_v57 = vpack.c.bf16 %v7433_v18, %v7432_v12  ;;  %8935 = vmatprep.subr.bf16.mxu0 %v16805_v20  ;;  %v12061_v35 = vld [vmem:[%s16521_s14 + $0x1e4] ss:$16 sps:$4 sm:$0xff]   ;;  %v12068_v18 = vld [vmem:[%s16521_s14 + $0x240] ss:$16 sps:$4 sm:$0xff]  }
 0x8a7   :  { %v7596_v13 = vpack.c.bf16 %v7431_v59, %v7430_v40  ;;  %v10978_v8 = vpop.f32.mrb[152].mxu1  ;;  %v12064_v24 = vld [vmem:[%s16521_s14 + $0x204] ss:$16 sps:$4 sm:$0xff]   ;;  %v12074_v59 = vld [vmem:[%s16521_s14 + $0x280] ss:$16 sps:$4 sm:$0xff]  }
 0x8a8   :  { %v7356_v39 = vadd.f32 %v10978_v8, %v6870_v50  ;;  %v7347_v55 = vpop.f32.mrb[153].mxu1  ;;  %8699 = vmatmul.mubr.bf16.gmra.mrb[36].mxu0 %v12029_v2  ;;  %v12067_v50 = vld [vmem:[%s16521_s14 + $0x224] ss:$16 sps:$4 sm:$0xff]   ;;  %v12080_v8 = vld [vmem:[%s16521_s14 + $0x2c0] ss:$16 sps:$4 sm:$0xff]  }
 0x8a9   :  { %v7348_v27 = vadd.f32 %v7347_v55, %v6860_v32  ;;  %v10979_v23 = vpop.f32.mrb[154].mxu1  ;;  %8936 = vmatpush1.bf16.msra.mxu0 %v7596_v13  ;;  %8706 = vmatprep.mubr.bf16.mxu0 %v12034_v5  ;;  %v12041_v32 = vld [vmem:[%s16521_s14 + $0x120] ss:$16 sps:$4 sm:$0xff]   ;;  %v12070_v12 = vld [vmem:[%s16521_s14 + $0x244] ss:$16 sps:$4 sm:$0xff]  }
 0x8aa   :  { %v7359_v6 = vadd.f32 %v10979_v23, %v6875_v1  ;;  %v7350_v47 = vpop.f32.mrb[155].mxu1  ;;  %8937 = vmatprep.subr.bf16.mxu0 %v16805_v20  ;;  %v7436_v44 = vmax.f32 %v7356_v39, 0.0  ;;  %v12073_v2 = vld [vmem:[%s16521_s14 + $0x264] ss:$16 sps:$4 sm:$0xff]   ;;  %v12071_v1 = vld [vmem:[%s16521_s14 + $0x260] ss:$16 sps:$4 sm:$0xff]  }
 0x8ab   :  { %v7351_v21 = vadd.f32 %v7350_v47, %v6865_v61  ;;  %v7434_v56 = vmax.f32 %v7348_v27, 0.0  ;;  %v12050_v61 = vld [vmem:[%s16521_s14 + $0x180] ss:$16 sps:$4 sm:$0xff]   ;;  %v12076_v40 = vld [vmem:[%s16521_s14 + $0x284] ss:$16 sps:$4 sm:$0xff]  }
 0x8ac   :  { %v7437_v29 = vmax.f32 %v7359_v6, 0.0  ;;  %v12079_v5 = vld [vmem:[%s16521_s14 + $0x2a4] ss:$16 sps:$4 sm:$0xff]   ;;  %v12083_v55 = vld [vmem:[%s16521_s14 + $0x2e0] ss:$16 sps:$4 sm:$0xff]  }
 0x8ad   :  { %v7435_v36 = vmax.f32 %v7351_v21, 0.0  ;;  %8938 = vmatpush1.bf16.msra.mxu0 %v7597_v57  ;;  %v12077_v57 = vld [vmem:[%s16521_s14 + $0x2a0] ss:$16 sps:$4 sm:$0xff]   ;;  %v12082_v13 = vld [vmem:[%s16521_s14 + $0x2c4] ss:$16 sps:$4 sm:$0xff]  }
 0x8ae   :  { %v7599_v31 = vpack.c.bf16 %v7437_v29, %v7436_v44  ;;  %8939 = vmatprep.subr.bf16.mxu0 %v16805_v20  ;;  %v12085_v39 = vld [vmem:[%s16521_s14 + $0x2e4] ss:$16 sps:$4 sm:$0xff]   ;;  %v12086_v27 = vld [vmem:[%s16521_s14 + $0x300] ss:$16 sps:$4 sm:$0xff]  }
 0x8af   :  { %v7598_v10 = vpack.c.bf16 %v7435_v36, %v7434_v56  ;;  %v10982_v53 = vpop.f32.mrb[156].mxu1  ;;  %v12091_v23 = vld [vmem:[%s16521_s14 + $0x324] ss:$16 sps:$4 sm:$0xff]   ;;  %v12089_v6 = vld [vmem:[%s16521_s14 + $0x320] ss:$16 sps:$4 sm:$0xff]  }
 0x8b0   :  { %v7372_v19 = vadd.f32 %v10982_v53, %v6890_v48  ;;  %v7363_v17 = vpop.f32.mrb[157].mxu1  ;;  %8707 = vmatmul.mubr.bf16.gmra.mrb[40].mxu0 %v12032_v58  ;;  %v12094_v47 = vld [vmem:[%s16521_s14 + $0x344] ss:$16 sps:$4 sm:$0xff]   ;;  %v12095_v44 = vld [vmem:[%s16521_s14 + $0x360] ss:$16 sps:$4 sm:$0xff]  }
 0x8b1   :  { %v7364_v9 = vadd.f32 %v7363_v17, %v6880_v42  ;;  %v10983_v28 = vpop.f32.mrb[158].mxu1  ;;  %8940 = vmatpush1.bf16.msra.mxu0 %v7598_v10  ;;  %8714 = vmatprep.mubr.bf16.mxu0 %v12037_v4  ;;  %v12088_v42 = vld [vmem:[%s16521_s14 + $0x304] ss:$16 sps:$4 sm:$0xff]   ;;  %v12098_v58 = vld [vmem:[%s16521_s14 + $0x380] ss:$16 sps:$4 sm:$0xff]  }
 0x8b2   :  { %v7375_v45 = vadd.f32 %v10983_v28, %v6895_v63  ;;  %v7366_v26 = vpop.f32.mrb[159].mxu1  ;;  %8941 = vmatprep.subr.bf16.mxu0 %v16805_v20  ;;  %v7440_v0 = vmax.f32 %v7372_v19, 0.0  ;;  %v12097_v21 = vld [vmem:[%s16521_s14 + $0x364] ss:$16 sps:$4 sm:$0xff]   ;;  %v12101_v36 = vld [vmem:[%s16521_s14 + $0x3a0] ss:$16 sps:$4 sm:$0xff]  }
 0x8b3   :  { %v7367_v30 = vadd.f32 %v7366_v26, %v6885_v37  ;;  %v7438_v7 = vmax.f32 %v7364_v9, 0.0  ;;  %v12092_v37 = vld [vmem:[%s16521_s14 + $0x340] ss:$16 sps:$4 sm:$0xff]   ;;  %v12100_v29 = vld [vmem:[%s16521_s14 + $0x384] ss:$16 sps:$4 sm:$0xff]  }
 0x8b4   :  { %v7441_v38 = vmax.f32 %v7375_v45, 0.0  ;;  %v12103_v56 = vld [vmem:[%s16521_s14 + $0x3a4] ss:$16 sps:$4 sm:$0xff]   ;;  %v12107_v10 = vld [vmem:[%s16521_s14 + $0x3e0] ss:$16 sps:$4 sm:$0xff]  }
 0x8b5   :  { %v7439_v49 = vmax.f32 %v7367_v30, 0.0  ;;  %8942 = vmatpush1.bf16.msra.mxu0 %v7599_v31  ;;  %v12106_v4 = vld [vmem:[%s16521_s14 + $0x3c4] ss:$16 sps:$4 sm:$0xff]   ;;  %v12104_v31 = vld [vmem:[%s16521_s14 + $0x3c0] ss:$16 sps:$4 sm:$0xff]  }
 0x8b6   :  { %v7601_v14 = vpack.c.bf16 %v7441_v38, %v7440_v0  ;;  %8943 = vmatprep.subr.bf16.mxu0 %v16805_v20  ;;  %v12109_v48 = vld [vmem:[%s16521_s14 + $0x3e4] ss:$16 sps:$4 sm:$0xff]   ;;  %v12112_v53 = vld [vmem:[%s16521_s14 + $0xc] ss:$16 sps:$4 sm:$0xff]   ;;  %v12110_v19 = vld [vmem:[%s16521_s14 + $0x8] ss:$16 sps:$4 sm:$0xff]  }
 0x8b7   :  { %v7600_v60 = vpack.c.bf16 %v7439_v49, %v7438_v7  ;;  %v12115_v17 = vld [vmem:[%s16521_s14 + $0x2c] ss:$16 sps:$4 sm:$0xff]   ;;  %v12113_v63 = vld [vmem:[%s16521_s14 + $0x28] ss:$16 sps:$4 sm:$0xff]  }
 0x8b8   :  { %8715 = vmatmul.mubr.bf16.gmra.mrb[44].mxu0 %v12035_v46  ;;  %v12118_v9 = vld [vmem:[%s16521_s14 + $0x4c] ss:$16 sps:$4 sm:$0xff]   ;;  %v12116_v28 = vld [vmem:[%s16521_s14 + $0x48] ss:$16 sps:$4 sm:$0xff]  }
 0x8b9   :  { %8944 = vmatpush1.bf16.msra.mxu0 %v7600_v60  ;;  %8722 = vmatprep.mubr.bf16.mxu0 %v12040_v43  ;;  %v12121_v45 = vld [vmem:[%s16521_s14 + $0x6c] ss:$16 sps:$4 sm:$0xff]   ;;  %v12119_v26 = vld [vmem:[%s16521_s14 + $0x68] ss:$16 sps:$4 sm:$0xff]  }
 0x8ba   :  { %8945 = vmatprep.subr.bf16.mxu0 %v16805_v20  ;;  %v12044_v20 = vld [vmem:[%s16521_s14 + $0x140] ss:$16 sps:$4 sm:$0xff]   ;;  %v12124_v30 = vld [vmem:[%s16521_s14 + $0x8c] ss:$16 sps:$4 sm:$0xff]   ;;  %v12122_v0 = vld [vmem:[%s16521_s14 + $0x88] ss:$16 sps:$4 sm:$0xff]  }
 0x8bb   :  { %v12127_v38 = vld [vmem:[%s16521_s14 + $0xac] ss:$16 sps:$4 sm:$0xff]   ;;  %v12125_v46 = vld [vmem:[%s16521_s14 + $0xa8] ss:$16 sps:$4 sm:$0xff]  }
 0x8bc   :  { %v12130_v7 = vld [vmem:[%s16521_s14 + $0xcc] ss:$16 sps:$4 sm:$0xff]   ;;  %v12128_v49 = vld [vmem:[%s16521_s14 + $0xc8] ss:$16 sps:$4 sm:$0xff]  }
 0x8bd   :  { %8946 = vmatpush1.bf16.msra.mxu0 %v7601_v14  ;;  %v12133_v43 = vld [vmem:[%s16521_s14 + $0xec] ss:$16 sps:$4 sm:$0xff]   ;;  %v12131_v14 = vld [vmem:[%s16521_s14 + $0xe8] ss:$16 sps:$4 sm:$0xff]  }
 0x8be   :  { %v12136_v60 = vld [vmem:[%s16521_s14 + $0x10c] ss:$16 sps:$4 sm:$0xff]  }
 0x8c0   :  { %8723 = vmatmul.mubr.bf16.gmra.mrb[48].mxu0 %v12038_v62  ;;  %v12134_v62 = vld [vmem:[%s16521_s14 + $0x108] ss:$16 sps:$4 sm:$0xff]  }
 0x8c1   :  { %8730 = vmatprep.mubr.bf16.mxu0 %v12043_v15  ;;  %v12139_v15 = vld [vmem:[%s16521_s14 + $0x12c] ss:$16 sps:$4 sm:$0xff]  }
 0x8c8   :  { %8731 = vmatmul.mubr.bf16.gmra.mrb[52].mxu0 %v12041_v32  ;;  %v12137_v32 = vld [vmem:[%s16521_s14 + $0x128] ss:$16 sps:$4 sm:$0xff]  }
 0x8c9   :  { %8738 = vmatprep.mubr.bf16.mxu0 %v12046_v22  ;;  %v12142_v22 = vld [vmem:[%s16521_s14 + $0x14c] ss:$16 sps:$4 sm:$0xff]  }
 0x8d0   :  { %8739 = vmatmul.mubr.bf16.gmra.mrb[56].mxu0 %v12044_v20  ;;  %v12140_v20 = vld [vmem:[%s16521_s14 + $0x148] ss:$16 sps:$4 sm:$0xff]  }
 0x8d1   :  { %8746 = vmatprep.mubr.bf16.mxu0 %v12049_v54  ;;  %v12145_v54 = vld [vmem:[%s16521_s14 + $0x16c] ss:$16 sps:$4 sm:$0xff]  }
 0x8d8   :  { %8747 = vmatmul.mubr.bf16.gmra.mrb[60].mxu0 %v12047_v3  ;;  %v12143_v3 = vld [vmem:[%s16521_s14 + $0x168] ss:$16 sps:$4 sm:$0xff]  }
 0x8d9   :  { %8754 = vmatprep.mubr.bf16.mxu0 %v12052_v34  ;;  %v12148_v34 = vld [vmem:[%s16521_s14 + $0x18c] ss:$16 sps:$4 sm:$0xff]  }
 0x8e0   :  { %8755 = vmatmul.mubr.bf16.gmra.mrb[64].mxu0 %v12050_v61  ;;  %v12146_v61 = vld [vmem:[%s16521_s14 + $0x188] ss:$16 sps:$4 sm:$0xff]  }
 0x8e1   :  { %8762 = vmatprep.mubr.bf16.mxu0 %v12055_v41  ;;  %v12151_v41 = vld [vmem:[%s16521_s14 + $0x1ac] ss:$16 sps:$4 sm:$0xff]  }
 0x8e8   :  { %8763 = vmatmul.mubr.bf16.gmra.mrb[68].mxu0 %v12053_v51  ;;  %v12149_v51 = vld [vmem:[%s16521_s14 + $0x1a8] ss:$16 sps:$4 sm:$0xff]  }
 0x8e9   :  { %8770 = vmatprep.mubr.bf16.mxu0 %v12058_v52  ;;  %v12154_v52 = vld [vmem:[%s16521_s14 + $0x1cc] ss:$16 sps:$4 sm:$0xff]  }
 0x8f0   :  { %8771 = vmatmul.mubr.bf16.gmra.mrb[72].mxu0 %v12056_v25  ;;  %v12152_v25 = vld [vmem:[%s16521_s14 + $0x1c8] ss:$16 sps:$4 sm:$0xff]  }
 0x8f1   :  { %8778 = vmatprep.mubr.bf16.mxu0 %v12061_v35  ;;  %v12157_v35 = vld [vmem:[%s16521_s14 + $0x1ec] ss:$16 sps:$4 sm:$0xff]  }
 0x8f8   :  { %8779 = vmatmul.mubr.bf16.gmra.mrb[76].mxu0 %v12059_v11  ;;  %v12155_v11 = vld [vmem:[%s16521_s14 + $0x1e8] ss:$16 sps:$4 sm:$0xff]  }
 0x8f9   :  { %8786 = vmatprep.mubr.bf16.mxu0 %v12064_v24  ;;  %v12160_v24 = vld [vmem:[%s16521_s14 + $0x20c] ss:$16 sps:$4 sm:$0xff]  }
 0x900   :  { %8787 = vmatmul.mubr.bf16.gmra.mrb[80].mxu0 %v12062_v16  ;;  %v12158_v16 = vld [vmem:[%s16521_s14 + $0x208] ss:$16 sps:$4 sm:$0xff]  }
 0x901   :  { %8794 = vmatprep.mubr.bf16.mxu0 %v12067_v50  ;;  %v12163_v50 = vld [vmem:[%s16521_s14 + $0x22c] ss:$16 sps:$4 sm:$0xff]  }
 0x908   :  { %8795 = vmatmul.mubr.bf16.gmra.mrb[84].mxu0 %v12065_v33  ;;  %v12161_v33 = vld [vmem:[%s16521_s14 + $0x228] ss:$16 sps:$4 sm:$0xff]  }
 0x909   :  { %8802 = vmatprep.mubr.bf16.mxu0 %v12070_v12  ;;  %v12166_v12 = vld [vmem:[%s16521_s14 + $0x24c] ss:$16 sps:$4 sm:$0xff]  }
 0x910   :  { %8803 = vmatmul.mubr.bf16.gmra.mrb[88].mxu0 %v12068_v18  ;;  %v12164_v18 = vld [vmem:[%s16521_s14 + $0x248] ss:$16 sps:$4 sm:$0xff]  }
 0x911   :  { %8810 = vmatprep.mubr.bf16.mxu0 %v12073_v2  ;;  %v12169_v2 = vld [vmem:[%s16521_s14 + $0x26c] ss:$16 sps:$4 sm:$0xff]  }
 0x918   :  { %8811 = vmatmul.mubr.bf16.gmra.mrb[92].mxu0 %v12071_v1  ;;  %v12167_v1 = vld [vmem:[%s16521_s14 + $0x268] ss:$16 sps:$4 sm:$0xff]  }
 0x919   :  { %8818 = vmatprep.mubr.bf16.mxu0 %v12076_v40  ;;  %v12172_v40 = vld [vmem:[%s16521_s14 + $0x28c] ss:$16 sps:$4 sm:$0xff]  }
 0x920   :  { %8819 = vmatmul.mubr.bf16.gmra.mrb[96].mxu0 %v12074_v59  ;;  %v12170_v59 = vld [vmem:[%s16521_s14 + $0x288] ss:$16 sps:$4 sm:$0xff]  }
 0x921   :  { %8826 = vmatprep.mubr.bf16.mxu0 %v12079_v5  ;;  %v12175_v5 = vld [vmem:[%s16521_s14 + $0x2ac] ss:$16 sps:$4 sm:$0xff]  }
 0x928   :  { %8827 = vmatmul.mubr.bf16.gmra.mrb[100].mxu0 %v12077_v57  ;;  %v12173_v57 = vld [vmem:[%s16521_s14 + $0x2a8] ss:$16 sps:$4 sm:$0xff]  }
 0x929   :  { %8834 = vmatprep.mubr.bf16.mxu0 %v12082_v13  ;;  %v12178_v13 = vld [vmem:[%s16521_s14 + $0x2cc] ss:$16 sps:$4 sm:$0xff]  }
 0x930   :  { %8835 = vmatmul.mubr.bf16.gmra.mrb[104].mxu0 %v12080_v8  ;;  %v12176_v8 = vld [vmem:[%s16521_s14 + $0x2c8] ss:$16 sps:$4 sm:$0xff]  }
 0x931   :  { %8842 = vmatprep.mubr.bf16.mxu0 %v12085_v39  ;;  %v12181_v39 = vld [vmem:[%s16521_s14 + $0x2ec] ss:$16 sps:$4 sm:$0xff]  }
 0x938   :  { %8843 = vmatmul.mubr.bf16.gmra.mrb[108].mxu0 %v12083_v55  ;;  %v16234_v55 = vpop.permute.xlu0 %7748 }
 0x939   :  { %8850 = vmatprep.mubr.bf16.mxu0 %v12088_v42  ;;  %v16236_v42 = vpop.permute.xlu1 %7753 }
 0x940   :  { %8851 = vmatmul.mubr.bf16.gmra.mrb[112].mxu0 %v12086_v27  ;;  %v12179_v27 = vld [vmem:[%s16521_s14 + $0x2e8] ss:$16 sps:$4 sm:$0xff]  }
 0x941   :  { %8858 = vmatprep.mubr.bf16.mxu0 %v12091_v23  ;;  %v12184_v23 = vld [vmem:[%s16521_s14 + $0x30c] ss:$16 sps:$4 sm:$0xff]  }
 0x948   :  { %8859 = vmatmul.mubr.bf16.gmra.mrb[116].mxu0 %v12089_v6  ;;  %v7669_v6 = vpop.permute.xlu0 %7668 }
 0x949   :  { %8866 = vmatprep.mubr.bf16.mxu0 %v12094_v47  ;;  %v7674_v47 = vpop.permute.xlu1 %7673 }
 0x950   :  { %8867 = vmatmul.mubr.bf16.gmra.mrb[120].mxu0 %v12092_v37  ;;  %v12182_v37 = vld [vmem:[%s16521_s14 + $0x308] ss:$16 sps:$4 sm:$0xff]  }
 0x951   :  { %8874 = vmatprep.mubr.bf16.mxu0 %v12097_v21  ;;  %v16247_v21 = vpop.permute.xlu0 %7758 }
 0x958   :  { %8875 = vmatmul.mubr.bf16.gmra.mrb[124].mxu0 %v12095_v44  ;;  %v12187_v44 = vld [vmem:[%s16521_s14 + $0x32c] ss:$16 sps:$4 sm:$0xff]  }
 0x959   :  { %8882 = vmatprep.mubr.bf16.mxu0 %v12100_v29  ;;  %v16252_v29 = vpop.permute.xlu1 %7763 }
 0x960   :  { %8883 = vmatmul.mubr.bf16.gmra.mrb[128].mxu0 %v12098_v58  ;;  %v7679_v58 = vpop.permute.xlu0 %7678 }
 0x961   :  { %8890 = vmatprep.mubr.bf16.mxu0 %v12103_v56  ;;  %v12185_v56 = vld [vmem:[%s16521_s14 + $0x328] ss:$16 sps:$4 sm:$0xff]  }
 0x968   :  { %8891 = vmatmul.mubr.bf16.gmra.mrb[132].mxu0 %v12101_v36  ;;  %v7684_v36 = vpop.permute.xlu1 %7683 }
 0x969   :  { %8898 = vmatprep.mubr.bf16.mxu0 %v12106_v4  ;;  %v12190_v4 = vld [vmem:[%s16521_s14 + $0x34c] ss:$16 sps:$4 sm:$0xff]  }
 0x970   :  { %8899 = vmatmul.mubr.bf16.gmra.mrb[136].mxu0 %v12104_v31  ;;  %v16260_v31 = vpop.permute.xlu0 %7768 }
 0x971   :  { %8906 = vmatprep.mubr.bf16.mxu0 %v12109_v48  ;;  %v16262_v48 = vpop.permute.xlu1 %7773 }
 0x978   :  { %8907 = vmatmul.mubr.bf16.gmra.mrb[140].mxu0 %v12107_v10  ;;  %v12188_v10 = vld [vmem:[%s16521_s14 + $0x348] ss:$16 sps:$4 sm:$0xff]  }
 0x979   :  { %8947 = vmatprep.mubr.bf16.mxu0 %v12112_v53  ;;  %v12193_v53 = vld [vmem:[%s16521_s14 + $0x36c] ss:$16 sps:$4 sm:$0xff]  }
 0x980   :  { %8948 = vmatmul.mubr.bf16.vlgmr.msra.gmra.mrb[16].mxu0 %v12110_v19  ;;  %v7689_v19 = vpop.permute.xlu0 %7688 }
 0x981   :  { %8955 = vmatprep.mubr.bf16.mxu0 %v12115_v17  ;;  %v7694_v17 = vpop.permute.xlu1 %7693 }
 0x988   :  { %8956 = vmatmul.mubr.bf16.gmra.mrb[20].mxu0 %v12113_v63 }
 0x989   :  { %8963 = vmatprep.mubr.bf16.mxu0 %v12118_v9 }
 0x990   :  { %8964 = vmatmul.mubr.bf16.gmra.mrb[24].mxu0 %v12116_v28 }
 0x991   :  { %8971 = vmatprep.mubr.bf16.mxu0 %v12121_v45  ;;  %v12191_v45 = vld [vmem:[%s16521_s14 + $0x368] ss:$16 sps:$4 sm:$0xff]  }
 0x998   :  { %8972 = vmatmul.mubr.bf16.gmra.mrb[28].mxu0 %v12119_v26  ;;  %v16273_v26 = vpop.permute.xlu0 %7778 }
 0x999   :  { %8979 = vmatprep.mubr.bf16.mxu0 %v12124_v30 }
 0x9a0   :  { %8980 = vmatmul.mubr.bf16.gmra.mrb[32].mxu0 %v12122_v0  ;;  %v12196_v0 = vld [vmem:[%s16521_s14 + $0x38c] ss:$16 sps:$4 sm:$0xff]  }
 0x9a1   :  { %8987 = vmatprep.mubr.bf16.mxu0 %v12127_v38 }
 0x9a8   :  { %8988 = vmatmul.mubr.bf16.gmra.mrb[36].mxu0 %v12125_v46 }
 0x9a9   :  { %8995 = vmatprep.mubr.bf16.mxu0 %v12130_v7  ;;  %v12208_v7 = vld [vmem:[%s16523_s16 + $0x4] ss:$16 sps:$4 sm:$0xff]  }
 0x9aa   :  { %9476 = vmatprep.mubr.bf16.mxu1 %v12208_v7 }
 0x9b0   :  { %8996 = vmatmul.mubr.bf16.gmra.mrb[40].mxu0 %v12128_v49  ;;  %v16281_v49 = vpop.permute.xlu1 %7783 }
 0x9b1   :  { %9003 = vmatprep.mubr.bf16.mxu0 %v12133_v43 }
 0x9b8   :  { %9004 = vmatmul.mubr.bf16.gmra.mrb[44].mxu0 %v12131_v14 }
 0x9b9   :  { %9011 = vmatprep.mubr.bf16.mxu0 %v12136_v60 }
 0x9c0   :  { %9012 = vmatmul.mubr.bf16.gmra.mrb[48].mxu0 %v12134_v62  ;;  %v7699_v62 = vpop.permute.xlu0 %7698 }
 0x9c1   :  { %9019 = vmatprep.mubr.bf16.mxu0 %v12139_v15 }
 0x9c8   :  { %9020 = vmatmul.mubr.bf16.gmra.mrb[52].mxu0 %v12137_v32 }
 0x9c9   :  { %9027 = vmatprep.mubr.bf16.mxu0 %v12142_v22 }
 0x9d0   :  { %9028 = vmatmul.mubr.bf16.gmra.mrb[56].mxu0 %v12140_v20  ;;  %v12194_v20 = vld [vmem:[%s16521_s14 + $0x388] ss:$16 sps:$4 sm:$0xff]  }
 0x9d1   :  { %9035 = vmatprep.mubr.bf16.mxu0 %v12145_v54  ;;  %v7704_v54 = vpop.permute.xlu1 %7703 }
 0x9d8   :  { %9036 = vmatmul.mubr.bf16.gmra.mrb[60].mxu0 %v12143_v3 }
 0x9d9   :  { %9043 = vmatprep.mubr.bf16.mxu0 %v12148_v34  ;;  %v12199_v34 = vld [vmem:[%s16521_s14 + $0x3ac] ss:$16 sps:$4 sm:$0xff]  }
 0x9e0   :  { %9044 = vmatmul.mubr.bf16.gmra.mrb[64].mxu0 %v12146_v61 }
 0x9e1   :  { %9051 = vmatprep.mubr.bf16.mxu0 %v12151_v41 }
 0x9e8   :  { %9052 = vmatmul.mubr.bf16.gmra.mrb[68].mxu0 %v12149_v51 }
 0x9e9   :  { %9059 = vmatprep.mubr.bf16.mxu0 %v12154_v52 }
 0x9f0   :  { %9060 = vmatmul.mubr.bf16.gmra.mrb[72].mxu0 %v12152_v25  ;;  %v16291_v25 = vpop.permute.xlu0 %7788 }
 0x9f1   :  { %9067 = vmatprep.mubr.bf16.mxu0 %v12157_v35 }
 0x9f8   :  { %9068 = vmatmul.mubr.bf16.gmra.mrb[76].mxu0 %v12155_v11  ;;  %v16295_v11 = vpop.permute.xlu1 %7793 }
 0x9f9   :  { %9075 = vmatprep.mubr.bf16.mxu0 %v12160_v24 }
 0xa00   :  { %9076 = vmatmul.mubr.bf16.gmra.mrb[80].mxu0 %v12158_v16 }
 0xa01   :  { %9083 = vmatprep.mubr.bf16.mxu0 %v12163_v50 }
 0xa08   :  { %9084 = vmatmul.mubr.bf16.gmra.mrb[84].mxu0 %v12161_v33  ;;  %v12197_v33 = vld [vmem:[%s16521_s14 + $0x3a8] ss:$16 sps:$4 sm:$0xff]  }
 0xa09   :  { %9091 = vmatprep.mubr.bf16.mxu0 %v12166_v12 }
 0xa10   :  { %9092 = vmatmul.mubr.bf16.gmra.mrb[88].mxu0 %v12164_v18  ;;  %v12202_v18 = vld [vmem:[%s16521_s14 + $0x3cc] ss:$16 sps:$4 sm:$0xff]  }
 0xa11   :  { %9099 = vmatprep.mubr.bf16.mxu0 %v12169_v2 }
 0xa18   :  { %9100 = vmatmul.mubr.bf16.gmra.mrb[92].mxu0 %v12167_v1 }
 0xa19   :  { %9107 = vmatprep.mubr.bf16.mxu0 %v12172_v40  ;;  %v7709_v40 = vpop.permute.xlu0 %7708 }
 0xa20   :  { %9108 = vmatmul.mubr.bf16.gmra.mrb[96].mxu0 %v12170_v59 }
 0xa21   :  { %9115 = vmatprep.mubr.bf16.mxu0 %v12175_v5 }
 0xa28   :  { %9116 = vmatmul.mubr.bf16.gmra.mrb[100].mxu0 %v12173_v57  ;;  %v7714_v57 = vpop.permute.xlu1 %7713 }
 0xa29   :  { %9123 = vmatprep.mubr.bf16.mxu0 %v12178_v13 }
 0xa30   :  { %9124 = vmatmul.mubr.bf16.gmra.mrb[104].mxu0 %v12176_v8 }
 0xa31   :  { %9131 = vmatprep.mubr.bf16.mxu0 %v12181_v39 }
 0xa38   :  { %9132 = vmatmul.mubr.bf16.gmra.mrb[108].mxu0 %v12179_v27 }
 0xa39   :  { %9139 = vmatprep.mubr.bf16.mxu0 %v12184_v23  ;;  %v12200_v23 = vld [vmem:[%s16521_s14 + $0x3c8] ss:$16 sps:$4 sm:$0xff]  }
 0xa40   :  { %9140 = vmatmul.mubr.bf16.gmra.mrb[112].mxu0 %v12182_v37  ;;  %v12205_v37 = vld [vmem:[%s16521_s14 + $0x3ec] ss:$16 sps:$4 sm:$0xff]  }
 0xa41   :  { %9147 = vmatprep.mubr.bf16.mxu0 %v12187_v44 }
 0xa48   :  { %9148 = vmatmul.mubr.bf16.gmra.mrb[116].mxu0 %v12185_v56  ;;  %v16313_v56 = vpop.permute.xlu1 %7803 }
 0xa49   :  { %9155 = vmatprep.mubr.bf16.mxu0 %v12190_v4 }
 0xa50   :  { %9156 = vmatmul.mubr.bf16.gmra.mrb[120].mxu0 %v12188_v10 }
 0xa51   :  { %9163 = vmatprep.mubr.bf16.mxu0 %v12193_v53 }
 0xa53   :  { %v8949_v63 = vpop.f32.mrb[16].mxu0 }
 0xa54   :  { %v11064_v9 = vadd.f32 %v8949_v63, %v7669_v6  ;;  %v8951_v28 = vpop.f32.mrb[17].mxu0  ;;  %v16308_v6 = vpop.permute.xlu0 %7798 }
 0xa55   :  { %v8952_v30 = vpop.f32.mrb[18].mxu0  ;;  %v7724_v28 = vpop.permute.xlu1 %7723 }
 0xa56   :  { %v11065_v38 = vadd.f32 %v8952_v30, %v7674_v47  ;;  %v8954_v46 = vpop.f32.mrb[19].mxu0  ;;  %v9204_v43 = vmax.f32 %v11064_v9, 0.0  ;;  %v12203_v9 = vld [vmem:[%s16521_s14 + $0x3e8] ss:$16 sps:$4 sm:$0xff]  }
 0xa58   :  { %v9205_v14 = vmax.f32 %v11065_v38, 0.0  ;;  %9164 = vmatmul.mubr.bf16.gmra.mrb[124].mxu0 %v12191_v45  ;;  %v7719_v53 = vpop.permute.xlu0 %7718 }
 0xa59   :  { %9171 = vmatprep.mubr.bf16.mxu0 %v12196_v0 }
 0xa5a   :  { %v16283_v60 = vpack.c.bf16 %v9205_v14, %v9204_v43  ;;  %v16324_v14 = vpop.permute.xlu1 %7813 }
 0xa5b   :  { %v8957_v15 = vpop.f32.mrb[20].mxu0 }
 0xa5c   :  { %v11066_v32 = vadd.f32 %v8957_v15, %v7679_v58  ;;  %v8959_v22 = vpop.f32.mrb[21].mxu0  ;;  %v16320_v7 = vpop.permute.xlu0 %7808 }
 0xa5d   :  { %v8960_v3 = vpop.f32.mrb[22].mxu0 }
 0xa5e   :  { %v11067_v61 = vadd.f32 %v8960_v3, %v7684_v36  ;;  %v8962_v41 = vpop.f32.mrb[23].mxu0  ;;  %v9206_v51 = vmax.f32 %v11066_v32, 0.0 }
 0xa5f   :  { %v7734_v41 = vpop.permute.xlu1 %7733 }
 0xa60   :  { %v9207_v52 = vmax.f32 %v11067_v61, 0.0  ;;  %9172 = vmatmul.mubr.bf16.gmra.mrb[128].mxu0 %v12194_v20  ;;  %v7729_v3 = vpop.permute.xlu0 %7728 }
 0xa61   :  { %9179 = vmatprep.mubr.bf16.mxu0 %v12199_v34 }
 0xa62   :  { %v16293_v35 = vpack.c.bf16 %v9207_v52, %v9206_v51 }
 0xa63   :  { %v8965_v24 = vpop.f32.mrb[24].mxu0 }
 0xa64   :  { %v11068_v16 = vadd.f32 %v8965_v24, %v7689_v19  ;;  %v8967_v50 = vpop.f32.mrb[25].mxu0 }
 0xa65   :  { %v8968_v12 = vpop.f32.mrb[26].mxu0  ;;  %v16328_v50 = vpop.permute.xlu0 %7818 }
 0xa66   :  { %v11069_v2 = vadd.f32 %v8968_v12, %v7694_v17  ;;  %v8970_v1 = vpop.f32.mrb[27].mxu0  ;;  %v9208_v59 = vmax.f32 %v11068_v16, 0.0 }
 0xa68   :  { %v9209_v5 = vmax.f32 %v11069_v2, 0.0  ;;  %9180 = vmatmul.mubr.bf16.gmra.mrb[132].mxu0 %v12197_v33  ;;  %v16330_v2 = vpop.permute.xlu1 %7823 }
 0xa69   :  { %9187 = vmatprep.mubr.bf16.mxu0 %v12202_v18 }
 0xa6a   :  { %v16303_v13 = vpack.c.bf16 %v9209_v5, %v9208_v59  ;;  %v7739_v5 = vpop.permute.xlu0 %7738 }
 0xa6b   :  { %v8973_v8 = vpop.f32.mrb[28].mxu0 }
 0xa6c   :  { %v11070_v39 = vadd.f32 %v8973_v8, %v7699_v62  ;;  %v8975_v27 = vpop.f32.mrb[29].mxu0 }
 0xa6d   :  { %v8976_v47 = vpop.f32.mrb[30].mxu0  ;;  %v7744_v27 = vpop.permute.xlu1 %7743 }
 0xa6e   :  { %v11071_v44 = vadd.f32 %v8976_v47, %v7704_v54  ;;  %v8978_v58 = vpop.f32.mrb[31].mxu0  ;;  %v9210_v36 = vmax.f32 %v11070_v39, 0.0 }
 0xa70   :  { %v9211_v4 = vmax.f32 %v11071_v44, 0.0  ;;  %9188 = vmatmul.mubr.bf16.gmra.mrb[136].mxu0 %v12200_v23 }
 0xa71   :  { %9195 = vmatprep.mubr.bf16.mxu0 %v12205_v37 }
 0xa72   :  { %v16315_v10 = vpack.c.bf16 %v9211_v4, %v9210_v36 }
 0xa73   :  { %v8981_v19 = vpop.f32.mrb[32].mxu0 }
 0xa74   :  { %v11072_v17 = vadd.f32 %v8981_v19, %v7709_v40  ;;  %v8983_v63 = vpop.f32.mrb[33].mxu0 }
 0xa75   :  { %v8984_v45 = vpop.f32.mrb[34].mxu0 }
 0xa76   :  { %v11073_v30 = vadd.f32 %v8984_v45, %v7714_v57  ;;  %v8986_v0 = vpop.f32.mrb[35].mxu0  ;;  %v9212_v38 = vmax.f32 %v11072_v17, 0.0 }
 0xa78   :  { %v9213_v46 = vmax.f32 %v11073_v30, 0.0  ;;  %9196 = vmatmul.mubr.bf16.gmra.mrb[140].mxu0 %v12203_v9 }
 0xa7a   :  { %v16322_v43 = vpack.c.bf16 %v9213_v46, %v9212_v38 }
 0xa7b   :  { %v8989_v62 = vpop.f32.mrb[36].mxu0 }
 0xa7c   :  { %v11074_v15 = vadd.f32 %v8989_v62, %v7719_v53  ;;  %v8991_v32 = vpop.f32.mrb[37].mxu0 }
 0xa7d   :  { %v8992_v22 = vpop.f32.mrb[38].mxu0 }
 0xa7e   :  { %v11075_v20 = vadd.f32 %v8992_v22, %v7724_v28  ;;  %v8994_v54 = vpop.f32.mrb[39].mxu0  ;;  %v9214_v34 = vmax.f32 %v11074_v15, 0.0 }
 0xa80   :  { %v9215_v61 = vmax.f32 %v11075_v20, 0.0 }
 0xa82   :  { %v16326_v51 = vpack.c.bf16 %v9215_v61, %v9214_v34 }
 0xa83   :  { %v8997_v52 = vpop.f32.mrb[40].mxu0 }
 0xa84   :  { %v11076_v24 = vadd.f32 %v8997_v52, %v7729_v3  ;;  %v8999_v16 = vpop.f32.mrb[41].mxu0 }
 0xa85   :  { %v9000_v33 = vpop.f32.mrb[42].mxu0 }
 0xa86   :  { %v11077_v12 = vadd.f32 %v9000_v33, %v7734_v41  ;;  %v9002_v18 = vpop.f32.mrb[43].mxu0  ;;  %v9216_v1 = vmax.f32 %v11076_v24, 0.0 }
 0xa88   :  { %v9217_v40 = vmax.f32 %v11077_v12, 0.0 }
 0xa8a   :  { %v16332_v59 = vpack.c.bf16 %v9217_v40, %v9216_v1  ;;  %v16349_v40 = vpop.permute.xlu1 %7913 }
 0xa8b   :  { %v9005_v57 = vpop.f32.mrb[44].mxu0 }
 0xa8c   :  { %v11078_v8 = vadd.f32 %v9005_v57, %v7739_v5  ;;  %v9007_v39 = vpop.f32.mrb[45].mxu0 }
 0xa8d   :  { %v9008_v23 = vpop.f32.mrb[46].mxu0 }
 0xa8e   :  { %v11079_v47 = vadd.f32 %v9008_v23, %v7744_v27  ;;  %v9010_v37 = vpop.f32.mrb[47].mxu0  ;;  %v9218_v44 = vmax.f32 %v11078_v8, 0.0 }
 0xa90   :  { %v9219_v58 = vmax.f32 %v11079_v47, 0.0  ;;  %v7834_v47 = vpop.permute.xlu1 %7833 }
 0xa92   :  { %v16334_v36 = vpack.c.bf16 %v9219_v58, %v9218_v44 }
 0xa93   :  { %v9013_v4 = vpop.f32.mrb[48].mxu0 }
 0xa94   :  { %v11080_v53 = vadd.f32 %v9013_v4, %v16234_v55  ;;  %v9015_v19 = vpop.f32.mrb[49].mxu0 }
 0xa95   :  { %v9016_v17 = vpop.f32.mrb[50].mxu0 }
 0xa96   :  { %v11081_v63 = vadd.f32 %v9016_v17, %v16236_v42  ;;  %v9018_v9 = vpop.f32.mrb[51].mxu0  ;;  %v9220_v28 = vmax.f32 %v11080_v53, 0.0 }
 0xa98   :  { %v9221_v45 = vmax.f32 %v11081_v63, 0.0 }
 0xa9a   :  { %v9292_v30 = vpack.c.bf16 %v9221_v45, %v9220_v28 }
 0xa9b   :  { %v9021_v0 = vpop.f32.mrb[52].mxu0 }
 0xa9c   :  { %v11082_v38 = vadd.f32 %v9021_v0, %v16247_v21  ;;  %v9023_v46 = vpop.f32.mrb[53].mxu0  ;;  %10648 = vmatprep.subr.bf16.mxu1 %v9292_v30 }
 0xa9d   :  { %v9024_v62 = vpop.f32.mrb[54].mxu0  ;;  %10649 = vmatpush3.bf16.msra.mxu1 %v16283_v60 }
 0xa9e   :  { %v11083_v15 = vadd.f32 %v9024_v62, %v16252_v29  ;;  %v9026_v32 = vpop.f32.mrb[55].mxu0  ;;  %v9222_v55 = vmax.f32 %v11082_v38, 0.0 }
 0xaa0   :  { %v9223_v22 = vmax.f32 %v11083_v15, 0.0 }
 0xaa2   :  { %v9293_v20 = vpack.c.bf16 %v9223_v22, %v9222_v55 }
 0xaa3   :  { %v9029_v54 = vpop.f32.mrb[56].mxu0 }
 0xaa4   :  { %v11084_v42 = vadd.f32 %v9029_v54, %v16260_v31  ;;  %v9031_v3 = vpop.f32.mrb[57].mxu0  ;;  %10650 = vmatprep.subr.bf16.mxu1 %v9293_v20 }
 0xaa5   :  { %v9032_v34 = vpop.f32.mrb[58].mxu0  ;;  %10651 = vmatpush3.bf16.msra.mxu1 %v16293_v35  ;;  %v16347_v35 = vpop.permute.xlu0 %7908 }
 0xaa6   :  { %v11085_v21 = vadd.f32 %v9032_v34, %v16262_v48  ;;  %v9034_v61 = vpop.f32.mrb[59].mxu0  ;;  %v9224_v41 = vmax.f32 %v11084_v42, 0.0 }
 0xaa8   :  { %v9225_v52 = vmax.f32 %v11085_v21, 0.0 }
 0xaaa   :  { %v9294_v60 = vpack.c.bf16 %v9225_v52, %v9224_v41 }
 0xaab   :  { %v9037_v24 = vpop.f32.mrb[60].mxu0 }
 0xaac   :  { %v11086_v29 = vadd.f32 %v9037_v24, %v16273_v26  ;;  %v9039_v16 = vpop.f32.mrb[61].mxu0  ;;  %10652 = vmatprep.subr.bf16.mxu1 %v9294_v60 }
 0xaad   :  { %v9040_v33 = vpop.f32.mrb[62].mxu0  ;;  %10653 = vmatpush3.bf16.msra.mxu1 %v16303_v13 }
 0xaae   :  { %v11087_v31 = vadd.f32 %v9040_v33, %v16281_v49  ;;  %v9042_v12 = vpop.f32.mrb[63].mxu0  ;;  %v9226_v18 = vmax.f32 %v11086_v29, 0.0  ;;  %v7829_v49 = vpop.permute.xlu0 %7828 }
 0xab0   :  { %v9227_v1 = vmax.f32 %v11087_v31, 0.0 }
 0xab2   :  { %v9295_v48 = vpack.c.bf16 %v9227_v1, %v9226_v18  ;;  %v16355_v53 = vpop.permute.xlu0 %7918 }
 0xab3   :  { %v9045_v5 = vpop.f32.mrb[64].mxu0 }
 0xab4   :  { %v11088_v57 = vadd.f32 %v9045_v5, %v16291_v25  ;;  %v9047_v8 = vpop.f32.mrb[65].mxu0  ;;  %10654 = vmatprep.subr.bf16.mxu1 %v9295_v48 }
 0xab5   :  { %v9048_v26 = vpop.f32.mrb[66].mxu0  ;;  %10655 = vmatpush3.bf16.msra.mxu1 %v16315_v10 }
 0xab6   :  { %v11089_v13 = vadd.f32 %v9048_v26, %v16295_v11  ;;  %v9050_v39 = vpop.f32.mrb[67].mxu0  ;;  %v9228_v27 = vmax.f32 %v11088_v57, 0.0  ;;  %v16359_v11 = vpop.permute.xlu1 %7923 }
 0xab7   :  { %v7839_v28 = vpop.permute.xlu0 %7838 }
 0xab8   :  { %v9229_v23 = vmax.f32 %v11089_v13, 0.0  ;;  %v12214_v13 = vld [vmem:[%s16523_s16 + $0x44] ss:$16 sps:$4 sm:$0xff]  }
 0xaba   :  { %v9296_v37 = vpack.c.bf16 %v9229_v23, %v9228_v27  ;;  %v7844_v0 = vpop.permute.xlu1 %7843 }
 0xabb   :  { %v9053_v44 = vpop.f32.mrb[68].mxu0  ;;  %v16364_v15 = vpop.permute.xlu0 %7928 }
 0xabc   :  { %v11090_v58 = vadd.f32 %v9053_v44, %v16308_v6  ;;  %v9055_v4 = vpop.f32.mrb[69].mxu0  ;;  %10656 = vmatprep.subr.bf16.mxu1 %v9296_v37 }
 0xabd   :  { %v9056_v25 = vpop.f32.mrb[70].mxu0  ;;  %10657 = vmatpush3.bf16.msra.mxu1 %v16322_v43 }
 0xabe   :  { %v11091_v10 = vadd.f32 %v9056_v25, %v16313_v56  ;;  %v9058_v19 = vpop.f32.mrb[71].mxu0  ;;  %v9230_v17 = vmax.f32 %v11090_v58, 0.0  ;;  %v16366_v55 = vpop.permute.xlu1 %7933 }
 0xac0   :  { %v9231_v63 = vmax.f32 %v11091_v10, 0.0  ;;  %v12212_v10 = vld [vmem:[%s16523_s16 + $0x40] ss:$16 sps:$4 sm:$0xff]  }
 0xac2   :  { %v9297_v9 = vpack.c.bf16 %v9231_v63, %v9230_v17  ;;  %v7854_v21 = vpop.permute.xlu1 %7853  ;;  %v12217_v17 = vld [vmem:[%s16523_s16 + $0x64] ss:$16 sps:$4 sm:$0xff]  }
 0xac3   :  { %v9061_v45 = vpop.f32.mrb[72].mxu0 }
 0xac4   :  { %v11092_v30 = vadd.f32 %v9061_v45, %v16320_v7  ;;  %v9063_v6 = vpop.f32.mrb[73].mxu0  ;;  %10658 = vmatprep.subr.bf16.mxu1 %v9297_v9 }
 0xac5   :  { %v9064_v38 = vpop.f32.mrb[74].mxu0  ;;  %10659 = vmatpush3.bf16.msra.mxu1 %v16326_v51 }
 0xac6   :  { %v11093_v43 = vadd.f32 %v9064_v38, %v16324_v14  ;;  %v9066_v46 = vpop.f32.mrb[75].mxu0  ;;  %v9232_v56 = vmax.f32 %v11092_v30, 0.0  ;;  %v7849_v14 = vpop.permute.xlu0 %7848 }
 0xac7   :  { %v16380_v33 = vpop.permute.xlu1 %7943 }
 0xac8   :  { %v9233_v62 = vmax.f32 %v11093_v43, 0.0 }
 0xaca   :  { %v9298_v32 = vpack.c.bf16 %v9233_v62, %v9232_v56  ;;  %v16374_v24 = vpop.permute.xlu0 %7938  ;;  %v12215_v56 = vld [vmem:[%s16523_s16 + $0x60] ss:$16 sps:$4 sm:$0xff]  }
 0xacb   :  { %v9069_v22 = vpop.f32.mrb[76].mxu0  ;;  %v7864_v8 = vpop.permute.xlu1 %7863 }
 0xacc   :  { %v11094_v20 = vadd.f32 %v9069_v22, %v16328_v50  ;;  %v9071_v7 = vpop.f32.mrb[77].mxu0  ;;  %10660 = vmatprep.subr.bf16.mxu1 %v9298_v32  ;;  %v12206_v50 = vld [vmem:[%s16523_s16] ss:$16 sps:$4 sm:$0xff]   ;;  %v12220_v22 = vld [vmem:[%s16523_s16 + $0xc] ss:$16 sps:$4 sm:$0xff]  }
 0xacd   :  { %v9072_v54 = vpop.f32.mrb[78].mxu0  ;;  %10661 = vmatpush3.bf16.msra.mxu1 %v16332_v59 }
 0xace   :  { %v11095_v51 = vadd.f32 %v9072_v54, %v16330_v2  ;;  %v9074_v42 = vpop.f32.mrb[79].mxu0  ;;  %v9234_v3 = vmax.f32 %v11094_v20, 0.0  ;;  %v12211_v2 = vld [vmem:[%s16523_s16 + $0x24] ss:$16 sps:$4 sm:$0xff]   ;;  %v7859_v1 = vpop.permute.xlu0 %7858 }
 0xacf   :  { %v16394_v44 = vpop.permute.xlu1 %7953 }
 0xad0   :  { %v9235_v34 = vmax.f32 %v11095_v51, 0.0 }
 0xad2   :  { %v9299_v61 = vpack.c.bf16 %v9235_v34, %v9234_v3 }
 0xad3   :  { %v9077_v41 = vpop.f32.mrb[80].mxu0  ;;  %v7874_v6 = vpop.permute.xlu1 %7873 }
 0xad4   :  { %v11096_v52 = vadd.f32 %v9077_v41, %v7829_v49  ;;  %v9079_v60 = vpop.f32.mrb[81].mxu0  ;;  %10662 = vmatprep.subr.bf16.mxu1 %v9299_v61 }
 0xad5   :  { %v9080_v29 = vpop.f32.mrb[82].mxu0  ;;  %10663 = vmatpush3.bf16.msra.mxu1 %v16334_v36  ;;  %v12209_v36 = vld [vmem:[%s16523_s16 + $0x20] ss:$16 sps:$4 sm:$0xff]  }
 0xad6   :  { %v11097_v59 = vadd.f32 %v9080_v29, %v7834_v47  ;;  %v9082_v16 = vpop.f32.mrb[83].mxu0  ;;  %v9236_v31 = vmax.f32 %v11096_v52, 0.0  ;;  %v16390_v47 = vpop.permute.xlu0 %7948 }
 0xad7   :  { %v16412_v54 = vpop.permute.xlu1 %7963 }
 0xad8   :  { %v9237_v12 = vmax.f32 %v11097_v59, 0.0  ;;  %9477 = vmatmul.mubr.bf16.vlgmr.msra.gmra.mrb[160].mxu1 %v12206_v50 }
 0xad9   :  { %9484 = vmatprep.mubr.bf16.mxu1 %v12211_v2 }
 0xada   :  { %v16382_v18 = vpack.c.bf16 %v9237_v12, %v9236_v31 }
 0xadb   :  { %v9085_v48 = vpop.f32.mrb[84].mxu0  ;;  %v7884_v41 = vpop.permute.xlu1 %7883 }
 0xadc   :  { %v11098_v5 = vadd.f32 %v9085_v48, %v7839_v28  ;;  %v9087_v57 = vpop.f32.mrb[85].mxu0  ;;  %v7869_v28 = vpop.permute.xlu0 %7868 }
 0xadd   :  { %v9088_v26 = vpop.f32.mrb[86].mxu0 }
 0xade   :  { %v11099_v39 = vadd.f32 %v9088_v26, %v7844_v0  ;;  %v9090_v49 = vpop.f32.mrb[87].mxu0  ;;  %v9238_v27 = vmax.f32 %v11098_v5, 0.0 }
 0xadf   :  { %v16420_v31 = vpop.permute.xlu1 %7973 }
 0xae0   :  { %v9239_v23 = vmax.f32 %v11099_v39, 0.0  ;;  %9485 = vmatmul.mubr.bf16.gmra.mrb[164].mxu1 %v12209_v36  ;;  %v16407_v62 = vpop.permute.xlu0 %7958 }
 0xae1   :  { %9492 = vmatprep.mubr.bf16.mxu1 %v12214_v13 }
 0xae2   :  { %v16392_v37 = vpack.c.bf16 %v9239_v23, %v9238_v27 }
 0xae3   :  { %v9093_v58 = vpop.f32.mrb[88].mxu0  ;;  %v7894_v39 = vpop.permute.xlu1 %7893 }
 0xae4   :  { %v11100_v4 = vadd.f32 %v9093_v58, %v7849_v14  ;;  %v9095_v25 = vpop.f32.mrb[89].mxu0  ;;  %v7879_v3 = vpop.permute.xlu0 %7878 }
 0xae5   :  { %v9096_v19 = vpop.f32.mrb[90].mxu0 }
 0xae6   :  { %v11101_v63 = vadd.f32 %v9096_v19, %v7854_v21  ;;  %v9098_v9 = vpop.f32.mrb[91].mxu0  ;;  %v9240_v45 = vmax.f32 %v11100_v4, 0.0 }
 0xae8   :  { %v9241_v30 = vmax.f32 %v11101_v63, 0.0  ;;  %9493 = vmatmul.mubr.bf16.gmra.mrb[168].mxu1 %v12212_v10  ;;  %v16416_v59 = vpop.permute.xlu0 %7968 }
 0xae9   :  { %9500 = vmatprep.mubr.bf16.mxu1 %v12217_v17  ;;  %v16426_v17 = vpop.permute.xlu1 %7983 }
 0xaea   :  { %v16402_v0 = vpack.c.bf16 %v9241_v30, %v9240_v45 }
 0xaeb   :  { %v9101_v38 = vpop.f32.mrb[92].mxu0 }
 0xaec   :  { %v11102_v43 = vadd.f32 %v9101_v38, %v7859_v1  ;;  %v9103_v46 = vpop.f32.mrb[93].mxu0 }
 0xaed   :  { %v9104_v32 = vpop.f32.mrb[94].mxu0 }
 0xaee   :  { %v11103_v20 = vadd.f32 %v9104_v32, %v7864_v8  ;;  %v9106_v7 = vpop.f32.mrb[95].mxu0  ;;  %v9242_v51 = vmax.f32 %v11102_v43, 0.0  ;;  %v7889_v8 = vpop.permute.xlu0 %7888 }
 0xaef   :  { %v7904_v43 = vpop.permute.xlu1 %7903 }
 0xaf0   :  { %v9243_v42 = vmax.f32 %v11103_v20, 0.0  ;;  %9501 = vmatmul.mubr.bf16.gmra.mrb[172].mxu1 %v12215_v56 }
 0xaf1   :  { %9541 = vmatprep.mubr.bf16.mxu1 %v12220_v22 }
 0xaf2   :  { %v16414_v14 = vpack.c.bf16 %v9243_v42, %v9242_v51  ;;  %v16424_v4 = vpop.permute.xlu0 %7978 }
 0xaf3   :  { %v9109_v34 = vpop.f32.mrb[96].mxu0 }
 0xaf4   :  { %v11104_v21 = vadd.f32 %v9109_v34, %v7869_v28  ;;  %v9111_v61 = vpop.f32.mrb[97].mxu0 }
 0xaf5   :  { %v9112_v52 = vpop.f32.mrb[98].mxu0 }
 0xaf6   :  { %v11105_v60 = vadd.f32 %v9112_v52, %v7874_v6  ;;  %v9114_v50 = vpop.f32.mrb[99].mxu0  ;;  %v9244_v29 = vmax.f32 %v11104_v21, 0.0  ;;  %v7899_v45 = vpop.permute.xlu0 %7898 }
 0xaf8   :  { %v9245_v2 = vmax.f32 %v11105_v60, 0.0 }
 0xafa   :  { %v16418_v16 = vpack.c.bf16 %v9245_v2, %v9244_v29 }
 0xafb   :  { %v9117_v12 = vpop.f32.mrb[100].mxu0 }
 0xafc   :  { %v11106_v1 = vadd.f32 %v9117_v12, %v7879_v3  ;;  %v9119_v48 = vpop.f32.mrb[101].mxu0 }
 0xafd   :  { %v9120_v5 = vpop.f32.mrb[102].mxu0 }
 0xafe   :  { %v11107_v57 = vadd.f32 %v9120_v5, %v7884_v41  ;;  %v9122_v36 = vpop.f32.mrb[103].mxu0  ;;  %v9246_v26 = vmax.f32 %v11106_v1, 0.0 }
 0xb00   :  { %v9247_v13 = vmax.f32 %v11107_v57, 0.0 }
 0xb02   :  { %v16422_v49 = vpack.c.bf16 %v9247_v13, %v9246_v26 }
 0xb03   :  { %v9125_v27 = vpop.f32.mrb[104].mxu0 }
 0xb04   :  { %v11108_v23 = vadd.f32 %v9125_v27, %v7889_v8  ;;  %v9127_v58 = vpop.f32.mrb[105].mxu0 }
 0xb05   :  { %v9128_v25 = vpop.f32.mrb[106].mxu0 }
 0xb06   :  { %v11109_v10 = vadd.f32 %v9128_v25, %v7894_v39  ;;  %v9130_v19 = vpop.f32.mrb[107].mxu0  ;;  %v9248_v63 = vmax.f32 %v11108_v23, 0.0 }
 0xb08   :  { %v9249_v9 = vmax.f32 %v11109_v10, 0.0 }
 0xb0a   :  { %v16428_v28 = vpack.c.bf16 %v9249_v9, %v9248_v63 }
 0xb0b   :  { %v9133_v30 = vpop.f32.mrb[108].mxu0 }
 0xb0c   :  { %v11110_v6 = vadd.f32 %v9133_v30, %v7899_v45  ;;  %v9135_v38 = vpop.f32.mrb[109].mxu0 }
 0xb0d   :  { %v9136_v46 = vpop.f32.mrb[110].mxu0 }
 0xb0e   :  { %v11111_v56 = vadd.f32 %v9136_v46, %v7904_v43  ;;  %v9138_v32 = vpop.f32.mrb[111].mxu0  ;;  %v9250_v22 = vmax.f32 %v11110_v6, 0.0 }
 0xb10   :  { %v9251_v20 = vmax.f32 %v11111_v56, 0.0 }
 0xb12   :  { %v16430_v7 = vpack.c.bf16 %v9251_v20, %v9250_v22 }
 0xb13   :  { %v9141_v51 = vpop.f32.mrb[112].mxu0 }
 0xb14   :  { %v11112_v42 = vadd.f32 %v9141_v51, %v16347_v35  ;;  %v9143_v3 = vpop.f32.mrb[113].mxu0 }
 0xb15   :  { %v9144_v34 = vpop.f32.mrb[114].mxu0 }
 0xb16   :  { %v11113_v21 = vadd.f32 %v9144_v34, %v16349_v40  ;;  %v9146_v61 = vpop.f32.mrb[115].mxu0  ;;  %v9252_v41 = vmax.f32 %v11112_v42, 0.0 }
 0xb18   :  { %v9253_v52 = vmax.f32 %v11113_v21, 0.0 }
 0xb1a   :  { %v9308_v60 = vpack.c.bf16 %v9253_v52, %v9252_v41 }
 0xb1b   :  { %v9149_v50 = vpop.f32.mrb[116].mxu0 }
 0xb1c   :  { %v11114_v29 = vadd.f32 %v9149_v50, %v16355_v53  ;;  %v9151_v2 = vpop.f32.mrb[117].mxu0  ;;  %10688 = vmatprep.subr.bf16.mxu1 %v9308_v60 }
 0xb1d   :  { %v9152_v12 = vpop.f32.mrb[118].mxu0  ;;  %10689 = vmatpush3.bf16.msra.mxu1 %v16382_v18 }
 0xb1e   :  { %v11115_v1 = vadd.f32 %v9152_v12, %v16359_v11  ;;  %v9154_v48 = vpop.f32.mrb[119].mxu0  ;;  %v9254_v35 = vmax.f32 %v11114_v29, 0.0 }
 0xb1f   :  { %v12227_v48 = vld [vmem:[%s16523_s16 + $0x68] ss:$16 sps:$4 sm:$0xff]  }
 0xb20   :  { %v9255_v5 = vmax.f32 %v11115_v1, 0.0  ;;  %v12229_v1 = vld [vmem:[%s16523_s16 + $0x6c] ss:$16 sps:$4 sm:$0xff]  }
 0xb22   :  { %v9309_v57 = vpack.c.bf16 %v9255_v5, %v9254_v35 }
 0xb23   :  { %v9157_v36 = vpop.f32.mrb[120].mxu0 }
 0xb24   :  { %v11116_v40 = vadd.f32 %v9157_v36, %v16364_v15  ;;  %v9159_v8 = vpop.f32.mrb[121].mxu0  ;;  %10690 = vmatprep.subr.bf16.mxu1 %v9309_v57 }
 0xb25   :  { %v9160_v26 = vpop.f32.mrb[122].mxu0  ;;  %10691 = vmatpush3.bf16.msra.mxu1 %v16392_v37 }
 0xb26   :  { %v11117_v53 = vadd.f32 %v9160_v26, %v16366_v55  ;;  %v9162_v13 = vpop.f32.mrb[123].mxu0  ;;  %v9256_v39 = vmax.f32 %v11116_v40, 0.0 }
 0xb28   :  { %v9257_v27 = vmax.f32 %v11117_v53, 0.0 }
 0xb2a   :  { %v9310_v18 = vpack.c.bf16 %v9257_v27, %v9256_v39 }
 0xb2b   :  { %v9165_v23 = vpop.f32.mrb[124].mxu0 }
 0xb2c   :  { %v11118_v11 = vadd.f32 %v9165_v23, %v16374_v24  ;;  %v9167_v58 = vpop.f32.mrb[125].mxu0  ;;  %10692 = vmatprep.subr.bf16.mxu1 %v9310_v18 }
 0xb2d   :  { %v9168_v25 = vpop.f32.mrb[126].mxu0  ;;  %10693 = vmatpush3.bf16.msra.mxu1 %v16402_v0 }
 0xb2e   :  { %v11119_v15 = vadd.f32 %v9168_v25, %v16380_v33  ;;  %v9170_v10 = vpop.f32.mrb[127].mxu0  ;;  %v9258_v19 = vmax.f32 %v11118_v11, 0.0 }
 0xb30   :  { %v9259_v63 = vmax.f32 %v11119_v15, 0.0 }
 0xb32   :  { %v9311_v37 = vpack.c.bf16 %v9259_v63, %v9258_v19 }
 0xb33   :  { %v9173_v9 = vpop.f32.mrb[128].mxu0 }
 0xb34   :  { %v11120_v55 = vadd.f32 %v9173_v9, %v16390_v47  ;;  %v9175_v45 = vpop.f32.mrb[129].mxu0  ;;  %10694 = vmatprep.subr.bf16.mxu1 %v9311_v37 }
 0xb35   :  { %v9176_v30 = vpop.f32.mrb[130].mxu0  ;;  %10695 = vmatpush3.bf16.msra.mxu1 %v16414_v14 }
 0xb36   :  { %v11121_v24 = vadd.f32 %v9176_v30, %v16394_v44  ;;  %v9178_v6 = vpop.f32.mrb[131].mxu0  ;;  %v9260_v38 = vmax.f32 %v11120_v55, 0.0 }
 0xb38   :  { %v9261_v43 = vmax.f32 %v11121_v24, 0.0  ;;  %v9327_v24 = vpop.permute.xlu0 %9326 }
 0xb3a   :  { %v9312_v0 = vpack.c.bf16 %v9261_v43, %v9260_v38 }
 0xb3b   :  { %v9181_v46 = vpop.f32.mrb[132].mxu0 }
 0xb3c   :  { %v11122_v33 = vadd.f32 %v9181_v46, %v16407_v62  ;;  %v9183_v56 = vpop.f32.mrb[133].mxu0  ;;  %10696 = vmatprep.subr.bf16.mxu1 %v9312_v0  ;;  %v9332_v46 = vpop.permute.xlu1 %9331 }
 0xb3d   :  { %v9184_v32 = vpop.f32.mrb[134].mxu0  ;;  %10697 = vmatpush3.bf16.msra.mxu1 %v16418_v16 }
 0xb3e   :  { %v11123_v47 = vadd.f32 %v9184_v32, %v16412_v54  ;;  %v9186_v22 = vpop.f32.mrb[135].mxu0  ;;  %v9262_v20 = vmax.f32 %v11122_v33, 0.0 }
 0xb40   :  { %v9263_v51 = vmax.f32 %v11123_v47, 0.0 }
 0xb42   :  { %v9313_v14 = vpack.c.bf16 %v9263_v51, %v9262_v20 }
 0xb43   :  { %v9189_v42 = vpop.f32.mrb[136].mxu0 }
 0xb44   :  { %v11124_v44 = vadd.f32 %v9189_v42, %v16416_v59  ;;  %v9191_v3 = vpop.f32.mrb[137].mxu0  ;;  %10698 = vmatprep.subr.bf16.mxu1 %v9313_v14 }
 0xb45   :  { %v9192_v34 = vpop.f32.mrb[138].mxu0  ;;  %10699 = vmatpush3.bf16.msra.mxu1 %v16422_v49 }
 0xb46   :  { %v11125_v62 = vadd.f32 %v9192_v34, %v16420_v31  ;;  %v9194_v21 = vpop.f32.mrb[139].mxu0  ;;  %v9264_v61 = vmax.f32 %v11124_v44, 0.0  ;;  %v12218_v31 = vld [vmem:[%s16523_s16 + $0x8] ss:$16 sps:$4 sm:$0xff]   ;;  %v9337_v44 = vpop.permute.xlu0 %9336 }
 0xb48   :  { %v9265_v41 = vmax.f32 %v11125_v62, 0.0 }
 0xb4a   :  { %v9314_v16 = vpack.c.bf16 %v9265_v41, %v9264_v61  ;;  %v9342_v41 = vpop.permute.xlu1 %9341 }
 0xb4b   :  { %v9197_v52 = vpop.f32.mrb[140].mxu0 }
 0xb4c   :  { %v11126_v54 = vadd.f32 %v9197_v52, %v16424_v4  ;;  %v9199_v60 = vpop.f32.mrb[141].mxu0  ;;  %10700 = vmatprep.subr.bf16.mxu1 %v9314_v16  ;;  %v12223_v4 = vld [vmem:[%s16523_s16 + $0x2c] ss:$16 sps:$4 sm:$0xff]  }
 0xb4d   :  { %v9200_v50 = vpop.f32.mrb[142].mxu0  ;;  %10701 = vmatpush3.bf16.msra.mxu1 %v16428_v28  ;;  %v12226_v28 = vld [vmem:[%s16523_s16 + $0x4c] ss:$16 sps:$4 sm:$0xff]  }
 0xb4e   :  { %v11127_v59 = vadd.f32 %v9200_v50, %v16426_v17  ;;  %v9202_v29 = vpop.f32.mrb[143].mxu0  ;;  %v9266_v2 = vmax.f32 %v11126_v54, 0.0  ;;  %v12221_v17 = vld [vmem:[%s16523_s16 + $0x28] ss:$16 sps:$4 sm:$0xff]  }
 0xb50   :  { %v9267_v12 = vmax.f32 %v11127_v59, 0.0 }
 0xb52   :  { %v9315_v49 = vpack.c.bf16 %v9267_v12, %v9266_v2 }
 0xb54   :  { %10702 = vmatprep.subr.bf16.mxu1 %v9315_v49  ;;  %v9347_v49 = vpop.permute.xlu0 %9346 }
 0xb55   :  { %10703 = vmatpush3.bf16.msra.mxu1 %v16430_v7  ;;  %v12224_v7 = vld [vmem:[%s16523_s16 + $0x48] ss:$16 sps:$4 sm:$0xff]  }
 0xb58   :  { %9542 = vmatmul.mubr.bf16.vlgmr.msra.gmra.mrb[176].mxu1 %v12218_v31 }
 0xb59   :  { %9549 = vmatprep.mubr.bf16.mxu1 %v12223_v4 }
 0xb60   :  { %9550 = vmatmul.mubr.bf16.gmra.mrb[180].mxu1 %v12221_v17 }
 0xb61   :  { %9557 = vmatprep.mubr.bf16.mxu1 %v12226_v28 }
 0xb68   :  { %9558 = vmatmul.mubr.bf16.gmra.mrb[184].mxu1 %v12224_v7 }
 0xb69   :  { %9565 = vmatprep.mubr.bf16.mxu1 %v12229_v1  ;;  %v9352_v1 = vpop.permute.xlu1 %9351 }
 0xb70   :  { %9566 = vmatmul.mubr.bf16.gmra.mrb[188].mxu1 %v12227_v48 }
 0xbab   :  { %v10664_v35 = vpop.f32.mrb[160].mxu1 }
 0xbac   :  { %v10665_v5 = vpop.f32.mrb[161].mxu1 }
 0xbad   :  { %v10666_v57 = vadd.f32 %v10665_v5, %v10664_v35  ;;  %v10667_v36 = vpop.f32.mrb[162].mxu1 }
 0xbae   :  { %v10668_v40 = vpop.f32.mrb[163].mxu1 }
 0xbaf   :  { %v10669_v8 = vadd.f32 %v10668_v40, %v10667_v36  ;;  %v9479_v38 = vadd.f32 %v10666_v57, %v9327_v24 }
 0xbb1   :  { %v9482_v56 = vadd.f32 %v10669_v8, %v9332_v46 }
 0xbb3   :  { %v10670_v26 = vpop.f32.mrb[164].mxu1 }
 0xbb4   :  { %v10671_v53 = vpop.f32.mrb[165].mxu1 }
 0xbb5   :  { %v10672_v13 = vadd.f32 %v10671_v53, %v10670_v26  ;;  %v10673_v39 = vpop.f32.mrb[166].mxu1 }
 0xbb6   :  { %v10674_v27 = vpop.f32.mrb[167].mxu1 }
 0xbb7   :  { %v10675_v18 = vadd.f32 %v10674_v27, %v10673_v39  ;;  %v9487_v34 = vadd.f32 %v10672_v13, %v9337_v44 }
 0xbb9   :  { %v9490_v52 = vadd.f32 %v10675_v18, %v9342_v41 }
 0xbbb   :  { %v10676_v23 = vpop.f32.mrb[168].mxu1 }
 0xbbc   :  { %v10677_v11 = vpop.f32.mrb[169].mxu1 }
 0xbbd   :  { %v10678_v58 = vadd.f32 %v10677_v11, %v10676_v23  ;;  %v10679_v25 = vpop.f32.mrb[170].mxu1  ;;  %v9357_v23 = vpop.permute.xlu0 %9356 }
 0xbbe   :  { %v10680_v15 = vpop.f32.mrb[171].mxu1 }
 0xbbf   :  { %v10681_v10 = vadd.f32 %v10680_v15, %v10679_v25  ;;  %v9495_v4 = vadd.f32 %v10678_v58, %v9347_v49 }
 0xbc1   :  { %v9498_v5 = vadd.f32 %v10681_v10, %v9352_v1 }
 0xbc3   :  { %v10682_v19 = vpop.f32.mrb[172].mxu1 }
 0xbc4   :  { %v10683_v63 = vpop.f32.mrb[173].mxu1 }
 0xbc5   :  { %v16477_v37 = vadd.f32 %v10683_v63, %v10682_v19  ;;  %v10685_v9 = vpop.f32.mrb[174].mxu1  ;;  %v9362_v19 = vpop.permute.xlu1 %9361 }
 0xbc6   :  { %v10686_v55 = vpop.f32.mrb[175].mxu1 }
 0xbc7   :  { %v16479_v45 = vadd.f32 %v10686_v55, %v10685_v9  ;;  %v9503_v58 = vadd.f32 %v16477_v37, %v9357_v23 }
 0xbc9   :  { %v9506_v55 = vadd.f32 %v16479_v45, %v9362_v19 }
 0xc2b   :  { %v10704_v30 = vpop.f32.mrb[176].mxu1 }
 0xc2c   :  { %v10705_v6 = vpop.f32.mrb[177].mxu1 }
 0xc2d   :  { %v10706_v43 = vadd.f32 %v10705_v6, %v10704_v30  ;;  %v10707_v0 = vpop.f32.mrb[178].mxu1 }
 0xc2e   :  { %v10708_v33 = vpop.f32.mrb[179].mxu1 }
 0xc2f   :  { %v9544_v32 = vadd.f32 %v10706_v43, %v9479_v38  ;;  %v10709_v47 = vadd.f32 %v10708_v33, %v10707_v0 }
 0xc31   :  { %v9574_v22 = vsub.f32 0.0, %v9544_v32  ;;  %v9547_v20 = vadd.f32 %v10709_v47, %v9482_v56 }
 0xc33   :  { %v9582_v51 = vmul.f32 1.442695, %v9574_v22  ;;  %v9575_v14 = vsub.f32 0.0, %v9547_v20  ;;  %v10710_v42 = vpop.f32.mrb[180].mxu1 }
 0xc34   :  { %v10711_v3 = vpop.f32.mrb[181].mxu1 }
 0xc35   :  { %12230 = vpow2.f32 %v9582_v51  ;;  %v9584_v62 = vmul.f32 1.442695, %v9575_v14  ;;  %v10712_v21 = vadd.f32 %v10711_v3, %v10710_v42  ;;  %v10713_v61 = vpop.f32.mrb[182].mxu1 }
 0xc36   :  { %v10714_v16 = vpop.f32.mrb[183].mxu1 }
 0xc37   :  { %12232 = vpow2.f32 %v9584_v62  ;;  %v9552_v54 = vadd.f32 %v10712_v21, %v9487_v34  ;;  %v10715_v60 = vadd.f32 %v10714_v16, %v10713_v61 }
 0xc39   :  { %v9576_v50 = vsub.f32 0.0, %v9552_v54  ;;  %v9555_v59 = vadd.f32 %v10715_v60, %v9490_v52 }
 0xc3b   :  { %v9586_v29 = vmul.f32 1.442695, %v9576_v50  ;;  %v9577_v2 = vsub.f32 0.0, %v9555_v59  ;;  %v10716_v12 = vpop.f32.mrb[184].mxu1 }
 0xc3c   :  { %v10717_v31 = vpop.f32.mrb[185].mxu1 }
 0xc3d   :  { %12234 = vpow2.f32 %v9586_v29  ;;  %v9588_v17 = vmul.f32 1.442695, %v9577_v2  ;;  %v10718_v28 = vadd.f32 %v10717_v31, %v10716_v12  ;;  %v10719_v7 = vpop.f32.mrb[186].mxu1 }
 0xc3e   :  { %v10720_v48 = vpop.f32.mrb[187].mxu1 }
 0xc3f   :  { %v12231_v35 = vpop.eup %12230  ;;  %12236 = vpow2.f32 %v9588_v17  ;;  %v9560_v57 = vadd.f32 %v10718_v28, %v9495_v4  ;;  %v10721_v36 = vadd.f32 %v10720_v48, %v10719_v7 }
 0xc40   :  { %v9598_v40 = vadd.f32 1.0, %v12231_v35 }
 0xc41   :  { %v12233_v8 = vpop.eup %12232  ;;  %v9578_v26 = vsub.f32 0.0, %v9560_v57  ;;  %v9563_v53 = vadd.f32 %v10721_v36, %v9498_v5 }
 0xc42   :  { %12238 = vrcp.f32 %v9598_v40  ;;  %v9599_v13 = vadd.f32 1.0, %v12233_v8 }
 0xc43   :  { %v9590_v39 = vmul.f32 1.442695, %v9578_v26  ;;  %v9579_v27 = vsub.f32 0.0, %v9563_v53  ;;  %v10722_v18 = vpop.f32.mrb[188].mxu1 }
 0xc44   :  { %12240 = vrcp.f32 %v9599_v13  ;;  %v10723_v11 = vpop.f32.mrb[189].mxu1 }
 0xc45   :  { %12242 = vpow2.f32 %v9590_v39  ;;  %v9592_v25 = vmul.f32 1.442695, %v9579_v27  ;;  %v10724_v15 = vadd.f32 %v10723_v11, %v10722_v18  ;;  %v10725_v10 = vpop.f32.mrb[190].mxu1 }
 0xc46   :  { %v10726_v63 = vpop.f32.mrb[191].mxu1 }
 0xc47   :  { %v12235_v9 = vpop.eup %12234  ;;  %12244 = vpow2.f32 %v9592_v25  ;;  %v9568_v30 = vadd.f32 %v10724_v15, %v9503_v58  ;;  %v10727_v24 = vadd.f32 %v10726_v63, %v10725_v10 }
 0xc48   :  { %v9600_v6 = vadd.f32 1.0, %v12235_v9 }
 0xc49   :  { %v12237_v38 = vpop.eup %12236  ;;  %v9580_v43 = vsub.f32 0.0, %v9568_v30  ;;  %v9571_v0 = vadd.f32 %v10727_v24, %v9506_v55 }
 0xc4a   :  { %12246 = vrcp.f32 %v9600_v6  ;;  %v9601_v46 = vadd.f32 1.0, %v12237_v38 }
 0xc4b   :  { %v9594_v33 = vmul.f32 1.442695, %v9580_v43  ;;  %v9581_v37 = vsub.f32 0.0, %v9571_v0 }
 0xc4c   :  { %v12239_v56 = vpop.eup %12238  ;;  %12248 = vrcp.f32 %v9601_v46 }
 0xc4d   :  { %9614 = vst [vmem:[%s16525_s18] sm:$0xff] %v12239_v56  ;;  %12250 = vpow2.f32 %v9594_v33  ;;  %v9596_v32 = vmul.f32 1.442695, %v9581_v37 }
 0xc4e   :  { %v12241_v45 = vpop.eup %12240 }
 0xc4f   :  { %v12243_v47 = vpop.eup %12242  ;;  %9615 = vst [vmem:[%s16525_s18 + $0x8] sm:$0xff] %v12241_v45  ;;  %12252 = vpow2.f32 %v9596_v32 }
 0xc50   :  { %v9602_v22 = vadd.f32 1.0, %v12243_v47 }
 0xc51   :  { %v12245_v20 = vpop.eup %12244 }
 0xc52   :  { %12254 = vrcp.f32 %v9602_v22  ;;  %v9603_v51 = vadd.f32 1.0, %v12245_v20 }
 0xc54   :  { %v12247_v14 = vpop.eup %12246  ;;  %12256 = vrcp.f32 %v9603_v51 }
 0xc55   :  { %9616 = vst [vmem:[%s16525_s18 + $0x10] sm:$0xff] %v12247_v14 }
 0xc56   :  { %v12249_v42 = vpop.eup %12248 }
 0xc57   :  { %v12251_v44 = vpop.eup %12250  ;;  %9617 = vst [vmem:[%s16525_s18 + $0x18] sm:$0xff] %v12249_v42 }
 0xc58   :  { %v9604_v3 = vadd.f32 1.0, %v12251_v44 }
 0xc59   :  { %v12253_v34 = vpop.eup %12252 }
 0xc5a   :  { %12258 = vrcp.f32 %v9604_v3  ;;  %v9605_v62 = vadd.f32 1.0, %v12253_v34 }
 0xc5c   :  { %v12255_v21 = vpop.eup %12254  ;;  %12260 = vrcp.f32 %v9605_v62 }
 0xc5d   :  { %9618 = vst [vmem:[%s16525_s18 + $0x20] sm:$0xff] %v12255_v21 }
 0xc5e   :  { %v12257_v61 = vpop.eup %12256 }
 0xc5f   :  { %9619 = vst [vmem:[%s16525_s18 + $0x28] sm:$0xff] %v12257_v61 }
 0xc64   :  { %v12259_v41 = vpop.eup %12258 }
 0xc65   :  { %9620 = vst [vmem:[%s16525_s18 + $0x30] sm:$0xff] %v12259_v41 }
 0xc66   :  { %v12261_v16 = vpop.eup %12260 }
 0xc67   :  { %9621 = vst [vmem:[%s16525_s18 + $0x38] sm:$0xff] %v12261_v16 }
 0xc68   :  { %9626 = vsyncpa [#allocation3], 1 }
 0xc69   :  { %9627 = vsyncpa [#allocation5], 1 }

</bundles_post_ra>
